<compile_context>
chip_gen: v5e
topology: v5e:2x2
jax: 0.10.0
libtpu: 0.0.40
codegen_flags: <defaults>
</compile_context>

<pallas_src>
import functools

import jax
import jax.numpy as jnp
from jax.experimental import pallas as pl
from jax.experimental.pallas import tpu as pltpu


def _densegrid_kernel(scale_ref, offset_ref, xyzT_ref, slab_ref,
                      row_xy_ref, row_z_ref, sel_ref, out_ref, *,
                      Nx, Ny, Nz, C):
    # scale/offset: (3,) f32 SMEM, precomputed affine (f = x*scale + offset)
    # xyzT_ref:     (3, T) f32 query points for this tile (points on lanes)
    # slab_ref:     (Nz*C, Nx*Ny) grid, slab[z*C + c, x*Ny + y] = G[c, x, y, z]
    # row_xy_ref:   (Nx*Ny, T) int32 constant, row_xy[r, t] = r
    # row_z_ref:    (Nz*C, T) int32 constant, row_z[j, t] = j // C
    # sel_ref:      (C, Nz*C) f32 constant, sel[c, j] = (j % C == c)
    # out_ref:      (C, T) f32

    def axis_coords(a, n):
        # align_corners=True: f = (x - lo)/(hi - lo) * (n - 1) == x*scale + off
        f = xyzT_ref[a:a + 1, :] * scale_ref[a] + offset_ref[a]      # (1, T)
        i0f = jnp.floor(f)
        w1 = f - i0f
        w0 = 1.0 - w1
        i0 = i0f.astype(jnp.int32)
        i1 = i0 + 1
        # padding_mode='zeros': out-of-range corners contribute nothing.
        v0 = ((i0 >= 0) & (i0 <= n - 1)).astype(jnp.float32)
        v1 = ((i1 >= 0) & (i1 <= n - 1)).astype(jnp.float32)
        return (jnp.clip(i0, 0, n - 1), jnp.clip(i1, 0, n - 1)), (w0 * v0, w1 * v1)

    (ix0, ix1), (wx0, wx1) = axis_coords(0, Nx)
    (iy0, iy1), (wy0, wy1) = axis_coords(1, Ny)
    (iz0, iz1), (wz0, wz1) = axis_coords(2, Nz)

    # --- 1) weighted 4-corner one-hot over the xy plane: (NXY, T) -------------
    # Balanced where-tree, no zero-init / accumulate chain.  Summing the four
    # terms keeps clipped-collision corners correct (the clipped one has w==0).
    row_xy = row_xy_ref[...]
    f00 = ix0 * Ny + iy0
    f01 = ix0 * Ny + iy1
    f10 = ix1 * Ny + iy0
    f11 = ix1 * Ny + iy1
    m00 = jnp.where(row_xy == f00, wx0 * wy0, 0.0)
    m01 = jnp.where(row_xy == f01, wx0 * wy1, 0.0)
    m10 = jnp.where(row_xy == f10, wx1 * wy0, 0.0)
    m11 = jnp.where(row_xy == f11, wx1 * wy1, 0.0)
    mxy = ((m00 + m01) + (m10 + m11)).astype(slab_ref.dtype)  # cast once (bf16 path)

    # --- 2) contract the xy plane on the MXU: (NZC, NXY) @ (NXY, T) -----------
    a_t = jnp.dot(slab_ref[...], mxy, preferred_element_type=jnp.float32)

    # --- 3) fold in the two z corners on the VPU -------------------------------
    row_z = row_z_ref[...]                                           # (NZC, T)
    wz = jnp.where(row_z == iz0, wz0, 0.0) + jnp.where(row_z == iz1, wz1, 0.0)
    p_t = a_t * wz

    # --- 4) sum over z per channel with the constant 0/1 selector matmul ------
    out_ref[...] = jnp.dot(sel_ref[...], p_t,
                           preferred_element_type=jnp.float32).astype(out_ref.dtype)


def pack_dense_grid(grid, matmul_dtype=jnp.float32):
    """One-time repack of the parameter [1, C, Nx, Ny, Nz] into the kernel slab.

    slab[z*C + c, x*Ny + y] = grid[0, c, x, y, z].  Use matmul_dtype=bfloat16 on
    v6e/v7x for ~3x MXU rate and half the slab bandwidth (~1e-2 abs error).
    Do this once per parameter update, not per forward call.
    """
    _, C, Nx, Ny, Nz = grid.shape
    slab = jnp.transpose(grid[0], (3, 0, 1, 2)).reshape(Nz * C, Nx * Ny)
    return slab.astype(matmul_dtype), (C, Nx, Ny, Nz)


def dense_grid_forward_t(pts_t, packed_grid, xyz_min, xyz_max, *, tile_n=1024):
    """Transpose-free entry point: pts_t is (3, N), returns (C, N).

    Production callers should use this layout directly so the wrapper does not
    add an extra HBM read+write pair for pts.T / out.T.
    """
    slab, (C, Nx, Ny, Nz) = packed_grid
    NXY, NZC = Nx * Ny, Nz * C
    assert pts_t.shape[0] == 3

    n = pts_t.shape[1]
    n_pad = pl.cdiv(n, tile_n) * tile_n
    pts_t = pts_t.astype(jnp.float32)
    if n_pad != n:
        pts_t = jnp.pad(pts_t, ((0, 0), (0, n_pad - n)))
    n_tiles = n_pad // tile_n

    # Precomputed affine (removes 3 per-tile (1,T) divides from the kernel).
    # NOTE: assumes xyz_max != xyz_min per axis (same requirement as the module).
    sizes = jnp.array([Nx, Ny, Nz], jnp.float32)
    xyz_min = xyz_min.astype(jnp.float32)
    xyz_max = xyz_max.astype(jnp.float32)
    scale = (sizes - 1.0) / (xyz_max - xyz_min)
    offset = -xyz_min * scale

    # Grid-invariant constants, DMA'd to VMEM once and reused by every tile.
    row_xy = jnp.broadcast_to(
        jnp.arange(NXY, dtype=jnp.int32)[:, None], (NXY, tile_n))
    row_z = jnp.broadcast_to(
        (jnp.arange(NZC, dtype=jnp.int32) // C)[:, None], (NZC, tile_n))
    sel = (jnp.arange(NZC, dtype=jnp.int32)[None, :] % C ==
           jnp.arange(C, dtype=jnp.int32)[:, None]).astype(jnp.float32)

    kernel = functools.partial(_densegrid_kernel, Nx=Nx, Ny=Ny, Nz=Nz, C=C)

    flops_per_tile = 2 * NZC * NXY * tile_n + 2 * C * NZC * tile_n
    bytes_accessed = ((3 + C) * 4 * n_pad
                      + int(slab.size) * slab.dtype.itemsize
                      + int(row_xy.size) * 4 + int(row_z.size) * 4
                      + int(sel.size) * 4)
    cost = pl.CostEstimate(flops=int(flops_per_tile * n_tiles),
                           transcendentals=0,
                           bytes_accessed=int(bytes_accessed))

    out_t = pl.pallas_call(
        kernel,
        out_shape=jax.ShapeDtypeStruct((C, n_pad), jnp.float32),
        grid=(n_tiles,),
        in_specs=[
            pl.BlockSpec(memory_space=pltpu.MemorySpace.SMEM),   # scale (3,)
            pl.BlockSpec(memory_space=pltpu.MemorySpace.SMEM),   # offset (3,)
            pl.BlockSpec((3, tile_n), lambda i: (0, i)),         # points tile
            pl.BlockSpec(memory_space=pltpu.MemorySpace.VMEM),   # grid slab
            pl.BlockSpec(memory_space=pltpu.MemorySpace.VMEM),   # row_xy const
            pl.BlockSpec(memory_space=pltpu.MemorySpace.VMEM),   # row_z const
            pl.BlockSpec(memory_space=pltpu.MemorySpace.VMEM),   # sel const
        ],
        out_specs=pl.BlockSpec((C, tile_n), lambda i: (0, i)),   # lane-dense out
        compiler_params=pltpu.CompilerParams(
            dimension_semantics=("parallel",),   # point-tile axis: megacore on v7x
            vmem_limit_bytes=32 << 20),
        cost_estimate=cost,
    )(scale, offset, pts_t, slab, row_xy, row_z, sel)

    return out_t[:, :n]


def dense_grid_forward(xyz, packed_grid, xyz_min, xyz_max, *, tile_n=1024):
    """Module-equivalent API: xyz (*shape, 3) -> (*shape, C)."""
    C = packed_grid[1][0]
    batch_shape = xyz.shape[:-1]
    assert xyz.shape[-1] == 3
    pts_t = xyz.reshape(-1, 3).astype(jnp.float32).T          # (3, N), lane-dense
    out_t = dense_grid_forward_t(pts_t, packed_grid, xyz_min, xyz_max,
                                 tile_n=tile_n)
    return out_t.T.reshape(*batch_shape, C)


def _reference_forward(xyz, grid, xyz_min, xyz_max):
    """Pure-JAX trilinear grid_sample (align_corners=True, zeros padding)."""
    C = grid.shape[1]
    Nx, Ny, Nz = grid.shape[2:]
    shape = xyz.shape[:-1]
    p = xyz.reshape(-1, 3).astype(jnp.float32)
    sizes = jnp.array([Nx, Ny, Nz], jnp.float32)
    t = (p - xyz_min) / (xyz_max - xyz_min)
    f = t * (sizes - 1.0)
    i0 = jnp.floor(f).astype(jnp.int32)
    w1 = f - i0.astype(jnp.float32)
    w0 = 1.0 - w1
    g = grid[0]  # (C, Nx, Ny, Nz)
    hi = jnp.array([Nx - 1, Ny - 1, Nz - 1], jnp.int32)
    out = jnp.zeros((p.shape[0], C), jnp.float32)
    for dx in (0, 1):
        for dy in (0, 1):
            for dz in (0, 1):
                d = jnp.array([dx, dy, dz], jnp.int32)
                ii = i0 + d
                valid = jnp.all((ii >= 0) & (ii <= hi), axis=-1).astype(jnp.float32)
                iic = jnp.clip(ii, 0, hi)
                vals = g[:, iic[:, 0], iic[:, 1], iic[:, 2]].T       # (N, C)
                wsel = jnp.where(d == 0, w0, w1)                     # (N, 3)
                w = jnp.prod(wsel, axis=-1) * valid                  # (N,)
                out = out + vals * w[:, None]
    return out.reshape(*shape, C)


if __name__ == "__main__":
    key = jax.random.PRNGKey(0)
    k_grid, k_xyz = jax.random.split(key)

    channels = 4
    world_size = (16, 16, 16)

    # Deterministic synthetic parameter (module __init__ uses torch.ones; a seeded
    # random grid exercises the interpolation more meaningfully).
    grid = jax.random.normal(k_grid, (1, channels, *world_size), jnp.float32)

    # set_aabb equivalent
    xyz_min = jnp.array([-1.0, -1.0, -1.0], jnp.float32)
    xyz_max = jnp.array([1.0, 1.0, 1.0], jnp.float32)

    # Query points (*shape, 3), a few slightly outside the AABB to hit the
    # zeros-padding path.
    xyz = jax.random.uniform(k_xyz, (2, 8, 8, 3), jnp.float32,
                             minval=-1.1, maxval=1.1)

    ref = _reference_forward(xyz, grid, xyz_min, xyz_max)

    # f32 path (default): module-accurate numerics.
    packed_f32 = pack_dense_grid(grid)                    # hoisted out of call path
    out = dense_grid_forward(xyz, packed_f32, xyz_min, xyz_max)
    out = jax.block_until_ready(out)
    assert out.shape == (2, 8, 8, channels), out.shape
    max_err = float(jnp.max(jnp.abs(out - ref)))
    assert max_err < 1e-4, f"f32 path max abs err {max_err}"

    # bf16-operand path (v6e/v7x MXU-rate / bandwidth optimization); looser tol.
    packed_bf16 = pack_dense_grid(grid, matmul_dtype=jnp.bfloat16)
    out_bf16 = dense_grid_forward(xyz, packed_bf16, xyz_min, xyz_max)
    out_bf16 = jax.block_until_ready(out_bf16)
    max_err_bf16 = float(jnp.max(jnp.abs(out_bf16 - ref)))
    assert max_err_bf16 < 5e-2, f"bf16 path max abs err {max_err_bf16}"

    print("KERNEL_OK")
</pallas_src>

<mosaic_0001>
module attributes {stable_mosaic.version = 11 : i64} {
  func.func @_densegrid_kernel(%arg0: i32, %arg1: memref<3xf32, #tpu.memory_space<smem>>, %arg2: memref<3xf32, #tpu.memory_space<smem>>, %arg3: memref<3x1024xf32, #tpu.memory_space<vmem>>, %arg4: memref<64x256xf32, #tpu.memory_space<vmem>>, %arg5: memref<256x1024xi32, #tpu.memory_space<vmem>>, %arg6: memref<64x1024xi32, #tpu.memory_space<vmem>>, %arg7: memref<4x64xf32, #tpu.memory_space<vmem>>, %arg8: memref<4x1024xf32, #tpu.memory_space<vmem>>) attributes {dimension_semantics = [#tpu.dimension_semantics<parallel>], iteration_bounds = array<i64: 1>, scalar_prefetch = 0 : i64, scratch_operands = 0 : i64, tpu.core_type = #tpu.core_type<tc>, window_params = [{transform_indices = @transform_0, window_bounds = array<i64: 3>}, {transform_indices = @transform_1, window_bounds = array<i64: 3>}, {transform_indices = @transform_2, window_bounds = array<i64: 3, 1024>}, {pipeline_mode = #tpu.pipeline_mode<synchronous>, transform_indices = @transform_3, window_bounds = array<i64: 64, 256>}, {pipeline_mode = #tpu.pipeline_mode<synchronous>, transform_indices = @transform_4, window_bounds = array<i64: 256, 1024>}, {pipeline_mode = #tpu.pipeline_mode<synchronous>, transform_indices = @transform_5, window_bounds = array<i64: 64, 1024>}, {pipeline_mode = #tpu.pipeline_mode<synchronous>, transform_indices = @transform_6, window_bounds = array<i64: 4, 64>}, {transform_indices = @transform_7, window_bounds = array<i64: 4, 1024>}]} {
    %c0 = arith.constant 0 : index
    %c0_0 = arith.constant 0 : index
    %0 = vector.load %arg3[%c0, %c0_0] : memref<3x1024xf32, #tpu.memory_space<vmem>>, vector<1x1024xf32>
    %c0_1 = arith.constant 0 : index
    %1 = memref.load %arg1[%c0_1] : memref<3xf32, #tpu.memory_space<smem>>
    %2 = vector.broadcast %1 : f32 to vector<1x1024xf32>
    %3 = arith.mulf %0, %2 : vector<1x1024xf32>
    %c0_2 = arith.constant 0 : index
    %4 = memref.load %arg2[%c0_2] : memref<3xf32, #tpu.memory_space<smem>>
    %5 = vector.broadcast %4 : f32 to vector<1x1024xf32>
    %6 = arith.addf %3, %5 : vector<1x1024xf32>
    %7 = math.floor %6 : vector<1x1024xf32>
    %8 = arith.subf %6, %7 : vector<1x1024xf32>
    %cst = arith.constant 1.000000e+00 : f32
    %9 = vector.broadcast %cst : f32 to vector<1x1024xf32>
    %10 = arith.subf %9, %8 : vector<1x1024xf32>
    %11 = arith.fptosi %7 : vector<1x1024xf32> to vector<1x1024xi32>
    %c1_i32 = arith.constant 1 : i32
    %12 = vector.broadcast %c1_i32 : i32 to vector<1x1024xi32>
    %13 = arith.addi %11, %12 : vector<1x1024xi32>
    %c0_i32 = arith.constant 0 : i32
    %14 = vector.broadcast %c0_i32 : i32 to vector<1x1024xi32>
    %15 = arith.cmpi sge, %11, %14 : vector<1x1024xi32>
    %c15_i32 = arith.constant 15 : i32
    %16 = vector.broadcast %c15_i32 : i32 to vector<1x1024xi32>
    %17 = arith.cmpi sle, %11, %16 : vector<1x1024xi32>
    %18 = arith.andi %15, %17 : vector<1x1024xi1>
    %19 = arith.extui %18 : vector<1x1024xi1> to vector<1x1024xi32>
    %20 = arith.sitofp %19 : vector<1x1024xi32> to vector<1x1024xf32>
    %c0_i32_3 = arith.constant 0 : i32
    %21 = vector.broadcast %c0_i32_3 : i32 to vector<1x1024xi32>
    %22 = arith.cmpi sge, %13, %21 : vector<1x1024xi32>
    %c15_i32_4 = arith.constant 15 : i32
    %23 = vector.broadcast %c15_i32_4 : i32 to vector<1x1024xi32>
    %24 = arith.cmpi sle, %13, %23 : vector<1x1024xi32>
    %25 = arith.andi %22, %24 : vector<1x1024xi1>
    %26 = arith.extui %25 : vector<1x1024xi1> to vector<1x1024xi32>
    %27 = arith.sitofp %26 : vector<1x1024xi32> to vector<1x1024xf32>
    %c0_i32_5 = arith.constant 0 : i32
    %c15_i32_6 = arith.constant 15 : i32
    %28 = vector.broadcast %c0_i32_5 : i32 to vector<1x1024xi32>
    %29 = arith.maxsi %28, %11 : vector<1x1024xi32>
    %30 = vector.broadcast %c15_i32_6 : i32 to vector<1x1024xi32>
    %31 = arith.minsi %30, %29 : vector<1x1024xi32>
    %c0_i32_7 = arith.constant 0 : i32
    %c15_i32_8 = arith.constant 15 : i32
    %32 = vector.broadcast %c0_i32_7 : i32 to vector<1x1024xi32>
    %33 = arith.maxsi %32, %13 : vector<1x1024xi32>
    %34 = vector.broadcast %c15_i32_8 : i32 to vector<1x1024xi32>
    %35 = arith.minsi %34, %33 : vector<1x1024xi32>
    %36 = arith.mulf %10, %20 : vector<1x1024xf32>
    %37 = arith.mulf %8, %27 : vector<1x1024xf32>
    %c1 = arith.constant 1 : index
    %c0_9 = arith.constant 0 : index
    %38 = vector.load %arg3[%c1, %c0_9] : memref<3x1024xf32, #tpu.memory_space<vmem>>, vector<1x1024xf32>
    %c1_10 = arith.constant 1 : index
    %39 = memref.load %arg1[%c1_10] : memref<3xf32, #tpu.memory_space<smem>>
    %40 = vector.broadcast %39 : f32 to vector<1x1024xf32>
    %41 = arith.mulf %38, %40 : vector<1x1024xf32>
    %c1_11 = arith.constant 1 : index
    %42 = memref.load %arg2[%c1_11] : memref<3xf32, #tpu.memory_space<smem>>
    %43 = vector.broadcast %42 : f32 to vector<1x1024xf32>
    %44 = arith.addf %41, %43 : vector<1x1024xf32>
    %45 = math.floor %44 : vector<1x1024xf32>
    %46 = arith.subf %44, %45 : vector<1x1024xf32>
    %cst_12 = arith.constant 1.000000e+00 : f32
    %47 = vector.broadcast %cst_12 : f32 to vector<1x1024xf32>
    %48 = arith.subf %47, %46 : vector<1x1024xf32>
    %49 = arith.fptosi %45 : vector<1x1024xf32> to vector<1x1024xi32>
    %c1_i32_13 = arith.constant 1 : i32
    %50 = vector.broadcast %c1_i32_13 : i32 to vector<1x1024xi32>
    %51 = arith.addi %49, %50 : vector<1x1024xi32>
    %c0_i32_14 = arith.constant 0 : i32
    %52 = vector.broadcast %c0_i32_14 : i32 to vector<1x1024xi32>
    %53 = arith.cmpi sge, %49, %52 : vector<1x1024xi32>
    %c15_i32_15 = arith.constant 15 : i32
    %54 = vector.broadcast %c15_i32_15 : i32 to vector<1x1024xi32>
    %55 = arith.cmpi sle, %49, %54 : vector<1x1024xi32>
    %56 = arith.andi %53, %55 : vector<1x1024xi1>
    %57 = arith.extui %56 : vector<1x1024xi1> to vector<1x1024xi32>
    %58 = arith.sitofp %57 : vector<1x1024xi32> to vector<1x1024xf32>
    %c0_i32_16 = arith.constant 0 : i32
    %59 = vector.broadcast %c0_i32_16 : i32 to vector<1x1024xi32>
    %60 = arith.cmpi sge, %51, %59 : vector<1x1024xi32>
    %c15_i32_17 = arith.constant 15 : i32
    %61 = vector.broadcast %c15_i32_17 : i32 to vector<1x1024xi32>
    %62 = arith.cmpi sle, %51, %61 : vector<1x1024xi32>
    %63 = arith.andi %60, %62 : vector<1x1024xi1>
    %64 = arith.extui %63 : vector<1x1024xi1> to vector<1x1024xi32>
    %65 = arith.sitofp %64 : vector<1x1024xi32> to vector<1x1024xf32>
    %c0_i32_18 = arith.constant 0 : i32
    %c15_i32_19 = arith.constant 15 : i32
    %66 = vector.broadcast %c0_i32_18 : i32 to vector<1x1024xi32>
    %67 = arith.maxsi %66, %49 : vector<1x1024xi32>
    %68 = vector.broadcast %c15_i32_19 : i32 to vector<1x1024xi32>
    %69 = arith.minsi %68, %67 : vector<1x1024xi32>
    %c0_i32_20 = arith.constant 0 : i32
    %c15_i32_21 = arith.constant 15 : i32
    %70 = vector.broadcast %c0_i32_20 : i32 to vector<1x1024xi32>
    %71 = arith.maxsi %70, %51 : vector<1x1024xi32>
    %72 = vector.broadcast %c15_i32_21 : i32 to vector<1x1024xi32>
    %73 = arith.minsi %72, %71 : vector<1x1024xi32>
    %74 = arith.mulf %48, %58 : vector<1x1024xf32>
    %75 = arith.mulf %46, %65 : vector<1x1024xf32>
    %c2 = arith.constant 2 : index
    %c0_22 = arith.constant 0 : index
    %76 = vector.load %arg3[%c2, %c0_22] : memref<3x1024xf32, #tpu.memory_space<vmem>>, vector<1x1024xf32>
    %c2_23 = arith.constant 2 : index
    %77 = memref.load %arg1[%c2_23] : memref<3xf32, #tpu.memory_space<smem>>
    %78 = vector.broadcast %77 : f32 to vector<1x1024xf32>
    %79 = arith.mulf %76, %78 : vector<1x1024xf32>
    %c2_24 = arith.constant 2 : index
    %80 = memref.load %arg2[%c2_24] : memref<3xf32, #tpu.memory_space<smem>>
    %81 = vector.broadcast %80 : f32 to vector<1x1024xf32>
    %82 = arith.addf %79, %81 : vector<1x1024xf32>
    %83 = math.floor %82 : vector<1x1024xf32>
    %84 = arith.subf %82, %83 : vector<1x1024xf32>
    %cst_25 = arith.constant 1.000000e+00 : f32
    %85 = vector.broadcast %cst_25 : f32 to vector<1x1024xf32>
    %86 = arith.subf %85, %84 : vector<1x1024xf32>
    %87 = arith.fptosi %83 : vector<1x1024xf32> to vector<1x1024xi32>
    %c1_i32_26 = arith.constant 1 : i32
    %88 = vector.broadcast %c1_i32_26 : i32 to vector<1x1024xi32>
    %89 = arith.addi %87, %88 : vector<1x1024xi32>
    %c0_i32_27 = arith.constant 0 : i32
    %90 = vector.broadcast %c0_i32_27 : i32 to vector<1x1024xi32>
    %91 = arith.cmpi sge, %87, %90 : vector<1x1024xi32>
    %c15_i32_28 = arith.constant 15 : i32
    %92 = vector.broadcast %c15_i32_28 : i32 to vector<1x1024xi32>
    %93 = arith.cmpi sle, %87, %92 : vector<1x1024xi32>
    %94 = arith.andi %91, %93 : vector<1x1024xi1>
    %95 = arith.extui %94 : vector<1x1024xi1> to vector<1x1024xi32>
    %96 = arith.sitofp %95 : vector<1x1024xi32> to vector<1x1024xf32>
    %c0_i32_29 = arith.constant 0 : i32
    %97 = vector.broadcast %c0_i32_29 : i32 to vector<1x1024xi32>
    %98 = arith.cmpi sge, %89, %97 : vector<1x1024xi32>
    %c15_i32_30 = arith.constant 15 : i32
    %99 = vector.broadcast %c15_i32_30 : i32 to vector<1x1024xi32>
    %100 = arith.cmpi sle, %89, %99 : vector<1x1024xi32>
    %101 = arith.andi %98, %100 : vector<1x1024xi1>
    %102 = arith.extui %101 : vector<1x1024xi1> to vector<1x1024xi32>
    %103 = arith.sitofp %102 : vector<1x1024xi32> to vector<1x1024xf32>
    %c0_i32_31 = arith.constant 0 : i32
    %c15_i32_32 = arith.constant 15 : i32
    %104 = vector.broadcast %c0_i32_31 : i32 to vector<1x1024xi32>
    %105 = arith.maxsi %104, %87 : vector<1x1024xi32>
    %106 = vector.broadcast %c15_i32_32 : i32 to vector<1x1024xi32>
    %107 = arith.minsi %106, %105 : vector<1x1024xi32>
    %c0_i32_33 = arith.constant 0 : i32
    %c15_i32_34 = arith.constant 15 : i32
    %108 = vector.broadcast %c0_i32_33 : i32 to vector<1x1024xi32>
    %109 = arith.maxsi %108, %89 : vector<1x1024xi32>
    %110 = vector.broadcast %c15_i32_34 : i32 to vector<1x1024xi32>
    %111 = arith.minsi %110, %109 : vector<1x1024xi32>
    %112 = arith.mulf %86, %96 : vector<1x1024xf32>
    %113 = arith.mulf %84, %103 : vector<1x1024xf32>
    %c0_35 = arith.constant 0 : index
    %c0_36 = arith.constant 0 : index
    %114 = vector.load %arg5[%c0_35, %c0_36] : memref<256x1024xi32, #tpu.memory_space<vmem>>, vector<256x1024xi32>
    %c16_i32 = arith.constant 16 : i32
    %115 = vector.broadcast %c16_i32 : i32 to vector<1x1024xi32>
    %116 = arith.muli %31, %115 : vector<1x1024xi32>
    %117 = arith.addi %116, %69 : vector<1x1024xi32>
    %c16_i32_37 = arith.constant 16 : i32
    %118 = vector.broadcast %c16_i32_37 : i32 to vector<1x1024xi32>
    %119 = arith.muli %31, %118 : vector<1x1024xi32>
    %120 = arith.addi %119, %73 : vector<1x1024xi32>
    %c16_i32_38 = arith.constant 16 : i32
    %121 = vector.broadcast %c16_i32_38 : i32 to vector<1x1024xi32>
    %122 = arith.muli %35, %121 : vector<1x1024xi32>
    %123 = arith.addi %122, %69 : vector<1x1024xi32>
    %c16_i32_39 = arith.constant 16 : i32
    %124 = vector.broadcast %c16_i32_39 : i32 to vector<1x1024xi32>
    %125 = arith.muli %35, %124 : vector<1x1024xi32>
    %126 = arith.addi %125, %73 : vector<1x1024xi32>
    %127 = vector.broadcast %117 : vector<1x1024xi32> to vector<256x1024xi32>
    %128 = arith.cmpi eq, %114, %127 : vector<256x1024xi32>
    %129 = arith.mulf %36, %74 : vector<1x1024xf32>
    %cst_40 = arith.constant 0.000000e+00 : f32
    %130 = vector.shape_cast %129 : vector<1x1024xf32> to vector<1x1024xf32>
    %131 = vector.broadcast %130 : vector<1x1024xf32> to vector<256x1024xf32>
    %132 = vector.broadcast %cst_40 : f32 to vector<256x1024xf32>
    %133 = arith.select %128, %131, %132 : vector<256x1024xi1>, vector<256x1024xf32>
    %134 = vector.broadcast %120 : vector<1x1024xi32> to vector<256x1024xi32>
    %135 = arith.cmpi eq, %114, %134 : vector<256x1024xi32>
    %136 = arith.mulf %36, %75 : vector<1x1024xf32>
    %cst_41 = arith.constant 0.000000e+00 : f32
    %137 = vector.shape_cast %136 : vector<1x1024xf32> to vector<1x1024xf32>
    %138 = vector.broadcast %137 : vector<1x1024xf32> to vector<256x1024xf32>
    %139 = vector.broadcast %cst_41 : f32 to vector<256x1024xf32>
    %140 = arith.select %135, %138, %139 : vector<256x1024xi1>, vector<256x1024xf32>
    %141 = vector.broadcast %123 : vector<1x1024xi32> to vector<256x1024xi32>
    %142 = arith.cmpi eq, %114, %141 : vector<256x1024xi32>
    %143 = arith.mulf %37, %74 : vector<1x1024xf32>
    %cst_42 = arith.constant 0.000000e+00 : f32
    %144 = vector.shape_cast %143 : vector<1x1024xf32> to vector<1x1024xf32>
    %145 = vector.broadcast %144 : vector<1x1024xf32> to vector<256x1024xf32>
    %146 = vector.broadcast %cst_42 : f32 to vector<256x1024xf32>
    %147 = arith.select %142, %145, %146 : vector<256x1024xi1>, vector<256x1024xf32>
    %148 = vector.broadcast %126 : vector<1x1024xi32> to vector<256x1024xi32>
    %149 = arith.cmpi eq, %114, %148 : vector<256x1024xi32>
    %150 = arith.mulf %37, %75 : vector<1x1024xf32>
    %cst_43 = arith.constant 0.000000e+00 : f32
    %151 = vector.shape_cast %150 : vector<1x1024xf32> to vector<1x1024xf32>
    %152 = vector.broadcast %151 : vector<1x1024xf32> to vector<256x1024xf32>
    %153 = vector.broadcast %cst_43 : f32 to vector<256x1024xf32>
    %154 = arith.select %149, %152, %153 : vector<256x1024xi1>, vector<256x1024xf32>
    %155 = arith.addf %133, %140 : vector<256x1024xf32>
    %156 = arith.addf %147, %154 : vector<256x1024xf32>
    %157 = arith.addf %155, %156 : vector<256x1024xf32>
    %c0_44 = arith.constant 0 : index
    %c0_45 = arith.constant 0 : index
    %158 = vector.load %arg4[%c0_44, %c0_45] : memref<64x256xf32, #tpu.memory_space<vmem>>, vector<64x256xf32>
    %cst_46 = arith.constant dense<0.000000e+00> : vector<64x1024xf32>
    %159 = tpu.matmul %158, %157, %cst_46 {dimension_numbers = #tpu.dot_dimension_numbers<[1], [0], [0], [1], [0, 0, 1, 1], [], []>} : vector<64x256xf32>, vector<256x1024xf32>, vector<64x1024xf32> -> vector<64x1024xf32>
    %c0_47 = arith.constant 0 : index
    %c0_48 = arith.constant 0 : index
    %160 = vector.load %arg6[%c0_47, %c0_48] : memref<64x1024xi32, #tpu.memory_space<vmem>>, vector<64x1024xi32>
    %161 = vector.broadcast %107 : vector<1x1024xi32> to vector<64x1024xi32>
    %162 = arith.cmpi eq, %160, %161 : vector<64x1024xi32>
    %cst_49 = arith.constant 0.000000e+00 : f32
    %163 = vector.shape_cast %112 : vector<1x1024xf32> to vector<1x1024xf32>
    %164 = vector.broadcast %163 : vector<1x1024xf32> to vector<64x1024xf32>
    %165 = vector.broadcast %cst_49 : f32 to vector<64x1024xf32>
    %166 = arith.select %162, %164, %165 : vector<64x1024xi1>, vector<64x1024xf32>
    %167 = vector.broadcast %111 : vector<1x1024xi32> to vector<64x1024xi32>
    %168 = arith.cmpi eq, %160, %167 : vector<64x1024xi32>
    %cst_50 = arith.constant 0.000000e+00 : f32
    %169 = vector.shape_cast %113 : vector<1x1024xf32> to vector<1x1024xf32>
    %170 = vector.broadcast %169 : vector<1x1024xf32> to vector<64x1024xf32>
    %171 = vector.broadcast %cst_50 : f32 to vector<64x1024xf32>
    %172 = arith.select %168, %170, %171 : vector<64x1024xi1>, vector<64x1024xf32>
    %173 = arith.addf %166, %172 : vector<64x1024xf32>
    %174 = arith.mulf %159, %173 : vector<64x1024xf32>
    %c0_51 = arith.constant 0 : index
    %c0_52 = arith.constant 0 : index
    %175 = vector.load %arg7[%c0_51, %c0_52] : memref<4x64xf32, #tpu.memory_space<vmem>>, vector<4x64xf32>
    %cst_53 = arith.constant dense<0.000000e+00> : vector<4x1024xf32>
    %176 = tpu.matmul %175, %174, %cst_53 {dimension_numbers = #tpu.dot_dimension_numbers<[1], [0], [0], [1], [0, 0, 1, 1], [], []>} : vector<4x64xf32>, vector<64x1024xf32>, vector<4x1024xf32> -> vector<4x1024xf32>
    %c0_54 = arith.constant 0 : index
    %c0_55 = arith.constant 0 : index
    %177 = vector.load %arg8[%c0_54, %c0_55] : memref<4x1024xf32, #tpu.memory_space<vmem>>, vector<4x1024xf32>
    tpu.vector_store %arg8[%c0_54, %c0_55], %176 {strides = array<i32>} : memref<4x1024xf32, #tpu.memory_space<vmem>>, vector<4x1024xf32>,
    return
  }
  func.func @transform_0(%arg0: i32) -> i32 {
    %c0_i32 = arith.constant 0 : i32
    %c0_i32_0 = arith.constant 0 : i32
    return %c0_i32 : i32
  }
  func.func @transform_1(%arg0: i32) -> i32 {
    %c0_i32 = arith.constant 0 : i32
    %c0_i32_0 = arith.constant 0 : i32
    return %c0_i32 : i32
  }
  func.func @transform_2(%arg0: i32) -> (i32, i32) {
    %c0_i32 = arith.constant 0 : i32
    %c0_i32_0 = arith.constant 0 : i32
    return %c0_i32, %arg0 : i32, i32
  }
  func.func @transform_3(%arg0: i32) -> (i32, i32) {
    %c0_i32 = arith.constant 0 : i32
    %c0_i32_0 = arith.constant 0 : i32
    %c0_i32_1 = arith.constant 0 : i32
    return %c0_i32, %c0_i32_0 : i32, i32
  }
  func.func @transform_4(%arg0: i32) -> (i32, i32) {
    %c0_i32 = arith.constant 0 : i32
    %c0_i32_0 = arith.constant 0 : i32
    %c0_i32_1 = arith.constant 0 : i32
    return %c0_i32, %c0_i32_0 : i32, i32
  }
  func.func @transform_5(%arg0: i32) -> (i32, i32) {
    %c0_i32 = arith.constant 0 : i32
    %c0_i32_0 = arith.constant 0 : i32
    %c0_i32_1 = arith.constant 0 : i32
    return %c0_i32, %c0_i32_0 : i32, i32
  }
  func.func @transform_6(%arg0: i32) -> (i32, i32) {
    %c0_i32 = arith.constant 0 : i32
    %c0_i32_0 = arith.constant 0 : i32
    %c0_i32_1 = arith.constant 0 : i32
    return %c0_i32, %c0_i32_0 : i32, i32
  }
  func.func @transform_7(%arg0: i32) -> (i32, i32) {
    %c0_i32 = arith.constant 0 : i32
    %c0_i32_0 = arith.constant 0 : i32
    return %c0_i32, %arg0 : i32, i32
  }
}

</mosaic_0001>

<bundles_post_ra>
// kernel: tpu_custom_call.1
= control target key start
LH: loop header
LB: loop body
LE: loop exit
PB: predicated region body
PF: predicated region fallthrough
CT: control target
= control target key end

     0   :  { %12 = vsyncpa [#allocation5], 0  ;;  %s8515_s0 = inlined_call_operand.hbm [shape: f32[3], index: 0, kind: input, shape index: {}]   ;;  %s8516_s1 = inlined_call_operand.hbm [shape: f32[3], index: 1, kind: input, shape index: {}]   ;;  %s8517_s2 = inlined_call_operand.hbm [shape: f32[3,1024], index: 2, kind: input, shape index: {}]   ;;  %s8518_s3 = inlined_call_operand.hbm [shape: f32[64,256], index: 3, kind: input, shape index: {}]   ;;  %s8519_s4 = inlined_call_operand.hbm [shape: s32[256,1024], index: 4, kind: input, shape index: {}]   ;;  %s8520_s5 = inlined_call_operand.hbm [shape: s32[64,1024], index: 5, kind: input, shape index: {}]   ;;  %s8521_s6 = inlined_call_operand.vmem [shape: f32[4,64], index: 6, kind: input, shape index: {}]   ;;  %s8522_s7 = inlined_call_operand.hbm [shape: f32[4,1024], index: 7, kind: output, shape index: {}]  }
   0x1   :  { %13 = vsyncpa [#allocation7], 0 }
   0x2   :  { %14 = vsyncpa [#allocation3], 0 }
   0x3   :  { %15 = vsyncpa [#allocation10], 0 }
   0x4   :  { %16 = vsyncpa [#allocation13], 0  ;;  %s51_s26 = sshll.u32 %s8518_s3, 4  ;;  %s52_s26 = int_to_ptr.hbm [resolvable:$true] %s51_s26 }
   0x5   :  { %17 = vsyncpa [#allocation4], 0  ;;  %s5014_s27 = smov [#allocation9]   ;;  %s23_s8 = sshll.u32 %s8515_s0, 4  ;;  %s24_s8 = int_to_ptr.hbm [resolvable:$true] %s23_s8 }
   0x6   :  { %s53_s28 = sshll.u32 %s5014_s27, 4  ;;  %s5015_s9 = smov 256   ;;  %s54_s28 = int_to_ptr.vmem [resolvable:$true] %s53_s28 }
   0x7   :  { %s5016_s10 = smov 16   ;;  %s5017_s11 = smov [#allocation2]  }
   0x8   :  { %59 = dma.hbm_to_vmem [thread:$0]  %s52_s26, 2048, %s54_s28, [#allocation10], %s5015_s9, %s5015_s9, %s5016_s10  }
   0x9   :  { %26 = dma.hbm_to_smem %s24_s8, 16, %s5017_s11, [#allocation5]  }
   0xa   :  { %s32_s14 = sshll.u32 %s8516_s1, 4  ;;  %s41_s16 = sshll.u32 %s8517_s2, 4  ;;  %s33_s14 = int_to_ptr.hbm [resolvable:$true] %s32_s14  ;;  %s42_s16 = int_to_ptr.hbm [resolvable:$true] %s41_s16 }
   0xb   :  { %s5018_s17 = smov [#allocation6]   ;;  %s5019_s18 = smov [#allocation8]  }
   0xc   :  { %35 = dma.hbm_to_smem %s33_s14, 16, %s5018_s17, [#allocation7]  }
   0xd   :  { %s43_s0 = sshll.u32 %s5019_s18, 4  ;;  %s64_s21 = sshll.u32 %s8519_s4, 4  ;;  %s44_s0 = int_to_ptr.vmem [resolvable:$true] %s43_s0  ;;  %s65_s21 = int_to_ptr.hbm [resolvable:$true] %s64_s21 }
   0xe   :  { %46 = dma.hbm_to_vmem [thread:$0]  %s42_s16, 512, %s44_s0, [#allocation3]  }
   0xf   :  { %s5020_s22 = smov [#allocation11]   ;;  %s77_s25 = sshll.u32 %s8520_s5, 4  ;;  %s78_s25 = int_to_ptr.hbm [resolvable:$true] %s77_s25 }
  0x10   :  { %s66_s23 = sshll.u32 %s5020_s22, 4  ;;  %s5021_s2 = smov 1024   ;;  %s67_s23 = int_to_ptr.vmem [resolvable:$true] %s66_s23 }
  0x11   :  { %s5022_s26 = smov 64   ;;  %s5023_s27 = smov [#allocation12]  }
  0x12   :  { %72 = dma.hbm_to_vmem [thread:$0]  %s65_s21, 32768, %s67_s23, [#allocation10], %s5021_s2, %s5021_s2, %s5022_s26  }
  0x13   :  { %s79_s28 = sshll.u32 %s5023_s27, 4  ;;  %s80_s28 = int_to_ptr.vmem [resolvable:$true] %s79_s28 }
  0x14   :  { %85 = dma.hbm_to_vmem [thread:$0]  %s78_s25, 8192, %s80_s28, [#allocation13], %s5021_s2, %s5021_s2, %s5022_s26  }
  0x15   :  { %5002 = dma.done.wait [#allocation5], 16  }
  0x16   :  { %5003 = vsyncadd [#allocation5], 4294967280 }
  0x17   :  { %5004 = dma.done.wait [#allocation7], 16  }
  0x18   :  { %5005 = vsyncadd [#allocation7], 4294967280 }
  0x19   :  { %5006 = dma.done.wait [#allocation3], 512  }
  0x1a   :  { %5007 = vsyncadd [#allocation3], 4294966784 }
  0x1b   :  { %5008 = dma.done.wait [#allocation10], 34816  }
  0x1c   :  { %5009 = vsyncadd [#allocation10], 4294932480 }
  0x1d   :  { %5010 = dma.done.wait [#allocation13], 8192  }
  0x1e   :  { %5011 = vsyncadd [#allocation13], 4294959104 }
  0x1f   :  { %112 = sfence }
  0x20   :  { %s114_s4 = sld [smem:[#allocation2]]  ;;  %v113_v0 = vld [vmem:[#allocation8] ss:$4 sm:$0xff]  ;;  %v146_v2 = vld [vmem:[#allocation8 + $0x1] ss:$4 sm:$0xff]  ;;  %v5024_v18 = vmov 0.0  }
  0x21   :  { %s117_s5 = sld [smem:[#allocation6]]  ;;  %v331_v42 = vld [vmem:[#allocation11 + $0x3c0] sm:$0xff]  ;;  %v332_v59 = vld [vmem:[#allocation11 + $0x3c8] sm:$0xff]  ;;  %s4760_s3 = sshll.u32 %s8522_s7, 4  ;;  %s4761_s3 = int_to_ptr.hbm [resolvable:$true] %s4760_s3 }
  0x22   :  { %s4776_s29 = sld [smem:[#allocation2 + $0x1]]  ;;  %v459_v47 = vld [vmem:[#allocation11 + $0x7c0] sm:$0xff] }
  0x23   :  { %s4777_s30 = sld [smem:[#allocation6 + $0x1]] }
  0x24   :  { %s6782_s8 = sld [smem:[#allocation2 + $0x2]] }
  0x25   :  { %s6817_s9 = sld [smem:[#allocation6 + $0x2]] }
  0x26   :  { %v115_v1 = vstv %s114_s4 }
  0x27   :  { %v116_v3 = vmul.f32 %v115_v1, %v113_v0  ;;  %v118_v4 = vstv %s117_s5 }
  0x28   :  { %v148_v5 = vstv %s4776_s29 }
  0x29   :  { %v119_v6 = vadd.f32 %v118_v4, %v116_v3  ;;  %v149_v7 = vmul.f32 %v148_v5, %v146_v2  ;;  %v151_v8 = vstv %s4777_s30 }
  0x2b   :  { %v120_v9 = vfloor.f32 %v119_v6  ;;  %v152_v10 = vadd.f32 %v151_v8, %v149_v7  ;;  %v460_v8 = vld [vmem:[#allocation11 + $0x7c8] sm:$0xff] }
  0x2d   :  { %v121_v11 = vsub.f32 %v119_v6, %v120_v9  ;;  %v4793_v12 = vcvt.f32.s32 %v120_v9  ;;  %v153_v13 = vfloor.f32 %v152_v10 }
  0x2f   :  { %v122_v14 = vsub.f32 1.0, %v121_v11  ;;  %v124_v15 = vadd.s32 1, %v4793_v12  ;;  %vm125_vm0 = vcmp.ge.s32.totalorder %v4793_v12, 0  ;;  %vm126_vm1 = vcmp.le.s32.totalorder %v4793_v12, 15 }
  0x30   :  { %vm127_vm2 = vmand %vm125_vm0, %vm126_vm1  ;;  %vm135_vm3 = vcmp.gt.s32.totalorder %v4793_v12, 0  ;;  %v154_v16 = vsub.f32 %v152_v10, %v153_v13  ;;  %v4795_v17 = vcvt.f32.s32 %v153_v13 }
  0x31   :  { %v4774_v19 = vsel %vm127_vm2, 1.0, %v5024_v18  ;;  %vm130_vm4 = vcmp.ge.s32.totalorder %v124_v15, 0  ;;  %vm131_vm5 = vcmp.le.s32.totalorder %v124_v15, 15  ;;  %v136_v20 = vsel %vm135_vm3, %v4793_v12, 0 }
  0x32   :  { %vm132_vm6 = vmand %vm130_vm4, %vm131_vm5  ;;  %vm137_vm7 = vcmp.lt.s32.totalorder %v136_v20, 15  ;;  %vm139_vm8 = vcmp.gt.s32.totalorder %v124_v15, 0  ;;  %v143_v21 = vmul.f32 %v4774_v19, %v122_v14  ;;  %v155_v22 = vsub.f32 1.0, %v154_v16 }
  0x33   :  { %v4775_v23 = vsel %vm132_vm6, 1.0, %v5024_v18  ;;  %v138_v24 = vsel %vm137_vm7, %v136_v20, 15  ;;  %v140_v25 = vsel %vm139_vm8, %v124_v15, 0  ;;  %v157_v26 = vadd.s32 1, %v4795_v17 }
  0x34   :  { %vm141_vm9 = vcmp.lt.s32.totalorder %v140_v25, 15  ;;  %v144_v27 = vmul.f32 %v4775_v23, %v121_v11  ;;  %vm158_vm10 = vcmp.ge.s32.totalorder %v4795_v17, 0  ;;  %vm159_vm11 = vcmp.le.s32.totalorder %v4795_v17, 15 }
  0x35   :  { %v142_v28 = vsel %vm141_vm9, %v140_v25, 15  ;;  %vm160_vm12 = vmand %vm158_vm10, %vm159_vm11  ;;  %vm163_vm13 = vcmp.ge.s32.totalorder %v157_v26, 0  ;;  %vm164_vm14 = vcmp.le.s32.totalorder %v157_v26, 15  ;;  %vm168_vm15 = vcmp.gt.s32.totalorder %v4795_v17, 0 }
  0x36   :  { %v4778_v29 = vsel %vm160_vm12, 1.0, %v5024_v18  ;;  %vm165_vm0 = vmand %vm163_vm13, %vm164_vm14  ;;  %v169_v30 = vsel %vm168_vm15, %v4795_v17, 0  ;;  %vm172_vm1 = vcmp.gt.s32.totalorder %v157_v26, 0  ;;  %v467_v31 = vmul.u32 16, %v138_v24 }
  0x37   :  { %v4779_v32 = vsel %vm165_vm0, 1.0, %v5024_v18  ;;  %vm170_vm2 = vcmp.lt.s32.totalorder %v169_v30, 15  ;;  %v173_v33 = vsel %vm172_vm1, %v157_v26, 0  ;;  %v176_v34 = vmul.f32 %v4778_v29, %v155_v22  ;;  %v323_v22 = vld [vmem:[#allocation11 + $0x380] sm:$0xff] }
  0x38   :  { %v171_v35 = vsel %vm170_vm2, %v169_v30, 15  ;;  %vm174_vm3 = vcmp.lt.s32.totalorder %v173_v33, 15  ;;  %v177_v36 = vmul.f32 %v4779_v32, %v154_v16  ;;  %v470_v37 = vmul.u32 16, %v142_v28  ;;  %v451_v28 = vld [vmem:[#allocation11 + $0x780] sm:$0xff] }
  0x39   :  { %v175_v38 = vsel %vm174_vm3, %v173_v33, 15  ;;  %v5088_v39 = vadd.s32 %v467_v31, %v171_v35  ;;  %v5090_v40 = vmul.f32 %v176_v34, %v143_v21  ;;  %v5092_v41 = vmul.f32 %v176_v34, %v144_v27 }
  0x3a   :  { %v5094_v43 = vadd.s32 %v467_v31, %v175_v38  ;;  %v5096_v44 = vadd.s32 %v470_v37, %v171_v35  ;;  %v5098_v45 = vadd.s32 %v470_v37, %v175_v38  ;;  %v5100_v46 = vmul.f32 %v177_v36, %v143_v21 }
  0x3b   :  { %v5103_v48 = vperm.slane %v5088_v39, 0  ;;  %v5106_v49 = vperm.slane %v5090_v40, 0  ;;  %v5109_v50 = vperm.slane %v5092_v41, 0  ;;  %v5111_v51 = vmul.f32 %v177_v36, %v144_v27  ;;  %v324_v36 = vld [vmem:[#allocation11 + $0x388] sm:$0xff] }
  0x3c   :  { %v5114_v52 = vperm.slane %v5094_v43, 0  ;;  %v5117_v53 = vperm.slane %v5100_v46, 0  ;;  %v5120_v54 = vperm.slane %v5096_v44, 0  ;;  %v5123_v55 = vperm.slane %v5098_v45, 0 }
  0x3d   :  { %vm601_vm4 = vcmp.eq.s32.totalorder %v331_v42, %v5103_v48  ;;  %v5127_v56 = vperm.slane %v5111_v51, 0  ;;  %vm729_vm5 = vcmp.eq.s32.totalorder %v459_v47, %v5103_v48  ;;  %v5131_v57 = vperm.slane %v5088_v39, 1 }
  0x3e   :  { %v875_v58 = vsel %vm601_vm4, %v5106_v49, 0.0  ;;  %vm1139_vm6 = vcmp.eq.s32.totalorder %v331_v42, %v5114_v52  ;;  %vm1677_vm7 = vcmp.eq.s32.totalorder %v331_v42, %v5120_v54  ;;  %vm2215_vm8 = vcmp.eq.s32.totalorder %v331_v42, %v5123_v55 }
  0x3f   :  { %v1413_v60 = vsel %vm1139_vm6, %v5117_v53, 0.0  ;;  %v1951_v61 = vsel %vm1677_vm7, %v5109_v50, 0.0  ;;  %v2489_v62 = vsel %vm2215_vm8, %v5127_v56, 0.0  ;;  %v1003_v63 = vsel %vm729_vm5, %v5106_v49, 0.0 }
  0x40   :  { %v2745_v0 = vadd.f32 %v1413_v60, %v875_v58  ;;  %v3001_v1 = vadd.f32 %v2489_v62, %v1951_v61  ;;  %vm1267_vm9 = vcmp.eq.s32.totalorder %v459_v47, %v5114_v52  ;;  %vm1805_vm10 = vcmp.eq.s32.totalorder %v459_v47, %v5120_v54 }
  0x41   :  { %v1541_v2 = vsel %vm1267_vm9, %v5117_v53, 0.0  ;;  %v2079_v3 = vsel %vm1805_vm10, %v5109_v50, 0.0  ;;  %vm2343_vm11 = vcmp.eq.s32.totalorder %v459_v47, %v5123_v55  ;;  %vm602_vm12 = vcmp.eq.s32.totalorder %v332_v59, %v5131_v57 }
  0x42   :  { %v3257_v4 = vadd.f32 %v3001_v1, %v2745_v0  ;;  %v2617_v5 = vsel %vm2343_vm11, %v5127_v56, 0.0  ;;  %v2873_v6 = vadd.f32 %v1541_v2, %v1003_v63  ;;  %v5149_v7 = vperm.slane %v5090_v40, 1 }
  0x43   :  { %v3129_v9 = vadd.f32 %v2617_v5, %v2079_v3  ;;  %v5152_v10 = vperm.slane %v5094_v43, 1  ;;  %v5155_v11 = vperm.slane %v5100_v46, 1  ;;  %v5158_v12 = vperm.slane %v5096_v44, 1  ;;  %v315_v3 = vld [vmem:[#allocation11 + $0x340] sm:$0xff] }
  0x44   :  { %3409 = vmatpush.msra.mxu0 %v3257_v4  ;;  %v876_v13 = vsel %vm602_vm12, %v5149_v7, 0.0  ;;  %v5162_v14 = vperm.slane %v5092_v41, 1  ;;  %v5165_v15 = vperm.slane %v5098_v45, 1  ;;  %v5168_v16 = vperm.slane %v5111_v51, 1 }
  0x45   :  { %v3385_v17 = vadd.f32 %v3129_v9, %v2873_v6  ;;  %vm1140_vm13 = vcmp.eq.s32.totalorder %v332_v59, %v5152_v10  ;;  %vm1678_vm14 = vcmp.eq.s32.totalorder %v332_v59, %v5158_v12  ;;  %vm730_vm15 = vcmp.eq.s32.totalorder %v460_v8, %v5131_v57 }
  0x46   :  { %v1414_v19 = vsel %vm1140_vm13, %v5155_v11, 0.0  ;;  %v1952_v20 = vsel %vm1678_vm14, %v5162_v14, 0.0  ;;  %vm2216_vm0 = vcmp.eq.s32.totalorder %v332_v59, %v5165_v15  ;;  %v1004_v21 = vsel %vm730_vm15, %v5149_v7, 0.0  ;;  %v452_v59 = vld [vmem:[#allocation11 + $0x788] sm:$0xff] }
  0x47   :  { %3450 = vmatpush.msra.mxu1 %v3385_v17  ;;  %v2490_v23 = vsel %vm2216_vm0, %v5168_v16, 0.0  ;;  %v2746_v24 = vadd.f32 %v1414_v19, %v876_v13  ;;  %vm1268_vm1 = vcmp.eq.s32.totalorder %v460_v8, %v5152_v10  ;;  %vm1806_vm2 = vcmp.eq.s32.totalorder %v460_v8, %v5158_v12 }
  0x48   :  { %v3002_v25 = vadd.f32 %v2490_v23, %v1952_v20  ;;  %v1542_v26 = vsel %vm1268_vm1, %v5155_v11, 0.0  ;;  %v2080_v27 = vsel %vm1806_vm2, %v5162_v14, 0.0  ;;  %vm2344_vm3 = vcmp.eq.s32.totalorder %v460_v8, %v5165_v15  ;;  %v443_v20 = vld [vmem:[#allocation11 + $0x740] sm:$0xff] }
  0x49   :  { %v2618_v29 = vsel %vm2344_vm3, %v5168_v16, 0.0  ;;  %v2874_v30 = vadd.f32 %v1542_v26, %v1004_v21  ;;  %vm593_vm4 = vcmp.eq.s32.totalorder %v323_v22, %v5103_v48  ;;  %vm1131_vm5 = vcmp.eq.s32.totalorder %v323_v22, %v5114_v52 }
  0x4a   :  { %v3258_v31 = vadd.f32 %v3002_v25, %v2746_v24  ;;  %v3130_v32 = vadd.f32 %v2618_v29, %v2080_v27  ;;  %v867_v33 = vsel %vm593_vm4, %v5106_v49, 0.0  ;;  %v1405_v34 = vsel %vm1131_vm5, %v5117_v53, 0.0  ;;  %v316_v29 = vld [vmem:[#allocation11 + $0x348] sm:$0xff] }
  0x4b   :  { %vm1669_vm6 = vcmp.eq.s32.totalorder %v323_v22, %v5120_v54  ;;  %vm2207_vm7 = vcmp.eq.s32.totalorder %v323_v22, %v5123_v55  ;;  %v2737_v35 = vadd.f32 %v1405_v34, %v867_v33  ;;  %vm721_vm8 = vcmp.eq.s32.totalorder %v451_v28, %v5103_v48 }
  0x4c   :  { %3491 = vmatpush.msra.mxu2 %v3258_v31  ;;  %v3386_v37 = vadd.f32 %v3130_v32, %v2874_v30  ;;  %v1943_v38 = vsel %vm1669_vm6, %v5109_v50, 0.0  ;;  %v2481_v42 = vsel %vm2207_vm7, %v5127_v56, 0.0  ;;  %v995_v47 = vsel %vm721_vm8, %v5106_v49, 0.0 }
  0x4d   :  { %v2993_v58 = vadd.f32 %v2481_v42, %v1943_v38  ;;  %vm1259_vm9 = vcmp.eq.s32.totalorder %v451_v28, %v5114_v52  ;;  %vm1797_vm10 = vcmp.eq.s32.totalorder %v451_v28, %v5120_v54  ;;  %vm2335_vm11 = vcmp.eq.s32.totalorder %v451_v28, %v5123_v55 }
  0x4e   :  { %3532 = vmatpush.msra.mxu3 %v3386_v37  ;;  %v1533_v60 = vsel %vm1259_vm9, %v5117_v53, 0.0  ;;  %v2071_v61 = vsel %vm1797_vm10, %v5109_v50, 0.0  ;;  %v2609_v62 = vsel %vm2335_vm11, %v5127_v56, 0.0  ;;  %vm594_vm12 = vcmp.eq.s32.totalorder %v324_v36, %v5131_v57 }
  0x4f   :  { %v3249_v63 = vadd.f32 %v2993_v58, %v2737_v35  ;;  %v2865_v0 = vadd.f32 %v1533_v60, %v995_v47  ;;  %v3121_v1 = vadd.f32 %v2609_v62, %v2071_v61  ;;  %v868_v2 = vsel %vm594_vm12, %v5149_v7, 0.0  ;;  %v444_v35 = vld [vmem:[#allocation11 + $0x748] sm:$0xff]  ;;  %v307_v60 = vld [vmem:[#allocation11 + $0x300] sm:$0xff] }
  0x50   :  { %vm1132_vm13 = vcmp.eq.s32.totalorder %v324_v36, %v5152_v10  ;;  %vm1670_vm14 = vcmp.eq.s32.totalorder %v324_v36, %v5158_v12  ;;  %vm2208_vm15 = vcmp.eq.s32.totalorder %v324_v36, %v5165_v15  ;;  %vm722_vm0 = vcmp.eq.s32.totalorder %v452_v59, %v5131_v57 }
  0x51   :  { %3410 = vmatpush.msra.mxu0 %v3249_v63  ;;  %v3377_v4 = vadd.f32 %v3121_v1, %v2865_v0  ;;  %v1406_v5 = vsel %vm1132_vm13, %v5155_v11, 0.0  ;;  %v1944_v6 = vsel %vm1670_vm14, %v5162_v14, 0.0  ;;  %v2482_v8 = vsel %vm2208_vm15, %v5168_v16, 0.0 }
  0x52   :  { %v2738_v9 = vadd.f32 %v1406_v5, %v868_v2  ;;  %v2994_v13 = vadd.f32 %v2482_v8, %v1944_v6  ;;  %v996_v17 = vsel %vm722_vm0, %v5149_v7, 0.0  ;;  %vm1260_vm1 = vcmp.eq.s32.totalorder %v452_v59, %v5152_v10  ;;  %v435_v5 = vld [vmem:[#allocation11 + $0x700] sm:$0xff] }
  0x53   :  { %3451 = vmatpush.msra.mxu1 %v3377_v4  ;;  %v1534_v19 = vsel %vm1260_vm1, %v5155_v11, 0.0  ;;  %vm1798_vm2 = vcmp.eq.s32.totalorder %v452_v59, %v5158_v12  ;;  %vm2336_vm3 = vcmp.eq.s32.totalorder %v452_v59, %v5165_v15  ;;  %vm585_vm4 = vcmp.eq.s32.totalorder %v315_v3, %v5103_v48 }
  0x54   :  { %v3250_v21 = vadd.f32 %v2994_v13, %v2738_v9  ;;  %v2072_v22 = vsel %vm1798_vm2, %v5162_v14, 0.0  ;;  %v2610_v23 = vsel %vm2336_vm3, %v5168_v16, 0.0  ;;  %v2866_v24 = vadd.f32 %v1534_v19, %v996_v17 }
  0x55   :  { %v3122_v25 = vadd.f32 %v2610_v23, %v2072_v22  ;;  %v859_v26 = vsel %vm585_vm4, %v5106_v49, 0.0  ;;  %vm1123_vm5 = vcmp.eq.s32.totalorder %v315_v3, %v5114_v52  ;;  %vm1661_vm6 = vcmp.eq.s32.totalorder %v315_v3, %v5120_v54  ;;  %v308_v22 = vld [vmem:[#allocation11 + $0x308] sm:$0xff] }
  0x56   :  { %3492 = vmatpush.msra.mxu2 %v3250_v21  ;;  %v1397_v27 = vsel %vm1123_vm5, %v5117_v53, 0.0  ;;  %v1935_v28 = vsel %vm1661_vm6, %v5109_v50, 0.0  ;;  %vm2199_vm7 = vcmp.eq.s32.totalorder %v315_v3, %v5123_v55  ;;  %vm713_vm8 = vcmp.eq.s32.totalorder %v443_v20, %v5103_v48 }
  0x57   :  { %v3378_v30 = vadd.f32 %v3122_v25, %v2866_v24  ;;  %v2473_v31 = vsel %vm2199_vm7, %v5127_v56, 0.0  ;;  %v2729_v32 = vadd.f32 %v1397_v27, %v859_v26  ;;  %v987_v33 = vsel %vm713_vm8, %v5106_v49, 0.0 }
  0x58   :  { %v2985_v34 = vadd.f32 %v2473_v31, %v1935_v28  ;;  %vm1251_vm9 = vcmp.eq.s32.totalorder %v443_v20, %v5114_v52  ;;  %vm1789_vm10 = vcmp.eq.s32.totalorder %v443_v20, %v5120_v54  ;;  %vm2327_vm11 = vcmp.eq.s32.totalorder %v443_v20, %v5123_v55  ;;  %v436_v28 = vld [vmem:[#allocation11 + $0x708] sm:$0xff] }
  0x59   :  { %3533 = vmatpush.msra.mxu3 %v3378_v30  ;;  %v1525_v36 = vsel %vm1251_vm9, %v5117_v53, 0.0  ;;  %v2063_v37 = vsel %vm1789_vm10, %v5109_v50, 0.0  ;;  %v2601_v38 = vsel %vm2327_vm11, %v5127_v56, 0.0  ;;  %vm586_vm12 = vcmp.eq.s32.totalorder %v316_v29, %v5131_v57 }
  0x5a   :  { %v3241_v42 = vadd.f32 %v2985_v34, %v2729_v32  ;;  %v2857_v47 = vadd.f32 %v1525_v36, %v987_v33  ;;  %v3113_v58 = vadd.f32 %v2601_v38, %v2063_v37  ;;  %v860_v59 = vsel %vm586_vm12, %v5149_v7, 0.0  ;;  %v299_v36 = vld [vmem:[#allocation11 + $0x2c0] sm:$0xff] }
  0x5b   :  { %vm1124_vm13 = vcmp.eq.s32.totalorder %v316_v29, %v5152_v10  ;;  %vm1662_vm14 = vcmp.eq.s32.totalorder %v316_v29, %v5158_v12  ;;  %vm2200_vm15 = vcmp.eq.s32.totalorder %v316_v29, %v5165_v15  ;;  %vm714_vm0 = vcmp.eq.s32.totalorder %v444_v35, %v5131_v57 }
  0x5c   :  { %3411 = vmatpush.msra.mxu0 %v3241_v42  ;;  %v3369_v61 = vadd.f32 %v3113_v58, %v2857_v47  ;;  %v1398_v62 = vsel %vm1124_vm13, %v5155_v11, 0.0  ;;  %v1936_v63 = vsel %vm1662_vm14, %v5162_v14, 0.0  ;;  %v2474_v0 = vsel %vm2200_vm15, %v5168_v16, 0.0 }
  0x5d   :  { %v2730_v1 = vadd.f32 %v1398_v62, %v860_v59  ;;  %v2986_v2 = vadd.f32 %v2474_v0, %v1936_v63  ;;  %v988_v3 = vsel %vm714_vm0, %v5149_v7, 0.0  ;;  %vm1252_vm1 = vcmp.eq.s32.totalorder %v444_v35, %v5152_v10  ;;  %v427_v62 = vld [vmem:[#allocation11 + $0x6c0] sm:$0xff] }
  0x5e   :  { %3452 = vmatpush.msra.mxu1 %v3369_v61  ;;  %v1526_v4 = vsel %vm1252_vm1, %v5155_v11, 0.0  ;;  %vm1790_vm2 = vcmp.eq.s32.totalorder %v444_v35, %v5158_v12  ;;  %vm2328_vm3 = vcmp.eq.s32.totalorder %v444_v35, %v5165_v15  ;;  %vm577_vm4 = vcmp.eq.s32.totalorder %v307_v60, %v5103_v48 }
  0x5f   :  { %v3242_v6 = vadd.f32 %v2986_v2, %v2730_v1  ;;  %v2064_v8 = vsel %vm1790_vm2, %v5162_v14, 0.0  ;;  %v2602_v9 = vsel %vm2328_vm3, %v5168_v16, 0.0  ;;  %v2858_v13 = vadd.f32 %v1526_v4, %v988_v3 }
  0x60   :  { %v3114_v17 = vadd.f32 %v2602_v9, %v2064_v8  ;;  %v851_v19 = vsel %vm577_vm4, %v5106_v49, 0.0  ;;  %vm1115_vm5 = vcmp.eq.s32.totalorder %v307_v60, %v5114_v52  ;;  %vm1653_vm6 = vcmp.eq.s32.totalorder %v307_v60, %v5120_v54  ;;  %v300_v8 = vld [vmem:[#allocation11 + $0x2c8] sm:$0xff] }
  0x61   :  { %3493 = vmatpush.msra.mxu2 %v3242_v6  ;;  %v1389_v20 = vsel %vm1115_vm5, %v5117_v53, 0.0  ;;  %v1927_v21 = vsel %vm1653_vm6, %v5109_v50, 0.0  ;;  %vm2191_vm7 = vcmp.eq.s32.totalorder %v307_v60, %v5123_v55  ;;  %vm705_vm8 = vcmp.eq.s32.totalorder %v435_v5, %v5103_v48 }
  0x62   :  { %v3370_v23 = vadd.f32 %v3114_v17, %v2858_v13  ;;  %v2465_v24 = vsel %vm2191_vm7, %v5127_v56, 0.0  ;;  %v2721_v25 = vadd.f32 %v1389_v20, %v851_v19  ;;  %v979_v26 = vsel %vm705_vm8, %v5106_v49, 0.0 }
  0x63   :  { %v2977_v27 = vadd.f32 %v2465_v24, %v1927_v21  ;;  %vm1243_vm9 = vcmp.eq.s32.totalorder %v435_v5, %v5114_v52  ;;  %vm1781_vm10 = vcmp.eq.s32.totalorder %v435_v5, %v5120_v54  ;;  %vm2319_vm11 = vcmp.eq.s32.totalorder %v435_v5, %v5123_v55  ;;  %v428_v21 = vld [vmem:[#allocation11 + $0x6c8] sm:$0xff] }
  0x64   :  { %3534 = vmatpush.msra.mxu3 %v3370_v23  ;;  %v1517_v29 = vsel %vm1243_vm9, %v5117_v53, 0.0  ;;  %v2055_v30 = vsel %vm1781_vm10, %v5109_v50, 0.0  ;;  %v2593_v31 = vsel %vm2319_vm11, %v5127_v56, 0.0  ;;  %vm578_vm12 = vcmp.eq.s32.totalorder %v308_v22, %v5131_v57 }
  0x65   :  { %v3233_v32 = vadd.f32 %v2977_v27, %v2721_v25  ;;  %v2849_v33 = vadd.f32 %v1517_v29, %v979_v26  ;;  %v3105_v34 = vadd.f32 %v2593_v31, %v2055_v30  ;;  %v852_v35 = vsel %vm578_vm12, %v5149_v7, 0.0  ;;  %v291_v29 = vld [vmem:[#allocation11 + $0x280] sm:$0xff] }
  0x66   :  { %vm1116_vm13 = vcmp.eq.s32.totalorder %v308_v22, %v5152_v10  ;;  %vm1654_vm14 = vcmp.eq.s32.totalorder %v308_v22, %v5158_v12  ;;  %vm2192_vm15 = vcmp.eq.s32.totalorder %v308_v22, %v5165_v15  ;;  %vm706_vm0 = vcmp.eq.s32.totalorder %v436_v28, %v5131_v57 }
  0x67   :  { %3412 = vmatpush.msra.mxu0 %v3233_v32  ;;  %v3361_v37 = vadd.f32 %v3105_v34, %v2849_v33  ;;  %v1390_v38 = vsel %vm1116_vm13, %v5155_v11, 0.0  ;;  %v1928_v42 = vsel %vm1654_vm14, %v5162_v14, 0.0  ;;  %v2466_v47 = vsel %vm2192_vm15, %v5168_v16, 0.0 }
  0x68   :  { %v2722_v58 = vadd.f32 %v1390_v38, %v852_v35  ;;  %v2978_v59 = vadd.f32 %v2466_v47, %v1928_v42  ;;  %v980_v60 = vsel %vm706_vm0, %v5149_v7, 0.0  ;;  %vm1244_vm1 = vcmp.eq.s32.totalorder %v436_v28, %v5152_v10  ;;  %v419_v38 = vld [vmem:[#allocation11 + $0x680] sm:$0xff] }
  0x69   :  { %3453 = vmatpush.msra.mxu1 %v3361_v37  ;;  %v1518_v61 = vsel %vm1244_vm1, %v5155_v11, 0.0  ;;  %vm1782_vm2 = vcmp.eq.s32.totalorder %v436_v28, %v5158_v12  ;;  %vm2320_vm3 = vcmp.eq.s32.totalorder %v436_v28, %v5165_v15  ;;  %vm569_vm4 = vcmp.eq.s32.totalorder %v299_v36, %v5103_v48 }
  0x6a   :  { %v3234_v63 = vadd.f32 %v2978_v59, %v2722_v58  ;;  %v2056_v0 = vsel %vm1782_vm2, %v5162_v14, 0.0  ;;  %v2594_v1 = vsel %vm2320_vm3, %v5168_v16, 0.0  ;;  %v2850_v2 = vadd.f32 %v1518_v61, %v980_v60 }
  0x6b   :  { %v3106_v3 = vadd.f32 %v2594_v1, %v2056_v0  ;;  %v843_v4 = vsel %vm569_vm4, %v5106_v49, 0.0  ;;  %vm1107_vm5 = vcmp.eq.s32.totalorder %v299_v36, %v5114_v52  ;;  %vm1645_vm6 = vcmp.eq.s32.totalorder %v299_v36, %v5120_v54  ;;  %v292_v0 = vld [vmem:[#allocation11 + $0x288] sm:$0xff] }
  0x6c   :  { %3494 = vmatpush.msra.mxu2 %v3234_v63  ;;  %v1381_v5 = vsel %vm1107_vm5, %v5117_v53, 0.0  ;;  %v1919_v6 = vsel %vm1645_vm6, %v5109_v50, 0.0  ;;  %vm2183_vm7 = vcmp.eq.s32.totalorder %v299_v36, %v5123_v55  ;;  %vm697_vm8 = vcmp.eq.s32.totalorder %v427_v62, %v5103_v48 }
  0x6d   :  { %v3362_v9 = vadd.f32 %v3106_v3, %v2850_v2  ;;  %v2457_v13 = vsel %vm2183_vm7, %v5127_v56, 0.0  ;;  %v2713_v17 = vadd.f32 %v1381_v5, %v843_v4  ;;  %v971_v19 = vsel %vm697_vm8, %v5106_v49, 0.0 }
  0x6e   :  { %v2969_v20 = vadd.f32 %v2457_v13, %v1919_v6  ;;  %vm1235_vm9 = vcmp.eq.s32.totalorder %v427_v62, %v5114_v52  ;;  %vm1773_vm10 = vcmp.eq.s32.totalorder %v427_v62, %v5120_v54  ;;  %vm2311_vm11 = vcmp.eq.s32.totalorder %v427_v62, %v5123_v55  ;;  %v420_v6 = vld [vmem:[#allocation11 + $0x688] sm:$0xff] }
  0x6f   :  { %3535 = vmatpush.msra.mxu3 %v3362_v9  ;;  %v1509_v22 = vsel %vm1235_vm9, %v5117_v53, 0.0  ;;  %v2047_v23 = vsel %vm1773_vm10, %v5109_v50, 0.0  ;;  %v2585_v24 = vsel %vm2311_vm11, %v5127_v56, 0.0  ;;  %vm570_vm12 = vcmp.eq.s32.totalorder %v300_v8, %v5131_v57 }
  0x70   :  { %v3225_v25 = vadd.f32 %v2969_v20, %v2713_v17  ;;  %v2841_v26 = vadd.f32 %v1509_v22, %v971_v19  ;;  %v3097_v27 = vadd.f32 %v2585_v24, %v2047_v23  ;;  %v844_v28 = vsel %vm570_vm12, %v5149_v7, 0.0  ;;  %v283_v22 = vld [vmem:[#allocation11 + $0x240] sm:$0xff] }
  0x71   :  { %vm1108_vm13 = vcmp.eq.s32.totalorder %v300_v8, %v5152_v10  ;;  %vm1646_vm14 = vcmp.eq.s32.totalorder %v300_v8, %v5158_v12  ;;  %vm2184_vm15 = vcmp.eq.s32.totalorder %v300_v8, %v5165_v15  ;;  %vm698_vm0 = vcmp.eq.s32.totalorder %v428_v21, %v5131_v57 }
  0x72   :  { %3413 = vmatpush.msra.mxu0 %v3225_v25  ;;  %v3353_v30 = vadd.f32 %v3097_v27, %v2841_v26  ;;  %v1382_v31 = vsel %vm1108_vm13, %v5155_v11, 0.0  ;;  %v1920_v32 = vsel %vm1646_vm14, %v5162_v14, 0.0  ;;  %v2458_v33 = vsel %vm2184_vm15, %v5168_v16, 0.0 }
  0x73   :  { %v2714_v34 = vadd.f32 %v1382_v31, %v844_v28  ;;  %v2970_v35 = vadd.f32 %v2458_v33, %v1920_v32  ;;  %v972_v36 = vsel %vm698_vm0, %v5149_v7, 0.0  ;;  %vm1236_vm1 = vcmp.eq.s32.totalorder %v428_v21, %v5152_v10  ;;  %v411_v31 = vld [vmem:[#allocation11 + $0x640] sm:$0xff] }
  0x74   :  { %3454 = vmatpush.msra.mxu1 %v3353_v30  ;;  %v1510_v37 = vsel %vm1236_vm1, %v5155_v11, 0.0  ;;  %vm1774_vm2 = vcmp.eq.s32.totalorder %v428_v21, %v5158_v12  ;;  %vm2312_vm3 = vcmp.eq.s32.totalorder %v428_v21, %v5165_v15  ;;  %vm561_vm4 = vcmp.eq.s32.totalorder %v291_v29, %v5103_v48 }
  0x75   :  { %v3226_v42 = vadd.f32 %v2970_v35, %v2714_v34  ;;  %v2048_v47 = vsel %vm1774_vm2, %v5162_v14, 0.0  ;;  %v2586_v58 = vsel %vm2312_vm3, %v5168_v16, 0.0  ;;  %v2842_v59 = vadd.f32 %v1510_v37, %v972_v36 }
  0x76   :  { %v3098_v60 = vadd.f32 %v2586_v58, %v2048_v47  ;;  %v835_v61 = vsel %vm561_vm4, %v5106_v49, 0.0  ;;  %vm1099_vm5 = vcmp.eq.s32.totalorder %v291_v29, %v5114_v52  ;;  %vm1637_vm6 = vcmp.eq.s32.totalorder %v291_v29, %v5120_v54  ;;  %v284_v47 = vld [vmem:[#allocation11 + $0x248] sm:$0xff] }
  0x77   :  { %3495 = vmatpush.msra.mxu2 %v3226_v42  ;;  %v1373_v62 = vsel %vm1099_vm5, %v5117_v53, 0.0  ;;  %v1911_v63 = vsel %vm1637_vm6, %v5109_v50, 0.0  ;;  %vm2175_vm7 = vcmp.eq.s32.totalorder %v291_v29, %v5123_v55  ;;  %vm689_vm8 = vcmp.eq.s32.totalorder %v419_v38, %v5103_v48 }
  0x78   :  { %v3354_v1 = vadd.f32 %v3098_v60, %v2842_v59  ;;  %v2449_v2 = vsel %vm2175_vm7, %v5127_v56, 0.0  ;;  %v2705_v3 = vadd.f32 %v1373_v62, %v835_v61  ;;  %v963_v4 = vsel %vm689_vm8, %v5106_v49, 0.0 }
  0x79   :  { %v2961_v5 = vadd.f32 %v2449_v2, %v1911_v63  ;;  %vm1227_vm9 = vcmp.eq.s32.totalorder %v419_v38, %v5114_v52  ;;  %vm1765_vm10 = vcmp.eq.s32.totalorder %v419_v38, %v5120_v54  ;;  %vm2303_vm11 = vcmp.eq.s32.totalorder %v419_v38, %v5123_v55  ;;  %v412_v63 = vld [vmem:[#allocation11 + $0x648] sm:$0xff] }
  0x7a   :  { %3536 = vmatpush.msra.mxu3 %v3354_v1  ;;  %v1501_v8 = vsel %vm1227_vm9, %v5117_v53, 0.0  ;;  %v2039_v9 = vsel %vm1765_vm10, %v5109_v50, 0.0  ;;  %v2577_v13 = vsel %vm2303_vm11, %v5127_v56, 0.0  ;;  %vm562_vm12 = vcmp.eq.s32.totalorder %v292_v0, %v5131_v57 }
  0x7b   :  { %v3217_v17 = vadd.f32 %v2961_v5, %v2705_v3  ;;  %v2833_v19 = vadd.f32 %v1501_v8, %v963_v4  ;;  %v3089_v20 = vadd.f32 %v2577_v13, %v2039_v9  ;;  %v836_v21 = vsel %vm562_vm12, %v5149_v7, 0.0  ;;  %v275_v8 = vld [vmem:[#allocation11 + $0x200] sm:$0xff] }
  0x7c   :  { %vm1100_vm13 = vcmp.eq.s32.totalorder %v292_v0, %v5152_v10  ;;  %vm1638_vm14 = vcmp.eq.s32.totalorder %v292_v0, %v5158_v12  ;;  %vm2176_vm15 = vcmp.eq.s32.totalorder %v292_v0, %v5165_v15  ;;  %vm690_vm0 = vcmp.eq.s32.totalorder %v420_v6, %v5131_v57 }
  0x7d   :  { %3414 = vmatpush.msra.mxu0 %v3217_v17  ;;  %v3345_v23 = vadd.f32 %v3089_v20, %v2833_v19  ;;  %v1374_v24 = vsel %vm1100_vm13, %v5155_v11, 0.0  ;;  %v1912_v25 = vsel %vm1638_vm14, %v5162_v14, 0.0  ;;  %v2450_v26 = vsel %vm2176_vm15, %v5168_v16, 0.0 }
  0x7e   :  { %v2706_v27 = vadd.f32 %v1374_v24, %v836_v21  ;;  %v2962_v28 = vadd.f32 %v2450_v26, %v1912_v25  ;;  %v964_v29 = vsel %vm690_vm0, %v5149_v7, 0.0  ;;  %vm1228_vm1 = vcmp.eq.s32.totalorder %v420_v6, %v5152_v10  ;;  %v403_v24 = vld [vmem:[#allocation11 + $0x600] sm:$0xff] }
  0x7f   :  { %3455 = vmatpush.msra.mxu1 %v3345_v23  ;;  %v1502_v30 = vsel %vm1228_vm1, %v5155_v11, 0.0  ;;  %vm1766_vm2 = vcmp.eq.s32.totalorder %v420_v6, %v5158_v12  ;;  %vm2304_vm3 = vcmp.eq.s32.totalorder %v420_v6, %v5165_v15  ;;  %vm553_vm4 = vcmp.eq.s32.totalorder %v283_v22, %v5103_v48 }
  0x80   :  { %v3218_v32 = vadd.f32 %v2962_v28, %v2706_v27  ;;  %v2040_v33 = vsel %vm1766_vm2, %v5162_v14, 0.0  ;;  %v2578_v34 = vsel %vm2304_vm3, %v5168_v16, 0.0  ;;  %v2834_v35 = vadd.f32 %v1502_v30, %v964_v29 }
  0x81   :  { %v3090_v36 = vadd.f32 %v2578_v34, %v2040_v33  ;;  %v827_v37 = vsel %vm553_vm4, %v5106_v49, 0.0  ;;  %vm1091_vm5 = vcmp.eq.s32.totalorder %v283_v22, %v5114_v52  ;;  %vm1629_vm6 = vcmp.eq.s32.totalorder %v283_v22, %v5120_v54  ;;  %v276_v33 = vld [vmem:[#allocation11 + $0x208] sm:$0xff] }
  0x82   :  { %3496 = vmatpush.msra.mxu2 %v3218_v32  ;;  %v1365_v38 = vsel %vm1091_vm5, %v5117_v53, 0.0  ;;  %v1903_v42 = vsel %vm1629_vm6, %v5109_v50, 0.0  ;;  %vm2167_vm7 = vcmp.eq.s32.totalorder %v283_v22, %v5123_v55  ;;  %vm681_vm8 = vcmp.eq.s32.totalorder %v411_v31, %v5103_v48 }
  0x83   :  { %v3346_v58 = vadd.f32 %v3090_v36, %v2834_v35  ;;  %v2441_v59 = vsel %vm2167_vm7, %v5127_v56, 0.0  ;;  %v2697_v60 = vadd.f32 %v1365_v38, %v827_v37  ;;  %v955_v61 = vsel %vm681_vm8, %v5106_v49, 0.0 }
  0x84   :  { %v2953_v62 = vadd.f32 %v2441_v59, %v1903_v42  ;;  %vm1219_vm9 = vcmp.eq.s32.totalorder %v411_v31, %v5114_v52  ;;  %vm1757_vm10 = vcmp.eq.s32.totalorder %v411_v31, %v5120_v54  ;;  %vm2295_vm11 = vcmp.eq.s32.totalorder %v411_v31, %v5123_v55  ;;  %v404_v42 = vld [vmem:[#allocation11 + $0x608] sm:$0xff] }
  0x85   :  { %3537 = vmatpush.msra.mxu3 %v3346_v58  ;;  %v1493_v0 = vsel %vm1219_vm9, %v5117_v53, 0.0  ;;  %v2031_v1 = vsel %vm1757_vm10, %v5109_v50, 0.0  ;;  %v2569_v2 = vsel %vm2295_vm11, %v5127_v56, 0.0  ;;  %vm554_vm12 = vcmp.eq.s32.totalorder %v284_v47, %v5131_v57 }
  0x86   :  { %v3209_v3 = vadd.f32 %v2953_v62, %v2697_v60  ;;  %v2825_v4 = vadd.f32 %v1493_v0, %v955_v61  ;;  %v3081_v5 = vadd.f32 %v2569_v2, %v2031_v1  ;;  %v828_v6 = vsel %vm554_vm12, %v5149_v7, 0.0  ;;  %v267_v0 = vld [vmem:[#allocation11 + $0x1c0] sm:$0xff] }
  0x87   :  { %vm1092_vm13 = vcmp.eq.s32.totalorder %v284_v47, %v5152_v10  ;;  %vm1630_vm14 = vcmp.eq.s32.totalorder %v284_v47, %v5158_v12  ;;  %vm2168_vm15 = vcmp.eq.s32.totalorder %v284_v47, %v5165_v15  ;;  %vm682_vm0 = vcmp.eq.s32.totalorder %v412_v63, %v5131_v57 }
  0x88   :  { %3415 = vmatpush.msra.mxu0 %v3209_v3  ;;  %v3337_v9 = vadd.f32 %v3081_v5, %v2825_v4  ;;  %v1366_v13 = vsel %vm1092_vm13, %v5155_v11, 0.0  ;;  %v1904_v17 = vsel %vm1630_vm14, %v5162_v14, 0.0  ;;  %v2442_v19 = vsel %vm2168_vm15, %v5168_v16, 0.0 }
  0x89   :  { %v2698_v20 = vadd.f32 %v1366_v13, %v828_v6  ;;  %v2954_v21 = vadd.f32 %v2442_v19, %v1904_v17  ;;  %v956_v22 = vsel %vm682_vm0, %v5149_v7, 0.0  ;;  %vm1220_vm1 = vcmp.eq.s32.totalorder %v412_v63, %v5152_v10  ;;  %v395_v13 = vld [vmem:[#allocation11 + $0x5c0] sm:$0xff] }
  0x8a   :  { %3456 = vmatpush.msra.mxu1 %v3337_v9  ;;  %v1494_v23 = vsel %vm1220_vm1, %v5155_v11, 0.0  ;;  %vm1758_vm2 = vcmp.eq.s32.totalorder %v412_v63, %v5158_v12  ;;  %vm2296_vm3 = vcmp.eq.s32.totalorder %v412_v63, %v5165_v15  ;;  %vm545_vm4 = vcmp.eq.s32.totalorder %v275_v8, %v5103_v48 }
  0x8b   :  { %v3210_v25 = vadd.f32 %v2954_v21, %v2698_v20  ;;  %v2032_v26 = vsel %vm1758_vm2, %v5162_v14, 0.0  ;;  %v2570_v27 = vsel %vm2296_vm3, %v5168_v16, 0.0  ;;  %v2826_v28 = vadd.f32 %v1494_v23, %v956_v22 }
  0x8c   :  { %v3082_v29 = vadd.f32 %v2570_v27, %v2032_v26  ;;  %v819_v30 = vsel %vm545_vm4, %v5106_v49, 0.0  ;;  %vm1083_vm5 = vcmp.eq.s32.totalorder %v275_v8, %v5114_v52  ;;  %vm1621_vm6 = vcmp.eq.s32.totalorder %v275_v8, %v5120_v54  ;;  %v268_v26 = vld [vmem:[#allocation11 + $0x1c8] sm:$0xff] }
  0x8d   :  { %3497 = vmatpush.msra.mxu2 %v3210_v25  ;;  %v1357_v31 = vsel %vm1083_vm5, %v5117_v53, 0.0  ;;  %v1895_v32 = vsel %vm1621_vm6, %v5109_v50, 0.0  ;;  %vm2159_vm7 = vcmp.eq.s32.totalorder %v275_v8, %v5123_v55  ;;  %vm673_vm8 = vcmp.eq.s32.totalorder %v403_v24, %v5103_v48 }
  0x8e   :  { %v3338_v34 = vadd.f32 %v3082_v29, %v2826_v28  ;;  %v2433_v35 = vsel %vm2159_vm7, %v5127_v56, 0.0  ;;  %v2689_v36 = vadd.f32 %v1357_v31, %v819_v30  ;;  %v947_v37 = vsel %vm673_vm8, %v5106_v49, 0.0 }
  0x8f   :  { %v2945_v38 = vadd.f32 %v2433_v35, %v1895_v32  ;;  %vm1211_vm9 = vcmp.eq.s32.totalorder %v403_v24, %v5114_v52  ;;  %vm1749_vm10 = vcmp.eq.s32.totalorder %v403_v24, %v5120_v54  ;;  %vm2287_vm11 = vcmp.eq.s32.totalorder %v403_v24, %v5123_v55  ;;  %v396_v32 = vld [vmem:[#allocation11 + $0x5c8] sm:$0xff] }
  0x90   :  { %3538 = vmatpush.msra.mxu3 %v3338_v34  ;;  %v1485_v47 = vsel %vm1211_vm9, %v5117_v53, 0.0  ;;  %v2023_v58 = vsel %vm1749_vm10, %v5109_v50, 0.0  ;;  %v2561_v59 = vsel %vm2287_vm11, %v5127_v56, 0.0  ;;  %vm546_vm12 = vcmp.eq.s32.totalorder %v276_v33, %v5131_v57 }
  0x91   :  { %v3201_v60 = vadd.f32 %v2945_v38, %v2689_v36  ;;  %v2817_v61 = vadd.f32 %v1485_v47, %v947_v37  ;;  %v3073_v62 = vadd.f32 %v2561_v59, %v2023_v58  ;;  %v820_v63 = vsel %vm546_vm12, %v5149_v7, 0.0  ;;  %v259_v47 = vld [vmem:[#allocation11 + $0x180] sm:$0xff] }
  0x92   :  { %vm1084_vm13 = vcmp.eq.s32.totalorder %v276_v33, %v5152_v10  ;;  %vm1622_vm14 = vcmp.eq.s32.totalorder %v276_v33, %v5158_v12  ;;  %vm2160_vm15 = vcmp.eq.s32.totalorder %v276_v33, %v5165_v15  ;;  %vm674_vm0 = vcmp.eq.s32.totalorder %v404_v42, %v5131_v57 }
  0x93   :  { %3416 = vmatpush.msra.mxu0 %v3201_v60  ;;  %v3329_v1 = vadd.f32 %v3073_v62, %v2817_v61  ;;  %v1358_v2 = vsel %vm1084_vm13, %v5155_v11, 0.0  ;;  %v1896_v3 = vsel %vm1622_vm14, %v5162_v14, 0.0  ;;  %v2434_v4 = vsel %vm2160_vm15, %v5168_v16, 0.0 }
  0x94   :  { %v2690_v5 = vadd.f32 %v1358_v2, %v820_v63  ;;  %v2946_v6 = vadd.f32 %v2434_v4, %v1896_v3  ;;  %v948_v8 = vsel %vm674_vm0, %v5149_v7, 0.0  ;;  %vm1212_vm1 = vcmp.eq.s32.totalorder %v404_v42, %v5152_v10  ;;  %v387_v2 = vld [vmem:[#allocation11 + $0x580] sm:$0xff] }
  0x95   :  { %3457 = vmatpush.msra.mxu1 %v3329_v1  ;;  %v1486_v9 = vsel %vm1212_vm1, %v5155_v11, 0.0  ;;  %vm1750_vm2 = vcmp.eq.s32.totalorder %v404_v42, %v5158_v12  ;;  %vm2288_vm3 = vcmp.eq.s32.totalorder %v404_v42, %v5165_v15  ;;  %vm537_vm4 = vcmp.eq.s32.totalorder %v267_v0, %v5103_v48 }
  0x96   :  { %v3202_v17 = vadd.f32 %v2946_v6, %v2690_v5  ;;  %v2024_v19 = vsel %vm1750_vm2, %v5162_v14, 0.0  ;;  %v2562_v20 = vsel %vm2288_vm3, %v5168_v16, 0.0  ;;  %v2818_v21 = vadd.f32 %v1486_v9, %v948_v8 }
  0x97   :  { %v3074_v22 = vadd.f32 %v2562_v20, %v2024_v19  ;;  %v811_v23 = vsel %vm537_vm4, %v5106_v49, 0.0  ;;  %vm1075_vm5 = vcmp.eq.s32.totalorder %v267_v0, %v5114_v52  ;;  %vm1613_vm6 = vcmp.eq.s32.totalorder %v267_v0, %v5120_v54  ;;  %v260_v19 = vld [vmem:[#allocation11 + $0x188] sm:$0xff] }
  0x98   :  { %3498 = vmatpush.msra.mxu2 %v3202_v17  ;;  %v1349_v24 = vsel %vm1075_vm5, %v5117_v53, 0.0  ;;  %v1887_v25 = vsel %vm1613_vm6, %v5109_v50, 0.0  ;;  %vm2151_vm7 = vcmp.eq.s32.totalorder %v267_v0, %v5123_v55  ;;  %vm665_vm8 = vcmp.eq.s32.totalorder %v395_v13, %v5103_v48 }
  0x99   :  { %v3330_v27 = vadd.f32 %v3074_v22, %v2818_v21  ;;  %v2425_v28 = vsel %vm2151_vm7, %v5127_v56, 0.0  ;;  %v2681_v29 = vadd.f32 %v1349_v24, %v811_v23  ;;  %v939_v30 = vsel %vm665_vm8, %v5106_v49, 0.0 }
  0x9a   :  { %v2937_v31 = vadd.f32 %v2425_v28, %v1887_v25  ;;  %vm1203_vm9 = vcmp.eq.s32.totalorder %v395_v13, %v5114_v52  ;;  %vm1741_vm10 = vcmp.eq.s32.totalorder %v395_v13, %v5120_v54  ;;  %vm2279_vm11 = vcmp.eq.s32.totalorder %v395_v13, %v5123_v55  ;;  %v388_v25 = vld [vmem:[#allocation11 + $0x588] sm:$0xff] }
  0x9b   :  { %3539 = vmatpush.msra.mxu3 %v3330_v27  ;;  %v1477_v33 = vsel %vm1203_vm9, %v5117_v53, 0.0  ;;  %v2015_v34 = vsel %vm1741_vm10, %v5109_v50, 0.0  ;;  %v2553_v35 = vsel %vm2279_vm11, %v5127_v56, 0.0  ;;  %vm538_vm12 = vcmp.eq.s32.totalorder %v268_v26, %v5131_v57 }
  0x9c   :  { %v3193_v36 = vadd.f32 %v2937_v31, %v2681_v29  ;;  %v2809_v37 = vadd.f32 %v1477_v33, %v939_v30  ;;  %v3065_v38 = vadd.f32 %v2553_v35, %v2015_v34  ;;  %v812_v42 = vsel %vm538_vm12, %v5149_v7, 0.0  ;;  %v251_v33 = vld [vmem:[#allocation11 + $0x140] sm:$0xff] }
  0x9d   :  { %vm1076_vm13 = vcmp.eq.s32.totalorder %v268_v26, %v5152_v10  ;;  %vm1614_vm14 = vcmp.eq.s32.totalorder %v268_v26, %v5158_v12  ;;  %vm2152_vm15 = vcmp.eq.s32.totalorder %v268_v26, %v5165_v15  ;;  %vm666_vm0 = vcmp.eq.s32.totalorder %v396_v32, %v5131_v57 }
  0x9e   :  { %3417 = vmatpush.msra.mxu0 %v3193_v36  ;;  %v3321_v58 = vadd.f32 %v3065_v38, %v2809_v37  ;;  %v1350_v59 = vsel %vm1076_vm13, %v5155_v11, 0.0  ;;  %v1888_v60 = vsel %vm1614_vm14, %v5162_v14, 0.0  ;;  %v2426_v61 = vsel %vm2152_vm15, %v5168_v16, 0.0 }
  0x9f   :  { %v2682_v62 = vadd.f32 %v1350_v59, %v812_v42  ;;  %v2938_v63 = vadd.f32 %v2426_v61, %v1888_v60  ;;  %v940_v0 = vsel %vm666_vm0, %v5149_v7, 0.0  ;;  %vm1204_vm1 = vcmp.eq.s32.totalorder %v396_v32, %v5152_v10  ;;  %v379_v59 = vld [vmem:[#allocation11 + $0x540] sm:$0xff] }
  0xa0   :  { %3458 = vmatpush.msra.mxu1 %v3321_v58  ;;  %v1478_v1 = vsel %vm1204_vm1, %v5155_v11, 0.0  ;;  %vm1742_vm2 = vcmp.eq.s32.totalorder %v396_v32, %v5158_v12  ;;  %vm2280_vm3 = vcmp.eq.s32.totalorder %v396_v32, %v5165_v15  ;;  %vm529_vm4 = vcmp.eq.s32.totalorder %v259_v47, %v5103_v48 }
  0xa1   :  { %v3194_v3 = vadd.f32 %v2938_v63, %v2682_v62  ;;  %v2016_v4 = vsel %vm1742_vm2, %v5162_v14, 0.0  ;;  %v2554_v5 = vsel %vm2280_vm3, %v5168_v16, 0.0  ;;  %v2810_v6 = vadd.f32 %v1478_v1, %v940_v0 }
  0xa2   :  { %v3066_v8 = vadd.f32 %v2554_v5, %v2016_v4  ;;  %v803_v9 = vsel %vm529_vm4, %v5106_v49, 0.0  ;;  %vm1067_vm5 = vcmp.eq.s32.totalorder %v259_v47, %v5114_v52  ;;  %vm1605_vm6 = vcmp.eq.s32.totalorder %v259_v47, %v5120_v54  ;;  %v252_v4 = vld [vmem:[#allocation11 + $0x148] sm:$0xff] }
  0xa3   :  { %3499 = vmatpush.msra.mxu2 %v3194_v3  ;;  %v1341_v13 = vsel %vm1067_vm5, %v5117_v53, 0.0  ;;  %v1879_v17 = vsel %vm1605_vm6, %v5109_v50, 0.0  ;;  %vm2143_vm7 = vcmp.eq.s32.totalorder %v259_v47, %v5123_v55  ;;  %vm657_vm8 = vcmp.eq.s32.totalorder %v387_v2, %v5103_v48 }
  0xa4   :  { %v3322_v20 = vadd.f32 %v3066_v8, %v2810_v6  ;;  %v2417_v21 = vsel %vm2143_vm7, %v5127_v56, 0.0  ;;  %v2673_v22 = vadd.f32 %v1341_v13, %v803_v9  ;;  %v931_v23 = vsel %vm657_vm8, %v5106_v49, 0.0 }
  0xa5   :  { %v2929_v24 = vadd.f32 %v2417_v21, %v1879_v17  ;;  %vm1195_vm9 = vcmp.eq.s32.totalorder %v387_v2, %v5114_v52  ;;  %vm1733_vm10 = vcmp.eq.s32.totalorder %v387_v2, %v5120_v54  ;;  %vm2271_vm11 = vcmp.eq.s32.totalorder %v387_v2, %v5123_v55  ;;  %v380_v17 = vld [vmem:[#allocation11 + $0x548] sm:$0xff] }
  0xa6   :  { %3540 = vmatpush.msra.mxu3 %v3322_v20  ;;  %v1469_v26 = vsel %vm1195_vm9, %v5117_v53, 0.0  ;;  %v2007_v27 = vsel %vm1733_vm10, %v5109_v50, 0.0  ;;  %v2545_v28 = vsel %vm2271_vm11, %v5127_v56, 0.0  ;;  %vm530_vm12 = vcmp.eq.s32.totalorder %v260_v19, %v5131_v57 }
  0xa7   :  { %v3185_v29 = vadd.f32 %v2929_v24, %v2673_v22  ;;  %v2801_v30 = vadd.f32 %v1469_v26, %v931_v23  ;;  %v3057_v31 = vadd.f32 %v2545_v28, %v2007_v27  ;;  %v804_v32 = vsel %vm530_vm12, %v5149_v7, 0.0  ;;  %v243_v26 = vld [vmem:[#allocation11 + $0x100] sm:$0xff] }
  0xa8   :  { %vm1068_vm13 = vcmp.eq.s32.totalorder %v260_v19, %v5152_v10  ;;  %vm1606_vm14 = vcmp.eq.s32.totalorder %v260_v19, %v5158_v12  ;;  %vm2144_vm15 = vcmp.eq.s32.totalorder %v260_v19, %v5165_v15  ;;  %vm658_vm0 = vcmp.eq.s32.totalorder %v388_v25, %v5131_v57 }
  0xa9   :  { %3418 = vmatpush.msra.mxu0 %v3185_v29  ;;  %v3313_v34 = vadd.f32 %v3057_v31, %v2801_v30  ;;  %v1342_v35 = vsel %vm1068_vm13, %v5155_v11, 0.0  ;;  %v1880_v36 = vsel %vm1606_vm14, %v5162_v14, 0.0  ;;  %v2418_v37 = vsel %vm2144_vm15, %v5168_v16, 0.0 }
  0xaa   :  { %v2674_v38 = vadd.f32 %v1342_v35, %v804_v32  ;;  %v2930_v42 = vadd.f32 %v2418_v37, %v1880_v36  ;;  %v932_v47 = vsel %vm658_vm0, %v5149_v7, 0.0  ;;  %vm1196_vm1 = vcmp.eq.s32.totalorder %v388_v25, %v5152_v10  ;;  %v371_v35 = vld [vmem:[#allocation11 + $0x500] sm:$0xff] }
  0xab   :  { %3459 = vmatpush.msra.mxu1 %v3313_v34  ;;  %v1470_v58 = vsel %vm1196_vm1, %v5155_v11, 0.0  ;;  %vm1734_vm2 = vcmp.eq.s32.totalorder %v388_v25, %v5158_v12  ;;  %vm2272_vm3 = vcmp.eq.s32.totalorder %v388_v25, %v5165_v15  ;;  %vm521_vm4 = vcmp.eq.s32.totalorder %v251_v33, %v5103_v48 }
  0xac   :  { %v3186_v60 = vadd.f32 %v2930_v42, %v2674_v38  ;;  %v2008_v61 = vsel %vm1734_vm2, %v5162_v14, 0.0  ;;  %v2546_v62 = vsel %vm2272_vm3, %v5168_v16, 0.0  ;;  %v2802_v63 = vadd.f32 %v1470_v58, %v932_v47 }
  0xad   :  { %v3058_v0 = vadd.f32 %v2546_v62, %v2008_v61  ;;  %v795_v1 = vsel %vm521_vm4, %v5106_v49, 0.0  ;;  %vm1059_vm5 = vcmp.eq.s32.totalorder %v251_v33, %v5114_v52  ;;  %vm1597_vm6 = vcmp.eq.s32.totalorder %v251_v33, %v5120_v54  ;;  %v244_v61 = vld [vmem:[#allocation11 + $0x108] sm:$0xff] }
  0xae   :  { %3500 = vmatpush.msra.mxu2 %v3186_v60  ;;  %v1333_v2 = vsel %vm1059_vm5, %v5117_v53, 0.0  ;;  %v1871_v3 = vsel %vm1597_vm6, %v5109_v50, 0.0  ;;  %vm2135_vm7 = vcmp.eq.s32.totalorder %v251_v33, %v5123_v55  ;;  %vm649_vm8 = vcmp.eq.s32.totalorder %v379_v59, %v5103_v48 }
  0xaf   :  { %v3314_v5 = vadd.f32 %v3058_v0, %v2802_v63  ;;  %v2409_v6 = vsel %vm2135_vm7, %v5127_v56, 0.0  ;;  %v2665_v8 = vadd.f32 %v1333_v2, %v795_v1  ;;  %v923_v9 = vsel %vm649_vm8, %v5106_v49, 0.0 }
  0xb0   :  { %v2921_v13 = vadd.f32 %v2409_v6, %v1871_v3  ;;  %vm1187_vm9 = vcmp.eq.s32.totalorder %v379_v59, %v5114_v52  ;;  %vm1725_vm10 = vcmp.eq.s32.totalorder %v379_v59, %v5120_v54  ;;  %vm2263_vm11 = vcmp.eq.s32.totalorder %v379_v59, %v5123_v55  ;;  %v372_v3 = vld [vmem:[#allocation11 + $0x508] sm:$0xff] }
  0xb1   :  { %3541 = vmatpush.msra.mxu3 %v3314_v5  ;;  %v1461_v19 = vsel %vm1187_vm9, %v5117_v53, 0.0  ;;  %v1999_v20 = vsel %vm1725_vm10, %v5109_v50, 0.0  ;;  %v2537_v21 = vsel %vm2263_vm11, %v5127_v56, 0.0  ;;  %vm522_vm12 = vcmp.eq.s32.totalorder %v252_v4, %v5131_v57 }
  0xb2   :  { %v3177_v22 = vadd.f32 %v2921_v13, %v2665_v8  ;;  %v2793_v23 = vadd.f32 %v1461_v19, %v923_v9  ;;  %v3049_v24 = vadd.f32 %v2537_v21, %v1999_v20  ;;  %v796_v25 = vsel %vm522_vm12, %v5149_v7, 0.0  ;;  %v235_v19 = vld [vmem:[#allocation11 + $0xc0] sm:$0xff] }
  0xb3   :  { %vm1060_vm13 = vcmp.eq.s32.totalorder %v252_v4, %v5152_v10  ;;  %vm1598_vm14 = vcmp.eq.s32.totalorder %v252_v4, %v5158_v12  ;;  %vm2136_vm15 = vcmp.eq.s32.totalorder %v252_v4, %v5165_v15  ;;  %vm650_vm0 = vcmp.eq.s32.totalorder %v380_v17, %v5131_v57 }
  0xb4   :  { %3419 = vmatpush.msra.mxu0 %v3177_v22  ;;  %v3305_v27 = vadd.f32 %v3049_v24, %v2793_v23  ;;  %v1334_v28 = vsel %vm1060_vm13, %v5155_v11, 0.0  ;;  %v1872_v29 = vsel %vm1598_vm14, %v5162_v14, 0.0  ;;  %v2410_v30 = vsel %vm2136_vm15, %v5168_v16, 0.0 }
  0xb5   :  { %v2666_v31 = vadd.f32 %v1334_v28, %v796_v25  ;;  %v2922_v32 = vadd.f32 %v2410_v30, %v1872_v29  ;;  %v924_v33 = vsel %vm650_vm0, %v5149_v7, 0.0  ;;  %vm1188_vm1 = vcmp.eq.s32.totalorder %v380_v17, %v5152_v10  ;;  %v363_v28 = vld [vmem:[#allocation11 + $0x4c0] sm:$0xff] }
  0xb6   :  { %3460 = vmatpush.msra.mxu1 %v3305_v27  ;;  %v1462_v34 = vsel %vm1188_vm1, %v5155_v11, 0.0  ;;  %vm1726_vm2 = vcmp.eq.s32.totalorder %v380_v17, %v5158_v12  ;;  %vm2264_vm3 = vcmp.eq.s32.totalorder %v380_v17, %v5165_v15  ;;  %vm513_vm4 = vcmp.eq.s32.totalorder %v243_v26, %v5103_v48 }
  0xb7   :  { %v3178_v36 = vadd.f32 %v2922_v32, %v2666_v31  ;;  %v2000_v37 = vsel %vm1726_vm2, %v5162_v14, 0.0  ;;  %v2538_v38 = vsel %vm2264_vm3, %v5168_v16, 0.0  ;;  %v2794_v42 = vadd.f32 %v1462_v34, %v924_v33 }
  0xb8   :  { %v3050_v47 = vadd.f32 %v2538_v38, %v2000_v37  ;;  %v787_v58 = vsel %vm513_vm4, %v5106_v49, 0.0  ;;  %vm1051_vm5 = vcmp.eq.s32.totalorder %v243_v26, %v5114_v52  ;;  %vm1589_vm6 = vcmp.eq.s32.totalorder %v243_v26, %v5120_v54  ;;  %v236_v37 = vld [vmem:[#allocation11 + $0xc8] sm:$0xff] }
  0xb9   :  { %3501 = vmatpush.msra.mxu2 %v3178_v36  ;;  %v1325_v59 = vsel %vm1051_vm5, %v5117_v53, 0.0  ;;  %v1863_v60 = vsel %vm1589_vm6, %v5109_v50, 0.0  ;;  %vm2127_vm7 = vcmp.eq.s32.totalorder %v243_v26, %v5123_v55  ;;  %vm641_vm8 = vcmp.eq.s32.totalorder %v371_v35, %v5103_v48 }
  0xba   :  { %v3306_v62 = vadd.f32 %v3050_v47, %v2794_v42  ;;  %v2401_v63 = vsel %vm2127_vm7, %v5127_v56, 0.0  ;;  %v2657_v0 = vadd.f32 %v1325_v59, %v787_v58  ;;  %v915_v1 = vsel %vm641_vm8, %v5106_v49, 0.0 }
  0xbb   :  { %v2913_v2 = vadd.f32 %v2401_v63, %v1863_v60  ;;  %vm1179_vm9 = vcmp.eq.s32.totalorder %v371_v35, %v5114_v52  ;;  %vm1717_vm10 = vcmp.eq.s32.totalorder %v371_v35, %v5120_v54  ;;  %vm2255_vm11 = vcmp.eq.s32.totalorder %v371_v35, %v5123_v55  ;;  %v364_v60 = vld [vmem:[#allocation11 + $0x4c8] sm:$0xff] }
  0xbc   :  { %3542 = vmatpush.msra.mxu3 %v3306_v62  ;;  %v1453_v4 = vsel %vm1179_vm9, %v5117_v53, 0.0  ;;  %v1991_v5 = vsel %vm1717_vm10, %v5109_v50, 0.0  ;;  %v2529_v6 = vsel %vm2255_vm11, %v5127_v56, 0.0  ;;  %vm514_vm12 = vcmp.eq.s32.totalorder %v244_v61, %v5131_v57 }
  0xbd   :  { %v3169_v8 = vadd.f32 %v2913_v2, %v2657_v0  ;;  %v2785_v9 = vadd.f32 %v1453_v4, %v915_v1  ;;  %v3041_v13 = vadd.f32 %v2529_v6, %v1991_v5  ;;  %v788_v17 = vsel %vm514_vm12, %v5149_v7, 0.0  ;;  %v227_v4 = vld [vmem:[#allocation11 + $0x80] sm:$0xff] }
  0xbe   :  { %vm1052_vm13 = vcmp.eq.s32.totalorder %v244_v61, %v5152_v10  ;;  %vm1590_vm14 = vcmp.eq.s32.totalorder %v244_v61, %v5158_v12  ;;  %vm2128_vm15 = vcmp.eq.s32.totalorder %v244_v61, %v5165_v15  ;;  %vm642_vm0 = vcmp.eq.s32.totalorder %v372_v3, %v5131_v57 }
  0xbf   :  { %3420 = vmatpush.msra.mxu0 %v3169_v8  ;;  %v3297_v20 = vadd.f32 %v3041_v13, %v2785_v9  ;;  %v1326_v21 = vsel %vm1052_vm13, %v5155_v11, 0.0  ;;  %v1864_v22 = vsel %vm1590_vm14, %v5162_v14, 0.0  ;;  %v2402_v23 = vsel %vm2128_vm15, %v5168_v16, 0.0 }
  0xc0   :  { %v2658_v24 = vadd.f32 %v1326_v21, %v788_v17  ;;  %v2914_v25 = vadd.f32 %v2402_v23, %v1864_v22  ;;  %v916_v26 = vsel %vm642_vm0, %v5149_v7, 0.0  ;;  %vm1180_vm1 = vcmp.eq.s32.totalorder %v372_v3, %v5152_v10  ;;  %v355_v21 = vld [vmem:[#allocation11 + $0x480] sm:$0xff] }
  0xc1   :  { %3461 = vmatpush.msra.mxu1 %v3297_v20  ;;  %v1454_v27 = vsel %vm1180_vm1, %v5155_v11, 0.0  ;;  %vm1718_vm2 = vcmp.eq.s32.totalorder %v372_v3, %v5158_v12  ;;  %vm2256_vm3 = vcmp.eq.s32.totalorder %v372_v3, %v5165_v15  ;;  %vm505_vm4 = vcmp.eq.s32.totalorder %v235_v19, %v5103_v48 }
  0xc2   :  { %v3170_v29 = vadd.f32 %v2914_v25, %v2658_v24  ;;  %v1992_v30 = vsel %vm1718_vm2, %v5162_v14, 0.0  ;;  %v2530_v31 = vsel %vm2256_vm3, %v5168_v16, 0.0  ;;  %v2786_v32 = vadd.f32 %v1454_v27, %v916_v26 }
  0xc3   :  { %v3042_v33 = vadd.f32 %v2530_v31, %v1992_v30  ;;  %v779_v34 = vsel %vm505_vm4, %v5106_v49, 0.0  ;;  %vm1043_vm5 = vcmp.eq.s32.totalorder %v235_v19, %v5114_v52  ;;  %vm1581_vm6 = vcmp.eq.s32.totalorder %v235_v19, %v5120_v54  ;;  %v228_v30 = vld [vmem:[#allocation11 + $0x88] sm:$0xff] }
  0xc4   :  { %3502 = vmatpush.msra.mxu2 %v3170_v29  ;;  %v1317_v35 = vsel %vm1043_vm5, %v5117_v53, 0.0  ;;  %v1855_v36 = vsel %vm1581_vm6, %v5109_v50, 0.0  ;;  %vm2119_vm7 = vcmp.eq.s32.totalorder %v235_v19, %v5123_v55  ;;  %vm633_vm8 = vcmp.eq.s32.totalorder %v363_v28, %v5103_v48 }
  0xc5   :  { %v3298_v38 = vadd.f32 %v3042_v33, %v2786_v32  ;;  %v2393_v42 = vsel %vm2119_vm7, %v5127_v56, 0.0  ;;  %v2649_v47 = vadd.f32 %v1317_v35, %v779_v34  ;;  %v907_v58 = vsel %vm633_vm8, %v5106_v49, 0.0 }
  0xc6   :  { %v2905_v59 = vadd.f32 %v2393_v42, %v1855_v36  ;;  %vm1171_vm9 = vcmp.eq.s32.totalorder %v363_v28, %v5114_v52  ;;  %vm1709_vm10 = vcmp.eq.s32.totalorder %v363_v28, %v5120_v54  ;;  %vm2247_vm11 = vcmp.eq.s32.totalorder %v363_v28, %v5123_v55  ;;  %v356_v36 = vld [vmem:[#allocation11 + $0x488] sm:$0xff] }
  0xc7   :  { %3543 = vmatpush.msra.mxu3 %v3298_v38  ;;  %v1445_v61 = vsel %vm1171_vm9, %v5117_v53, 0.0  ;;  %v1983_v62 = vsel %vm1709_vm10, %v5109_v50, 0.0  ;;  %v2521_v63 = vsel %vm2247_vm11, %v5127_v56, 0.0  ;;  %vm506_vm12 = vcmp.eq.s32.totalorder %v236_v37, %v5131_v57 }
  0xc8   :  { %v3161_v0 = vadd.f32 %v2905_v59, %v2649_v47  ;;  %v2777_v1 = vadd.f32 %v1445_v61, %v907_v58  ;;  %v3033_v2 = vadd.f32 %v2521_v63, %v1983_v62  ;;  %v780_v3 = vsel %vm506_vm12, %v5149_v7, 0.0  ;;  %v219_v61 = vld [vmem:[#allocation11 + $0x40] sm:$0xff] }
  0xc9   :  { %vm1044_vm13 = vcmp.eq.s32.totalorder %v236_v37, %v5152_v10  ;;  %vm1582_vm14 = vcmp.eq.s32.totalorder %v236_v37, %v5158_v12  ;;  %vm2120_vm15 = vcmp.eq.s32.totalorder %v236_v37, %v5165_v15  ;;  %vm634_vm0 = vcmp.eq.s32.totalorder %v364_v60, %v5131_v57 }
  0xca   :  { %3421 = vmatpush.msra.mxu0 %v3161_v0  ;;  %v3289_v5 = vadd.f32 %v3033_v2, %v2777_v1  ;;  %v1318_v6 = vsel %vm1044_vm13, %v5155_v11, 0.0  ;;  %v1856_v8 = vsel %vm1582_vm14, %v5162_v14, 0.0  ;;  %v2394_v9 = vsel %vm2120_vm15, %v5168_v16, 0.0 }
  0xcb   :  { %v2650_v13 = vadd.f32 %v1318_v6, %v780_v3  ;;  %v2906_v17 = vadd.f32 %v2394_v9, %v1856_v8  ;;  %v908_v19 = vsel %vm634_vm0, %v5149_v7, 0.0  ;;  %vm1172_vm1 = vcmp.eq.s32.totalorder %v364_v60, %v5152_v10  ;;  %v347_v6 = vld [vmem:[#allocation11 + $0x440] sm:$0xff] }
  0xcc   :  { %3462 = vmatpush.msra.mxu1 %v3289_v5  ;;  %v1446_v20 = vsel %vm1172_vm1, %v5155_v11, 0.0  ;;  %vm1710_vm2 = vcmp.eq.s32.totalorder %v364_v60, %v5158_v12  ;;  %vm2248_vm3 = vcmp.eq.s32.totalorder %v364_v60, %v5165_v15  ;;  %vm497_vm4 = vcmp.eq.s32.totalorder %v227_v4, %v5103_v48 }
  0xcd   :  { %v3162_v22 = vadd.f32 %v2906_v17, %v2650_v13  ;;  %v1984_v23 = vsel %vm1710_vm2, %v5162_v14, 0.0  ;;  %v2522_v24 = vsel %vm2248_vm3, %v5168_v16, 0.0  ;;  %v2778_v25 = vadd.f32 %v1446_v20, %v908_v19 }
  0xce   :  { %v3034_v26 = vadd.f32 %v2522_v24, %v1984_v23  ;;  %v771_v27 = vsel %vm497_vm4, %v5106_v49, 0.0  ;;  %vm1035_vm5 = vcmp.eq.s32.totalorder %v227_v4, %v5114_v52  ;;  %vm1573_vm6 = vcmp.eq.s32.totalorder %v227_v4, %v5120_v54  ;;  %v220_v23 = vld [vmem:[#allocation11 + $0x48] sm:$0xff] }
  0xcf   :  { %3503 = vmatpush.msra.mxu2 %v3162_v22  ;;  %v1309_v28 = vsel %vm1035_vm5, %v5117_v53, 0.0  ;;  %v1847_v29 = vsel %vm1573_vm6, %v5109_v50, 0.0  ;;  %vm2111_vm7 = vcmp.eq.s32.totalorder %v227_v4, %v5123_v55  ;;  %vm625_vm8 = vcmp.eq.s32.totalorder %v355_v21, %v5103_v48 }
  0xd0   :  { %v3290_v31 = vadd.f32 %v3034_v26, %v2778_v25  ;;  %v2385_v32 = vsel %vm2111_vm7, %v5127_v56, 0.0  ;;  %v2641_v33 = vadd.f32 %v1309_v28, %v771_v27  ;;  %v899_v34 = vsel %vm625_vm8, %v5106_v49, 0.0 }
  0xd1   :  { %v2897_v35 = vadd.f32 %v2385_v32, %v1847_v29  ;;  %vm1163_vm9 = vcmp.eq.s32.totalorder %v355_v21, %v5114_v52  ;;  %vm1701_vm10 = vcmp.eq.s32.totalorder %v355_v21, %v5120_v54  ;;  %vm2239_vm11 = vcmp.eq.s32.totalorder %v355_v21, %v5123_v55  ;;  %v348_v29 = vld [vmem:[#allocation11 + $0x448] sm:$0xff] }
  0xd2   :  { %3544 = vmatpush.msra.mxu3 %v3290_v31  ;;  %v1437_v37 = vsel %vm1163_vm9, %v5117_v53, 0.0  ;;  %v1975_v38 = vsel %vm1701_vm10, %v5109_v50, 0.0  ;;  %v2513_v42 = vsel %vm2239_vm11, %v5127_v56, 0.0  ;;  %vm498_vm12 = vcmp.eq.s32.totalorder %v228_v30, %v5131_v57 }
  0xd3   :  { %v3153_v47 = vadd.f32 %v2897_v35, %v2641_v33  ;;  %v2769_v58 = vadd.f32 %v1437_v37, %v899_v34  ;;  %v3025_v59 = vadd.f32 %v2513_v42, %v1975_v38  ;;  %v772_v60 = vsel %vm498_vm12, %v5149_v7, 0.0  ;;  %v211_v37 = vld [vmem:[#allocation11] sm:$0xff] }
  0xd4   :  { %vm1036_vm13 = vcmp.eq.s32.totalorder %v228_v30, %v5152_v10  ;;  %vm1574_vm14 = vcmp.eq.s32.totalorder %v228_v30, %v5158_v12  ;;  %vm2112_vm15 = vcmp.eq.s32.totalorder %v228_v30, %v5165_v15  ;;  %vm626_vm0 = vcmp.eq.s32.totalorder %v356_v36, %v5131_v57 }
  0xd5   :  { %3422 = vmatpush.msra.mxu0 %v3153_v47  ;;  %v3281_v62 = vadd.f32 %v3025_v59, %v2769_v58  ;;  %v1310_v63 = vsel %vm1036_vm13, %v5155_v11, 0.0  ;;  %v1848_v0 = vsel %vm1574_vm14, %v5162_v14, 0.0  ;;  %v2386_v1 = vsel %vm2112_vm15, %v5168_v16, 0.0 }
  0xd6   :  { %v2642_v2 = vadd.f32 %v1310_v63, %v772_v60  ;;  %v2898_v3 = vadd.f32 %v2386_v1, %v1848_v0  ;;  %v900_v4 = vsel %vm626_vm0, %v5149_v7, 0.0  ;;  %vm1164_vm1 = vcmp.eq.s32.totalorder %v356_v36, %v5152_v10  ;;  %v339_v63 = vld [vmem:[#allocation11 + $0x400] sm:$0xff] }
  0xd7   :  { %3463 = vmatpush.msra.mxu1 %v3281_v62  ;;  %v1438_v5 = vsel %vm1164_vm1, %v5155_v11, 0.0  ;;  %vm1702_vm2 = vcmp.eq.s32.totalorder %v356_v36, %v5158_v12  ;;  %vm2240_vm3 = vcmp.eq.s32.totalorder %v356_v36, %v5165_v15  ;;  %vm489_vm4 = vcmp.eq.s32.totalorder %v219_v61, %v5103_v48 }
  0xd8   :  { %v3154_v8 = vadd.f32 %v2898_v3, %v2642_v2  ;;  %v1976_v9 = vsel %vm1702_vm2, %v5162_v14, 0.0  ;;  %v2514_v13 = vsel %vm2240_vm3, %v5168_v16, 0.0  ;;  %v2770_v17 = vadd.f32 %v1438_v5, %v900_v4 }
  0xd9   :  { %v3026_v19 = vadd.f32 %v2514_v13, %v1976_v9  ;;  %v763_v20 = vsel %vm489_vm4, %v5106_v49, 0.0  ;;  %vm1027_vm5 = vcmp.eq.s32.totalorder %v219_v61, %v5114_v52  ;;  %vm1565_vm6 = vcmp.eq.s32.totalorder %v219_v61, %v5120_v54  ;;  %v212_v9 = vld [vmem:[#allocation11 + $0x8] sm:$0xff] }
  0xda   :  { %3504 = vmatpush.msra.mxu2 %v3154_v8  ;;  %v1301_v21 = vsel %vm1027_vm5, %v5117_v53, 0.0  ;;  %v1839_v22 = vsel %vm1565_vm6, %v5109_v50, 0.0  ;;  %vm2103_vm7 = vcmp.eq.s32.totalorder %v219_v61, %v5123_v55  ;;  %vm617_vm8 = vcmp.eq.s32.totalorder %v347_v6, %v5103_v48 }
  0xdb   :  { %v3282_v24 = vadd.f32 %v3026_v19, %v2770_v17  ;;  %v2377_v25 = vsel %vm2103_vm7, %v5127_v56, 0.0  ;;  %v2633_v26 = vadd.f32 %v1301_v21, %v763_v20  ;;  %v891_v27 = vsel %vm617_vm8, %v5106_v49, 0.0 }
  0xdc   :  { %v2889_v28 = vadd.f32 %v2377_v25, %v1839_v22  ;;  %vm1155_vm9 = vcmp.eq.s32.totalorder %v347_v6, %v5114_v52  ;;  %vm1693_vm10 = vcmp.eq.s32.totalorder %v347_v6, %v5120_v54  ;;  %vm2231_vm11 = vcmp.eq.s32.totalorder %v347_v6, %v5123_v55  ;;  %v340_v22 = vld [vmem:[#allocation11 + $0x408] sm:$0xff] }
  0xdd   :  { %3545 = vmatpush.msra.mxu3 %v3282_v24  ;;  %v1429_v30 = vsel %vm1155_vm9, %v5117_v53, 0.0  ;;  %v1967_v31 = vsel %vm1693_vm10, %v5109_v50, 0.0  ;;  %v2505_v32 = vsel %vm2231_vm11, %v5127_v56, 0.0  ;;  %vm490_vm12 = vcmp.eq.s32.totalorder %v220_v23, %v5131_v57 }
  0xde   :  { %v3145_v33 = vadd.f32 %v2889_v28, %v2633_v26  ;;  %v2761_v34 = vadd.f32 %v1429_v30, %v891_v27  ;;  %v3017_v35 = vadd.f32 %v2505_v32, %v1967_v31  ;;  %v764_v36 = vsel %vm490_vm12, %v5149_v7, 0.0  ;;  %v334_v31 = vld [vmem:[#allocation11 + $0x3d8] sm:$0xff] }
  0xdf   :  { %vm1028_vm13 = vcmp.eq.s32.totalorder %v220_v23, %v5152_v10  ;;  %vm1566_vm14 = vcmp.eq.s32.totalorder %v220_v23, %v5158_v12  ;;  %vm2104_vm15 = vcmp.eq.s32.totalorder %v220_v23, %v5165_v15  ;;  %vm618_vm0 = vcmp.eq.s32.totalorder %v348_v29, %v5131_v57 }
  0xe0   :  { %3423 = vmatpush.msra.mxu0 %v3145_v33  ;;  %v3273_v38 = vadd.f32 %v3017_v35, %v2761_v34  ;;  %v1302_v42 = vsel %vm1028_vm13, %v5155_v11, 0.0  ;;  %v1840_v47 = vsel %vm1566_vm14, %v5162_v14, 0.0  ;;  %v2378_v58 = vsel %vm2104_vm15, %v5168_v16, 0.0 }
  0xe1   :  { %v2634_v59 = vadd.f32 %v1302_v42, %v764_v36  ;;  %v2890_v60 = vadd.f32 %v2378_v58, %v1840_v47  ;;  %v892_v61 = vsel %vm618_vm0, %v5149_v7, 0.0  ;;  %vm1156_vm1 = vcmp.eq.s32.totalorder %v348_v29, %v5152_v10 }
  0xe2   :  { %3464 = vmatpush.msra.mxu1 %v3273_v38  ;;  %v1430_v62 = vsel %vm1156_vm1, %v5155_v11, 0.0  ;;  %vm1694_vm2 = vcmp.eq.s32.totalorder %v348_v29, %v5158_v12  ;;  %vm2232_vm3 = vcmp.eq.s32.totalorder %v348_v29, %v5165_v15  ;;  %vm481_vm4 = vcmp.eq.s32.totalorder %v211_v37, %v5103_v48 }
  0xe3   :  { %v3146_v0 = vadd.f32 %v2890_v60, %v2634_v59  ;;  %v1968_v1 = vsel %vm1694_vm2, %v5162_v14, 0.0  ;;  %v2506_v2 = vsel %vm2232_vm3, %v5168_v16, 0.0  ;;  %v2762_v3 = vadd.f32 %v1430_v62, %v892_v61  ;;  %v326_v59 = vld [vmem:[#allocation11 + $0x398] sm:$0xff]  ;;  %v3395_v60 = vld [vmem:[#allocation9 + $0x10] sm:$0xff] }
  0xe4   :  { %v3018_v4 = vadd.f32 %v2506_v2, %v1968_v1  ;;  %v755_v5 = vsel %vm481_vm4, %v5106_v49, 0.0  ;;  %vm1019_vm5 = vcmp.eq.s32.totalorder %v211_v37, %v5114_v52  ;;  %vm1557_vm6 = vcmp.eq.s32.totalorder %v211_v37, %v5120_v54  ;;  %v3396_v1 = vld [vmem:[#allocation9 + $0x18] sm:$0xff] }
  0xe5   :  { %3505 = vmatpush.msra.mxu2 %v3146_v0  ;;  %v1293_v6 = vsel %vm1019_vm5, %v5117_v53, 0.0  ;;  %v1831_v8 = vsel %vm1557_vm6, %v5109_v50, 0.0  ;;  %vm2095_vm7 = vcmp.eq.s32.totalorder %v211_v37, %v5123_v55  ;;  %vm609_vm8 = vcmp.eq.s32.totalorder %v339_v63, %v5103_v48 }
  0xe6   :  { %v3274_v13 = vadd.f32 %v3018_v4, %v2762_v3  ;;  %v2369_v17 = vsel %vm2095_vm7, %v5127_v56, 0.0  ;;  %v2625_v19 = vadd.f32 %v1293_v6, %v755_v5  ;;  %v883_v20 = vsel %vm609_vm8, %v5106_v49, 0.0  ;;  %v454_v3 = vld [vmem:[#allocation11 + $0x798] sm:$0xff] }
  0xe7   :  { %v2881_v21 = vadd.f32 %v2369_v17, %v1831_v8  ;;  %vm1147_vm9 = vcmp.eq.s32.totalorder %v339_v63, %v5114_v52  ;;  %vm1685_vm10 = vcmp.eq.s32.totalorder %v339_v63, %v5120_v54  ;;  %vm2223_vm11 = vcmp.eq.s32.totalorder %v339_v63, %v5123_v55  ;;  %v3393_v52 = vld [vmem:[#allocation9] sm:$0xff] }
  0xe8   :  { %3546 = vmatpush.msra.mxu3 %v3274_v13  ;;  %v1421_v23 = vsel %vm1147_vm9, %v5117_v53, 0.0  ;;  %v1959_v48 = vsel %vm1685_vm10, %v5109_v50, 0.0  ;;  %v2497_v24 = vsel %vm2223_vm11, %v5127_v56, 0.0  ;;  %vm482_vm12 = vcmp.eq.s32.totalorder %v212_v9, %v5131_v57  ;;  %v3394_v56 = vld [vmem:[#allocation9 + $0x8] sm:$0xff] }
  0xe9   :  { %v3137_v25 = vadd.f32 %v2881_v21, %v2625_v19  ;;  %v2753_v26 = vadd.f32 %v1421_v23, %v883_v20  ;;  %v3009_v49 = vadd.f32 %v2497_v24, %v1959_v48  ;;  %v756_v27 = vsel %vm482_vm12, %v5149_v7, 0.0 }
  0xea   :  { %vm1020_vm13 = vcmp.eq.s32.totalorder %v212_v9, %v5152_v10  ;;  %vm1558_vm14 = vcmp.eq.s32.totalorder %v212_v9, %v5158_v12  ;;  %vm2096_vm15 = vcmp.eq.s32.totalorder %v212_v9, %v5165_v15  ;;  %vm610_vm0 = vcmp.eq.s32.totalorder %v340_v22, %v5131_v57 }
  0xeb   :  { %3424 = vmatpush.msra.mxu0 %v3137_v25  ;;  %v3265_v50 = vadd.f32 %v3009_v49, %v2753_v26  ;;  %v1294_v53 = vsel %vm1020_vm13, %v5155_v11, 0.0  ;;  %v1832_v54 = vsel %vm1558_vm14, %v5162_v14, 0.0  ;;  %v2370_v55 = vsel %vm2096_vm15, %v5168_v16, 0.0  ;;  %v333_v25 = vld [vmem:[#allocation11 + $0x3d0] sm:$0xff] }
  0xec   :  { %v2626_v28 = vadd.f32 %v1294_v53, %v756_v27  ;;  %v2882_v29 = vadd.f32 %v2370_v55, %v1832_v54  ;;  %v884_v30 = vsel %vm610_vm0, %v5149_v7, 0.0  ;;  %vm1148_vm1 = vcmp.eq.s32.totalorder %v340_v22, %v5152_v10  ;;  %3425 = vmatmul.f32.vlgmr.msra.gmra.mxu0 %v3393_v52  ;;  %v3397_v27 = vld [vmem:[#allocation9 + $0x20] sm:$0xff]  ;;  %v3398_v55 = vld [vmem:[#allocation9 + $0x28] sm:$0xff] }
  0xed   :  { %3465 = vmatpush.msra.mxu1 %v3265_v50  ;;  %v1422_v57 = vsel %vm1148_vm1, %v5155_v11, 0.0  ;;  %vm1686_vm2 = vcmp.eq.s32.totalorder %v340_v22, %v5158_v12  ;;  %vm2224_vm3 = vcmp.eq.s32.totalorder %v340_v22, %v5165_v15  ;;  %v5663_v32 = vperm.slane %v5088_v39, 3  ;;  %v462_v12 = vld [vmem:[#allocation11 + $0x7d8] sm:$0xff] }
  0xee   :  { %v3138_v33 = vadd.f32 %v2882_v29, %v2626_v28  ;;  %v1960_v34 = vsel %vm1686_vm2, %v5162_v14, 0.0  ;;  %v2498_v35 = vsel %vm2224_vm3, %v5168_v16, 0.0  ;;  %v2754_v7 = vadd.f32 %v1422_v57, %v884_v30  ;;  %3466 = vmatmul.f32.vlgmr.msra.gmra.mxu1 %v3394_v56  ;;  %v461_v30 = vld [vmem:[#allocation11 + $0x7d0] sm:$0xff] }
  0xef   :  { %v3010_v10 = vadd.f32 %v2498_v35, %v1960_v34  ;;  %vm604_vm4 = vcmp.eq.s32.totalorder %v334_v31, %v5663_v32  ;;  %v5669_v36 = vperm.slane %v5090_v40, 3  ;;  %v5672_v11 = vperm.slane %v5094_v43, 3 }
  0xf0   :  { %3506 = vmatpush.msra.mxu2 %v3138_v33  ;;  %v5675_v15 = vperm.slane %v5100_v46, 3  ;;  %v5678_v14 = vperm.slane %v5096_v44, 3  ;;  %v5681_v16 = vperm.slane %v5092_v41, 3  ;;  %v5684_v37 = vperm.slane %v5098_v45, 3 }
  0xf1   :  { %v3266_v38 = vadd.f32 %v3010_v10, %v2754_v7  ;;  %3507 = vmatmul.f32.vlgmr.msra.gmra.mxu2 %v3393_v52  ;;  %v878_v42 = vsel %vm604_vm4, %v5669_v36, 0.0  ;;  %vm1142_vm5 = vcmp.eq.s32.totalorder %v334_v31, %v5672_v11  ;;  %v5689_v47 = vperm.slane %v5111_v51, 3 }
  0xf2   :  { %v1416_v58 = vsel %vm1142_vm5, %v5675_v15, 0.0  ;;  %vm1680_vm6 = vcmp.eq.s32.totalorder %v334_v31, %v5678_v14  ;;  %vm2218_vm7 = vcmp.eq.s32.totalorder %v334_v31, %v5684_v37  ;;  %vm732_vm8 = vcmp.eq.s32.totalorder %v462_v12, %v5663_v32 }
  0xf3   :  { %3547 = vmatpush.msra.mxu3 %v3266_v38  ;;  %v1954_v61 = vsel %vm1680_vm6, %v5681_v16, 0.0  ;;  %v2492_v62 = vsel %vm2218_vm7, %v5689_v47, 0.0  ;;  %v2748_v63 = vadd.f32 %v1416_v58, %v878_v42  ;;  %v1006_v0 = vsel %vm732_vm8, %v5669_v36, 0.0  ;;  %v318_v38 = vld [vmem:[#allocation11 + $0x358] sm:$0xff] }
  0xf4   :  { %3548 = vmatmul.f32.vlgmr.msra.gmra.mxu3 %v3394_v56  ;;  %v3004_v2 = vadd.f32 %v2492_v62, %v1954_v61  ;;  %vm1270_vm9 = vcmp.eq.s32.totalorder %v462_v12, %v5672_v11  ;;  %vm1808_vm10 = vcmp.eq.s32.totalorder %v462_v12, %v5678_v14  ;;  %vm2346_vm11 = vcmp.eq.s32.totalorder %v462_v12, %v5684_v37  ;;  %v446_v62 = vld [vmem:[#allocation11 + $0x758] sm:$0xff] }
  0xf5   :  { %v1544_v4 = vsel %vm1270_vm9, %v5675_v15, 0.0  ;;  %v2082_v5 = vsel %vm1808_vm10, %v5681_v16, 0.0  ;;  %v2620_v6 = vsel %vm2346_vm11, %v5689_v47, 0.0  ;;  %vm596_vm12 = vcmp.eq.s32.totalorder %v326_v59, %v5663_v32  ;;  %3428 = vmatmul.f32.gmra.mxu0 %v3395_v60 }
  0xf6   :  { %v3260_v8 = vadd.f32 %v3004_v2, %v2748_v63  ;;  %v2876_v9 = vadd.f32 %v1544_v4, %v1006_v0  ;;  %v3132_v13 = vadd.f32 %v2620_v6, %v2082_v5  ;;  %v870_v17 = vsel %vm596_vm12, %v5669_v36, 0.0  ;;  %3469 = vmatmul.f32.gmra.mxu1 %v3396_v1  ;;  %v3399_v6 = vld [vmem:[#allocation9 + $0x30] sm:$0xff] }
  0xf7   :  { %vm1134_vm13 = vcmp.eq.s32.totalorder %v326_v59, %v5672_v11  ;;  %vm1672_vm14 = vcmp.eq.s32.totalorder %v326_v59, %v5678_v14  ;;  %vm2210_vm15 = vcmp.eq.s32.totalorder %v326_v59, %v5684_v37  ;;  %vm724_vm0 = vcmp.eq.s32.totalorder %v454_v3, %v5663_v32 }
  0xf8   :  { %3655 = vmatpush.msrb.mxu2 %v3260_v8  ;;  %v3388_v19 = vadd.f32 %v3132_v13, %v2876_v9  ;;  %v1408_v20 = vsel %vm1134_vm13, %v5675_v15, 0.0  ;;  %v1946_v21 = vsel %vm1672_vm14, %v5681_v16, 0.0  ;;  %v2484_v22 = vsel %vm2210_vm15, %v5689_v47, 0.0  ;;  %v3400_v8 = vld [vmem:[#allocation9 + $0x38] sm:$0xff]  ;;  %v325_v9 = vld [vmem:[#allocation11 + $0x390] sm:$0xff] }
  0xf9   :  { %v2740_v23 = vadd.f32 %v1408_v20, %v870_v17  ;;  %v2996_v48 = vadd.f32 %v2484_v22, %v1946_v21  ;;  %v998_v24 = vsel %vm724_vm0, %v5669_v36, 0.0  ;;  %vm1262_vm1 = vcmp.eq.s32.totalorder %v454_v3, %v5672_v11  ;;  %3510 = vmatmul.f32.gmra.mxu2 %v3395_v60 }
  0xfa   :  { %3696 = vmatpush.msrb.mxu3 %v3388_v19  ;;  %v1536_v26 = vsel %vm1262_vm1, %v5675_v15, 0.0  ;;  %vm1800_vm2 = vcmp.eq.s32.totalorder %v454_v3, %v5678_v14  ;;  %vm2338_vm3 = vcmp.eq.s32.totalorder %v454_v3, %v5684_v37  ;;  %v5719_v49 = vperm.slane %v5088_v39, 2 }
  0xfb   :  { %v3252_v52 = vadd.f32 %v2996_v48, %v2740_v23  ;;  %v2074_v50 = vsel %vm1800_vm2, %v5681_v16, 0.0  ;;  %v2612_v53 = vsel %vm2338_vm3, %v5689_v47, 0.0  ;;  %v2868_v54 = vadd.f32 %v1536_v26, %v998_v24  ;;  %v453_v24 = vld [vmem:[#allocation11 + $0x790] sm:$0xff] }
  0xfc   :  { %v3124_v56 = vadd.f32 %v2612_v53, %v2074_v50  ;;  %3551 = vmatmul.f32.gmra.mxu3 %v3396_v1  ;;  %vm603_vm4 = vcmp.eq.s32.totalorder %v333_v25, %v5719_v49  ;;  %v5725_v28 = vperm.slane %v5090_v40, 2  ;;  %v5728_v29 = vperm.slane %v5094_v43, 2 }
  0xfd   :  { %3656 = vmatpush.msrb.mxu2 %v3252_v52  ;;  %v5731_v31 = vperm.slane %v5100_v46, 2  ;;  %v5734_v57 = vperm.slane %v5096_v44, 2  ;;  %v5737_v33 = vperm.slane %v5092_v41, 2  ;;  %v5740_v34 = vperm.slane %v5098_v45, 2  ;;  %3431 = vmatmul.f32.gmra.mxu0 %v3397_v27 }
  0xfe   :  { %v3380_v35 = vadd.f32 %v3124_v56, %v2868_v54  ;;  %v877_v7 = vsel %vm603_vm4, %v5725_v28, 0.0  ;;  %vm1141_vm5 = vcmp.eq.s32.totalorder %v333_v25, %v5728_v29  ;;  %v5745_v10 = vperm.slane %v5111_v51, 2  ;;  %3472 = vmatmul.f32.gmra.mxu1 %v3398_v55  ;;  %v310_v56 = vld [vmem:[#allocation11 + $0x318] sm:$0xff] }
  0xff   :  { %v1415_v12 = vsel %vm1141_vm5, %v5731_v31, 0.0  ;;  %vm1679_vm6 = vcmp.eq.s32.totalorder %v333_v25, %v5734_v57  ;;  %vm2217_vm7 = vcmp.eq.s32.totalorder %v333_v25, %v5740_v34  ;;  %vm731_vm8 = vcmp.eq.s32.totalorder %v461_v30, %v5719_v49 }
 0x100   :  { %3697 = vmatpush.msrb.mxu3 %v3380_v35  ;;  %v1953_v42 = vsel %vm1679_vm6, %v5737_v33, 0.0  ;;  %v2491_v58 = vsel %vm2217_vm7, %v5745_v10, 0.0  ;;  %v2747_v59 = vadd.f32 %v1415_v12, %v877_v7  ;;  %v1005_v60 = vsel %vm731_vm8, %v5725_v28, 0.0 }
 0x101   :  { %v3003_v61 = vadd.f32 %v2491_v58, %v1953_v42  ;;  %vm1269_vm9 = vcmp.eq.s32.totalorder %v461_v30, %v5728_v29  ;;  %vm1807_vm10 = vcmp.eq.s32.totalorder %v461_v30, %v5734_v57  ;;  %vm2345_vm11 = vcmp.eq.s32.totalorder %v461_v30, %v5740_v34  ;;  %3513 = vmatmul.f32.gmra.mxu2 %v3397_v27  ;;  %v438_v42 = vld [vmem:[#allocation11 + $0x718] sm:$0xff] }
 0x102   :  { %v1543_v63 = vsel %vm1269_vm9, %v5731_v31, 0.0  ;;  %v2081_v0 = vsel %vm1807_vm10, %v5737_v33, 0.0  ;;  %v2619_v1 = vsel %vm2345_vm11, %v5745_v10, 0.0  ;;  %vm588_vm12 = vcmp.eq.s32.totalorder %v318_v38, %v5663_v32 }
 0x103   :  { %v3259_v2 = vadd.f32 %v3003_v61, %v2747_v59  ;;  %v2875_v3 = vadd.f32 %v1543_v63, %v1005_v60  ;;  %v3131_v4 = vadd.f32 %v2619_v1, %v2081_v0  ;;  %v862_v5 = vsel %vm588_vm12, %v5669_v36, 0.0  ;;  %v317_v1 = vld [vmem:[#allocation11 + $0x350] sm:$0xff] }
 0x104   :  { %vm1126_vm13 = vcmp.eq.s32.totalorder %v318_v38, %v5672_v11  ;;  %vm1664_vm14 = vcmp.eq.s32.totalorder %v318_v38, %v5678_v14  ;;  %vm2202_vm15 = vcmp.eq.s32.totalorder %v318_v38, %v5684_v37  ;;  %vm716_vm0 = vcmp.eq.s32.totalorder %v446_v62, %v5663_v32  ;;  %3554 = vmatmul.f32.gmra.mxu3 %v3398_v55 }
 0x105   :  { %3573 = vmatpush.msrb.mxu0 %v3259_v2  ;;  %v3387_v13 = vadd.f32 %v3131_v4, %v2875_v3  ;;  %v1400_v17 = vsel %vm1126_vm13, %v5675_v15, 0.0  ;;  %v1938_v19 = vsel %vm1664_vm14, %v5681_v16, 0.0  ;;  %v2476_v20 = vsel %vm2202_vm15, %v5689_v47, 0.0 }
 0x106   :  { %v2732_v21 = vadd.f32 %v1400_v17, %v862_v5  ;;  %v2988_v22 = vadd.f32 %v2476_v20, %v1938_v19  ;;  %v990_v23 = vsel %vm716_vm0, %v5669_v36, 0.0  ;;  %vm1254_vm1 = vcmp.eq.s32.totalorder %v446_v62, %v5672_v11  ;;  %3434 = vmatmul.f32.gmra.mxu0 %v3399_v6  ;;  %3475 = vmatmul.f32.gmra.mxu1 %v3400_v8  ;;  %v445_v17 = vld [vmem:[#allocation11 + $0x750] sm:$0xff] }
 0x107   :  { %3614 = vmatpush.msrb.mxu1 %v3387_v13  ;;  %v1528_v48 = vsel %vm1254_vm1, %v5675_v15, 0.0  ;;  %vm1792_vm2 = vcmp.eq.s32.totalorder %v446_v62, %v5678_v14  ;;  %vm2330_vm3 = vcmp.eq.s32.totalorder %v446_v62, %v5684_v37  ;;  %vm595_vm4 = vcmp.eq.s32.totalorder %v325_v9, %v5719_v49 }
 0x108   :  { %v3244_v25 = vadd.f32 %v2988_v22, %v2732_v21  ;;  %v2066_v26 = vsel %vm1792_vm2, %v5681_v16, 0.0  ;;  %v2604_v27 = vsel %vm2330_vm3, %v5689_v47, 0.0  ;;  %v2860_v52 = vadd.f32 %v1528_v48, %v990_v23 }
 0x109   :  { %v3116_v50 = vadd.f32 %v2604_v27, %v2066_v26  ;;  %v869_v53 = vsel %vm595_vm4, %v5725_v28, 0.0  ;;  %vm1133_vm5 = vcmp.eq.s32.totalorder %v325_v9, %v5728_v29  ;;  %vm1671_vm6 = vcmp.eq.s32.totalorder %v325_v9, %v5734_v57  ;;  %3516 = vmatmul.f32.gmra.mxu2 %v3399_v6 }
 0x10a   :  { %3657 = vmatpush.msrb.mxu2 %v3244_v25  ;;  %v1407_v54 = vsel %vm1133_vm5, %v5731_v31, 0.0  ;;  %v1945_v55 = vsel %vm1671_vm6, %v5737_v33, 0.0  ;;  %vm2209_vm7 = vcmp.eq.s32.totalorder %v325_v9, %v5740_v34  ;;  %vm723_vm8 = vcmp.eq.s32.totalorder %v453_v24, %v5719_v49  ;;  %v3402_v25 = vld [vmem:[#allocation9 + $0x48] sm:$0xff] }
 0x10b   :  { %v3372_v30 = vadd.f32 %v3116_v50, %v2860_v52  ;;  %v2483_v35 = vsel %vm2209_vm7, %v5745_v10, 0.0  ;;  %v2739_v7 = vadd.f32 %v1407_v54, %v869_v53  ;;  %v997_v12 = vsel %vm723_vm8, %v5725_v28, 0.0  ;;  %v302_v52 = vld [vmem:[#allocation11 + $0x2d8] sm:$0xff] }
 0x10c   :  { %v2995_v38 = vadd.f32 %v2483_v35, %v1945_v55  ;;  %vm1261_vm9 = vcmp.eq.s32.totalorder %v453_v24, %v5728_v29  ;;  %vm1799_vm10 = vcmp.eq.s32.totalorder %v453_v24, %v5734_v57  ;;  %vm2337_vm11 = vcmp.eq.s32.totalorder %v453_v24, %v5740_v34  ;;  %3557 = vmatmul.f32.gmra.mxu3 %v3400_v8  ;;  %v3401_v24 = vld [vmem:[#allocation9 + $0x40] sm:$0xff] }
 0x10d   :  { %3698 = vmatpush.msrb.mxu3 %v3372_v30  ;;  %v1535_v58 = vsel %vm1261_vm9, %v5731_v31, 0.0  ;;  %v2073_v59 = vsel %vm1799_vm10, %v5737_v33, 0.0  ;;  %v2611_v60 = vsel %vm2337_vm11, %v5745_v10, 0.0  ;;  %vm580_vm12 = vcmp.eq.s32.totalorder %v310_v56, %v5663_v32  ;;  %v430_v30 = vld [vmem:[#allocation11 + $0x6d8] sm:$0xff] }
 0x10e   :  { %v3251_v61 = vadd.f32 %v2995_v38, %v2739_v7  ;;  %v2867_v62 = vadd.f32 %v1535_v58, %v997_v12  ;;  %v3123_v63 = vadd.f32 %v2611_v60, %v2073_v59  ;;  %v854_v0 = vsel %vm580_vm12, %v5669_v36, 0.0  ;;  %3437 = vmatmul.f32.gmra.mxu0 %v3401_v24  ;;  %3478 = vmatmul.f32.gmra.mxu1 %v3402_v25  ;;  %v309_v60 = vld [vmem:[#allocation11 + $0x310] sm:$0xff] }
 0x10f   :  { %vm1118_vm13 = vcmp.eq.s32.totalorder %v310_v56, %v5672_v11  ;;  %vm1656_vm14 = vcmp.eq.s32.totalorder %v310_v56, %v5678_v14  ;;  %vm2194_vm15 = vcmp.eq.s32.totalorder %v310_v56, %v5684_v37  ;;  %vm708_vm0 = vcmp.eq.s32.totalorder %v438_v42, %v5663_v32 }
 0x110   :  { %3574 = vmatpush.msrb.mxu0 %v3251_v61  ;;  %v3379_v2 = vadd.f32 %v3123_v63, %v2867_v62  ;;  %v1392_v3 = vsel %vm1118_vm13, %v5675_v15, 0.0  ;;  %v1930_v4 = vsel %vm1656_vm14, %v5681_v16, 0.0  ;;  %v2468_v5 = vsel %vm2194_vm15, %v5689_v47, 0.0 }
 0x111   :  { %v2724_v6 = vadd.f32 %v1392_v3, %v854_v0  ;;  %v2980_v8 = vadd.f32 %v2468_v5, %v1930_v4  ;;  %v982_v9 = vsel %vm708_vm0, %v5669_v36, 0.0  ;;  %vm1246_vm1 = vcmp.eq.s32.totalorder %v438_v42, %v5672_v11  ;;  %3519 = vmatmul.f32.gmra.mxu2 %v3401_v24  ;;  %v437_v5 = vld [vmem:[#allocation11 + $0x710] sm:$0xff] }
 0x112   :  { %3615 = vmatpush.msrb.mxu1 %v3379_v2  ;;  %v1520_v13 = vsel %vm1246_vm1, %v5675_v15, 0.0  ;;  %vm1784_vm2 = vcmp.eq.s32.totalorder %v438_v42, %v5678_v14  ;;  %vm2322_vm3 = vcmp.eq.s32.totalorder %v438_v42, %v5684_v37  ;;  %vm587_vm4 = vcmp.eq.s32.totalorder %v317_v1, %v5719_v49 }
 0x113   :  { %v3236_v19 = vadd.f32 %v2980_v8, %v2724_v6  ;;  %v2058_v20 = vsel %vm1784_vm2, %v5681_v16, 0.0  ;;  %v2596_v21 = vsel %vm2322_vm3, %v5689_v47, 0.0  ;;  %v2852_v22 = vadd.f32 %v1520_v13, %v982_v9 }
 0x114   :  { %v3108_v23 = vadd.f32 %v2596_v21, %v2058_v20  ;;  %v861_v48 = vsel %vm587_vm4, %v5725_v28, 0.0  ;;  %vm1125_vm5 = vcmp.eq.s32.totalorder %v317_v1, %v5728_v29  ;;  %vm1663_vm6 = vcmp.eq.s32.totalorder %v317_v1, %v5734_v57  ;;  %3560 = vmatmul.f32.gmra.mxu3 %v3402_v25 }
 0x115   :  { %3658 = vmatpush.msrb.mxu2 %v3236_v19  ;;  %v1399_v26 = vsel %vm1125_vm5, %v5731_v31, 0.0  ;;  %v1937_v27 = vsel %vm1663_vm6, %v5737_v33, 0.0  ;;  %vm2201_vm7 = vcmp.eq.s32.totalorder %v317_v1, %v5740_v34  ;;  %vm715_vm8 = vcmp.eq.s32.totalorder %v445_v17, %v5719_v49 }
 0x116   :  { %v3364_v50 = vadd.f32 %v3108_v23, %v2852_v22  ;;  %v2475_v53 = vsel %vm2201_vm7, %v5745_v10, 0.0  ;;  %v2731_v54 = vadd.f32 %v1399_v26, %v861_v48  ;;  %v989_v55 = vsel %vm715_vm8, %v5725_v28, 0.0  ;;  %v294_v22 = vld [vmem:[#allocation11 + $0x298] sm:$0xff] }
 0x117   :  { %v2987_v56 = vadd.f32 %v2475_v53, %v1937_v27  ;;  %vm1253_vm9 = vcmp.eq.s32.totalorder %v445_v17, %v5728_v29  ;;  %vm1791_vm10 = vcmp.eq.s32.totalorder %v445_v17, %v5734_v57  ;;  %vm2329_vm11 = vcmp.eq.s32.totalorder %v445_v17, %v5740_v34  ;;  %v422_v27 = vld [vmem:[#allocation11 + $0x698] sm:$0xff] }
 0x118   :  { %3699 = vmatpush.msrb.mxu3 %v3364_v50  ;;  %v1527_v35 = vsel %vm1253_vm9, %v5731_v31, 0.0  ;;  %v2065_v7 = vsel %vm1791_vm10, %v5737_v33, 0.0  ;;  %v2603_v12 = vsel %vm2329_vm11, %v5745_v10, 0.0  ;;  %vm572_vm12 = vcmp.eq.s32.totalorder %v302_v52, %v5663_v32 }
 0x119   :  { %v3243_v38 = vadd.f32 %v2987_v56, %v2731_v54  ;;  %v2859_v42 = vadd.f32 %v1527_v35, %v989_v55  ;;  %v3115_v58 = vadd.f32 %v2603_v12, %v2065_v7  ;;  %v846_v59 = vsel %vm572_vm12, %v5669_v36, 0.0  ;;  %v301_v35 = vld [vmem:[#allocation11 + $0x2d0] sm:$0xff] }
 0x11a   :  { %vm1110_vm13 = vcmp.eq.s32.totalorder %v302_v52, %v5672_v11  ;;  %vm1648_vm14 = vcmp.eq.s32.totalorder %v302_v52, %v5678_v14  ;;  %vm2186_vm15 = vcmp.eq.s32.totalorder %v302_v52, %v5684_v37  ;;  %vm700_vm0 = vcmp.eq.s32.totalorder %v430_v30, %v5663_v32 }
 0x11b   :  { %3575 = vmatpush.msrb.mxu0 %v3243_v38  ;;  %v3371_v61 = vadd.f32 %v3115_v58, %v2859_v42  ;;  %v1384_v62 = vsel %vm1110_vm13, %v5675_v15, 0.0  ;;  %v1922_v63 = vsel %vm1648_vm14, %v5681_v16, 0.0  ;;  %v2460_v0 = vsel %vm2186_vm15, %v5689_v47, 0.0 }
 0x11c   :  { %v2716_v1 = vadd.f32 %v1384_v62, %v846_v59  ;;  %v2972_v2 = vadd.f32 %v2460_v0, %v1922_v63  ;;  %v974_v3 = vsel %vm700_vm0, %v5669_v36, 0.0  ;;  %vm1238_vm1 = vcmp.eq.s32.totalorder %v430_v30, %v5672_v11  ;;  %v429_v62 = vld [vmem:[#allocation11 + $0x6d0] sm:$0xff] }
 0x11d   :  { %3616 = vmatpush.msrb.mxu1 %v3371_v61  ;;  %v1512_v4 = vsel %vm1238_vm1, %v5675_v15, 0.0  ;;  %vm1776_vm2 = vcmp.eq.s32.totalorder %v430_v30, %v5678_v14  ;;  %vm2314_vm3 = vcmp.eq.s32.totalorder %v430_v30, %v5684_v37  ;;  %vm579_vm4 = vcmp.eq.s32.totalorder %v309_v60, %v5719_v49 }
 0x11e   :  { %v3228_v6 = vadd.f32 %v2972_v2, %v2716_v1  ;;  %v2050_v8 = vsel %vm1776_vm2, %v5681_v16, 0.0  ;;  %v2588_v9 = vsel %vm2314_vm3, %v5689_v47, 0.0  ;;  %v2844_v13 = vadd.f32 %v1512_v4, %v974_v3 }
 0x11f   :  { %v3100_v17 = vadd.f32 %v2588_v9, %v2050_v8  ;;  %v853_v19 = vsel %vm579_vm4, %v5725_v28, 0.0  ;;  %vm1117_vm5 = vcmp.eq.s32.totalorder %v309_v60, %v5728_v29  ;;  %vm1655_vm6 = vcmp.eq.s32.totalorder %v309_v60, %v5734_v57  ;;  %v286_v8 = vld [vmem:[#allocation11 + $0x258] sm:$0xff] }
 0x120   :  { %3659 = vmatpush.msrb.mxu2 %v3228_v6  ;;  %v1391_v20 = vsel %vm1117_vm5, %v5731_v31, 0.0  ;;  %v1929_v21 = vsel %vm1655_vm6, %v5737_v33, 0.0  ;;  %vm2193_vm7 = vcmp.eq.s32.totalorder %v309_v60, %v5740_v34  ;;  %vm707_vm8 = vcmp.eq.s32.totalorder %v437_v5, %v5719_v49 }
 0x121   :  { %v3356_v23 = vadd.f32 %v3100_v17, %v2844_v13  ;;  %v2467_v48 = vsel %vm2193_vm7, %v5745_v10, 0.0  ;;  %v2723_v24 = vadd.f32 %v1391_v20, %v853_v19  ;;  %v981_v25 = vsel %vm707_vm8, %v5725_v28, 0.0 }
 0x122   :  { %v2979_v26 = vadd.f32 %v2467_v48, %v1929_v21  ;;  %vm1245_vm9 = vcmp.eq.s32.totalorder %v437_v5, %v5728_v29  ;;  %vm1783_vm10 = vcmp.eq.s32.totalorder %v437_v5, %v5734_v57  ;;  %vm2321_vm11 = vcmp.eq.s32.totalorder %v437_v5, %v5740_v34  ;;  %v414_v21 = vld [vmem:[#allocation11 + $0x658] sm:$0xff] }
 0x123   :  { %3700 = vmatpush.msrb.mxu3 %v3356_v23  ;;  %v1519_v52 = vsel %vm1245_vm9, %v5731_v31, 0.0  ;;  %v2057_v50 = vsel %vm1783_vm10, %v5737_v33, 0.0  ;;  %v2595_v53 = vsel %vm2321_vm11, %v5745_v10, 0.0  ;;  %vm564_vm12 = vcmp.eq.s32.totalorder %v294_v22, %v5663_v32 }
 0x124   :  { %v3235_v54 = vadd.f32 %v2979_v26, %v2723_v24  ;;  %v2851_v55 = vadd.f32 %v1519_v52, %v981_v25  ;;  %v3107_v56 = vadd.f32 %v2595_v53, %v2057_v50  ;;  %v838_v30 = vsel %vm564_vm12, %v5669_v36, 0.0  ;;  %v3403_v24 = vld [vmem:[#allocation9 + $0x50] sm:$0xff]  ;;  %v3404_v25 = vld [vmem:[#allocation9 + $0x58] sm:$0xff] }
 0x125   :  { %vm1102_vm13 = vcmp.eq.s32.totalorder %v294_v22, %v5672_v11  ;;  %vm1640_vm14 = vcmp.eq.s32.totalorder %v294_v22, %v5678_v14  ;;  %vm2178_vm15 = vcmp.eq.s32.totalorder %v294_v22, %v5684_v37  ;;  %vm692_vm0 = vcmp.eq.s32.totalorder %v422_v27, %v5663_v32  ;;  %3440 = vmatmul.f32.gmra.mxu0 %v3403_v24  ;;  %v293_v53 = vld [vmem:[#allocation11 + $0x290] sm:$0xff] }
 0x126   :  { %3576 = vmatpush.msrb.mxu0 %v3235_v54  ;;  %v3363_v7 = vadd.f32 %v3107_v56, %v2851_v55  ;;  %v1376_v12 = vsel %vm1102_vm13, %v5675_v15, 0.0  ;;  %v1914_v38 = vsel %vm1640_vm14, %v5681_v16, 0.0  ;;  %v2452_v42 = vsel %vm2178_vm15, %v5689_v47, 0.0  ;;  %3481 = vmatmul.f32.gmra.mxu1 %v3404_v25 }
 0x127   :  { %v2708_v58 = vadd.f32 %v1376_v12, %v838_v30  ;;  %v2964_v59 = vadd.f32 %v2452_v42, %v1914_v38  ;;  %v966_v60 = vsel %vm692_vm0, %v5669_v36, 0.0  ;;  %vm1230_vm1 = vcmp.eq.s32.totalorder %v422_v27, %v5672_v11  ;;  %3522 = vmatmul.f32.gmra.mxu2 %v3403_v24  ;;  %3563 = vmatmul.f32.gmra.mxu3 %v3404_v25  ;;  %v421_v42 = vld [vmem:[#allocation11 + $0x690] sm:$0xff] }
 0x128   :  { %3617 = vmatpush.msrb.mxu1 %v3363_v7  ;;  %v1504_v61 = vsel %vm1230_vm1, %v5675_v15, 0.0  ;;  %vm1768_vm2 = vcmp.eq.s32.totalorder %v422_v27, %v5678_v14  ;;  %vm2306_vm3 = vcmp.eq.s32.totalorder %v422_v27, %v5684_v37  ;;  %vm571_vm4 = vcmp.eq.s32.totalorder %v301_v35, %v5719_v49 }
 0x129   :  { %v3220_v63 = vadd.f32 %v2964_v59, %v2708_v58  ;;  %v2042_v0 = vsel %vm1768_vm2, %v5681_v16, 0.0  ;;  %v2580_v1 = vsel %vm2306_vm3, %v5689_v47, 0.0  ;;  %v2836_v2 = vadd.f32 %v1504_v61, %v966_v60 }
 0x12a   :  { %v3092_v3 = vadd.f32 %v2580_v1, %v2042_v0  ;;  %v845_v4 = vsel %vm571_vm4, %v5725_v28, 0.0  ;;  %vm1109_vm5 = vcmp.eq.s32.totalorder %v301_v35, %v5728_v29  ;;  %vm1647_vm6 = vcmp.eq.s32.totalorder %v301_v35, %v5734_v57 }
 0x12b   :  { %3660 = vmatpush.msrb.mxu2 %v3220_v63  ;;  %v1383_v5 = vsel %vm1109_vm5, %v5731_v31, 0.0  ;;  %v1921_v6 = vsel %vm1647_vm6, %v5737_v33, 0.0  ;;  %vm2185_vm7 = vcmp.eq.s32.totalorder %v301_v35, %v5740_v34  ;;  %vm699_vm8 = vcmp.eq.s32.totalorder %v429_v62, %v5719_v49 }
 0x12c   :  { %v3348_v9 = vadd.f32 %v3092_v3, %v2836_v2  ;;  %v2459_v13 = vsel %vm2185_vm7, %v5745_v10, 0.0  ;;  %v2715_v17 = vadd.f32 %v1383_v5, %v845_v4  ;;  %v973_v19 = vsel %vm699_vm8, %v5725_v28, 0.0  ;;  %v278_v2 = vld [vmem:[#allocation11 + $0x218] sm:$0xff] }
 0x12d   :  { %v2971_v20 = vadd.f32 %v2459_v13, %v1921_v6  ;;  %vm1237_vm9 = vcmp.eq.s32.totalorder %v429_v62, %v5728_v29  ;;  %vm1775_vm10 = vcmp.eq.s32.totalorder %v429_v62, %v5734_v57  ;;  %vm2313_vm11 = vcmp.eq.s32.totalorder %v429_v62, %v5740_v34 }
 0x12e   :  { %3701 = vmatpush.msrb.mxu3 %v3348_v9  ;;  %v1511_v22 = vsel %vm1237_vm9, %v5731_v31, 0.0  ;;  %v2049_v23 = vsel %vm1775_vm10, %v5737_v33, 0.0  ;;  %v2587_v48 = vsel %vm2313_vm11, %v5745_v10, 0.0  ;;  %vm556_vm12 = vcmp.eq.s32.totalorder %v286_v8, %v5663_v32  ;;  %v406_v9 = vld [vmem:[#allocation11 + $0x618] sm:$0xff] }
 0x12f   :  { %v3227_v26 = vadd.f32 %v2971_v20, %v2715_v17  ;;  %v2843_v27 = vadd.f32 %v1511_v22, %v973_v19  ;;  %v3099_v52 = vadd.f32 %v2587_v48, %v2049_v23  ;;  %v830_v50 = vsel %vm556_vm12, %v5669_v36, 0.0  ;;  %v285_v48 = vld [vmem:[#allocation11 + $0x250] sm:$0xff] }
 0x130   :  { %vm1094_vm13 = vcmp.eq.s32.totalorder %v286_v8, %v5672_v11  ;;  %vm1632_vm14 = vcmp.eq.s32.totalorder %v286_v8, %v5678_v14  ;;  %vm2170_vm15 = vcmp.eq.s32.totalorder %v286_v8, %v5684_v37  ;;  %vm684_vm0 = vcmp.eq.s32.totalorder %v414_v21, %v5663_v32 }
 0x131   :  { %3577 = vmatpush.msrb.mxu0 %v3227_v26  ;;  %v3355_v54 = vadd.f32 %v3099_v52, %v2843_v27  ;;  %v1368_v55 = vsel %vm1094_vm13, %v5675_v15, 0.0  ;;  %v1906_v56 = vsel %vm1632_vm14, %v5681_v16, 0.0  ;;  %v2444_v30 = vsel %vm2170_vm15, %v5689_v47, 0.0 }
 0x132   :  { %v2700_v35 = vadd.f32 %v1368_v55, %v830_v50  ;;  %v2956_v7 = vadd.f32 %v2444_v30, %v1906_v56  ;;  %v958_v12 = vsel %vm684_vm0, %v5669_v36, 0.0  ;;  %vm1222_vm1 = vcmp.eq.s32.totalorder %v414_v21, %v5672_v11  ;;  %v413_v55 = vld [vmem:[#allocation11 + $0x650] sm:$0xff] }
 0x133   :  { %3618 = vmatpush.msrb.mxu1 %v3355_v54  ;;  %v1496_v38 = vsel %vm1222_vm1, %v5675_v15, 0.0  ;;  %vm1760_vm2 = vcmp.eq.s32.totalorder %v414_v21, %v5678_v14  ;;  %vm2298_vm3 = vcmp.eq.s32.totalorder %v414_v21, %v5684_v37  ;;  %vm563_vm4 = vcmp.eq.s32.totalorder %v293_v53, %v5719_v49 }
 0x134   :  { %v3212_v58 = vadd.f32 %v2956_v7, %v2700_v35  ;;  %v2034_v59 = vsel %vm1760_vm2, %v5681_v16, 0.0  ;;  %v2572_v60 = vsel %vm2298_vm3, %v5689_v47, 0.0  ;;  %v2828_v61 = vadd.f32 %v1496_v38, %v958_v12 }
 0x135   :  { %v3084_v62 = vadd.f32 %v2572_v60, %v2034_v59  ;;  %v837_v63 = vsel %vm563_vm4, %v5725_v28, 0.0  ;;  %vm1101_vm5 = vcmp.eq.s32.totalorder %v293_v53, %v5728_v29  ;;  %vm1639_vm6 = vcmp.eq.s32.totalorder %v293_v53, %v5734_v57  ;;  %v270_v59 = vld [vmem:[#allocation11 + $0x1d8] sm:$0xff] }
 0x136   :  { %3661 = vmatpush.msrb.mxu2 %v3212_v58  ;;  %v1375_v0 = vsel %vm1101_vm5, %v5731_v31, 0.0  ;;  %v1913_v1 = vsel %vm1639_vm6, %v5737_v33, 0.0  ;;  %vm2177_vm7 = vcmp.eq.s32.totalorder %v293_v53, %v5740_v34  ;;  %vm691_vm8 = vcmp.eq.s32.totalorder %v421_v42, %v5719_v49 }
 0x137   :  { %v3340_v3 = vadd.f32 %v3084_v62, %v2828_v61  ;;  %v2451_v4 = vsel %vm2177_vm7, %v5745_v10, 0.0  ;;  %v2707_v5 = vadd.f32 %v1375_v0, %v837_v63  ;;  %v965_v6 = vsel %vm691_vm8, %v5725_v28, 0.0 }
 0x138   :  { %v2963_v8 = vadd.f32 %v2451_v4, %v1913_v1  ;;  %vm1229_vm9 = vcmp.eq.s32.totalorder %v421_v42, %v5728_v29  ;;  %vm1767_vm10 = vcmp.eq.s32.totalorder %v421_v42, %v5734_v57  ;;  %vm2305_vm11 = vcmp.eq.s32.totalorder %v421_v42, %v5740_v34  ;;  %v398_v1 = vld [vmem:[#allocation11 + $0x5d8] sm:$0xff] }
 0x139   :  { %3702 = vmatpush.msrb.mxu3 %v3340_v3  ;;  %v1503_v13 = vsel %vm1229_vm9, %v5731_v31, 0.0  ;;  %v2041_v17 = vsel %vm1767_vm10, %v5737_v33, 0.0  ;;  %v2579_v19 = vsel %vm2305_vm11, %v5745_v10, 0.0  ;;  %vm548_vm12 = vcmp.eq.s32.totalorder %v278_v2, %v5663_v32 }
 0x13a   :  { %v3219_v20 = vadd.f32 %v2963_v8, %v2707_v5  ;;  %v2835_v21 = vadd.f32 %v1503_v13, %v965_v6  ;;  %v3091_v22 = vadd.f32 %v2579_v19, %v2041_v17  ;;  %v822_v23 = vsel %vm548_vm12, %v5669_v36, 0.0  ;;  %v277_v13 = vld [vmem:[#allocation11 + $0x210] sm:$0xff] }
 0x13b   :  { %vm1086_vm13 = vcmp.eq.s32.totalorder %v278_v2, %v5672_v11  ;;  %vm1624_vm14 = vcmp.eq.s32.totalorder %v278_v2, %v5678_v14  ;;  %vm2162_vm15 = vcmp.eq.s32.totalorder %v278_v2, %v5684_v37  ;;  %vm676_vm0 = vcmp.eq.s32.totalorder %v406_v9, %v5663_v32 }
 0x13c   :  { %3578 = vmatpush.msrb.mxu0 %v3219_v20  ;;  %v3347_v24 = vadd.f32 %v3091_v22, %v2835_v21  ;;  %v1360_v25 = vsel %vm1086_vm13, %v5675_v15, 0.0  ;;  %v1898_v26 = vsel %vm1624_vm14, %v5681_v16, 0.0  ;;  %v2436_v27 = vsel %vm2162_vm15, %v5689_v47, 0.0 }
 0x13d   :  { %v2692_v52 = vadd.f32 %v1360_v25, %v822_v23  ;;  %v2948_v50 = vadd.f32 %v2436_v27, %v1898_v26  ;;  %v950_v53 = vsel %vm676_vm0, %v5669_v36, 0.0  ;;  %vm1214_vm1 = vcmp.eq.s32.totalorder %v406_v9, %v5672_v11  ;;  %v3406_v25 = vld [vmem:[#allocation9 + $0x68] sm:$0xff]  ;;  %v405_v27 = vld [vmem:[#allocation11 + $0x610] sm:$0xff] }
 0x13e   :  { %3619 = vmatpush.msrb.mxu1 %v3347_v24  ;;  %v1488_v54 = vsel %vm1214_vm1, %v5675_v15, 0.0  ;;  %vm1752_vm2 = vcmp.eq.s32.totalorder %v406_v9, %v5678_v14  ;;  %vm2290_vm3 = vcmp.eq.s32.totalorder %v406_v9, %v5684_v37  ;;  %vm555_vm4 = vcmp.eq.s32.totalorder %v285_v48, %v5719_v49  ;;  %v3405_v24 = vld [vmem:[#allocation9 + $0x60] sm:$0xff]  ;;  %3566 = vmatmul.f32.gmra.mxu3 %v3406_v25 }
 0x13f   :  { %v3204_v56 = vadd.f32 %v2948_v50, %v2692_v52  ;;  %v2026_v30 = vsel %vm1752_vm2, %v5681_v16, 0.0  ;;  %v2564_v35 = vsel %vm2290_vm3, %v5689_v47, 0.0  ;;  %v2820_v7 = vadd.f32 %v1488_v54, %v950_v53  ;;  %3443 = vmatmul.f32.gmra.mxu0 %v3405_v24  ;;  %3484 = vmatmul.f32.gmra.mxu1 %v3406_v25 }
 0x140   :  { %v3076_v12 = vadd.f32 %v2564_v35, %v2026_v30  ;;  %v829_v38 = vsel %vm555_vm4, %v5725_v28, 0.0  ;;  %vm1093_vm5 = vcmp.eq.s32.totalorder %v285_v48, %v5728_v29  ;;  %vm1631_vm6 = vcmp.eq.s32.totalorder %v285_v48, %v5734_v57  ;;  %3525 = vmatmul.f32.gmra.mxu2 %v3405_v24 }
 0x141   :  { %3662 = vmatpush.msrb.mxu2 %v3204_v56  ;;  %v1367_v42 = vsel %vm1093_vm5, %v5731_v31, 0.0  ;;  %v1905_v58 = vsel %vm1631_vm6, %v5737_v33, 0.0  ;;  %vm2169_vm7 = vcmp.eq.s32.totalorder %v285_v48, %v5740_v34  ;;  %vm683_vm8 = vcmp.eq.s32.totalorder %v413_v55, %v5719_v49 }
 0x142   :  { %v3332_v60 = vadd.f32 %v3076_v12, %v2820_v7  ;;  %v2443_v61 = vsel %vm2169_vm7, %v5745_v10, 0.0  ;;  %v2699_v62 = vadd.f32 %v1367_v42, %v829_v38  ;;  %v957_v63 = vsel %vm683_vm8, %v5725_v28, 0.0  ;;  %v262_v7 = vld [vmem:[#allocation11 + $0x198] sm:$0xff] }
 0x143   :  { %v2955_v0 = vadd.f32 %v2443_v61, %v1905_v58  ;;  %vm1221_vm9 = vcmp.eq.s32.totalorder %v413_v55, %v5728_v29  ;;  %vm1759_vm10 = vcmp.eq.s32.totalorder %v413_v55, %v5734_v57  ;;  %vm2297_vm11 = vcmp.eq.s32.totalorder %v413_v55, %v5740_v34 }
 0x144   :  { %3703 = vmatpush.msrb.mxu3 %v3332_v60  ;;  %v1495_v2 = vsel %vm1221_vm9, %v5731_v31, 0.0  ;;  %v2033_v3 = vsel %vm1759_vm10, %v5737_v33, 0.0  ;;  %v2571_v4 = vsel %vm2297_vm11, %v5745_v10, 0.0  ;;  %vm540_vm12 = vcmp.eq.s32.totalorder %v270_v59, %v5663_v32  ;;  %v390_v60 = vld [vmem:[#allocation11 + $0x598] sm:$0xff] }
 0x145   :  { %v3211_v5 = vadd.f32 %v2955_v0, %v2699_v62  ;;  %v2827_v6 = vadd.f32 %v1495_v2, %v957_v63  ;;  %v3083_v8 = vadd.f32 %v2571_v4, %v2033_v3  ;;  %v814_v9 = vsel %vm540_vm12, %v5669_v36, 0.0  ;;  %v269_v4 = vld [vmem:[#allocation11 + $0x1d0] sm:$0xff] }
 0x146   :  { %vm1078_vm13 = vcmp.eq.s32.totalorder %v270_v59, %v5672_v11  ;;  %vm1616_vm14 = vcmp.eq.s32.totalorder %v270_v59, %v5678_v14  ;;  %vm2154_vm15 = vcmp.eq.s32.totalorder %v270_v59, %v5684_v37  ;;  %vm668_vm0 = vcmp.eq.s32.totalorder %v398_v1, %v5663_v32 }
 0x147   :  { %3579 = vmatpush.msrb.mxu0 %v3211_v5  ;;  %v3339_v17 = vadd.f32 %v3083_v8, %v2827_v6  ;;  %v1352_v19 = vsel %vm1078_vm13, %v5675_v15, 0.0  ;;  %v1890_v20 = vsel %vm1616_vm14, %v5681_v16, 0.0  ;;  %v2428_v21 = vsel %vm2154_vm15, %v5689_v47, 0.0 }
 0x148   :  { %v2684_v22 = vadd.f32 %v1352_v19, %v814_v9  ;;  %v2940_v23 = vadd.f32 %v2428_v21, %v1890_v20  ;;  %v942_v48 = vsel %vm668_vm0, %v5669_v36, 0.0  ;;  %vm1206_vm1 = vcmp.eq.s32.totalorder %v398_v1, %v5672_v11  ;;  %v397_v21 = vld [vmem:[#allocation11 + $0x5d0] sm:$0xff] }
 0x149   :  { %3620 = vmatpush.msrb.mxu1 %v3339_v17  ;;  %v1480_v26 = vsel %vm1206_vm1, %v5675_v15, 0.0  ;;  %vm1744_vm2 = vcmp.eq.s32.totalorder %v398_v1, %v5678_v14  ;;  %vm2282_vm3 = vcmp.eq.s32.totalorder %v398_v1, %v5684_v37  ;;  %vm547_vm4 = vcmp.eq.s32.totalorder %v277_v13, %v5719_v49 }
 0x14a   :  { %v3196_v52 = vadd.f32 %v2940_v23, %v2684_v22  ;;  %v2018_v50 = vsel %vm1744_vm2, %v5681_v16, 0.0  ;;  %v2556_v53 = vsel %vm2282_vm3, %v5689_v47, 0.0  ;;  %v2812_v54 = vadd.f32 %v1480_v26, %v942_v48 }
 0x14b   :  { %v3068_v55 = vadd.f32 %v2556_v53, %v2018_v50  ;;  %v821_v56 = vsel %vm547_vm4, %v5725_v28, 0.0  ;;  %vm1085_vm5 = vcmp.eq.s32.totalorder %v277_v13, %v5728_v29  ;;  %vm1623_vm6 = vcmp.eq.s32.totalorder %v277_v13, %v5734_v57  ;;  %v254_v50 = vld [vmem:[#allocation11 + $0x158] sm:$0xff] }
 0x14c   :  { %3663 = vmatpush.msrb.mxu2 %v3196_v52  ;;  %v1359_v30 = vsel %vm1085_vm5, %v5731_v31, 0.0  ;;  %v1897_v35 = vsel %vm1623_vm6, %v5737_v33, 0.0  ;;  %vm2161_vm7 = vcmp.eq.s32.totalorder %v277_v13, %v5740_v34  ;;  %vm675_vm8 = vcmp.eq.s32.totalorder %v405_v27, %v5719_v49 }
 0x14d   :  { %v3324_v12 = vadd.f32 %v3068_v55, %v2812_v54  ;;  %v2435_v38 = vsel %vm2161_vm7, %v5745_v10, 0.0  ;;  %v2691_v42 = vadd.f32 %v1359_v30, %v821_v56  ;;  %v949_v58 = vsel %vm675_vm8, %v5725_v28, 0.0 }
 0x14e   :  { %v2947_v59 = vadd.f32 %v2435_v38, %v1897_v35  ;;  %vm1213_vm9 = vcmp.eq.s32.totalorder %v405_v27, %v5728_v29  ;;  %vm1751_vm10 = vcmp.eq.s32.totalorder %v405_v27, %v5734_v57  ;;  %vm2289_vm11 = vcmp.eq.s32.totalorder %v405_v27, %v5740_v34  ;;  %v382_v35 = vld [vmem:[#allocation11 + $0x558] sm:$0xff] }
 0x14f   :  { %3704 = vmatpush.msrb.mxu3 %v3324_v12  ;;  %v1487_v61 = vsel %vm1213_vm9, %v5731_v31, 0.0  ;;  %v2025_v62 = vsel %vm1751_vm10, %v5737_v33, 0.0  ;;  %v2563_v63 = vsel %vm2289_vm11, %v5745_v10, 0.0  ;;  %vm532_vm12 = vcmp.eq.s32.totalorder %v262_v7, %v5663_v32 }
 0x150   :  { %v3203_v0 = vadd.f32 %v2947_v59, %v2691_v42  ;;  %v2819_v1 = vadd.f32 %v1487_v61, %v949_v58  ;;  %v3075_v2 = vadd.f32 %v2563_v63, %v2025_v62  ;;  %v806_v3 = vsel %vm532_vm12, %v5669_v36, 0.0  ;;  %v261_v61 = vld [vmem:[#allocation11 + $0x190] sm:$0xff] }
 0x151   :  { %vm1070_vm13 = vcmp.eq.s32.totalorder %v262_v7, %v5672_v11  ;;  %vm1608_vm14 = vcmp.eq.s32.totalorder %v262_v7, %v5678_v14  ;;  %vm2146_vm15 = vcmp.eq.s32.totalorder %v262_v7, %v5684_v37  ;;  %vm660_vm0 = vcmp.eq.s32.totalorder %v390_v60, %v5663_v32 }
 0x152   :  { %3580 = vmatpush.msrb.mxu0 %v3203_v0  ;;  %v3331_v5 = vadd.f32 %v3075_v2, %v2819_v1  ;;  %v1344_v6 = vsel %vm1070_vm13, %v5675_v15, 0.0  ;;  %v1882_v8 = vsel %vm1608_vm14, %v5681_v16, 0.0  ;;  %v2420_v9 = vsel %vm2146_vm15, %v5689_v47, 0.0 }
 0x153   :  { %v2676_v13 = vadd.f32 %v1344_v6, %v806_v3  ;;  %v2932_v17 = vadd.f32 %v2420_v9, %v1882_v8  ;;  %v934_v19 = vsel %vm660_vm0, %v5669_v36, 0.0  ;;  %vm1198_vm1 = vcmp.eq.s32.totalorder %v390_v60, %v5672_v11  ;;  %v389_v6 = vld [vmem:[#allocation11 + $0x590] sm:$0xff] }
 0x154   :  { %3621 = vmatpush.msrb.mxu1 %v3331_v5  ;;  %v1472_v20 = vsel %vm1198_vm1, %v5675_v15, 0.0  ;;  %vm1736_vm2 = vcmp.eq.s32.totalorder %v390_v60, %v5678_v14  ;;  %vm2274_vm3 = vcmp.eq.s32.totalorder %v390_v60, %v5684_v37  ;;  %vm539_vm4 = vcmp.eq.s32.totalorder %v269_v4, %v5719_v49 }
 0x155   :  { %v3188_v22 = vadd.f32 %v2932_v17, %v2676_v13  ;;  %v2010_v23 = vsel %vm1736_vm2, %v5681_v16, 0.0  ;;  %v2548_v48 = vsel %vm2274_vm3, %v5689_v47, 0.0  ;;  %v2804_v24 = vadd.f32 %v1472_v20, %v934_v19 }
 0x156   :  { %v3060_v25 = vadd.f32 %v2548_v48, %v2010_v23  ;;  %v813_v26 = vsel %vm539_vm4, %v5725_v28, 0.0  ;;  %vm1077_vm5 = vcmp.eq.s32.totalorder %v269_v4, %v5728_v29  ;;  %vm1615_vm6 = vcmp.eq.s32.totalorder %v269_v4, %v5734_v57  ;;  %v246_v23 = vld [vmem:[#allocation11 + $0x118] sm:$0xff]  ;;  %v3407_v48 = vld [vmem:[#allocation9 + $0x70] sm:$0xff] }
 0x157   :  { %3664 = vmatpush.msrb.mxu2 %v3188_v22  ;;  %v1351_v27 = vsel %vm1077_vm5, %v5731_v31, 0.0  ;;  %v1889_v52 = vsel %vm1615_vm6, %v5737_v33, 0.0  ;;  %vm2153_vm7 = vcmp.eq.s32.totalorder %v269_v4, %v5740_v34  ;;  %vm667_vm8 = vcmp.eq.s32.totalorder %v397_v21, %v5719_v49  ;;  %3446 = vmatmul.f32.gmra.mxu0 %v3407_v48 }
 0x158   :  { %v3316_v53 = vadd.f32 %v3060_v25, %v2804_v24  ;;  %v2427_v54 = vsel %vm2153_vm7, %v5745_v10, 0.0  ;;  %v2683_v55 = vadd.f32 %v1351_v27, %v813_v26  ;;  %v941_v56 = vsel %vm667_vm8, %v5725_v28, 0.0  ;;  %v3408_v24 = vld [vmem:[#allocation9 + $0x78] sm:$0xff]  ;;  %3528 = vmatmul.f32.gmra.mxu2 %v3407_v48 }
 0x159   :  { %v2939_v30 = vadd.f32 %v2427_v54, %v1889_v52  ;;  %vm1205_vm9 = vcmp.eq.s32.totalorder %v397_v21, %v5728_v29  ;;  %vm1743_vm10 = vcmp.eq.s32.totalorder %v397_v21, %v5734_v57  ;;  %vm2281_vm11 = vcmp.eq.s32.totalorder %v397_v21, %v5740_v34  ;;  %3487 = vmatmul.f32.gmra.mxu1 %v3408_v24  ;;  %v366_v48 = vld [vmem:[#allocation11 + $0x4d8] sm:$0xff] }
 0x15a   :  { %3705 = vmatpush.msrb.mxu3 %v3316_v53  ;;  %v1479_v7 = vsel %vm1205_vm9, %v5731_v31, 0.0  ;;  %v2017_v12 = vsel %vm1743_vm10, %v5737_v33, 0.0  ;;  %v2555_v38 = vsel %vm2281_vm11, %v5745_v10, 0.0  ;;  %vm524_vm12 = vcmp.eq.s32.totalorder %v254_v50, %v5663_v32  ;;  %v374_v53 = vld [vmem:[#allocation11 + $0x518] sm:$0xff] }
 0x15b   :  { %v3195_v42 = vadd.f32 %v2939_v30, %v2683_v55  ;;  %v2811_v58 = vadd.f32 %v1479_v7, %v941_v56  ;;  %v3067_v59 = vadd.f32 %v2555_v38, %v2017_v12  ;;  %v798_v60 = vsel %vm524_vm12, %v5669_v36, 0.0  ;;  %3569 = vmatmul.f32.gmra.mxu3 %v3408_v24  ;;  %v253_v38 = vld [vmem:[#allocation11 + $0x150] sm:$0xff] }
 0x15c   :  { %vm1062_vm13 = vcmp.eq.s32.totalorder %v254_v50, %v5672_v11  ;;  %vm1600_vm14 = vcmp.eq.s32.totalorder %v254_v50, %v5678_v14  ;;  %vm2138_vm15 = vcmp.eq.s32.totalorder %v254_v50, %v5684_v37  ;;  %vm652_vm0 = vcmp.eq.s32.totalorder %v382_v35, %v5663_v32 }
 0x15d   :  { %3581 = vmatpush.msrb.mxu0 %v3195_v42  ;;  %v3323_v62 = vadd.f32 %v3067_v59, %v2811_v58  ;;  %v1336_v63 = vsel %vm1062_vm13, %v5675_v15, 0.0  ;;  %v1874_v0 = vsel %vm1600_vm14, %v5681_v16, 0.0  ;;  %v2412_v1 = vsel %vm2138_vm15, %v5689_v47, 0.0 }
 0x15e   :  { %v2668_v2 = vadd.f32 %v1336_v63, %v798_v60  ;;  %v2924_v3 = vadd.f32 %v2412_v1, %v1874_v0  ;;  %v926_v4 = vsel %vm652_vm0, %v5669_v36, 0.0  ;;  %vm1190_vm1 = vcmp.eq.s32.totalorder %v382_v35, %v5672_v11  ;;  %v381_v1 = vld [vmem:[#allocation11 + $0x550] sm:$0xff] }
 0x15f   :  { %3622 = vmatpush.msrb.mxu1 %v3323_v62  ;;  %v1464_v5 = vsel %vm1190_vm1, %v5675_v15, 0.0  ;;  %vm1728_vm2 = vcmp.eq.s32.totalorder %v382_v35, %v5678_v14  ;;  %vm2266_vm3 = vcmp.eq.s32.totalorder %v382_v35, %v5684_v37  ;;  %vm531_vm4 = vcmp.eq.s32.totalorder %v261_v61, %v5719_v49 }
 0x160   :  { %v3180_v8 = vadd.f32 %v2924_v3, %v2668_v2  ;;  %v2002_v9 = vsel %vm1728_vm2, %v5681_v16, 0.0  ;;  %v2540_v13 = vsel %vm2266_vm3, %v5689_v47, 0.0  ;;  %v2796_v17 = vadd.f32 %v1464_v5, %v926_v4 }
 0x161   :  { %v3052_v19 = vadd.f32 %v2540_v13, %v2002_v9  ;;  %v805_v20 = vsel %vm531_vm4, %v5725_v28, 0.0  ;;  %vm1069_vm5 = vcmp.eq.s32.totalorder %v261_v61, %v5728_v29  ;;  %vm1607_vm6 = vcmp.eq.s32.totalorder %v261_v61, %v5734_v57 }
 0x162   :  { %3665 = vmatpush.msrb.mxu2 %v3180_v8  ;;  %v1343_v21 = vsel %vm1069_vm5, %v5731_v31, 0.0  ;;  %v1881_v22 = vsel %vm1607_vm6, %v5737_v33, 0.0  ;;  %vm2145_vm7 = vcmp.eq.s32.totalorder %v261_v61, %v5740_v34  ;;  %vm659_vm8 = vcmp.eq.s32.totalorder %v389_v6, %v5719_v49 }
 0x163   :  { %v3308_v25 = vadd.f32 %v3052_v19, %v2796_v17  ;;  %v2419_v26 = vsel %vm2145_vm7, %v5745_v10, 0.0  ;;  %v2675_v27 = vadd.f32 %v1343_v21, %v805_v20  ;;  %v933_v52 = vsel %vm659_vm8, %v5725_v28, 0.0  ;;  %v238_v17 = vld [vmem:[#allocation11 + $0xd8] sm:$0xff] }
 0x164   :  { %v2931_v50 = vadd.f32 %v2419_v26, %v1881_v22  ;;  %vm1197_vm9 = vcmp.eq.s32.totalorder %v389_v6, %v5728_v29  ;;  %vm1735_vm10 = vcmp.eq.s32.totalorder %v389_v6, %v5734_v57  ;;  %vm2273_vm11 = vcmp.eq.s32.totalorder %v389_v6, %v5740_v34 }
 0x165   :  { %3706 = vmatpush.msrb.mxu3 %v3308_v25  ;;  %v1471_v54 = vsel %vm1197_vm9, %v5731_v31, 0.0  ;;  %v2009_v55 = vsel %vm1735_vm10, %v5737_v33, 0.0  ;;  %v2547_v56 = vsel %vm2273_vm11, %v5745_v10, 0.0  ;;  %vm516_vm12 = vcmp.eq.s32.totalorder %v246_v23, %v5663_v32 }
 0x166   :  { %v3187_v30 = vadd.f32 %v2931_v50, %v2675_v27  ;;  %v2803_v35 = vadd.f32 %v1471_v54, %v933_v52  ;;  %v3059_v7 = vadd.f32 %v2547_v56, %v2009_v55  ;;  %v790_v12 = vsel %vm516_vm12, %v5669_v36, 0.0  ;;  %v245_v54 = vld [vmem:[#allocation11 + $0x110] sm:$0xff] }
 0x167   :  { %vm1054_vm13 = vcmp.eq.s32.totalorder %v246_v23, %v5672_v11  ;;  %vm1592_vm14 = vcmp.eq.s32.totalorder %v246_v23, %v5678_v14  ;;  %vm2130_vm15 = vcmp.eq.s32.totalorder %v246_v23, %v5684_v37  ;;  %vm644_vm0 = vcmp.eq.s32.totalorder %v374_v53, %v5663_v32 }
 0x168   :  { %3582 = vmatpush.msrb.mxu0 %v3187_v30  ;;  %v3315_v42 = vadd.f32 %v3059_v7, %v2803_v35  ;;  %v1328_v58 = vsel %vm1054_vm13, %v5675_v15, 0.0  ;;  %v1866_v59 = vsel %vm1592_vm14, %v5681_v16, 0.0  ;;  %v2404_v60 = vsel %vm2130_vm15, %v5689_v47, 0.0 }
 0x169   :  { %v2660_v61 = vadd.f32 %v1328_v58, %v790_v12  ;;  %v2916_v62 = vadd.f32 %v2404_v60, %v1866_v59  ;;  %v918_v63 = vsel %vm644_vm0, %v5669_v36, 0.0  ;;  %vm1182_vm1 = vcmp.eq.s32.totalorder %v374_v53, %v5672_v11  ;;  %v373_v58 = vld [vmem:[#allocation11 + $0x510] sm:$0xff] }
 0x16a   :  { %3623 = vmatpush.msrb.mxu1 %v3315_v42  ;;  %v1456_v0 = vsel %vm1182_vm1, %v5675_v15, 0.0  ;;  %vm1720_vm2 = vcmp.eq.s32.totalorder %v374_v53, %v5678_v14  ;;  %vm2258_vm3 = vcmp.eq.s32.totalorder %v374_v53, %v5684_v37  ;;  %vm523_vm4 = vcmp.eq.s32.totalorder %v253_v38, %v5719_v49 }
 0x16b   :  { %v3172_v2 = vadd.f32 %v2916_v62, %v2660_v61  ;;  %v1994_v3 = vsel %vm1720_vm2, %v5681_v16, 0.0  ;;  %v2532_v4 = vsel %vm2258_vm3, %v5689_v47, 0.0  ;;  %v2788_v5 = vadd.f32 %v1456_v0, %v918_v63 }
 0x16c   :  { %v3044_v6 = vadd.f32 %v2532_v4, %v1994_v3  ;;  %v797_v8 = vsel %vm523_vm4, %v5725_v28, 0.0  ;;  %vm1061_vm5 = vcmp.eq.s32.totalorder %v253_v38, %v5728_v29  ;;  %vm1599_vm6 = vcmp.eq.s32.totalorder %v253_v38, %v5734_v57  ;;  %v230_v3 = vld [vmem:[#allocation11 + $0x98] sm:$0xff] }
 0x16d   :  { %3666 = vmatpush.msrb.mxu2 %v3172_v2  ;;  %v1335_v9 = vsel %vm1061_vm5, %v5731_v31, 0.0  ;;  %v1873_v13 = vsel %vm1599_vm6, %v5737_v33, 0.0  ;;  %vm2137_vm7 = vcmp.eq.s32.totalorder %v253_v38, %v5740_v34  ;;  %vm651_vm8 = vcmp.eq.s32.totalorder %v381_v1, %v5719_v49 }
 0x16e   :  { %v3300_v19 = vadd.f32 %v3044_v6, %v2788_v5  ;;  %v2411_v20 = vsel %vm2137_vm7, %v5745_v10, 0.0  ;;  %v2667_v21 = vadd.f32 %v1335_v9, %v797_v8  ;;  %v925_v22 = vsel %vm651_vm8, %v5725_v28, 0.0 }
 0x16f   :  { %v2923_v23 = vadd.f32 %v2411_v20, %v1873_v13  ;;  %vm1189_vm9 = vcmp.eq.s32.totalorder %v381_v1, %v5728_v29  ;;  %vm1727_vm10 = vcmp.eq.s32.totalorder %v381_v1, %v5734_v57  ;;  %vm2265_vm11 = vcmp.eq.s32.totalorder %v381_v1, %v5740_v34  ;;  %v358_v13 = vld [vmem:[#allocation11 + $0x498] sm:$0xff] }
 0x170   :  { %3707 = vmatpush.msrb.mxu3 %v3300_v19  ;;  %v1463_v24 = vsel %vm1189_vm9, %v5731_v31, 0.0  ;;  %v2001_v25 = vsel %vm1727_vm10, %v5737_v33, 0.0  ;;  %v2539_v26 = vsel %vm2265_vm11, %v5745_v10, 0.0  ;;  %vm508_vm12 = vcmp.eq.s32.totalorder %v238_v17, %v5663_v32 }
 0x171   :  { %v3179_v27 = vadd.f32 %v2923_v23, %v2667_v21  ;;  %v2795_v52 = vadd.f32 %v1463_v24, %v925_v22  ;;  %v3051_v50 = vadd.f32 %v2539_v26, %v2001_v25  ;;  %v782_v53 = vsel %vm508_vm12, %v5669_v36, 0.0  ;;  %v237_v24 = vld [vmem:[#allocation11 + $0xd0] sm:$0xff] }
 0x172   :  { %vm1046_vm13 = vcmp.eq.s32.totalorder %v238_v17, %v5672_v11  ;;  %vm1584_vm14 = vcmp.eq.s32.totalorder %v238_v17, %v5678_v14  ;;  %vm2122_vm15 = vcmp.eq.s32.totalorder %v238_v17, %v5684_v37  ;;  %vm636_vm0 = vcmp.eq.s32.totalorder %v366_v48, %v5663_v32 }
 0x173   :  { %3583 = vmatpush.msrb.mxu0 %v3179_v27  ;;  %v3307_v55 = vadd.f32 %v3051_v50, %v2795_v52  ;;  %v1320_v56 = vsel %vm1046_vm13, %v5675_v15, 0.0  ;;  %v1858_v30 = vsel %vm1584_vm14, %v5681_v16, 0.0  ;;  %v2396_v35 = vsel %vm2122_vm15, %v5689_v47, 0.0 }
 0x174   :  { %v2652_v7 = vadd.f32 %v1320_v56, %v782_v53  ;;  %v2908_v12 = vadd.f32 %v2396_v35, %v1858_v30  ;;  %v910_v38 = vsel %vm636_vm0, %v5669_v36, 0.0  ;;  %vm1174_vm1 = vcmp.eq.s32.totalorder %v366_v48, %v5672_v11  ;;  %v365_v56 = vld [vmem:[#allocation11 + $0x4d0] sm:$0xff] }
 0x175   :  { %3624 = vmatpush.msrb.mxu1 %v3307_v55  ;;  %v1448_v42 = vsel %vm1174_vm1, %v5675_v15, 0.0  ;;  %vm1712_vm2 = vcmp.eq.s32.totalorder %v366_v48, %v5678_v14  ;;  %vm2250_vm3 = vcmp.eq.s32.totalorder %v366_v48, %v5684_v37  ;;  %vm515_vm4 = vcmp.eq.s32.totalorder %v245_v54, %v5719_v49 }
 0x176   :  { %v3164_v59 = vadd.f32 %v2908_v12, %v2652_v7  ;;  %v1986_v60 = vsel %vm1712_vm2, %v5681_v16, 0.0  ;;  %v2524_v61 = vsel %vm2250_vm3, %v5689_v47, 0.0  ;;  %v2780_v62 = vadd.f32 %v1448_v42, %v910_v38 }
 0x177   :  { %v3036_v63 = vadd.f32 %v2524_v61, %v1986_v60  ;;  %v789_v0 = vsel %vm515_vm4, %v5725_v28, 0.0  ;;  %vm1053_vm5 = vcmp.eq.s32.totalorder %v245_v54, %v5728_v29  ;;  %vm1591_vm6 = vcmp.eq.s32.totalorder %v245_v54, %v5734_v57  ;;  %v222_v60 = vld [vmem:[#allocation11 + $0x58] sm:$0xff] }
 0x178   :  { %3667 = vmatpush.msrb.mxu2 %v3164_v59  ;;  %v1327_v1 = vsel %vm1053_vm5, %v5731_v31, 0.0  ;;  %v1865_v2 = vsel %vm1591_vm6, %v5737_v33, 0.0  ;;  %vm2129_vm7 = vcmp.eq.s32.totalorder %v245_v54, %v5740_v34  ;;  %vm643_vm8 = vcmp.eq.s32.totalorder %v373_v58, %v5719_v49 }
 0x179   :  { %v3292_v4 = vadd.f32 %v3036_v63, %v2780_v62  ;;  %v2403_v5 = vsel %vm2129_vm7, %v5745_v10, 0.0  ;;  %v2659_v6 = vadd.f32 %v1327_v1, %v789_v0  ;;  %v917_v8 = vsel %vm643_vm8, %v5725_v28, 0.0 }
 0x17a   :  { %v2915_v9 = vadd.f32 %v2403_v5, %v1865_v2  ;;  %vm1181_vm9 = vcmp.eq.s32.totalorder %v373_v58, %v5728_v29  ;;  %vm1719_vm10 = vcmp.eq.s32.totalorder %v373_v58, %v5734_v57  ;;  %vm2257_vm11 = vcmp.eq.s32.totalorder %v373_v58, %v5740_v34  ;;  %v350_v2 = vld [vmem:[#allocation11 + $0x458] sm:$0xff] }
 0x17b   :  { %3708 = vmatpush.msrb.mxu3 %v3292_v4  ;;  %v1455_v17 = vsel %vm1181_vm9, %v5731_v31, 0.0  ;;  %v1993_v19 = vsel %vm1719_vm10, %v5737_v33, 0.0  ;;  %v2531_v20 = vsel %vm2257_vm11, %v5745_v10, 0.0  ;;  %vm500_vm12 = vcmp.eq.s32.totalorder %v230_v3, %v5663_v32 }
 0x17c   :  { %v3171_v21 = vadd.f32 %v2915_v9, %v2659_v6  ;;  %v2787_v22 = vadd.f32 %v1455_v17, %v917_v8  ;;  %v3043_v23 = vadd.f32 %v2531_v20, %v1993_v19  ;;  %v774_v48 = vsel %vm500_vm12, %v5669_v36, 0.0  ;;  %v229_v17 = vld [vmem:[#allocation11 + $0x90] sm:$0xff] }
 0x17d   :  { %vm1038_vm13 = vcmp.eq.s32.totalorder %v230_v3, %v5672_v11  ;;  %vm1576_vm14 = vcmp.eq.s32.totalorder %v230_v3, %v5678_v14  ;;  %vm2114_vm15 = vcmp.eq.s32.totalorder %v230_v3, %v5684_v37  ;;  %vm628_vm0 = vcmp.eq.s32.totalorder %v358_v13, %v5663_v32 }
 0x17e   :  { %3584 = vmatpush.msrb.mxu0 %v3171_v21  ;;  %v3299_v25 = vadd.f32 %v3043_v23, %v2787_v22  ;;  %v1312_v26 = vsel %vm1038_vm13, %v5675_v15, 0.0  ;;  %v1850_v27 = vsel %vm1576_vm14, %v5681_v16, 0.0  ;;  %v2388_v52 = vsel %vm2114_vm15, %v5689_v47, 0.0 }
 0x17f   :  { %v2644_v50 = vadd.f32 %v1312_v26, %v774_v48  ;;  %v2900_v53 = vadd.f32 %v2388_v52, %v1850_v27  ;;  %v902_v54 = vsel %vm628_vm0, %v5669_v36, 0.0  ;;  %vm1166_vm1 = vcmp.eq.s32.totalorder %v358_v13, %v5672_v11  ;;  %v357_v26 = vld [vmem:[#allocation11 + $0x490] sm:$0xff] }
 0x180   :  { %3625 = vmatpush.msrb.mxu1 %v3299_v25  ;;  %v1440_v55 = vsel %vm1166_vm1, %v5675_v15, 0.0  ;;  %vm1704_vm2 = vcmp.eq.s32.totalorder %v358_v13, %v5678_v14  ;;  %vm2242_vm3 = vcmp.eq.s32.totalorder %v358_v13, %v5684_v37  ;;  %vm507_vm4 = vcmp.eq.s32.totalorder %v237_v24, %v5719_v49 }
 0x181   :  { %v3156_v30 = vadd.f32 %v2900_v53, %v2644_v50  ;;  %v1978_v35 = vsel %vm1704_vm2, %v5681_v16, 0.0  ;;  %v2516_v7 = vsel %vm2242_vm3, %v5689_v47, 0.0  ;;  %v2772_v12 = vadd.f32 %v1440_v55, %v902_v54 }
 0x182   :  { %v3028_v38 = vadd.f32 %v2516_v7, %v1978_v35  ;;  %v781_v42 = vsel %vm507_vm4, %v5725_v28, 0.0  ;;  %vm1045_vm5 = vcmp.eq.s32.totalorder %v237_v24, %v5728_v29  ;;  %vm1583_vm6 = vcmp.eq.s32.totalorder %v237_v24, %v5734_v57  ;;  %v214_v35 = vld [vmem:[#allocation11 + $0x18] sm:$0xff] }
 0x183   :  { %3668 = vmatpush.msrb.mxu2 %v3156_v30  ;;  %v1319_v58 = vsel %vm1045_vm5, %v5731_v31, 0.0  ;;  %v1857_v59 = vsel %vm1583_vm6, %v5737_v33, 0.0  ;;  %vm2121_vm7 = vcmp.eq.s32.totalorder %v237_v24, %v5740_v34  ;;  %vm635_vm8 = vcmp.eq.s32.totalorder %v365_v56, %v5719_v49 }
 0x184   :  { %v3284_v61 = vadd.f32 %v3028_v38, %v2772_v12  ;;  %v2395_v62 = vsel %vm2121_vm7, %v5745_v10, 0.0  ;;  %v2651_v63 = vadd.f32 %v1319_v58, %v781_v42  ;;  %v909_v0 = vsel %vm635_vm8, %v5725_v28, 0.0 }
 0x185   :  { %v2907_v1 = vadd.f32 %v2395_v62, %v1857_v59  ;;  %vm1173_vm9 = vcmp.eq.s32.totalorder %v365_v56, %v5728_v29  ;;  %vm1711_vm10 = vcmp.eq.s32.totalorder %v365_v56, %v5734_v57  ;;  %vm2249_vm11 = vcmp.eq.s32.totalorder %v365_v56, %v5740_v34  ;;  %v342_v59 = vld [vmem:[#allocation11 + $0x418] sm:$0xff] }
 0x186   :  { %3709 = vmatpush.msrb.mxu3 %v3284_v61  ;;  %v1447_v3 = vsel %vm1173_vm9, %v5731_v31, 0.0  ;;  %v1985_v4 = vsel %vm1711_vm10, %v5737_v33, 0.0  ;;  %v2523_v5 = vsel %vm2249_vm11, %v5745_v10, 0.0  ;;  %vm492_vm12 = vcmp.eq.s32.totalorder %v222_v60, %v5663_v32 }
 0x187   :  { %v3163_v6 = vadd.f32 %v2907_v1, %v2651_v63  ;;  %v2779_v8 = vadd.f32 %v1447_v3, %v909_v0  ;;  %v3035_v9 = vadd.f32 %v2523_v5, %v1985_v4  ;;  %v766_v13 = vsel %vm492_vm12, %v5669_v36, 0.0  ;;  %v221_v3 = vld [vmem:[#allocation11 + $0x50] sm:$0xff] }
 0x188   :  { %vm1030_vm13 = vcmp.eq.s32.totalorder %v222_v60, %v5672_v11  ;;  %vm1568_vm14 = vcmp.eq.s32.totalorder %v222_v60, %v5678_v14  ;;  %vm2106_vm15 = vcmp.eq.s32.totalorder %v222_v60, %v5684_v37  ;;  %vm620_vm0 = vcmp.eq.s32.totalorder %v350_v2, %v5663_v32 }
 0x189   :  { %3585 = vmatpush.msrb.mxu0 %v3163_v6  ;;  %v3291_v19 = vadd.f32 %v3035_v9, %v2779_v8  ;;  %v1304_v20 = vsel %vm1030_vm13, %v5675_v15, 0.0  ;;  %v1842_v21 = vsel %vm1568_vm14, %v5681_v16, 0.0  ;;  %v2380_v22 = vsel %vm2106_vm15, %v5689_v47, 0.0 }
 0x18a   :  { %v2636_v23 = vadd.f32 %v1304_v20, %v766_v13  ;;  %v2892_v48 = vadd.f32 %v2380_v22, %v1842_v21  ;;  %v894_v24 = vsel %vm620_vm0, %v5669_v36, 0.0  ;;  %vm1158_vm1 = vcmp.eq.s32.totalorder %v350_v2, %v5672_v11 }
 0x18b   :  { %3626 = vmatpush.msrb.mxu1 %v3291_v19  ;;  %v1432_v25 = vsel %vm1158_vm1, %v5675_v15, 0.0  ;;  %vm1696_vm2 = vcmp.eq.s32.totalorder %v350_v2, %v5678_v14  ;;  %vm2234_vm3 = vcmp.eq.s32.totalorder %v350_v2, %v5684_v37  ;;  %vm499_vm4 = vcmp.eq.s32.totalorder %v229_v17, %v5719_v49 }
 0x18c   :  { %v3148_v27 = vadd.f32 %v2892_v48, %v2636_v23  ;;  %v1970_v52 = vsel %vm1696_vm2, %v5681_v16, 0.0  ;;  %v2508_v50 = vsel %vm2234_vm3, %v5689_v47, 0.0  ;;  %v2764_v53 = vadd.f32 %v1432_v25, %v894_v24  ;;  %v4810_v25 = vld [vmem:[#allocation9] sm:$0xff] }
 0x18d   :  { %v3020_v54 = vadd.f32 %v2508_v50, %v1970_v52  ;;  %v773_v55 = vsel %vm499_vm4, %v5725_v28, 0.0  ;;  %vm1037_vm5 = vcmp.eq.s32.totalorder %v229_v17, %v5728_v29  ;;  %vm1575_vm6 = vcmp.eq.s32.totalorder %v229_v17, %v5734_v57 }
 0x18e   :  { %3669 = vmatpush.msrb.mxu2 %v3148_v27  ;;  %v1311_v56 = vsel %vm1037_vm5, %v5731_v31, 0.0  ;;  %v1849_v30 = vsel %vm1575_vm6, %v5737_v33, 0.0  ;;  %vm2113_vm7 = vcmp.eq.s32.totalorder %v229_v17, %v5740_v34  ;;  %vm627_vm8 = vcmp.eq.s32.totalorder %v357_v26, %v5719_v49  ;;  %v341_v27 = vld [vmem:[#allocation11 + $0x410] sm:$0xff] }
 0x18f   :  { %v3276_v7 = vadd.f32 %v3020_v54, %v2764_v53  ;;  %v2387_v12 = vsel %vm2113_vm7, %v5745_v10, 0.0  ;;  %v2643_v38 = vadd.f32 %v1311_v56, %v773_v55  ;;  %v901_v42 = vsel %vm627_vm8, %v5725_v28, 0.0 }
 0x190   :  { %v2899_v58 = vadd.f32 %v2387_v12, %v1849_v30  ;;  %vm1165_vm9 = vcmp.eq.s32.totalorder %v357_v26, %v5728_v29  ;;  %vm1703_vm10 = vcmp.eq.s32.totalorder %v357_v26, %v5734_v57  ;;  %vm2241_vm11 = vcmp.eq.s32.totalorder %v357_v26, %v5740_v34 }
 0x191   :  { %3710 = vmatpush.msrb.mxu3 %v3276_v7  ;;  %v1439_v60 = vsel %vm1165_vm9, %v5731_v31, 0.0  ;;  %v1977_v61 = vsel %vm1703_vm10, %v5737_v33, 0.0  ;;  %v2515_v62 = vsel %vm2241_vm11, %v5745_v10, 0.0  ;;  %vm484_vm12 = vcmp.eq.s32.totalorder %v214_v35, %v5663_v32 }
 0x192   :  { %v3155_v63 = vadd.f32 %v2899_v58, %v2643_v38  ;;  %v2771_v0 = vadd.f32 %v1439_v60, %v901_v42  ;;  %v3027_v1 = vadd.f32 %v2515_v62, %v1977_v61  ;;  %v758_v2 = vsel %vm484_vm12, %v5669_v36, 0.0  ;;  %v336_v61 = vld [vmem:[#allocation11 + $0x3e8] sm:$0xff] }
 0x193   :  { %vm1022_vm13 = vcmp.eq.s32.totalorder %v214_v35, %v5672_v11  ;;  %vm1560_vm14 = vcmp.eq.s32.totalorder %v214_v35, %v5678_v14  ;;  %vm2098_vm15 = vcmp.eq.s32.totalorder %v214_v35, %v5684_v37  ;;  %vm612_vm0 = vcmp.eq.s32.totalorder %v342_v59, %v5663_v32  ;;  %v349_v32 = vld [vmem:[#allocation11 + $0x450] sm:$0xff]  ;;  %v4811_v35 = vld [vmem:[#allocation9 + $0x8] sm:$0xff] }
 0x194   :  { %3586 = vmatpush.msrb.mxu0 %v3155_v63  ;;  %v3283_v4 = vadd.f32 %v3027_v1, %v2771_v0  ;;  %v1296_v5 = vsel %vm1022_vm13, %v5675_v15, 0.0  ;;  %v1834_v6 = vsel %vm1560_vm14, %v5681_v16, 0.0  ;;  %v2372_v8 = vsel %vm2098_vm15, %v5689_v47, 0.0 }
 0x195   :  { %v2628_v9 = vadd.f32 %v1296_v5, %v758_v2  ;;  %v2884_v13 = vadd.f32 %v2372_v8, %v1834_v6  ;;  %v886_v17 = vsel %vm612_vm0, %v5669_v36, 0.0  ;;  %vm1150_vm1 = vcmp.eq.s32.totalorder %v342_v59, %v5672_v11 }
 0x196   :  { %3627 = vmatpush.msrb.mxu1 %v3283_v4  ;;  %v1424_v19 = vsel %vm1150_vm1, %v5675_v15, 0.0  ;;  %vm1688_vm2 = vcmp.eq.s32.totalorder %v342_v59, %v5678_v14  ;;  %vm2226_vm3 = vcmp.eq.s32.totalorder %v342_v59, %v5684_v37  ;;  %vm491_vm4 = vcmp.eq.s32.totalorder %v221_v3, %v5719_v49  ;;  %v213_v14 = vld [vmem:[#allocation11 + $0x10] sm:$0xff] }
 0x197   :  { %v3140_v20 = vadd.f32 %v2884_v13, %v2628_v9  ;;  %v1962_v21 = vsel %vm1688_vm2, %v5681_v16, 0.0  ;;  %v2500_v22 = vsel %vm2226_vm3, %v5689_v47, 0.0  ;;  %v2756_v23 = vadd.f32 %v1424_v19, %v886_v17  ;;  %v4813_v9 = vld [vmem:[#allocation9 + $0x18] sm:$0xff]  ;;  %v328_v17 = vld [vmem:[#allocation11 + $0x3a8] sm:$0xff] }
 0x198   :  { %v3012_v48 = vadd.f32 %v2500_v22, %v1962_v21  ;;  %v765_v36 = vsel %vm491_vm4, %v5725_v28, 0.0  ;;  %vm1029_vm5 = vcmp.eq.s32.totalorder %v221_v3, %v5728_v29  ;;  %vm1567_vm6 = vcmp.eq.s32.totalorder %v221_v3, %v5734_v57 }
 0x199   :  { %3670 = vmatpush.msrb.mxu2 %v3140_v20  ;;  %v1303_v11 = vsel %vm1029_vm5, %v5731_v31, 0.0  ;;  %v1841_v15 = vsel %vm1567_vm6, %v5737_v33, 0.0  ;;  %vm2105_vm7 = vcmp.eq.s32.totalorder %v221_v3, %v5740_v34  ;;  %vm619_vm8 = vcmp.eq.s32.totalorder %v349_v32, %v5719_v49 }
 0x19a   :  { %v3268_v16 = vadd.f32 %v3012_v48, %v2756_v23  ;;  %v2379_v37 = vsel %vm2105_vm7, %v5745_v10, 0.0  ;;  %v2635_v47 = vadd.f32 %v1303_v11, %v765_v36  ;;  %v893_v24 = vsel %vm619_vm8, %v5725_v28, 0.0  ;;  %3671 = vmatmul.f32.vlgmr.msrb.gmra.mxu2 %v4810_v25  ;;  %v456_v23 = vld [vmem:[#allocation11 + $0x7a8] sm:$0xff] }
 0x19b   :  { %v2891_v26 = vadd.f32 %v2379_v37, %v1841_v15  ;;  %vm1157_vm9 = vcmp.eq.s32.totalorder %v349_v32, %v5728_v29  ;;  %vm1695_vm10 = vcmp.eq.s32.totalorder %v349_v32, %v5734_v57  ;;  %vm2233_vm11 = vcmp.eq.s32.totalorder %v349_v32, %v5740_v34 }
 0x19c   :  { %3711 = vmatpush.msrb.mxu3 %v3268_v16  ;;  %v1431_v52 = vsel %vm1157_vm9, %v5731_v31, 0.0  ;;  %v1969_v50 = vsel %vm1695_vm10, %v5737_v33, 0.0  ;;  %v2507_v53 = vsel %vm2233_vm11, %v5745_v10, 0.0  ;;  %vm483_vm12 = vcmp.eq.s32.totalorder %v213_v14, %v5719_v49 }
 0x19d   :  { %v3147_v54 = vadd.f32 %v2891_v26, %v2635_v47  ;;  %v2763_v55 = vadd.f32 %v1431_v52, %v893_v24  ;;  %v3019_v56 = vadd.f32 %v2507_v53, %v1969_v50  ;;  %v757_v30 = vsel %vm483_vm12, %v5725_v28, 0.0  ;;  %3712 = vmatmul.f32.vlgmr.msrb.gmra.mxu3 %v4811_v35  ;;  %v4814_v47 = vld [vmem:[#allocation9 + $0x20] sm:$0xff] }
 0x19e   :  { %vm1021_vm13 = vcmp.eq.s32.totalorder %v213_v14, %v5728_v29  ;;  %vm1559_vm14 = vcmp.eq.s32.totalorder %v213_v14, %v5734_v57  ;;  %vm2097_vm15 = vcmp.eq.s32.totalorder %v213_v14, %v5740_v34  ;;  %vm611_vm0 = vcmp.eq.s32.totalorder %v341_v27, %v5719_v49 }
 0x19f   :  { %3587 = vmatpush.msrb.mxu0 %v3147_v54  ;;  %v3275_v7 = vadd.f32 %v3019_v56, %v2763_v55  ;;  %v1295_v12 = vsel %vm1021_vm13, %v5731_v31, 0.0  ;;  %v1833_v38 = vsel %vm1559_vm14, %v5737_v33, 0.0  ;;  %v2371_v42 = vsel %vm2097_vm15, %v5745_v10, 0.0  ;;  %v335_v54 = vld [vmem:[#allocation11 + $0x3e0] sm:$0xff]  ;;  %v4815_v55 = vld [vmem:[#allocation9 + $0x28] sm:$0xff] }
 0x1a0   :  { %v2627_v58 = vadd.f32 %v1295_v12, %v757_v30  ;;  %v2883_v59 = vadd.f32 %v2371_v42, %v1833_v38  ;;  %v885_v60 = vsel %vm611_vm0, %v5725_v28, 0.0  ;;  %vm1149_vm1 = vcmp.eq.s32.totalorder %v341_v27, %v5728_v29  ;;  %v4812_v28 = vld [vmem:[#allocation9 + $0x10] sm:$0xff] }
 0x1a1   :  { %3628 = vmatpush.msrb.mxu1 %v3275_v7  ;;  %v1423_v62 = vsel %vm1149_vm1, %v5731_v31, 0.0  ;;  %vm1687_vm2 = vcmp.eq.s32.totalorder %v341_v27, %v5734_v57  ;;  %vm2225_vm3 = vcmp.eq.s32.totalorder %v341_v27, %v5740_v34  ;;  %v6223_v49 = vperm.slane %v5088_v39, 5  ;;  %v464_v34 = vld [vmem:[#allocation11 + $0x7e8] sm:$0xff] }
 0x1a2   :  { %v3139_v63 = vadd.f32 %v2883_v59, %v2627_v58  ;;  %v1961_v0 = vsel %vm1687_vm2, %v5737_v33, 0.0  ;;  %v2499_v1 = vsel %vm2225_vm3, %v5745_v10, 0.0  ;;  %v2755_v2 = vadd.f32 %v1423_v62, %v885_v60  ;;  %3674 = vmatmul.f32.gmra.mxu2 %v4812_v28  ;;  %v463_v60 = vld [vmem:[#allocation11 + $0x7e0] sm:$0xff] }
 0x1a3   :  { %v3011_v29 = vadd.f32 %v2499_v1, %v1961_v0  ;;  %vm606_vm4 = vcmp.eq.s32.totalorder %v336_v61, %v6223_v49  ;;  %v6229_v31 = vperm.slane %v5090_v40, 5  ;;  %v6232_v57 = vperm.slane %v5094_v43, 5 }
 0x1a4   :  { %3588 = vmatpush.msrb.mxu0 %v3139_v63  ;;  %v6235_v3 = vperm.slane %v5100_v46, 5  ;;  %v6238_v33 = vperm.slane %v5096_v44, 5  ;;  %v6241_v10 = vperm.slane %v5092_v41, 5  ;;  %v6244_v4 = vperm.slane %v5098_v45, 5 }
 0x1a5   :  { %v3267_v5 = vadd.f32 %v3011_v29, %v2755_v2  ;;  %3589 = vmatmul.f32.vlgmr.msrb.gmra.mxu0 %v4810_v25  ;;  %v880_v6 = vsel %vm606_vm4, %v6229_v31, 0.0  ;;  %vm1144_vm5 = vcmp.eq.s32.totalorder %v336_v61, %v6232_v57  ;;  %v6249_v8 = vperm.slane %v5111_v51, 5  ;;  %3715 = vmatmul.f32.gmra.mxu3 %v4813_v9  ;;  %v4816_v29 = vld [vmem:[#allocation9 + $0x30] sm:$0xff] }
 0x1a6   :  { %v1418_v13 = vsel %vm1144_vm5, %v6235_v3, 0.0  ;;  %vm1682_vm6 = vcmp.eq.s32.totalorder %v336_v61, %v6238_v33  ;;  %vm2220_vm7 = vcmp.eq.s32.totalorder %v336_v61, %v6244_v4  ;;  %vm734_vm8 = vcmp.eq.s32.totalorder %v464_v34, %v6223_v49 }
 0x1a7   :  { %3629 = vmatpush.msrb.mxu1 %v3267_v5  ;;  %v1956_v19 = vsel %vm1682_vm6, %v6241_v10, 0.0  ;;  %v2494_v32 = vsel %vm2220_vm7, %v6249_v8, 0.0  ;;  %v2750_v20 = vadd.f32 %v1418_v13, %v880_v6  ;;  %v1008_v21 = vsel %vm734_vm8, %v6229_v31, 0.0  ;;  %v320_v5 = vld [vmem:[#allocation11 + $0x368] sm:$0xff] }
 0x1a8   :  { %3630 = vmatmul.f32.vlgmr.msrb.gmra.mxu1 %v4811_v35  ;;  %v3006_v22 = vadd.f32 %v2494_v32, %v1956_v19  ;;  %vm1272_vm9 = vcmp.eq.s32.totalorder %v464_v34, %v6232_v57  ;;  %vm1810_vm10 = vcmp.eq.s32.totalorder %v464_v34, %v6238_v33  ;;  %vm2348_vm11 = vcmp.eq.s32.totalorder %v464_v34, %v6244_v4  ;;  %v448_v32 = vld [vmem:[#allocation11 + $0x768] sm:$0xff] }
 0x1a9   :  { %v1546_v48 = vsel %vm1272_vm9, %v6235_v3, 0.0  ;;  %v2084_v36 = vsel %vm1810_vm10, %v6241_v10, 0.0  ;;  %v2622_v11 = vsel %vm2348_vm11, %v6249_v8, 0.0  ;;  %vm598_vm12 = vcmp.eq.s32.totalorder %v328_v17, %v6223_v49 }
 0x1aa   :  { %v3262_v15 = vadd.f32 %v3006_v22, %v2750_v20  ;;  %v2878_v14 = vadd.f32 %v1546_v48, %v1008_v21  ;;  %v3134_v16 = vadd.f32 %v2622_v11, %v2084_v36  ;;  %v872_v37 = vsel %vm598_vm12, %v6229_v31, 0.0  ;;  %3677 = vmatmul.f32.gmra.mxu2 %v4814_v47 }
 0x1ab   :  { %vm1136_vm13 = vcmp.eq.s32.totalorder %v328_v17, %v6232_v57  ;;  %vm1674_vm14 = vcmp.eq.s32.totalorder %v328_v17, %v6238_v33  ;;  %vm2212_vm15 = vcmp.eq.s32.totalorder %v328_v17, %v6244_v4  ;;  %vm726_vm0 = vcmp.eq.s32.totalorder %v456_v23, %v6223_v49 }
 0x1ac   :  { %3819 = vmatpush.msra.mxu2 %v3262_v15  ;;  %v3390_v24 = vadd.f32 %v3134_v16, %v2878_v14  ;;  %v1410_v25 = vsel %vm1136_vm13, %v6235_v3, 0.0  ;;  %v1948_v26 = vsel %vm1674_vm14, %v6241_v10, 0.0  ;;  %v2486_v27 = vsel %vm2212_vm15, %v6249_v8, 0.0  ;;  %v327_v14 = vld [vmem:[#allocation11 + $0x3a0] sm:$0xff] }
 0x1ad   :  { %v2742_v52 = vadd.f32 %v1410_v25, %v872_v37  ;;  %v2998_v50 = vadd.f32 %v2486_v27, %v1948_v26  ;;  %v1000_v53 = vsel %vm726_vm0, %v6229_v31, 0.0  ;;  %vm1264_vm1 = vcmp.eq.s32.totalorder %v456_v23, %v6232_v57  ;;  %3592 = vmatmul.f32.gmra.mxu0 %v4812_v28  ;;  %3718 = vmatmul.f32.gmra.mxu3 %v4815_v55 }
 0x1ae   :  { %3860 = vmatpush.msra.mxu3 %v3390_v24  ;;  %v1538_v56 = vsel %vm1264_vm1, %v6235_v3, 0.0  ;;  %vm1802_vm2 = vcmp.eq.s32.totalorder %v456_v23, %v6238_v33  ;;  %vm2340_vm3 = vcmp.eq.s32.totalorder %v456_v23, %v6244_v4  ;;  %v6279_v30 = vperm.slane %v5088_v39, 4  ;;  %v4817_v23 = vld [vmem:[#allocation9 + $0x38] sm:$0xff] }
 0x1af   :  { %v3254_v35 = vadd.f32 %v2998_v50, %v2742_v52  ;;  %v2076_v7 = vsel %vm1802_vm2, %v6241_v10, 0.0  ;;  %v2614_v12 = vsel %vm2340_vm3, %v6249_v8, 0.0  ;;  %v2870_v38 = vadd.f32 %v1538_v56, %v1000_v53  ;;  %v4818_v52 = vld [vmem:[#allocation9 + $0x40] sm:$0xff] }
 0x1b0   :  { %v3126_v42 = vadd.f32 %v2614_v12, %v2076_v7  ;;  %3633 = vmatmul.f32.gmra.mxu1 %v4813_v9  ;;  %vm605_vm4 = vcmp.eq.s32.totalorder %v335_v54, %v6279_v30  ;;  %v6285_v58 = vperm.slane %v5090_v40, 4  ;;  %v6288_v59 = vperm.slane %v5094_v43, 4  ;;  %v455_v53 = vld [vmem:[#allocation11 + $0x7a0] sm:$0xff] }
 0x1b1   :  { %3820 = vmatpush.msra.mxu2 %v3254_v35  ;;  %v6291_v61 = vperm.slane %v5100_v46, 4  ;;  %v6294_v62 = vperm.slane %v5096_v44, 4  ;;  %v6297_v63 = vperm.slane %v5092_v41, 4  ;;  %v6300_v0 = vperm.slane %v5098_v45, 4 }
 0x1b2   :  { %v3382_v1 = vadd.f32 %v3126_v42, %v2870_v38  ;;  %v879_v2 = vsel %vm605_vm4, %v6285_v58, 0.0  ;;  %vm1143_vm5 = vcmp.eq.s32.totalorder %v335_v54, %v6288_v59  ;;  %v6305_v28 = vperm.slane %v5111_v51, 4  ;;  %3680 = vmatmul.f32.gmra.mxu2 %v4816_v29 }
 0x1b3   :  { %v1417_v34 = vsel %vm1143_vm5, %v6291_v61, 0.0  ;;  %vm1681_vm6 = vcmp.eq.s32.totalorder %v335_v54, %v6294_v62  ;;  %vm2219_vm7 = vcmp.eq.s32.totalorder %v335_v54, %v6300_v0  ;;  %vm733_vm8 = vcmp.eq.s32.totalorder %v463_v60, %v6279_v30 }
 0x1b4   :  { %3861 = vmatpush.msra.mxu3 %v3382_v1  ;;  %v1955_v6 = vsel %vm1681_vm6, %v6297_v63, 0.0  ;;  %v2493_v9 = vsel %vm2219_vm7, %v6305_v28, 0.0  ;;  %v2749_v13 = vadd.f32 %v1417_v34, %v879_v2  ;;  %v1007_v17 = vsel %vm733_vm8, %v6285_v58, 0.0  ;;  %v4819_v1 = vld [vmem:[#allocation9 + $0x48] sm:$0xff] }
 0x1b5   :  { %v3005_v19 = vadd.f32 %v2493_v9, %v1955_v6  ;;  %vm1271_vm9 = vcmp.eq.s32.totalorder %v463_v60, %v6288_v59  ;;  %vm1809_vm10 = vcmp.eq.s32.totalorder %v463_v60, %v6294_v62  ;;  %vm2347_vm11 = vcmp.eq.s32.totalorder %v463_v60, %v6300_v0  ;;  %3595 = vmatmul.f32.gmra.mxu0 %v4814_v47  ;;  %v312_v60 = vld [vmem:[#allocation11 + $0x328] sm:$0xff] }
 0x1b6   :  { %v1545_v20 = vsel %vm1271_vm9, %v6291_v61, 0.0  ;;  %v2083_v21 = vsel %vm1809_vm10, %v6297_v63, 0.0  ;;  %v2621_v22 = vsel %vm2347_vm11, %v6305_v28, 0.0  ;;  %vm590_vm12 = vcmp.eq.s32.totalorder %v320_v5, %v6223_v49  ;;  %3721 = vmatmul.f32.gmra.mxu3 %v4817_v23 }
 0x1b7   :  { %v3261_v48 = vadd.f32 %v3005_v19, %v2749_v13  ;;  %v2877_v36 = vadd.f32 %v1545_v20, %v1007_v17  ;;  %v3133_v11 = vadd.f32 %v2621_v22, %v2083_v21  ;;  %v864_v15 = vsel %vm590_vm12, %v6229_v31, 0.0 }
 0x1b8   :  { %vm1128_vm13 = vcmp.eq.s32.totalorder %v320_v5, %v6232_v57  ;;  %vm1666_vm14 = vcmp.eq.s32.totalorder %v320_v5, %v6238_v33  ;;  %vm2204_vm15 = vcmp.eq.s32.totalorder %v320_v5, %v6244_v4  ;;  %vm718_vm0 = vcmp.eq.s32.totalorder %v448_v32, %v6223_v49  ;;  %3636 = vmatmul.f32.gmra.mxu1 %v4815_v55 }
 0x1b9   :  { %3737 = vmatpush.msra.mxu0 %v3261_v48  ;;  %v3389_v16 = vadd.f32 %v3133_v11, %v2877_v36  ;;  %v1402_v37 = vsel %vm1128_vm13, %v6235_v3, 0.0  ;;  %v1940_v47 = vsel %vm1666_vm14, %v6241_v10, 0.0  ;;  %v2478_v24 = vsel %vm2204_vm15, %v6249_v8, 0.0  ;;  %v4820_v48 = vld [vmem:[#allocation9 + $0x50] sm:$0xff] }
 0x1ba   :  { %v2734_v25 = vadd.f32 %v1402_v37, %v864_v15  ;;  %v2990_v26 = vadd.f32 %v2478_v24, %v1940_v47  ;;  %v992_v27 = vsel %vm718_vm0, %v6229_v31, 0.0  ;;  %vm1256_vm1 = vcmp.eq.s32.totalorder %v448_v32, %v6232_v57  ;;  %3683 = vmatmul.f32.gmra.mxu2 %v4818_v52 }
 0x1bb   :  { %3778 = vmatpush.msra.mxu1 %v3389_v16  ;;  %v1530_v50 = vsel %vm1256_vm1, %v6235_v3, 0.0  ;;  %vm1794_vm2 = vcmp.eq.s32.totalorder %v448_v32, %v6238_v33  ;;  %vm2332_vm3 = vcmp.eq.s32.totalorder %v448_v32, %v6244_v4  ;;  %vm597_vm4 = vcmp.eq.s32.totalorder %v327_v14, %v6279_v30 }
 0x1bc   :  { %v3246_v54 = vadd.f32 %v2990_v26, %v2734_v25  ;;  %v2068_v55 = vsel %vm1794_vm2, %v6241_v10, 0.0  ;;  %v2606_v56 = vsel %vm2332_vm3, %v6249_v8, 0.0  ;;  %v2862_v35 = vadd.f32 %v1530_v50, %v992_v27  ;;  %v447_v25 = vld [vmem:[#allocation11 + $0x760] sm:$0xff]  ;;  %v4821_v26 = vld [vmem:[#allocation9 + $0x58] sm:$0xff] }
 0x1bd   :  { %v3118_v7 = vadd.f32 %v2606_v56, %v2068_v55  ;;  %v871_v12 = vsel %vm597_vm4, %v6285_v58, 0.0  ;;  %vm1135_vm5 = vcmp.eq.s32.totalorder %v327_v14, %v6288_v59  ;;  %vm1673_vm6 = vcmp.eq.s32.totalorder %v327_v14, %v6294_v62  ;;  %3598 = vmatmul.f32.gmra.mxu0 %v4816_v29  ;;  %v440_v29 = vld [vmem:[#allocation11 + $0x728] sm:$0xff] }
 0x1be   :  { %3821 = vmatpush.msra.mxu2 %v3246_v54  ;;  %v1409_v38 = vsel %vm1135_vm5, %v6291_v61, 0.0  ;;  %v1947_v42 = vsel %vm1673_vm6, %v6297_v63, 0.0  ;;  %vm2211_vm7 = vcmp.eq.s32.totalorder %v327_v14, %v6300_v0  ;;  %vm725_vm8 = vcmp.eq.s32.totalorder %v455_v53, %v6279_v30  ;;  %3724 = vmatmul.f32.gmra.mxu3 %v4819_v1 }
 0x1bf   :  { %v3374_v2 = vadd.f32 %v3118_v7, %v2862_v35  ;;  %v2485_v34 = vsel %vm2211_vm7, %v6305_v28, 0.0  ;;  %v2741_v5 = vadd.f32 %v1409_v38, %v871_v12  ;;  %v999_v6 = vsel %vm725_vm8, %v6285_v58, 0.0  ;;  %v304_v7 = vld [vmem:[#allocation11 + $0x2e8] sm:$0xff] }
 0x1c0   :  { %v2997_v9 = vadd.f32 %v2485_v34, %v1947_v42  ;;  %vm1263_vm9 = vcmp.eq.s32.totalorder %v455_v53, %v6288_v59  ;;  %vm1801_vm10 = vcmp.eq.s32.totalorder %v455_v53, %v6294_v62  ;;  %vm2339_vm11 = vcmp.eq.s32.totalorder %v455_v53, %v6300_v0  ;;  %3639 = vmatmul.f32.gmra.mxu1 %v4817_v23  ;;  %v319_v23 = vld [vmem:[#allocation11 + $0x360] sm:$0xff] }
 0x1c1   :  { %3862 = vmatpush.msra.mxu3 %v3374_v2  ;;  %v1537_v13 = vsel %vm1263_vm9, %v6291_v61, 0.0  ;;  %v2075_v17 = vsel %vm1801_vm10, %v6297_v63, 0.0  ;;  %v2613_v19 = vsel %vm2339_vm11, %v6305_v28, 0.0  ;;  %vm582_vm12 = vcmp.eq.s32.totalorder %v312_v60, %v6223_v49  ;;  %v4822_v2 = vld [vmem:[#allocation9 + $0x60] sm:$0xff] }
 0x1c2   :  { %v3253_v32 = vadd.f32 %v2997_v9, %v2741_v5  ;;  %v2869_v20 = vadd.f32 %v1537_v13, %v999_v6  ;;  %v3125_v21 = vadd.f32 %v2613_v19, %v2075_v17  ;;  %v856_v22 = vsel %vm582_vm12, %v6229_v31, 0.0  ;;  %3686 = vmatmul.f32.gmra.mxu2 %v4820_v48 }
 0x1c3   :  { %vm1120_vm13 = vcmp.eq.s32.totalorder %v312_v60, %v6232_v57  ;;  %vm1658_vm14 = vcmp.eq.s32.totalorder %v312_v60, %v6238_v33  ;;  %vm2196_vm15 = vcmp.eq.s32.totalorder %v312_v60, %v6244_v4  ;;  %vm710_vm0 = vcmp.eq.s32.totalorder %v440_v29, %v6223_v49 }
 0x1c4   :  { %3738 = vmatpush.msra.mxu0 %v3253_v32  ;;  %v3381_v36 = vadd.f32 %v3125_v21, %v2869_v20  ;;  %v1394_v11 = vsel %vm1120_vm13, %v6235_v3, 0.0  ;;  %v1932_v15 = vsel %vm1658_vm14, %v6241_v10, 0.0  ;;  %v2470_v14 = vsel %vm2196_vm15, %v6249_v8, 0.0  ;;  %v311_v32 = vld [vmem:[#allocation11 + $0x320] sm:$0xff]  ;;  %v4823_v20 = vld [vmem:[#allocation9 + $0x68] sm:$0xff] }
 0x1c5   :  { %v2726_v16 = vadd.f32 %v1394_v11, %v856_v22  ;;  %v2982_v37 = vadd.f32 %v2470_v14, %v1932_v15  ;;  %v984_v47 = vsel %vm710_vm0, %v6229_v31, 0.0  ;;  %vm1248_vm1 = vcmp.eq.s32.totalorder %v440_v29, %v6232_v57  ;;  %3601 = vmatmul.f32.gmra.mxu0 %v4818_v52 }
 0x1c6   :  { %3779 = vmatpush.msra.mxu1 %v3381_v36  ;;  %v1522_v24 = vsel %vm1248_vm1, %v6235_v3, 0.0  ;;  %vm1786_vm2 = vcmp.eq.s32.totalorder %v440_v29, %v6238_v33  ;;  %vm2324_vm3 = vcmp.eq.s32.totalorder %v440_v29, %v6244_v4  ;;  %vm589_vm4 = vcmp.eq.s32.totalorder %v319_v23, %v6279_v30  ;;  %3727 = vmatmul.f32.gmra.mxu3 %v4821_v26 }
 0x1c7   :  { %v3238_v27 = vadd.f32 %v2982_v37, %v2726_v16  ;;  %v2060_v50 = vsel %vm1786_vm2, %v6241_v10, 0.0  ;;  %v2598_v53 = vsel %vm2324_vm3, %v6249_v8, 0.0  ;;  %v2854_v54 = vadd.f32 %v1522_v24, %v984_v47  ;;  %v439_v16 = vld [vmem:[#allocation11 + $0x720] sm:$0xff] }
 0x1c8   :  { %v3110_v55 = vadd.f32 %v2598_v53, %v2060_v50  ;;  %v863_v52 = vsel %vm589_vm4, %v6285_v58, 0.0  ;;  %vm1127_vm5 = vcmp.eq.s32.totalorder %v319_v23, %v6288_v59  ;;  %vm1665_vm6 = vcmp.eq.s32.totalorder %v319_v23, %v6294_v62  ;;  %3642 = vmatmul.f32.gmra.mxu1 %v4819_v1  ;;  %v432_v1 = vld [vmem:[#allocation11 + $0x6e8] sm:$0xff] }
 0x1c9   :  { %3822 = vmatpush.msra.mxu2 %v3238_v27  ;;  %v1401_v56 = vsel %vm1127_vm5, %v6291_v61, 0.0  ;;  %v1939_v35 = vsel %vm1665_vm6, %v6297_v63, 0.0  ;;  %vm2203_vm7 = vcmp.eq.s32.totalorder %v319_v23, %v6300_v0  ;;  %vm717_vm8 = vcmp.eq.s32.totalorder %v447_v25, %v6279_v30  ;;  %v4824_v27 = vld [vmem:[#allocation9 + $0x70] sm:$0xff] }
 0x1ca   :  { %v3366_v12 = vadd.f32 %v3110_v55, %v2854_v54  ;;  %v2477_v38 = vsel %vm2203_vm7, %v6305_v28, 0.0  ;;  %v2733_v42 = vadd.f32 %v1401_v56, %v863_v52  ;;  %v991_v60 = vsel %vm717_vm8, %v6285_v58, 0.0  ;;  %3689 = vmatmul.f32.gmra.mxu2 %v4822_v2  ;;  %v296_v55 = vld [vmem:[#allocation11 + $0x2a8] sm:$0xff] }
 0x1cb   :  { %v2989_v34 = vadd.f32 %v2477_v38, %v1939_v35  ;;  %vm1255_vm9 = vcmp.eq.s32.totalorder %v447_v25, %v6288_v59  ;;  %vm1793_vm10 = vcmp.eq.s32.totalorder %v447_v25, %v6294_v62  ;;  %vm2331_vm11 = vcmp.eq.s32.totalorder %v447_v25, %v6300_v0  ;;  %v424_v38 = vld [vmem:[#allocation11 + $0x6a8] sm:$0xff] }
 0x1cc   :  { %3863 = vmatpush.msra.mxu3 %v3366_v12  ;;  %v1529_v5 = vsel %vm1255_vm9, %v6291_v61, 0.0  ;;  %v2067_v6 = vsel %vm1793_vm10, %v6297_v63, 0.0  ;;  %v2605_v9 = vsel %vm2331_vm11, %v6305_v28, 0.0  ;;  %vm574_vm12 = vcmp.eq.s32.totalorder %v304_v7, %v6223_v49 }
 0x1cd   :  { %v3245_v29 = vadd.f32 %v2989_v34, %v2733_v42  ;;  %v2861_v13 = vadd.f32 %v1529_v5, %v991_v60  ;;  %v3117_v17 = vadd.f32 %v2605_v9, %v2067_v6  ;;  %v848_v19 = vsel %vm574_vm12, %v6229_v31, 0.0  ;;  %3604 = vmatmul.f32.gmra.mxu0 %v4820_v48  ;;  %v4825_v42 = vld [vmem:[#allocation9 + $0x78] sm:$0xff] }
 0x1ce   :  { %vm1112_vm13 = vcmp.eq.s32.totalorder %v304_v7, %v6232_v57  ;;  %vm1650_vm14 = vcmp.eq.s32.totalorder %v304_v7, %v6238_v33  ;;  %vm2188_vm15 = vcmp.eq.s32.totalorder %v304_v7, %v6244_v4  ;;  %vm702_vm0 = vcmp.eq.s32.totalorder %v432_v1, %v6223_v49  ;;  %3730 = vmatmul.f32.gmra.mxu3 %v4823_v20 }
 0x1cf   :  { %3739 = vmatpush.msra.mxu0 %v3245_v29  ;;  %v3373_v21 = vadd.f32 %v3117_v17, %v2861_v13  ;;  %v1386_v22 = vsel %vm1112_vm13, %v6235_v3, 0.0  ;;  %v1924_v23 = vsel %vm1650_vm14, %v6241_v10, 0.0  ;;  %v2462_v36 = vsel %vm2188_vm15, %v6249_v8, 0.0  ;;  %v303_v29 = vld [vmem:[#allocation11 + $0x2e0] sm:$0xff] }
 0x1d0   :  { %v2718_v48 = vadd.f32 %v1386_v22, %v848_v19  ;;  %v2974_v11 = vadd.f32 %v2462_v36, %v1924_v23  ;;  %v976_v15 = vsel %vm702_vm0, %v6229_v31, 0.0  ;;  %vm1240_vm1 = vcmp.eq.s32.totalorder %v432_v1, %v6232_v57  ;;  %3645 = vmatmul.f32.gmra.mxu1 %v4821_v26  ;;  %v431_v36 = vld [vmem:[#allocation11 + $0x6e0] sm:$0xff] }
 0x1d1   :  { %3780 = vmatpush.msra.mxu1 %v3373_v21  ;;  %v1514_v14 = vsel %vm1240_vm1, %v6235_v3, 0.0  ;;  %vm1778_vm2 = vcmp.eq.s32.totalorder %v432_v1, %v6238_v33  ;;  %vm2316_vm3 = vcmp.eq.s32.totalorder %v432_v1, %v6244_v4  ;;  %vm581_vm4 = vcmp.eq.s32.totalorder %v311_v32, %v6279_v30 }
 0x1d2   :  { %v3230_v37 = vadd.f32 %v2974_v11, %v2718_v48  ;;  %v2052_v47 = vsel %vm1778_vm2, %v6241_v10, 0.0  ;;  %v2590_v24 = vsel %vm2316_vm3, %v6249_v8, 0.0  ;;  %v2846_v25 = vadd.f32 %v1514_v14, %v976_v15  ;;  %3692 = vmatmul.f32.gmra.mxu2 %v4824_v27 }
 0x1d3   :  { %v3102_v50 = vadd.f32 %v2590_v24, %v2052_v47  ;;  %v855_v26 = vsel %vm581_vm4, %v6285_v58, 0.0  ;;  %vm1119_vm5 = vcmp.eq.s32.totalorder %v311_v32, %v6288_v59  ;;  %vm1657_vm6 = vcmp.eq.s32.totalorder %v311_v32, %v6294_v62 }
 0x1d4   :  { %3823 = vmatpush.msra.mxu2 %v3230_v37  ;;  %v1393_v53 = vsel %vm1119_vm5, %v6291_v61, 0.0  ;;  %v1931_v54 = vsel %vm1657_vm6, %v6297_v63, 0.0  ;;  %vm2195_vm7 = vcmp.eq.s32.totalorder %v311_v32, %v6300_v0  ;;  %vm709_vm8 = vcmp.eq.s32.totalorder %v439_v16, %v6279_v30 }
 0x1d5   :  { %v3358_v52 = vadd.f32 %v3102_v50, %v2846_v25  ;;  %v2469_v56 = vsel %vm2195_vm7, %v6305_v28, 0.0  ;;  %v2725_v35 = vadd.f32 %v1393_v53, %v855_v26  ;;  %v983_v7 = vsel %vm709_vm8, %v6285_v58, 0.0  ;;  %3607 = vmatmul.f32.gmra.mxu0 %v4822_v2  ;;  %v288_v25 = vld [vmem:[#allocation11 + $0x268] sm:$0xff] }
 0x1d6   :  { %v2981_v12 = vadd.f32 %v2469_v56, %v1931_v54  ;;  %vm1247_vm9 = vcmp.eq.s32.totalorder %v439_v16, %v6288_v59  ;;  %vm1785_vm10 = vcmp.eq.s32.totalorder %v439_v16, %v6294_v62  ;;  %vm2323_vm11 = vcmp.eq.s32.totalorder %v439_v16, %v6300_v0  ;;  %3733 = vmatmul.f32.gmra.mxu3 %v4825_v42 }
 0x1d7   :  { %3864 = vmatpush.msra.mxu3 %v3358_v52  ;;  %v1521_v60 = vsel %vm1247_vm9, %v6291_v61, 0.0  ;;  %v2059_v34 = vsel %vm1785_vm10, %v6297_v63, 0.0  ;;  %v2597_v1 = vsel %vm2323_vm11, %v6305_v28, 0.0  ;;  %vm566_vm12 = vcmp.eq.s32.totalorder %v296_v55, %v6223_v49 }
 0x1d8   :  { %v3237_v2 = vadd.f32 %v2981_v12, %v2725_v35  ;;  %v2853_v5 = vadd.f32 %v1521_v60, %v983_v7  ;;  %v3109_v6 = vadd.f32 %v2597_v1, %v2059_v34  ;;  %v840_v9 = vsel %vm566_vm12, %v6229_v31, 0.0  ;;  %3648 = vmatmul.f32.gmra.mxu1 %v4823_v20  ;;  %v295_v60 = vld [vmem:[#allocation11 + $0x2a0] sm:$0xff] }
 0x1d9   :  { %vm1104_vm13 = vcmp.eq.s32.totalorder %v296_v55, %v6232_v57  ;;  %vm1642_vm14 = vcmp.eq.s32.totalorder %v296_v55, %v6238_v33  ;;  %vm2180_vm15 = vcmp.eq.s32.totalorder %v296_v55, %v6244_v4  ;;  %vm694_vm0 = vcmp.eq.s32.totalorder %v424_v38, %v6223_v49  ;;  %v416_v55 = vld [vmem:[#allocation11 + $0x668] sm:$0xff] }
 0x1da   :  { %3740 = vmatpush.msra.mxu0 %v3237_v2  ;;  %v3365_v13 = vadd.f32 %v3109_v6, %v2853_v5  ;;  %v1378_v17 = vsel %vm1104_vm13, %v6235_v3, 0.0  ;;  %v1916_v19 = vsel %vm1642_vm14, %v6241_v10, 0.0  ;;  %v2454_v32 = vsel %vm2180_vm15, %v6249_v8, 0.0 }
 0x1db   :  { %v2710_v21 = vadd.f32 %v1378_v17, %v840_v9  ;;  %v2966_v22 = vadd.f32 %v2454_v32, %v1916_v19  ;;  %v968_v20 = vsel %vm694_vm0, %v6229_v31, 0.0  ;;  %vm1232_vm1 = vcmp.eq.s32.totalorder %v424_v38, %v6232_v57  ;;  %v423_v17 = vld [vmem:[#allocation11 + $0x6a0] sm:$0xff] }
 0x1dc   :  { %3781 = vmatpush.msra.mxu1 %v3365_v13  ;;  %v1506_v23 = vsel %vm1232_vm1, %v6235_v3, 0.0  ;;  %vm1770_vm2 = vcmp.eq.s32.totalorder %v424_v38, %v6238_v33  ;;  %vm2308_vm3 = vcmp.eq.s32.totalorder %v424_v38, %v6244_v4  ;;  %vm573_vm4 = vcmp.eq.s32.totalorder %v303_v29, %v6279_v30 }
 0x1dd   :  { %v3222_v48 = vadd.f32 %v2966_v22, %v2710_v21  ;;  %v2044_v11 = vsel %vm1770_vm2, %v6241_v10, 0.0  ;;  %v2582_v15 = vsel %vm2308_vm3, %v6249_v8, 0.0  ;;  %v2838_v14 = vadd.f32 %v1506_v23, %v968_v20  ;;  %3610 = vmatmul.f32.gmra.mxu0 %v4824_v27 }
 0x1de   :  { %v3094_v16 = vadd.f32 %v2582_v15, %v2044_v11  ;;  %v847_v37 = vsel %vm573_vm4, %v6285_v58, 0.0  ;;  %vm1111_vm5 = vcmp.eq.s32.totalorder %v303_v29, %v6288_v59  ;;  %vm1649_vm6 = vcmp.eq.s32.totalorder %v303_v29, %v6294_v62  ;;  %v280_v11 = vld [vmem:[#allocation11 + $0x228] sm:$0xff] }
 0x1df   :  { %3824 = vmatpush.msra.mxu2 %v3222_v48  ;;  %v1385_v47 = vsel %vm1111_vm5, %v6291_v61, 0.0  ;;  %v1923_v24 = vsel %vm1649_vm6, %v6297_v63, 0.0  ;;  %vm2187_vm7 = vcmp.eq.s32.totalorder %v303_v29, %v6300_v0  ;;  %vm701_vm8 = vcmp.eq.s32.totalorder %v431_v36, %v6279_v30 }
 0x1e0   :  { %v3350_v50 = vadd.f32 %v3094_v16, %v2838_v14  ;;  %v2461_v27 = vsel %vm2187_vm7, %v6305_v28, 0.0  ;;  %v2717_v26 = vadd.f32 %v1385_v47, %v847_v37  ;;  %v975_v53 = vsel %vm701_vm8, %v6285_v58, 0.0  ;;  %3651 = vmatmul.f32.gmra.mxu1 %v4825_v42 }
 0x1e1   :  { %v2973_v54 = vadd.f32 %v2461_v27, %v1923_v24  ;;  %vm1239_vm9 = vcmp.eq.s32.totalorder %v431_v36, %v6288_v59  ;;  %vm1777_vm10 = vcmp.eq.s32.totalorder %v431_v36, %v6294_v62  ;;  %vm2315_vm11 = vcmp.eq.s32.totalorder %v431_v36, %v6300_v0  ;;  %v408_v24 = vld [vmem:[#allocation11 + $0x628] sm:$0xff] }
 0x1e2   :  { %3865 = vmatpush.msra.mxu3 %v3350_v50  ;;  %v1513_v52 = vsel %vm1239_vm9, %v6291_v61, 0.0  ;;  %v2051_v56 = vsel %vm1777_vm10, %v6297_v63, 0.0  ;;  %v2589_v35 = vsel %vm2315_vm11, %v6305_v28, 0.0  ;;  %vm558_vm12 = vcmp.eq.s32.totalorder %v288_v25, %v6223_v49 }
 0x1e3   :  { %v3229_v7 = vadd.f32 %v2973_v54, %v2717_v26  ;;  %v2845_v12 = vadd.f32 %v1513_v52, %v975_v53  ;;  %v3101_v38 = vadd.f32 %v2589_v35, %v2051_v56  ;;  %v832_v42 = vsel %vm558_vm12, %v6229_v31, 0.0  ;;  %v287_v52 = vld [vmem:[#allocation11 + $0x260] sm:$0xff] }
 0x1e4   :  { %vm1096_vm13 = vcmp.eq.s32.totalorder %v288_v25, %v6232_v57  ;;  %vm1634_vm14 = vcmp.eq.s32.totalorder %v288_v25, %v6238_v33  ;;  %vm2172_vm15 = vcmp.eq.s32.totalorder %v288_v25, %v6244_v4  ;;  %vm686_vm0 = vcmp.eq.s32.totalorder %v416_v55, %v6223_v49 }
 0x1e5   :  { %3741 = vmatpush.msra.mxu0 %v3229_v7  ;;  %v3357_v34 = vadd.f32 %v3101_v38, %v2845_v12  ;;  %v1370_v1 = vsel %vm1096_vm13, %v6235_v3, 0.0  ;;  %v1908_v2 = vsel %vm1634_vm14, %v6241_v10, 0.0  ;;  %v2446_v5 = vsel %vm2172_vm15, %v6249_v8, 0.0 }
 0x1e6   :  { %v2702_v6 = vadd.f32 %v1370_v1, %v832_v42  ;;  %v2958_v9 = vadd.f32 %v2446_v5, %v1908_v2  ;;  %v960_v29 = vsel %vm686_vm0, %v6229_v31, 0.0  ;;  %vm1224_vm1 = vcmp.eq.s32.totalorder %v416_v55, %v6232_v57  ;;  %v415_v1 = vld [vmem:[#allocation11 + $0x660] sm:$0xff] }
 0x1e7   :  { %3782 = vmatpush.msra.mxu1 %v3357_v34  ;;  %v1498_v13 = vsel %vm1224_vm1, %v6235_v3, 0.0  ;;  %vm1762_vm2 = vcmp.eq.s32.totalorder %v416_v55, %v6238_v33  ;;  %vm2300_vm3 = vcmp.eq.s32.totalorder %v416_v55, %v6244_v4  ;;  %vm565_vm4 = vcmp.eq.s32.totalorder %v295_v60, %v6279_v30 }
 0x1e8   :  { %v3214_v19 = vadd.f32 %v2958_v9, %v2702_v6  ;;  %v2036_v32 = vsel %vm1762_vm2, %v6241_v10, 0.0  ;;  %v2574_v21 = vsel %vm2300_vm3, %v6249_v8, 0.0  ;;  %v2830_v22 = vadd.f32 %v1498_v13, %v960_v29 }
 0x1e9   :  { %v3086_v20 = vadd.f32 %v2574_v21, %v2036_v32  ;;  %v839_v23 = vsel %vm565_vm4, %v6285_v58, 0.0  ;;  %vm1103_vm5 = vcmp.eq.s32.totalorder %v295_v60, %v6288_v59  ;;  %vm1641_vm6 = vcmp.eq.s32.totalorder %v295_v60, %v6294_v62  ;;  %v272_v32 = vld [vmem:[#allocation11 + $0x1e8] sm:$0xff] }
 0x1ea   :  { %3825 = vmatpush.msra.mxu2 %v3214_v19  ;;  %v1377_v36 = vsel %vm1103_vm5, %v6291_v61, 0.0  ;;  %v1915_v48 = vsel %vm1641_vm6, %v6297_v63, 0.0  ;;  %vm2179_vm7 = vcmp.eq.s32.totalorder %v295_v60, %v6300_v0  ;;  %vm693_vm8 = vcmp.eq.s32.totalorder %v423_v17, %v6279_v30 }
 0x1eb   :  { %v3342_v15 = vadd.f32 %v3086_v20, %v2830_v22  ;;  %v2453_v14 = vsel %vm2179_vm7, %v6305_v28, 0.0  ;;  %v2709_v16 = vadd.f32 %v1377_v36, %v839_v23  ;;  %v967_v37 = vsel %vm693_vm8, %v6285_v58, 0.0 }
 0x1ec   :  { %v2965_v47 = vadd.f32 %v2453_v14, %v1915_v48  ;;  %vm1231_vm9 = vcmp.eq.s32.totalorder %v423_v17, %v6288_v59  ;;  %vm1769_vm10 = vcmp.eq.s32.totalorder %v423_v17, %v6294_v62  ;;  %vm2307_vm11 = vcmp.eq.s32.totalorder %v423_v17, %v6300_v0  ;;  %v400_v48 = vld [vmem:[#allocation11 + $0x5e8] sm:$0xff] }
 0x1ed   :  { %3866 = vmatpush.msra.mxu3 %v3342_v15  ;;  %v1505_v25 = vsel %vm1231_vm9, %v6291_v61, 0.0  ;;  %v2043_v50 = vsel %vm1769_vm10, %v6297_v63, 0.0  ;;  %v2581_v27 = vsel %vm2307_vm11, %v6305_v28, 0.0  ;;  %vm550_vm12 = vcmp.eq.s32.totalorder %v280_v11, %v6223_v49 }
 0x1ee   :  { %v3221_v26 = vadd.f32 %v2965_v47, %v2709_v16  ;;  %v2837_v53 = vadd.f32 %v1505_v25, %v967_v37  ;;  %v3093_v54 = vadd.f32 %v2581_v27, %v2043_v50  ;;  %v824_v55 = vsel %vm550_vm12, %v6229_v31, 0.0  ;;  %v279_v25 = vld [vmem:[#allocation11 + $0x220] sm:$0xff] }
 0x1ef   :  { %vm1088_vm13 = vcmp.eq.s32.totalorder %v280_v11, %v6232_v57  ;;  %vm1626_vm14 = vcmp.eq.s32.totalorder %v280_v11, %v6238_v33  ;;  %vm2164_vm15 = vcmp.eq.s32.totalorder %v280_v11, %v6244_v4  ;;  %vm678_vm0 = vcmp.eq.s32.totalorder %v408_v24, %v6223_v49 }
 0x1f0   :  { %3742 = vmatpush.msra.mxu0 %v3221_v26  ;;  %v3349_v56 = vadd.f32 %v3093_v54, %v2837_v53  ;;  %v1362_v35 = vsel %vm1088_vm13, %v6235_v3, 0.0  ;;  %v1900_v7 = vsel %vm1626_vm14, %v6241_v10, 0.0  ;;  %v2438_v12 = vsel %vm2164_vm15, %v6249_v8, 0.0 }
 0x1f1   :  { %v2694_v38 = vadd.f32 %v1362_v35, %v824_v55  ;;  %v2950_v42 = vadd.f32 %v2438_v12, %v1900_v7  ;;  %v952_v60 = vsel %vm678_vm0, %v6229_v31, 0.0  ;;  %vm1216_vm1 = vcmp.eq.s32.totalorder %v408_v24, %v6232_v57  ;;  %v407_v35 = vld [vmem:[#allocation11 + $0x620] sm:$0xff] }
 0x1f2   :  { %3783 = vmatpush.msra.mxu1 %v3349_v56  ;;  %v1490_v34 = vsel %vm1216_vm1, %v6235_v3, 0.0  ;;  %vm1754_vm2 = vcmp.eq.s32.totalorder %v408_v24, %v6238_v33  ;;  %vm2292_vm3 = vcmp.eq.s32.totalorder %v408_v24, %v6244_v4  ;;  %vm557_vm4 = vcmp.eq.s32.totalorder %v287_v52, %v6279_v30 }
 0x1f3   :  { %v3206_v2 = vadd.f32 %v2950_v42, %v2694_v38  ;;  %v2028_v5 = vsel %vm1754_vm2, %v6241_v10, 0.0  ;;  %v2566_v6 = vsel %vm2292_vm3, %v6249_v8, 0.0  ;;  %v2822_v9 = vadd.f32 %v1490_v34, %v952_v60 }
 0x1f4   :  { %v3078_v29 = vadd.f32 %v2566_v6, %v2028_v5  ;;  %v831_v13 = vsel %vm557_vm4, %v6285_v58, 0.0  ;;  %vm1095_vm5 = vcmp.eq.s32.totalorder %v287_v52, %v6288_v59  ;;  %vm1633_vm6 = vcmp.eq.s32.totalorder %v287_v52, %v6294_v62  ;;  %v264_v5 = vld [vmem:[#allocation11 + $0x1a8] sm:$0xff] }
 0x1f5   :  { %3826 = vmatpush.msra.mxu2 %v3206_v2  ;;  %v1369_v17 = vsel %vm1095_vm5, %v6291_v61, 0.0  ;;  %v1907_v19 = vsel %vm1633_vm6, %v6297_v63, 0.0  ;;  %vm2171_vm7 = vcmp.eq.s32.totalorder %v287_v52, %v6300_v0  ;;  %vm685_vm8 = vcmp.eq.s32.totalorder %v415_v1, %v6279_v30 }
 0x1f6   :  { %v3334_v21 = vadd.f32 %v3078_v29, %v2822_v9  ;;  %v2445_v22 = vsel %vm2171_vm7, %v6305_v28, 0.0  ;;  %v2701_v20 = vadd.f32 %v1369_v17, %v831_v13  ;;  %v959_v23 = vsel %vm685_vm8, %v6285_v58, 0.0 }
 0x1f7   :  { %v2957_v36 = vadd.f32 %v2445_v22, %v1907_v19  ;;  %vm1223_vm9 = vcmp.eq.s32.totalorder %v415_v1, %v6288_v59  ;;  %vm1761_vm10 = vcmp.eq.s32.totalorder %v415_v1, %v6294_v62  ;;  %vm2299_vm11 = vcmp.eq.s32.totalorder %v415_v1, %v6300_v0  ;;  %v392_v19 = vld [vmem:[#allocation11 + $0x5a8] sm:$0xff] }
 0x1f8   :  { %3867 = vmatpush.msra.mxu3 %v3334_v21  ;;  %v1497_v11 = vsel %vm1223_vm9, %v6291_v61, 0.0  ;;  %v2035_v15 = vsel %vm1761_vm10, %v6297_v63, 0.0  ;;  %v2573_v14 = vsel %vm2299_vm11, %v6305_v28, 0.0  ;;  %vm542_vm12 = vcmp.eq.s32.totalorder %v272_v32, %v6223_v49 }
 0x1f9   :  { %v3213_v16 = vadd.f32 %v2957_v36, %v2701_v20  ;;  %v2829_v37 = vadd.f32 %v1497_v11, %v959_v23  ;;  %v3085_v47 = vadd.f32 %v2573_v14, %v2035_v15  ;;  %v816_v24 = vsel %vm542_vm12, %v6229_v31, 0.0  ;;  %v271_v11 = vld [vmem:[#allocation11 + $0x1e0] sm:$0xff] }
 0x1fa   :  { %vm1080_vm13 = vcmp.eq.s32.totalorder %v272_v32, %v6232_v57  ;;  %vm1618_vm14 = vcmp.eq.s32.totalorder %v272_v32, %v6238_v33  ;;  %vm2156_vm15 = vcmp.eq.s32.totalorder %v272_v32, %v6244_v4  ;;  %vm670_vm0 = vcmp.eq.s32.totalorder %v400_v48, %v6223_v49 }
 0x1fb   :  { %3743 = vmatpush.msra.mxu0 %v3213_v16  ;;  %v3341_v50 = vadd.f32 %v3085_v47, %v2829_v37  ;;  %v1354_v27 = vsel %vm1080_vm13, %v6235_v3, 0.0  ;;  %v1892_v26 = vsel %vm1618_vm14, %v6241_v10, 0.0  ;;  %v2430_v53 = vsel %vm2156_vm15, %v6249_v8, 0.0 }
 0x1fc   :  { %v2686_v54 = vadd.f32 %v1354_v27, %v816_v24  ;;  %v2942_v55 = vadd.f32 %v2430_v53, %v1892_v26  ;;  %v944_v52 = vsel %vm670_vm0, %v6229_v31, 0.0  ;;  %vm1208_vm1 = vcmp.eq.s32.totalorder %v400_v48, %v6232_v57  ;;  %v399_v27 = vld [vmem:[#allocation11 + $0x5e0] sm:$0xff] }
 0x1fd   :  { %3784 = vmatpush.msra.mxu1 %v3341_v50  ;;  %v1482_v56 = vsel %vm1208_vm1, %v6235_v3, 0.0  ;;  %vm1746_vm2 = vcmp.eq.s32.totalorder %v400_v48, %v6238_v33  ;;  %vm2284_vm3 = vcmp.eq.s32.totalorder %v400_v48, %v6244_v4  ;;  %vm549_vm4 = vcmp.eq.s32.totalorder %v279_v25, %v6279_v30 }
 0x1fe   :  { %v3198_v7 = vadd.f32 %v2942_v55, %v2686_v54  ;;  %v2020_v12 = vsel %vm1746_vm2, %v6241_v10, 0.0  ;;  %v2558_v38 = vsel %vm2284_vm3, %v6249_v8, 0.0  ;;  %v2814_v42 = vadd.f32 %v1482_v56, %v944_v52 }
 0x1ff   :  { %v3070_v60 = vadd.f32 %v2558_v38, %v2020_v12  ;;  %v823_v34 = vsel %vm549_vm4, %v6285_v58, 0.0  ;;  %vm1087_vm5 = vcmp.eq.s32.totalorder %v279_v25, %v6288_v59  ;;  %vm1625_vm6 = vcmp.eq.s32.totalorder %v279_v25, %v6294_v62  ;;  %v256_v12 = vld [vmem:[#allocation11 + $0x168] sm:$0xff] }
 0x200   :  { %3827 = vmatpush.msra.mxu2 %v3198_v7  ;;  %v1361_v1 = vsel %vm1087_vm5, %v6291_v61, 0.0  ;;  %v1899_v2 = vsel %vm1625_vm6, %v6297_v63, 0.0  ;;  %vm2163_vm7 = vcmp.eq.s32.totalorder %v279_v25, %v6300_v0  ;;  %vm677_vm8 = vcmp.eq.s32.totalorder %v407_v35, %v6279_v30 }
 0x201   :  { %v3326_v6 = vadd.f32 %v3070_v60, %v2814_v42  ;;  %v2437_v9 = vsel %vm2163_vm7, %v6305_v28, 0.0  ;;  %v2693_v29 = vadd.f32 %v1361_v1, %v823_v34  ;;  %v951_v13 = vsel %vm677_vm8, %v6285_v58, 0.0 }
 0x202   :  { %v2949_v17 = vadd.f32 %v2437_v9, %v1899_v2  ;;  %vm1215_vm9 = vcmp.eq.s32.totalorder %v407_v35, %v6288_v59  ;;  %vm1753_vm10 = vcmp.eq.s32.totalorder %v407_v35, %v6294_v62  ;;  %vm2291_vm11 = vcmp.eq.s32.totalorder %v407_v35, %v6300_v0  ;;  %v384_v2 = vld [vmem:[#allocation11 + $0x568] sm:$0xff] }
 0x203   :  { %3868 = vmatpush.msra.mxu3 %v3326_v6  ;;  %v1489_v32 = vsel %vm1215_vm9, %v6291_v61, 0.0  ;;  %v2027_v21 = vsel %vm1753_vm10, %v6297_v63, 0.0  ;;  %v2565_v22 = vsel %vm2291_vm11, %v6305_v28, 0.0  ;;  %vm534_vm12 = vcmp.eq.s32.totalorder %v264_v5, %v6223_v49 }
 0x204   :  { %v3205_v20 = vadd.f32 %v2949_v17, %v2693_v29  ;;  %v2821_v23 = vadd.f32 %v1489_v32, %v951_v13  ;;  %v3077_v36 = vadd.f32 %v2565_v22, %v2027_v21  ;;  %v808_v48 = vsel %vm534_vm12, %v6229_v31, 0.0  ;;  %v263_v32 = vld [vmem:[#allocation11 + $0x1a0] sm:$0xff] }
 0x205   :  { %vm1072_vm13 = vcmp.eq.s32.totalorder %v264_v5, %v6232_v57  ;;  %vm1610_vm14 = vcmp.eq.s32.totalorder %v264_v5, %v6238_v33  ;;  %vm2148_vm15 = vcmp.eq.s32.totalorder %v264_v5, %v6244_v4  ;;  %vm662_vm0 = vcmp.eq.s32.totalorder %v392_v19, %v6223_v49 }
 0x206   :  { %3744 = vmatpush.msra.mxu0 %v3205_v20  ;;  %v3333_v15 = vadd.f32 %v3077_v36, %v2821_v23  ;;  %v1346_v14 = vsel %vm1072_vm13, %v6235_v3, 0.0  ;;  %v1884_v16 = vsel %vm1610_vm14, %v6241_v10, 0.0  ;;  %v2422_v37 = vsel %vm2148_vm15, %v6249_v8, 0.0 }
 0x207   :  { %v2678_v47 = vadd.f32 %v1346_v14, %v808_v48  ;;  %v2934_v24 = vadd.f32 %v2422_v37, %v1884_v16  ;;  %v936_v25 = vsel %vm662_vm0, %v6229_v31, 0.0  ;;  %vm1200_vm1 = vcmp.eq.s32.totalorder %v392_v19, %v6232_v57  ;;  %v391_v14 = vld [vmem:[#allocation11 + $0x5a0] sm:$0xff] }
 0x208   :  { %3785 = vmatpush.msra.mxu1 %v3333_v15  ;;  %v1474_v50 = vsel %vm1200_vm1, %v6235_v3, 0.0  ;;  %vm1738_vm2 = vcmp.eq.s32.totalorder %v392_v19, %v6238_v33  ;;  %vm2276_vm3 = vcmp.eq.s32.totalorder %v392_v19, %v6244_v4  ;;  %vm541_vm4 = vcmp.eq.s32.totalorder %v271_v11, %v6279_v30 }
 0x209   :  { %v3190_v26 = vadd.f32 %v2934_v24, %v2678_v47  ;;  %v2012_v53 = vsel %vm1738_vm2, %v6241_v10, 0.0  ;;  %v2550_v54 = vsel %vm2276_vm3, %v6249_v8, 0.0  ;;  %v2806_v55 = vadd.f32 %v1474_v50, %v936_v25 }
 0x20a   :  { %v3062_v52 = vadd.f32 %v2550_v54, %v2012_v53  ;;  %v815_v56 = vsel %vm541_vm4, %v6285_v58, 0.0  ;;  %vm1079_vm5 = vcmp.eq.s32.totalorder %v271_v11, %v6288_v59  ;;  %vm1617_vm6 = vcmp.eq.s32.totalorder %v271_v11, %v6294_v62  ;;  %v248_v53 = vld [vmem:[#allocation11 + $0x128] sm:$0xff] }
 0x20b   :  { %3828 = vmatpush.msra.mxu2 %v3190_v26  ;;  %v1353_v35 = vsel %vm1079_vm5, %v6291_v61, 0.0  ;;  %v1891_v7 = vsel %vm1617_vm6, %v6297_v63, 0.0  ;;  %vm2155_vm7 = vcmp.eq.s32.totalorder %v271_v11, %v6300_v0  ;;  %vm669_vm8 = vcmp.eq.s32.totalorder %v399_v27, %v6279_v30 }
 0x20c   :  { %v3318_v38 = vadd.f32 %v3062_v52, %v2806_v55  ;;  %v2429_v42 = vsel %vm2155_vm7, %v6305_v28, 0.0  ;;  %v2685_v60 = vadd.f32 %v1353_v35, %v815_v56  ;;  %v943_v34 = vsel %vm669_vm8, %v6285_v58, 0.0 }
 0x20d   :  { %v2941_v1 = vadd.f32 %v2429_v42, %v1891_v7  ;;  %vm1207_vm9 = vcmp.eq.s32.totalorder %v399_v27, %v6288_v59  ;;  %vm1745_vm10 = vcmp.eq.s32.totalorder %v399_v27, %v6294_v62  ;;  %vm2283_vm11 = vcmp.eq.s32.totalorder %v399_v27, %v6300_v0  ;;  %v376_v7 = vld [vmem:[#allocation11 + $0x528] sm:$0xff] }
 0x20e   :  { %3869 = vmatpush.msra.mxu3 %v3318_v38  ;;  %v1481_v5 = vsel %vm1207_vm9, %v6291_v61, 0.0  ;;  %v2019_v6 = vsel %vm1745_vm10, %v6297_v63, 0.0  ;;  %v2557_v9 = vsel %vm2283_vm11, %v6305_v28, 0.0  ;;  %vm526_vm12 = vcmp.eq.s32.totalorder %v256_v12, %v6223_v49 }
 0x20f   :  { %v3197_v29 = vadd.f32 %v2941_v1, %v2685_v60  ;;  %v2813_v13 = vadd.f32 %v1481_v5, %v943_v34  ;;  %v3069_v17 = vadd.f32 %v2557_v9, %v2019_v6  ;;  %v800_v19 = vsel %vm526_vm12, %v6229_v31, 0.0  ;;  %v255_v5 = vld [vmem:[#allocation11 + $0x160] sm:$0xff] }
 0x210   :  { %vm1064_vm13 = vcmp.eq.s32.totalorder %v256_v12, %v6232_v57  ;;  %vm1602_vm14 = vcmp.eq.s32.totalorder %v256_v12, %v6238_v33  ;;  %vm2140_vm15 = vcmp.eq.s32.totalorder %v256_v12, %v6244_v4  ;;  %vm654_vm0 = vcmp.eq.s32.totalorder %v384_v2, %v6223_v49 }
 0x211   :  { %3745 = vmatpush.msra.mxu0 %v3197_v29  ;;  %v3325_v21 = vadd.f32 %v3069_v17, %v2813_v13  ;;  %v1338_v22 = vsel %vm1064_vm13, %v6235_v3, 0.0  ;;  %v1876_v20 = vsel %vm1602_vm14, %v6241_v10, 0.0  ;;  %v2414_v23 = vsel %vm2140_vm15, %v6249_v8, 0.0 }
 0x212   :  { %v2670_v36 = vadd.f32 %v1338_v22, %v800_v19  ;;  %v2926_v48 = vadd.f32 %v2414_v23, %v1876_v20  ;;  %v928_v11 = vsel %vm654_vm0, %v6229_v31, 0.0  ;;  %vm1192_vm1 = vcmp.eq.s32.totalorder %v384_v2, %v6232_v57  ;;  %v383_v22 = vld [vmem:[#allocation11 + $0x560] sm:$0xff] }
 0x213   :  { %3786 = vmatpush.msra.mxu1 %v3325_v21  ;;  %v1466_v15 = vsel %vm1192_vm1, %v6235_v3, 0.0  ;;  %vm1730_vm2 = vcmp.eq.s32.totalorder %v384_v2, %v6238_v33  ;;  %vm2268_vm3 = vcmp.eq.s32.totalorder %v384_v2, %v6244_v4  ;;  %vm533_vm4 = vcmp.eq.s32.totalorder %v263_v32, %v6279_v30 }
 0x214   :  { %v3182_v16 = vadd.f32 %v2926_v48, %v2670_v36  ;;  %v2004_v37 = vsel %vm1730_vm2, %v6241_v10, 0.0  ;;  %v2542_v47 = vsel %vm2268_vm3, %v6249_v8, 0.0  ;;  %v2798_v24 = vadd.f32 %v1466_v15, %v928_v11 }
 0x215   :  { %v3054_v25 = vadd.f32 %v2542_v47, %v2004_v37  ;;  %v807_v50 = vsel %vm533_vm4, %v6285_v58, 0.0  ;;  %vm1071_vm5 = vcmp.eq.s32.totalorder %v263_v32, %v6288_v59  ;;  %vm1609_vm6 = vcmp.eq.s32.totalorder %v263_v32, %v6294_v62  ;;  %v240_v37 = vld [vmem:[#allocation11 + $0xe8] sm:$0xff] }
 0x216   :  { %3829 = vmatpush.msra.mxu2 %v3182_v16  ;;  %v1345_v27 = vsel %vm1071_vm5, %v6291_v61, 0.0  ;;  %v1883_v26 = vsel %vm1609_vm6, %v6297_v63, 0.0  ;;  %vm2147_vm7 = vcmp.eq.s32.totalorder %v263_v32, %v6300_v0  ;;  %vm661_vm8 = vcmp.eq.s32.totalorder %v391_v14, %v6279_v30 }
 0x217   :  { %v3310_v54 = vadd.f32 %v3054_v25, %v2798_v24  ;;  %v2421_v55 = vsel %vm2147_vm7, %v6305_v28, 0.0  ;;  %v2677_v52 = vadd.f32 %v1345_v27, %v807_v50  ;;  %v935_v56 = vsel %vm661_vm8, %v6285_v58, 0.0 }
 0x218   :  { %v2933_v35 = vadd.f32 %v2421_v55, %v1883_v26  ;;  %vm1199_vm9 = vcmp.eq.s32.totalorder %v391_v14, %v6288_v59  ;;  %vm1737_vm10 = vcmp.eq.s32.totalorder %v391_v14, %v6294_v62  ;;  %vm2275_vm11 = vcmp.eq.s32.totalorder %v391_v14, %v6300_v0  ;;  %v368_v26 = vld [vmem:[#allocation11 + $0x4e8] sm:$0xff] }
 0x219   :  { %3870 = vmatpush.msra.mxu3 %v3310_v54  ;;  %v1473_v12 = vsel %vm1199_vm9, %v6291_v61, 0.0  ;;  %v2011_v38 = vsel %vm1737_vm10, %v6297_v63, 0.0  ;;  %v2549_v42 = vsel %vm2275_vm11, %v6305_v28, 0.0  ;;  %vm518_vm12 = vcmp.eq.s32.totalorder %v248_v53, %v6223_v49 }
 0x21a   :  { %v3189_v60 = vadd.f32 %v2933_v35, %v2677_v52  ;;  %v2805_v34 = vadd.f32 %v1473_v12, %v935_v56  ;;  %v3061_v1 = vadd.f32 %v2549_v42, %v2011_v38  ;;  %v792_v2 = vsel %vm518_vm12, %v6229_v31, 0.0  ;;  %v247_v12 = vld [vmem:[#allocation11 + $0x120] sm:$0xff] }
 0x21b   :  { %vm1056_vm13 = vcmp.eq.s32.totalorder %v248_v53, %v6232_v57  ;;  %vm1594_vm14 = vcmp.eq.s32.totalorder %v248_v53, %v6238_v33  ;;  %vm2132_vm15 = vcmp.eq.s32.totalorder %v248_v53, %v6244_v4  ;;  %vm646_vm0 = vcmp.eq.s32.totalorder %v376_v7, %v6223_v49 }
 0x21c   :  { %3746 = vmatpush.msra.mxu0 %v3189_v60  ;;  %v3317_v6 = vadd.f32 %v3061_v1, %v2805_v34  ;;  %v1330_v9 = vsel %vm1056_vm13, %v6235_v3, 0.0  ;;  %v1868_v29 = vsel %vm1594_vm14, %v6241_v10, 0.0  ;;  %v2406_v13 = vsel %vm2132_vm15, %v6249_v8, 0.0 }
 0x21d   :  { %v2662_v17 = vadd.f32 %v1330_v9, %v792_v2  ;;  %v2918_v19 = vadd.f32 %v2406_v13, %v1868_v29  ;;  %v920_v32 = vsel %vm646_vm0, %v6229_v31, 0.0  ;;  %vm1184_vm1 = vcmp.eq.s32.totalorder %v376_v7, %v6232_v57  ;;  %v375_v9 = vld [vmem:[#allocation11 + $0x520] sm:$0xff] }
 0x21e   :  { %3787 = vmatpush.msra.mxu1 %v3317_v6  ;;  %v1458_v21 = vsel %vm1184_vm1, %v6235_v3, 0.0  ;;  %vm1722_vm2 = vcmp.eq.s32.totalorder %v376_v7, %v6238_v33  ;;  %vm2260_vm3 = vcmp.eq.s32.totalorder %v376_v7, %v6244_v4  ;;  %vm525_vm4 = vcmp.eq.s32.totalorder %v255_v5, %v6279_v30 }
 0x21f   :  { %v3174_v20 = vadd.f32 %v2918_v19, %v2662_v17  ;;  %v1996_v23 = vsel %vm1722_vm2, %v6241_v10, 0.0  ;;  %v2534_v36 = vsel %vm2260_vm3, %v6249_v8, 0.0  ;;  %v2790_v48 = vadd.f32 %v1458_v21, %v920_v32 }
 0x220   :  { %v3046_v11 = vadd.f32 %v2534_v36, %v1996_v23  ;;  %v799_v15 = vsel %vm525_vm4, %v6285_v58, 0.0  ;;  %vm1063_vm5 = vcmp.eq.s32.totalorder %v255_v5, %v6288_v59  ;;  %vm1601_vm6 = vcmp.eq.s32.totalorder %v255_v5, %v6294_v62  ;;  %v232_v23 = vld [vmem:[#allocation11 + $0xa8] sm:$0xff] }
 0x221   :  { %3830 = vmatpush.msra.mxu2 %v3174_v20  ;;  %v1337_v14 = vsel %vm1063_vm5, %v6291_v61, 0.0  ;;  %v1875_v16 = vsel %vm1601_vm6, %v6297_v63, 0.0  ;;  %vm2139_vm7 = vcmp.eq.s32.totalorder %v255_v5, %v6300_v0  ;;  %vm653_vm8 = vcmp.eq.s32.totalorder %v383_v22, %v6279_v30 }
 0x222   :  { %v3302_v47 = vadd.f32 %v3046_v11, %v2790_v48  ;;  %v2413_v24 = vsel %vm2139_vm7, %v6305_v28, 0.0  ;;  %v2669_v25 = vadd.f32 %v1337_v14, %v799_v15  ;;  %v927_v50 = vsel %vm653_vm8, %v6285_v58, 0.0 }
 0x223   :  { %v2925_v27 = vadd.f32 %v2413_v24, %v1875_v16  ;;  %vm1191_vm9 = vcmp.eq.s32.totalorder %v383_v22, %v6288_v59  ;;  %vm1729_vm10 = vcmp.eq.s32.totalorder %v383_v22, %v6294_v62  ;;  %vm2267_vm11 = vcmp.eq.s32.totalorder %v383_v22, %v6300_v0  ;;  %v360_v16 = vld [vmem:[#allocation11 + $0x4a8] sm:$0xff] }
 0x224   :  { %3871 = vmatpush.msra.mxu3 %v3302_v47  ;;  %v1465_v53 = vsel %vm1191_vm9, %v6291_v61, 0.0  ;;  %v2003_v54 = vsel %vm1729_vm10, %v6297_v63, 0.0  ;;  %v2541_v55 = vsel %vm2267_vm11, %v6305_v28, 0.0  ;;  %vm510_vm12 = vcmp.eq.s32.totalorder %v240_v37, %v6223_v49 }
 0x225   :  { %v3181_v52 = vadd.f32 %v2925_v27, %v2669_v25  ;;  %v2797_v56 = vadd.f32 %v1465_v53, %v927_v50  ;;  %v3053_v35 = vadd.f32 %v2541_v55, %v2003_v54  ;;  %v784_v7 = vsel %vm510_vm12, %v6229_v31, 0.0  ;;  %v239_v53 = vld [vmem:[#allocation11 + $0xe0] sm:$0xff] }
 0x226   :  { %vm1048_vm13 = vcmp.eq.s32.totalorder %v240_v37, %v6232_v57  ;;  %vm1586_vm14 = vcmp.eq.s32.totalorder %v240_v37, %v6238_v33  ;;  %vm2124_vm15 = vcmp.eq.s32.totalorder %v240_v37, %v6244_v4  ;;  %vm638_vm0 = vcmp.eq.s32.totalorder %v368_v26, %v6223_v49 }
 0x227   :  { %3747 = vmatpush.msra.mxu0 %v3181_v52  ;;  %v3309_v38 = vadd.f32 %v3053_v35, %v2797_v56  ;;  %v1322_v42 = vsel %vm1048_vm13, %v6235_v3, 0.0  ;;  %v1860_v60 = vsel %vm1586_vm14, %v6241_v10, 0.0  ;;  %v2398_v34 = vsel %vm2124_vm15, %v6249_v8, 0.0 }
 0x228   :  { %v2654_v1 = vadd.f32 %v1322_v42, %v784_v7  ;;  %v2910_v2 = vadd.f32 %v2398_v34, %v1860_v60  ;;  %v912_v5 = vsel %vm638_vm0, %v6229_v31, 0.0  ;;  %vm1176_vm1 = vcmp.eq.s32.totalorder %v368_v26, %v6232_v57  ;;  %v367_v42 = vld [vmem:[#allocation11 + $0x4e0] sm:$0xff] }
 0x229   :  { %3788 = vmatpush.msra.mxu1 %v3309_v38  ;;  %v1450_v6 = vsel %vm1176_vm1, %v6235_v3, 0.0  ;;  %vm1714_vm2 = vcmp.eq.s32.totalorder %v368_v26, %v6238_v33  ;;  %vm2252_vm3 = vcmp.eq.s32.totalorder %v368_v26, %v6244_v4  ;;  %vm517_vm4 = vcmp.eq.s32.totalorder %v247_v12, %v6279_v30 }
 0x22a   :  { %v3166_v29 = vadd.f32 %v2910_v2, %v2654_v1  ;;  %v1988_v13 = vsel %vm1714_vm2, %v6241_v10, 0.0  ;;  %v2526_v17 = vsel %vm2252_vm3, %v6249_v8, 0.0  ;;  %v2782_v19 = vadd.f32 %v1450_v6, %v912_v5 }
 0x22b   :  { %v3038_v32 = vadd.f32 %v2526_v17, %v1988_v13  ;;  %v791_v21 = vsel %vm517_vm4, %v6285_v58, 0.0  ;;  %vm1055_vm5 = vcmp.eq.s32.totalorder %v247_v12, %v6288_v59  ;;  %vm1593_vm6 = vcmp.eq.s32.totalorder %v247_v12, %v6294_v62  ;;  %v224_v13 = vld [vmem:[#allocation11 + $0x68] sm:$0xff] }
 0x22c   :  { %3831 = vmatpush.msra.mxu2 %v3166_v29  ;;  %v1329_v22 = vsel %vm1055_vm5, %v6291_v61, 0.0  ;;  %v1867_v20 = vsel %vm1593_vm6, %v6297_v63, 0.0  ;;  %vm2131_vm7 = vcmp.eq.s32.totalorder %v247_v12, %v6300_v0  ;;  %vm645_vm8 = vcmp.eq.s32.totalorder %v375_v9, %v6279_v30 }
 0x22d   :  { %v3294_v36 = vadd.f32 %v3038_v32, %v2782_v19  ;;  %v2405_v48 = vsel %vm2131_vm7, %v6305_v28, 0.0  ;;  %v2661_v11 = vadd.f32 %v1329_v22, %v791_v21  ;;  %v919_v15 = vsel %vm645_vm8, %v6285_v58, 0.0 }
 0x22e   :  { %v2917_v14 = vadd.f32 %v2405_v48, %v1867_v20  ;;  %vm1183_vm9 = vcmp.eq.s32.totalorder %v375_v9, %v6288_v59  ;;  %vm1721_vm10 = vcmp.eq.s32.totalorder %v375_v9, %v6294_v62  ;;  %vm2259_vm11 = vcmp.eq.s32.totalorder %v375_v9, %v6300_v0  ;;  %v352_v20 = vld [vmem:[#allocation11 + $0x468] sm:$0xff] }
 0x22f   :  { %3872 = vmatpush.msra.mxu3 %v3294_v36  ;;  %v1457_v37 = vsel %vm1183_vm9, %v6291_v61, 0.0  ;;  %v1995_v47 = vsel %vm1721_vm10, %v6297_v63, 0.0  ;;  %v2533_v24 = vsel %vm2259_vm11, %v6305_v28, 0.0  ;;  %vm502_vm12 = vcmp.eq.s32.totalorder %v232_v23, %v6223_v49 }
 0x230   :  { %v3173_v25 = vadd.f32 %v2917_v14, %v2661_v11  ;;  %v2789_v50 = vadd.f32 %v1457_v37, %v919_v15  ;;  %v3045_v27 = vadd.f32 %v2533_v24, %v1995_v47  ;;  %v776_v26 = vsel %vm502_vm12, %v6229_v31, 0.0  ;;  %v231_v37 = vld [vmem:[#allocation11 + $0xa0] sm:$0xff] }
 0x231   :  { %vm1040_vm13 = vcmp.eq.s32.totalorder %v232_v23, %v6232_v57  ;;  %vm1578_vm14 = vcmp.eq.s32.totalorder %v232_v23, %v6238_v33  ;;  %vm2116_vm15 = vcmp.eq.s32.totalorder %v232_v23, %v6244_v4  ;;  %vm630_vm0 = vcmp.eq.s32.totalorder %v360_v16, %v6223_v49 }
 0x232   :  { %3748 = vmatpush.msra.mxu0 %v3173_v25  ;;  %v3301_v54 = vadd.f32 %v3045_v27, %v2789_v50  ;;  %v1314_v55 = vsel %vm1040_vm13, %v6235_v3, 0.0  ;;  %v1852_v52 = vsel %vm1578_vm14, %v6241_v10, 0.0  ;;  %v2390_v56 = vsel %vm2116_vm15, %v6249_v8, 0.0 }
 0x233   :  { %v2646_v35 = vadd.f32 %v1314_v55, %v776_v26  ;;  %v2902_v7 = vadd.f32 %v2390_v56, %v1852_v52  ;;  %v904_v12 = vsel %vm630_vm0, %v6229_v31, 0.0  ;;  %vm1168_vm1 = vcmp.eq.s32.totalorder %v360_v16, %v6232_v57  ;;  %v359_v55 = vld [vmem:[#allocation11 + $0x4a0] sm:$0xff] }
 0x234   :  { %3789 = vmatpush.msra.mxu1 %v3301_v54  ;;  %v1442_v38 = vsel %vm1168_vm1, %v6235_v3, 0.0  ;;  %vm1706_vm2 = vcmp.eq.s32.totalorder %v360_v16, %v6238_v33  ;;  %vm2244_vm3 = vcmp.eq.s32.totalorder %v360_v16, %v6244_v4  ;;  %vm509_vm4 = vcmp.eq.s32.totalorder %v239_v53, %v6279_v30 }
 0x235   :  { %v3158_v60 = vadd.f32 %v2902_v7, %v2646_v35  ;;  %v1980_v34 = vsel %vm1706_vm2, %v6241_v10, 0.0  ;;  %v2518_v1 = vsel %vm2244_vm3, %v6249_v8, 0.0  ;;  %v2774_v2 = vadd.f32 %v1442_v38, %v904_v12 }
 0x236   :  { %v3030_v5 = vadd.f32 %v2518_v1, %v1980_v34  ;;  %v783_v6 = vsel %vm509_vm4, %v6285_v58, 0.0  ;;  %vm1047_vm5 = vcmp.eq.s32.totalorder %v239_v53, %v6288_v59  ;;  %vm1585_vm6 = vcmp.eq.s32.totalorder %v239_v53, %v6294_v62  ;;  %v216_v34 = vld [vmem:[#allocation11 + $0x28] sm:$0xff] }
 0x237   :  { %3832 = vmatpush.msra.mxu2 %v3158_v60  ;;  %v1321_v9 = vsel %vm1047_vm5, %v6291_v61, 0.0  ;;  %v1859_v29 = vsel %vm1585_vm6, %v6297_v63, 0.0  ;;  %vm2123_vm7 = vcmp.eq.s32.totalorder %v239_v53, %v6300_v0  ;;  %vm637_vm8 = vcmp.eq.s32.totalorder %v367_v42, %v6279_v30 }
 0x238   :  { %v3286_v17 = vadd.f32 %v3030_v5, %v2774_v2  ;;  %v2397_v19 = vsel %vm2123_vm7, %v6305_v28, 0.0  ;;  %v2653_v32 = vadd.f32 %v1321_v9, %v783_v6  ;;  %v911_v21 = vsel %vm637_vm8, %v6285_v58, 0.0 }
 0x239   :  { %v2909_v22 = vadd.f32 %v2397_v19, %v1859_v29  ;;  %vm1175_vm9 = vcmp.eq.s32.totalorder %v367_v42, %v6288_v59  ;;  %vm1713_vm10 = vcmp.eq.s32.totalorder %v367_v42, %v6294_v62  ;;  %vm2251_vm11 = vcmp.eq.s32.totalorder %v367_v42, %v6300_v0  ;;  %v344_v29 = vld [vmem:[#allocation11 + $0x428] sm:$0xff] }
 0x23a   :  { %3873 = vmatpush.msra.mxu3 %v3286_v17  ;;  %v1449_v23 = vsel %vm1175_vm9, %v6291_v61, 0.0  ;;  %v1987_v36 = vsel %vm1713_vm10, %v6297_v63, 0.0  ;;  %v2525_v48 = vsel %vm2251_vm11, %v6305_v28, 0.0  ;;  %vm494_vm12 = vcmp.eq.s32.totalorder %v224_v13, %v6223_v49 }
 0x23b   :  { %v3165_v11 = vadd.f32 %v2909_v22, %v2653_v32  ;;  %v2781_v15 = vadd.f32 %v1449_v23, %v911_v21  ;;  %v3037_v14 = vadd.f32 %v2525_v48, %v1987_v36  ;;  %v768_v16 = vsel %vm494_vm12, %v6229_v31, 0.0 }
 0x23c   :  { %vm1032_vm13 = vcmp.eq.s32.totalorder %v224_v13, %v6232_v57  ;;  %vm1570_vm14 = vcmp.eq.s32.totalorder %v224_v13, %v6238_v33  ;;  %vm2108_vm15 = vcmp.eq.s32.totalorder %v224_v13, %v6244_v4  ;;  %vm622_vm0 = vcmp.eq.s32.totalorder %v352_v20, %v6223_v49 }
 0x23d   :  { %3749 = vmatpush.msra.mxu0 %v3165_v11  ;;  %v3293_v47 = vadd.f32 %v3037_v14, %v2781_v15  ;;  %v1306_v24 = vsel %vm1032_vm13, %v6235_v3, 0.0  ;;  %v1844_v25 = vsel %vm1570_vm14, %v6241_v10, 0.0  ;;  %v2382_v50 = vsel %vm2108_vm15, %v6249_v8, 0.0 }
 0x23e   :  { %v2638_v27 = vadd.f32 %v1306_v24, %v768_v16  ;;  %v2894_v26 = vadd.f32 %v2382_v50, %v1844_v25  ;;  %v896_v53 = vsel %vm622_vm0, %v6229_v31, 0.0  ;;  %vm1160_vm1 = vcmp.eq.s32.totalorder %v352_v20, %v6232_v57 }
 0x23f   :  { %3790 = vmatpush.msra.mxu1 %v3293_v47  ;;  %v1434_v54 = vsel %vm1160_vm1, %v6235_v3, 0.0  ;;  %vm1698_vm2 = vcmp.eq.s32.totalorder %v352_v20, %v6238_v33  ;;  %vm2236_vm3 = vcmp.eq.s32.totalorder %v352_v20, %v6244_v4  ;;  %vm501_vm4 = vcmp.eq.s32.totalorder %v231_v37, %v6279_v30 }
 0x240   :  { %v3150_v52 = vadd.f32 %v2894_v26, %v2638_v27  ;;  %v1972_v56 = vsel %vm1698_vm2, %v6241_v10, 0.0  ;;  %v2510_v35 = vsel %vm2236_vm3, %v6249_v8, 0.0  ;;  %v2766_v7 = vadd.f32 %v1434_v54, %v896_v53  ;;  %v351_v26 = vld [vmem:[#allocation11 + $0x460] sm:$0xff] }
 0x241   :  { %v3022_v12 = vadd.f32 %v2510_v35, %v1972_v56  ;;  %v775_v38 = vsel %vm501_vm4, %v6285_v58, 0.0  ;;  %vm1039_vm5 = vcmp.eq.s32.totalorder %v231_v37, %v6288_v59  ;;  %vm1577_vm6 = vcmp.eq.s32.totalorder %v231_v37, %v6294_v62  ;;  %v6769_v56 = vld [vmem:[#allocation9 + $0x8] sm:$0xff] }
 0x242   :  { %3833 = vmatpush.msra.mxu2 %v3150_v52  ;;  %v1313_v42 = vsel %vm1039_vm5, %v6291_v61, 0.0  ;;  %v1851_v60 = vsel %vm1577_vm6, %v6297_v63, 0.0  ;;  %vm2115_vm7 = vcmp.eq.s32.totalorder %v231_v37, %v6300_v0  ;;  %vm629_vm8 = vcmp.eq.s32.totalorder %v359_v55, %v6279_v30  ;;  %v215_v52 = vld [vmem:[#allocation11 + $0x20] sm:$0xff] }
 0x243   :  { %v3278_v1 = vadd.f32 %v3022_v12, %v2766_v7  ;;  %v2389_v2 = vsel %vm2115_vm7, %v6305_v28, 0.0  ;;  %v2645_v5 = vadd.f32 %v1313_v42, %v775_v38  ;;  %v903_v6 = vsel %vm629_vm8, %v6285_v58, 0.0 }
 0x244   :  { %v2901_v9 = vadd.f32 %v2389_v2, %v1851_v60  ;;  %vm1167_vm9 = vcmp.eq.s32.totalorder %v359_v55, %v6288_v59  ;;  %vm1705_vm10 = vcmp.eq.s32.totalorder %v359_v55, %v6294_v62  ;;  %vm2243_vm11 = vcmp.eq.s32.totalorder %v359_v55, %v6300_v0  ;;  %v6777_v60 = vld [vmem:[#allocation9 + $0x10] sm:$0xff] }
 0x245   :  { %3874 = vmatpush.msra.mxu3 %v3278_v1  ;;  %v1441_v13 = vsel %vm1167_vm9, %v6291_v61, 0.0  ;;  %v1979_v17 = vsel %vm1705_vm10, %v6297_v63, 0.0  ;;  %v2517_v19 = vsel %vm2243_vm11, %v6305_v28, 0.0  ;;  %vm486_vm12 = vcmp.eq.s32.totalorder %v216_v34, %v6223_v49 }
 0x246   :  { %v3157_v32 = vadd.f32 %v2901_v9, %v2645_v5  ;;  %v2773_v21 = vadd.f32 %v1441_v13, %v903_v6  ;;  %v3029_v22 = vadd.f32 %v2517_v19, %v1979_v17  ;;  %v760_v20 = vsel %vm486_vm12, %v6229_v31, 0.0  ;;  %v343_v5 = vld [vmem:[#allocation11 + $0x420] sm:$0xff]  ;;  %v6785_v9 = vld [vmem:[#allocation9 + $0x18] sm:$0xff] }
 0x247   :  { %vm1024_vm13 = vcmp.eq.s32.totalorder %v216_v34, %v6232_v57  ;;  %vm1562_vm14 = vcmp.eq.s32.totalorder %v216_v34, %v6238_v33  ;;  %vm2100_vm15 = vcmp.eq.s32.totalorder %v216_v34, %v6244_v4  ;;  %vm614_vm0 = vcmp.eq.s32.totalorder %v344_v29, %v6223_v49  ;;  %v223_v49 = vld [vmem:[#allocation11 + $0x60] sm:$0xff] }
 0x248   :  { %3750 = vmatpush.msra.mxu0 %v3157_v32  ;;  %v3285_v23 = vadd.f32 %v3029_v22, %v2773_v21  ;;  %v1298_v36 = vsel %vm1024_vm13, %v6235_v3, 0.0  ;;  %v1836_v48 = vsel %vm1562_vm14, %v6241_v10, 0.0  ;;  %v2374_v11 = vsel %vm2100_vm15, %v6249_v8, 0.0 }
 0x249   :  { %v2630_v15 = vadd.f32 %v1298_v36, %v760_v20  ;;  %v2886_v14 = vadd.f32 %v2374_v11, %v1836_v48  ;;  %v888_v16 = vsel %vm614_vm0, %v6229_v31, 0.0  ;;  %vm1152_vm1 = vcmp.eq.s32.totalorder %v344_v29, %v6232_v57 }
 0x24a   :  { %3791 = vmatpush.msra.mxu1 %v3285_v23  ;;  %v1426_v37 = vsel %vm1152_vm1, %v6235_v3, 0.0  ;;  %vm1690_vm2 = vcmp.eq.s32.totalorder %v344_v29, %v6238_v33  ;;  %vm2228_vm3 = vcmp.eq.s32.totalorder %v344_v29, %v6244_v4  ;;  %vm493_vm4 = vcmp.eq.s32.totalorder %v223_v49, %v6279_v30  ;;  %v6758_v33 = vld [vmem:[#allocation9] sm:$0xff] }
 0x24b   :  { %v3142_v47 = vadd.f32 %v2886_v14, %v2630_v15  ;;  %v1964_v24 = vsel %vm1690_vm2, %v6241_v10, 0.0  ;;  %v2502_v25 = vsel %vm2228_vm3, %v6249_v8, 0.0  ;;  %v2758_v50 = vadd.f32 %v1426_v37, %v888_v16  ;;  %v6798_v23 = vld [vmem:[#allocation9 + $0x20] sm:$0xff]  ;;  %v6824_v14 = vld [vmem:[#allocation9 + $0x28] sm:$0xff] }
 0x24c   :  { %v3014_v27 = vadd.f32 %v2502_v25, %v1964_v24  ;;  %vm1031_vm5 = vcmp.eq.s32.totalorder %v223_v49, %v6288_v59  ;;  %vm1569_vm6 = vcmp.eq.s32.totalorder %v223_v49, %v6294_v62  ;;  %vm2107_vm7 = vcmp.eq.s32.totalorder %v223_v49, %v6300_v0 }
 0x24d   :  { %3834 = vmatpush.msra.mxu2 %v3142_v47  ;;  %v767_v57 = vsel %vm493_vm4, %v6285_v58, 0.0  ;;  %v1305_v3 = vsel %vm1031_vm5, %v6291_v61, 0.0  ;;  %v1843_v10 = vsel %vm1569_vm6, %v6297_v63, 0.0  ;;  %v2381_v4 = vsel %vm2107_vm7, %v6305_v28, 0.0 }
 0x24e   :  { %v3270_v31 = vadd.f32 %v3014_v27, %v2758_v50  ;;  %3835 = vmatmul.f32.vlgmr.msra.gmra.mxu2 %v6758_v33  ;;  %v2637_v8 = vadd.f32 %v1305_v3, %v767_v57  ;;  %vm621_vm8 = vcmp.eq.s32.totalorder %v351_v26, %v6279_v30  ;;  %v2893_v53 = vadd.f32 %v2381_v4, %v1843_v10  ;;  %v179_v27 = vld [vmem:[#allocation8 + $0x2] ss:$4 sm:$0xff] }
 0x24f   :  { %v895_v54 = vsel %vm621_vm8, %v6285_v58, 0.0  ;;  %vm1159_vm9 = vcmp.eq.s32.totalorder %v351_v26, %v6288_v59  ;;  %vm1697_vm10 = vcmp.eq.s32.totalorder %v351_v26, %v6294_v62  ;;  %vm2235_vm11 = vcmp.eq.s32.totalorder %v351_v26, %v6300_v0  ;;  %v330_v57 = vld [vmem:[#allocation11 + $0x3b8] sm:$0xff] }
 0x250   :  { %3875 = vmatpush.msra.mxu3 %v3270_v31  ;;  %v1433_v55 = vsel %vm1159_vm9, %v6291_v61, 0.0  ;;  %v3149_v35 = vadd.f32 %v2893_v53, %v2637_v8  ;;  %v1971_v7 = vsel %vm1697_vm10, %v6297_v63, 0.0  ;;  %v2509_v12 = vsel %vm2235_vm11, %v6305_v28, 0.0  ;;  %v6849_v8 = vld [vmem:[#allocation9 + $0x30] sm:$0xff] }
 0x251   :  { %3876 = vmatmul.f32.vlgmr.msra.gmra.mxu3 %v6769_v56  ;;  %v2765_v38 = vadd.f32 %v1433_v55, %v895_v54  ;;  %vm485_vm12 = vcmp.eq.s32.totalorder %v215_v52, %v6279_v30  ;;  %vm1023_vm13 = vcmp.eq.s32.totalorder %v215_v52, %v6288_v59  ;;  %v3021_v42 = vadd.f32 %v2509_v12, %v1971_v7  ;;  %v458_v7 = vld [vmem:[#allocation11 + $0x7b8] sm:$0xff] }
 0x252   :  { %3751 = vmatpush.msra.mxu0 %v3149_v35  ;;  %vm1561_vm14 = vcmp.eq.s32.totalorder %v215_v52, %v6294_v62  ;;  %v759_v1 = vsel %vm485_vm12, %v6285_v58, 0.0  ;;  %v1297_v2 = vsel %vm1023_vm13, %v6291_v61, 0.0  ;;  %vm2099_vm15 = vcmp.eq.s32.totalorder %v215_v52, %v6300_v0  ;;  %v6857_v12 = vld [vmem:[#allocation9 + $0x38] sm:$0xff] }
 0x253   :  { %v3277_v34 = vadd.f32 %v3021_v42, %v2765_v38  ;;  %v1835_v6 = vsel %vm1561_vm14, %v6297_v63, 0.0  ;;  %v2629_v29 = vadd.f32 %v1297_v2, %v759_v1  ;;  %vm613_vm0 = vcmp.eq.s32.totalorder %v343_v5, %v6279_v30  ;;  %v338_v30 = vld [vmem:[#allocation11 + $0x3f8] sm:$0xff] }
 0x254   :  { %v2373_v13 = vsel %vm2099_vm15, %v6305_v28, 0.0  ;;  %v887_v19 = vsel %vm613_vm0, %v6285_v58, 0.0  ;;  %vm1151_vm1 = vcmp.eq.s32.totalorder %v343_v5, %v6288_v59  ;;  %vm1689_vm2 = vcmp.eq.s32.totalorder %v343_v5, %v6294_v62 }
 0x255   :  { %3792 = vmatpush.msra.mxu1 %v3277_v34  ;;  %v2885_v17 = vadd.f32 %v2373_v13, %v1835_v6  ;;  %v1425_v32 = vsel %vm1151_vm1, %v6291_v61, 0.0  ;;  %vm2227_vm3 = vcmp.eq.s32.totalorder %v343_v5, %v6300_v0  ;;  %v1963_v22 = vsel %vm1689_vm2, %v6297_v63, 0.0 }
 0x256   :  { %3838 = vmatmul.f32.gmra.mxu2 %v6777_v60  ;;  %v2501_v20 = vsel %vm2227_vm3, %v6305_v28, 0.0  ;;  %v2757_v58 = vadd.f32 %v1425_v32, %v887_v19  ;;  %v6802_v59 = vperm.slane %v5088_v39, 7  ;;  %v6805_v61 = vperm.slane %v5090_v40, 7  ;;  %v466_v28 = vld [vmem:[#allocation11 + $0x7f8] sm:$0xff] }
 0x257   :  { %v3141_v21 = vadd.f32 %v2885_v17, %v2629_v29  ;;  %v3013_v36 = vadd.f32 %v2501_v20, %v1963_v22  ;;  %v6808_v62 = vperm.slane %v5094_v43, 7  ;;  %v6811_v63 = vperm.slane %v5100_v46, 7  ;;  %v6875_v17 = vld [vmem:[#allocation9 + $0x40] sm:$0xff] }
 0x258   :  { %v6814_v0 = vperm.slane %v5096_v44, 7  ;;  %v181_v48 = vstv %s6782_s8  ;;  %vm608_vm4 = vcmp.eq.s32.totalorder %v338_v30, %v6802_v59  ;;  %v6822_v15 = vperm.slane %v5092_v41, 7 }
 0x259   :  { %3879 = vmatmul.f32.gmra.mxu3 %v6785_v9  ;;  %3752 = vmatpush.msra.mxu0 %v3141_v21  ;;  %v3269_v11 = vadd.f32 %v3013_v36, %v2757_v58  ;;  %v882_v16 = vsel %vm608_vm4, %v6805_v61, 0.0  ;;  %vm1146_vm5 = vcmp.eq.s32.totalorder %v338_v30, %v6808_v62  ;;  %v6831_v37 = vperm.slane %v5098_v45, 7 }
 0x25a   :  { %3753 = vmatmul.f32.vlgmr.msra.gmra.mxu0 %v6758_v33  ;;  %vm1684_vm6 = vcmp.eq.s32.totalorder %v338_v30, %v6814_v0  ;;  %v1420_v49 = vsel %vm1146_vm5, %v6811_v63, 0.0  ;;  %v6836_v24 = vperm.slane %v5111_v51, 7  ;;  %vm736_vm7 = vcmp.eq.s32.totalorder %v466_v28, %v6802_v59 }
 0x25b   :  { %3793 = vmatpush.msra.mxu1 %v3269_v11  ;;  %v1958_v47 = vsel %vm1684_vm6, %v6822_v15, 0.0  ;;  %vm2222_vm8 = vcmp.eq.s32.totalorder %v338_v30, %v6831_v37  ;;  %v2752_v25 = vadd.f32 %v1420_v49, %v882_v16  ;;  %v1010_v50 = vsel %vm736_vm7, %v6805_v61, 0.0  ;;  %v6897_v11 = vld [vmem:[#allocation9 + $0x48] sm:$0xff]  ;;  %v322_v49 = vld [vmem:[#allocation11 + $0x378] sm:$0xff] }
 0x25c   :  { %3794 = vmatmul.f32.vlgmr.msra.gmra.mxu1 %v6769_v56  ;;  %vm1274_vm9 = vcmp.eq.s32.totalorder %v466_v28, %v6808_v62  ;;  %v2496_v26 = vsel %vm2222_vm8, %v6836_v24, 0.0  ;;  %vm1812_vm10 = vcmp.eq.s32.totalorder %v466_v28, %v6814_v0  ;;  %vm2350_vm11 = vcmp.eq.s32.totalorder %v466_v28, %v6831_v37 }
 0x25d   :  { %v1548_v31 = vsel %vm1274_vm9, %v6811_v63, 0.0  ;;  %v3008_v3 = vadd.f32 %v2496_v26, %v1958_v47  ;;  %v2086_v33 = vsel %vm1812_vm10, %v6822_v15, 0.0  ;;  %v2624_v10 = vsel %vm2350_vm11, %v6836_v24, 0.0  ;;  %v450_v26 = vld [vmem:[#allocation11 + $0x778] sm:$0xff] }
 0x25e   :  { %3841 = vmatmul.f32.gmra.mxu2 %v6798_v23  ;;  %v2880_v4 = vadd.f32 %v1548_v31, %v1010_v50  ;;  %v3136_v53 = vadd.f32 %v2624_v10, %v2086_v33  ;;  %v182_v54 = vmul.f32 %v181_v48, %v179_v27  ;;  %vm600_vm12 = vcmp.eq.s32.totalorder %v330_v57, %v6802_v59 }
 0x25f   :  { %v3264_v55 = vadd.f32 %v3008_v3, %v2752_v25  ;;  %v184_v52 = vstv %s6817_s9  ;;  %v874_v35 = vsel %vm600_vm12, %v6805_v61, 0.0  ;;  %vm1138_vm13 = vcmp.eq.s32.totalorder %v330_v57, %v6808_v62 }
 0x260   :  { %v3392_v56 = vadd.f32 %v3136_v53, %v2880_v4  ;;  %v1412_v38 = vsel %vm1138_vm13, %v6811_v63, 0.0  ;;  %vm1676_vm14 = vcmp.eq.s32.totalorder %v330_v57, %v6814_v0  ;;  %vm2214_vm15 = vcmp.eq.s32.totalorder %v330_v57, %v6831_v37 }
 0x261   :  { %3882 = vmatmul.f32.gmra.mxu3 %v6824_v14  ;;  %3983 = vmatpush.msrb.mxu2 %v3264_v55  ;;  %v1950_v42 = vsel %vm1676_vm14, %v6822_v15, 0.0  ;;  %v2744_v34 = vadd.f32 %v1412_v38, %v874_v35  ;;  %v6864_v1 = vadd.f32 %v184_v52, %v182_v54  ;;  %v2488_v2 = vsel %vm2214_vm15, %v6836_v24, 0.0  ;;  %v6940_v54 = vld [vmem:[#allocation9 + $0x58] sm:$0xff] }
 0x262   :  { %3756 = vmatmul.f32.gmra.mxu0 %v6777_v60  ;;  %4024 = vmatpush.msrb.mxu3 %v3392_v56  ;;  %vm728_vm0 = vcmp.eq.s32.totalorder %v458_v7, %v6802_v59  ;;  %vm1266_vm1 = vcmp.eq.s32.totalorder %v458_v7, %v6808_v62  ;;  %v3000_v60 = vadd.f32 %v2488_v2, %v1950_v42  ;;  %v6881_v20 = vperm.slane %v5088_v39, 6  ;;  %v465_v39 = vld [vmem:[#allocation11 + $0x7f0] sm:$0xff] }
 0x263   :  { %v1002_v5 = vsel %vm728_vm0, %v6805_v61, 0.0  ;;  %v1540_v6 = vsel %vm1266_vm1, %v6811_v63, 0.0  ;;  %vm1804_vm2 = vcmp.eq.s32.totalorder %v458_v7, %v6814_v0  ;;  %vm2342_vm3 = vcmp.eq.s32.totalorder %v458_v7, %v6831_v37  ;;  %v329_v7 = vld [vmem:[#allocation11 + $0x3b0] sm:$0xff] }
 0x264   :  { %3797 = vmatmul.f32.gmra.mxu1 %v6785_v9  ;;  %v2078_v29 = vsel %vm1804_vm2, %v6822_v15, 0.0  ;;  %v2872_v13 = vadd.f32 %v1540_v6, %v1002_v5  ;;  %v3256_v19 = vadd.f32 %v3000_v60, %v2744_v34  ;;  %v2616_v32 = vsel %vm2342_vm3, %v6836_v24, 0.0  ;;  %v337_v9 = vld [vmem:[#allocation11 + $0x3f0] sm:$0xff]  ;;  %v6953_v6 = vld [vmem:[#allocation9 + $0x60] sm:$0xff] }
 0x265   :  { %v186_v21 = vfloor.f32 %v6864_v1  ;;  %v3128_v22 = vadd.f32 %v2616_v32, %v2078_v29  ;;  %v6884_v30 = vperm.slane %v5090_v40, 6  ;;  %v6887_v58 = vperm.slane %v5094_v43, 6 }
 0x266   :  { %3844 = vmatmul.f32.gmra.mxu2 %v6849_v8  ;;  %v6890_v36 = vperm.slane %v5100_v46, 6  ;;  %vm607_vm4 = vcmp.eq.s32.totalorder %v337_v9, %v6881_v20  ;;  %v6895_v48 = vperm.slane %v5096_v44, 6  ;;  %v6903_v43 = vperm.slane %v5092_v41, 6 }
 0x267   :  { %3984 = vmatpush.msrb.mxu2 %v3256_v19  ;;  %v3384_v28 = vadd.f32 %v3128_v22, %v2872_v13  ;;  %v881_v40 = vsel %vm607_vm4, %v6884_v30, 0.0  ;;  %vm1145_vm5 = vcmp.eq.s32.totalorder %v337_v9, %v6887_v58  ;;  %v6906_v46 = vperm.slane %v5098_v45, 6 }
 0x268   :  { %v1419_v44 = vsel %vm1145_vm5, %v6890_v36, 0.0  ;;  %vm1683_vm6 = vcmp.eq.s32.totalorder %v337_v9, %v6895_v48  ;;  %v6915_v16 = vperm.slane %v5111_v51, 6  ;;  %vm735_vm8 = vcmp.eq.s32.totalorder %v465_v39, %v6881_v20  ;;  %v6925_v51 = vld [vmem:[#allocation9 + $0x50] sm:$0xff] }
 0x269   :  { %3885 = vmatmul.f32.gmra.mxu3 %v6857_v12  ;;  %v1957_v41 = vsel %vm1683_vm6, %v6903_v43, 0.0  ;;  %vm2221_vm7 = vcmp.eq.s32.totalorder %v337_v9, %v6906_v46  ;;  %v2751_v45 = vadd.f32 %v1419_v44, %v881_v40  ;;  %v1009_v25 = vsel %vm735_vm8, %v6884_v30, 0.0 }
 0x26a   :  { %3759 = vmatmul.f32.gmra.mxu0 %v6798_v23  ;;  %v6910_v23 = vcvt.f32.s32 %v186_v21  ;;  %4025 = vmatpush.msrb.mxu3 %v3384_v28  ;;  %v2495_v47 = vsel %vm2221_vm7, %v6915_v16, 0.0  ;;  %vm1273_vm9 = vcmp.eq.s32.totalorder %v465_v39, %v6887_v58  ;;  %vm1811_vm10 = vcmp.eq.s32.totalorder %v465_v39, %v6895_v48 }
 0x26b   :  { %v1547_v50 = vsel %vm1273_vm9, %v6890_v36, 0.0  ;;  %v2085_v27 = vsel %vm1811_vm10, %v6903_v43, 0.0  ;;  %vm2349_vm11 = vcmp.eq.s32.totalorder %v465_v39, %v6906_v46  ;;  %vm592_vm12 = vcmp.eq.s32.totalorder %v322_v49, %v6802_v59 }
 0x26c   :  { %3800 = vmatmul.f32.gmra.mxu1 %v6824_v14  ;;  %v3007_v14 = vadd.f32 %v2495_v47, %v1957_v41  ;;  %v2623_v31 = vsel %vm2349_vm11, %v6915_v16, 0.0  ;;  %v2879_v57 = vadd.f32 %v1547_v50, %v1009_v25  ;;  %vm1130_vm13 = vcmp.eq.s32.totalorder %v322_v49, %v6808_v62  ;;  %v6979_v41 = vld [vmem:[#allocation9 + $0x68] sm:$0xff] }
 0x26d   :  { %v3135_v33 = vadd.f32 %v2623_v31, %v2085_v27  ;;  %v866_v10 = vsel %vm592_vm12, %v6805_v61, 0.0  ;;  %v1404_v4 = vsel %vm1130_vm13, %v6811_v63, 0.0  ;;  %vm1668_vm14 = vcmp.eq.s32.totalorder %v322_v49, %v6814_v0  ;;  %v6992_v27 = vld [vmem:[#allocation9 + $0x70] sm:$0xff] }
 0x26e   :  { %3847 = vmatmul.f32.gmra.mxu2 %v6875_v17  ;;  %v3263_v3 = vadd.f32 %v3007_v14, %v2751_v45  ;;  %vm2206_vm15 = vcmp.eq.s32.totalorder %v322_v49, %v6831_v37  ;;  %v2736_v53 = vadd.f32 %v1404_v4, %v866_v10  ;;  %vm720_vm0 = vcmp.eq.s32.totalorder %v450_v26, %v6802_v59  ;;  %v442_v45 = vld [vmem:[#allocation11 + $0x738] sm:$0xff] }
 0x26f   :  { %v3391_v55 = vadd.f32 %v3135_v33, %v2879_v57  ;;  %v1942_v52 = vsel %vm1668_vm14, %v6822_v15, 0.0  ;;  %v2480_v56 = vsel %vm2206_vm15, %v6836_v24, 0.0  ;;  %v994_v35 = vsel %vm720_vm0, %v6805_v61, 0.0 }
 0x270   :  { %3901 = vmatpush.msrb.mxu0 %v3263_v3  ;;  %vm1258_vm1 = vcmp.eq.s32.totalorder %v450_v26, %v6808_v62  ;;  %vm1796_vm2 = vcmp.eq.s32.totalorder %v450_v26, %v6814_v0  ;;  %vm2334_vm3 = vcmp.eq.s32.totalorder %v450_v26, %v6831_v37  ;;  %v6959_v29 = vsub.f32 %v6864_v1, %v186_v21  ;;  %v314_v21 = vld [vmem:[#allocation11 + $0x338] sm:$0xff] }
 0x271   :  { %3888 = vmatmul.f32.gmra.mxu3 %v6897_v11  ;;  %3942 = vmatpush.msrb.mxu1 %v3391_v55  ;;  %v1532_v38 = vsel %vm1258_vm1, %v6811_v63, 0.0  ;;  %v2070_v42 = vsel %vm1796_vm2, %v6822_v15, 0.0  ;;  %v2608_v34 = vsel %vm2334_vm3, %v6836_v24, 0.0  ;;  %vm599_vm4 = vcmp.eq.s32.totalorder %v329_v7, %v6881_v20 }
 0x272   :  { %3762 = vmatmul.f32.gmra.mxu0 %v6849_v8  ;;  %v2992_v8 = vadd.f32 %v2480_v56, %v1942_v52  ;;  %v2864_v60 = vadd.f32 %v1532_v38, %v994_v35  ;;  %v3120_v5 = vadd.f32 %v2608_v34, %v2070_v42  ;;  %vm1137_vm5 = vcmp.eq.s32.totalorder %v329_v7, %v6887_v58  ;;  %v449_v34 = vld [vmem:[#allocation11 + $0x770] sm:$0xff] }
 0x273   :  { %v6964_v13 = vadd.s32 1, %v6910_v23  ;;  %v873_v32 = vsel %vm599_vm4, %v6884_v30, 0.0  ;;  %v1411_v9 = vsel %vm1137_vm5, %v6890_v36, 0.0  ;;  %vm191_vm6 = vcmp.ge.s32.totalorder %v6910_v23, 0 }
 0x274   :  { %3803 = vmatmul.f32.gmra.mxu1 %v6857_v12  ;;  %v3248_v2 = vadd.f32 %v2992_v8, %v2736_v53  ;;  %v457_v12 = vld [vmem:[#allocation11 + $0x7b0] sm:$0xff]  ;;  %v3376_v19 = vadd.f32 %v3120_v5, %v2864_v60  ;;  %vm1675_vm7 = vcmp.eq.s32.totalorder %v329_v7, %v6895_v48  ;;  %vm2213_vm8 = vcmp.eq.s32.totalorder %v329_v7, %v6906_v46 }
 0x275   :  { %v2743_v1 = vadd.f32 %v1411_v9, %v873_v32  ;;  %v1949_v22 = vsel %vm1675_vm7, %v6903_v43, 0.0  ;;  %v2487_v28 = vsel %vm2213_vm8, %v6915_v16, 0.0  ;;  %vm727_vm9 = vcmp.eq.s32.totalorder %v457_v12, %v6881_v20  ;;  %v321_v53 = vld [vmem:[#allocation11 + $0x370] sm:$0xff] }
 0x276   :  { %3850 = vmatmul.f32.gmra.mxu2 %v6925_v51  ;;  %4026 = vmatpush.msrb.mxu3 %v3376_v19  ;;  %vm1265_vm10 = vcmp.eq.s32.totalorder %v457_v12, %v6887_v58  ;;  %vm192_vm11 = vcmp.le.s32.totalorder %v6910_v23, 15  ;;  %v2999_v39 = vadd.f32 %v2487_v28, %v1949_v22  ;;  %v1001_v40 = vsel %vm727_vm9, %v6884_v30, 0.0  ;;  %v306_v19 = vld [vmem:[#allocation11 + $0x2f8] sm:$0xff] }
 0x277   :  { %3985 = vmatpush.msrb.mxu2 %v3248_v2  ;;  %v1539_v44 = vsel %vm1265_vm10, %v6890_v36, 0.0  ;;  %vm1803_vm12 = vcmp.eq.s32.totalorder %v457_v12, %v6895_v48  ;;  %vm2341_vm13 = vcmp.eq.s32.totalorder %v457_v12, %v6906_v46  ;;  %vm584_vm14 = vcmp.eq.s32.totalorder %v314_v21, %v6802_v59  ;;  %vm7003_vm3 = vmand %vm191_vm6, %vm192_vm11  ;;  %v7022_v2 = vld [vmem:[#allocation9 + $0x78] sm:$0xff] }
 0x278   :  { %v3255_v49 = vadd.f32 %v2999_v39, %v2743_v1  ;;  %v2077_v47 = vsel %vm1803_vm12, %v6903_v43, 0.0  ;;  %v2615_v25 = vsel %vm2341_vm13, %v6915_v16, 0.0  ;;  %v858_v14 = vsel %vm584_vm14, %v6805_v61, 0.0 }
 0x279   :  { %3891 = vmatmul.f32.gmra.mxu3 %v6940_v54  ;;  %v3127_v50 = vadd.f32 %v2615_v25, %v2077_v47  ;;  %vm1122_vm15 = vcmp.eq.s32.totalorder %v314_v21, %v6808_v62  ;;  %vm1660_vm0 = vcmp.eq.s32.totalorder %v314_v21, %v6814_v0  ;;  %vm2198_vm1 = vcmp.eq.s32.totalorder %v314_v21, %v6831_v37  ;;  %v434_v21 = vld [vmem:[#allocation11 + $0x6f8] sm:$0xff] }
 0x27a   :  { %3765 = vmatmul.f32.gmra.mxu0 %v6875_v17  ;;  %v2871_v17 = vadd.f32 %v1539_v44, %v1001_v40  ;;  %v1934_v26 = vsel %vm1660_vm0, %v6822_v15, 0.0  ;;  %v2472_v31 = vsel %vm2198_vm1, %v6836_v24, 0.0  ;;  %vm712_vm2 = vcmp.eq.s32.totalorder %v442_v45, %v6802_v59 }
 0x27b   :  { %3902 = vmatpush.msrb.mxu0 %v3255_v49  ;;  %v2984_v10 = vadd.f32 %v2472_v31, %v1934_v26  ;;  %v986_v4 = vsel %vm712_vm2, %v6805_v61, 0.0  ;;  %vm201_vm4 = vcmp.gt.s32.totalorder %v6910_v23, 0  ;;  %vm1250_vm5 = vcmp.eq.s32.totalorder %v442_v45, %v6808_v62  ;;  %v313_v26 = vld [vmem:[#allocation11 + $0x330] sm:$0xff] }
 0x27c   :  { %3806 = vmatmul.f32.gmra.mxu1 %v6897_v11  ;;  %v1396_v11 = vsel %vm1122_vm15, %v6811_v63, 0.0  ;;  %v3383_v3 = vadd.f32 %v3127_v50, %v2871_v17  ;;  %vm1788_vm7 = vcmp.eq.s32.totalorder %v442_v45, %v6814_v0  ;;  %vm2326_vm8 = vcmp.eq.s32.totalorder %v442_v45, %v6831_v37 }
 0x27d   :  { %v2728_v33 = vadd.f32 %v1396_v11, %v858_v14  ;;  %v1524_v52 = vsel %vm1250_vm5, %v6811_v63, 0.0  ;;  %v2062_v56 = vsel %vm1788_vm7, %v6822_v15, 0.0  ;;  %v2600_v35 = vsel %vm2326_vm8, %v6836_v24, 0.0 }
 0x27e   :  { %3853 = vmatmul.f32.gmra.mxu2 %v6953_v6  ;;  %3943 = vmatpush.msrb.mxu1 %v3383_v3  ;;  %v188_v8 = vsub.f32 1.0, %v6959_v29  ;;  %v7020_v7 = vsel %vm7003_vm3, 1.0, %v5024_v18  ;;  %v2856_v38 = vadd.f32 %v1524_v52, %v986_v4  ;;  %v3112_v42 = vadd.f32 %v2600_v35, %v2062_v56 }
 0x27f   :  { %v3240_v55 = vadd.f32 %v2984_v10, %v2728_v33  ;;  %vm196_vm6 = vcmp.ge.s32.totalorder %v6964_v13, 0  ;;  %vm591_vm9 = vcmp.eq.s32.totalorder %v321_v53, %v6881_v20  ;;  %vm1129_vm10 = vcmp.eq.s32.totalorder %v321_v53, %v6887_v58 }
 0x280   :  { %vm197_vm11 = vcmp.le.s32.totalorder %v6964_v13, 15  ;;  %v3368_v60 = vadd.f32 %v3112_v42, %v2856_v38  ;;  %v865_v5 = vsel %vm591_vm9, %v6884_v30, 0.0  ;;  %v1403_v12 = vsel %vm1129_vm10, %v6890_v36, 0.0  ;;  %v298_v38 = vld [vmem:[#allocation11 + $0x2b8] sm:$0xff] }
 0x281   :  { %3894 = vmatmul.f32.gmra.mxu3 %v6979_v41  ;;  %3986 = vmatpush.msrb.mxu2 %v3240_v55  ;;  %vm1667_vm12 = vcmp.eq.s32.totalorder %v321_v53, %v6895_v48  ;;  %vm2205_vm13 = vcmp.eq.s32.totalorder %v321_v53, %v6906_v46  ;;  %vm719_vm14 = vcmp.eq.s32.totalorder %v449_v34, %v6881_v20  ;;  %vm198_vm10 = vmand %vm196_vm6, %vm197_vm11  ;;  %v441_v53 = vld [vmem:[#allocation11 + $0x730] sm:$0xff] }
 0x282   :  { %3768 = vmatmul.f32.gmra.mxu0 %v6925_v51  ;;  %v7029_v51 = vsel %vm201_vm4, %v6910_v23, 0  ;;  %v2735_v23 = vadd.f32 %v1403_v12, %v865_v5  ;;  %4027 = vmatpush.msrb.mxu3 %v3368_v60  ;;  %v2479_v32 = vsel %vm2205_vm13, %v6915_v16, 0.0  ;;  %v993_v9 = vsel %vm719_vm14, %v6884_v30, 0.0  ;;  %v426_v60 = vld [vmem:[#allocation11 + $0x6b8] sm:$0xff] }
 0x283   :  { %vm203_vm15 = vcmp.lt.s32.totalorder %v7029_v51, 15  ;;  %vm1257_vm0 = vcmp.eq.s32.totalorder %v449_v34, %v6887_v58  ;;  %vm1795_vm1 = vcmp.eq.s32.totalorder %v449_v34, %v6895_v48  ;;  %vm2333_vm2 = vcmp.eq.s32.totalorder %v449_v34, %v6906_v46 }
 0x284   :  { %3809 = vmatmul.f32.gmra.mxu1 %v6940_v54  ;;  %v1941_v54 = vsel %vm1667_vm12, %v6903_v43, 0.0  ;;  %v1531_v22 = vsel %vm1257_vm0, %v6890_v36, 0.0  ;;  %v2069_v28 = vsel %vm1795_vm1, %v6903_v43, 0.0  ;;  %v2607_v39 = vsel %vm2333_vm2, %v6915_v16, 0.0 }
 0x285   :  { %v2991_v1 = vadd.f32 %v2479_v32, %v1941_v54  ;;  %vm576_vm3 = vcmp.eq.s32.totalorder %v306_v19, %v6802_v59  ;;  %v2863_v44 = vadd.f32 %v1531_v22, %v993_v9  ;;  %v3119_v17 = vadd.f32 %v2607_v39, %v2069_v28 }
 0x286   :  { %3856 = vmatmul.f32.gmra.mxu2 %v6992_v27  ;;  %v850_v45 = vsel %vm576_vm3, %v6805_v61, 0.0  ;;  %vm1114_vm4 = vcmp.eq.s32.totalorder %v306_v19, %v6808_v62  ;;  %vm1652_vm5 = vcmp.eq.s32.totalorder %v306_v19, %v6814_v0  ;;  %vm2190_vm7 = vcmp.eq.s32.totalorder %v306_v19, %v6831_v37 }
 0x287   :  { %v3247_v40 = vadd.f32 %v2991_v1, %v2735_v23  ;;  %vm704_vm8 = vcmp.eq.s32.totalorder %v434_v21, %v6802_v59  ;;  %v3375_v49 = vadd.f32 %v3119_v17, %v2863_v44  ;;  %v1388_v47 = vsel %vm1114_vm4, %v6811_v63, 0.0 }
 0x288   :  { %v1926_v25 = vsel %vm1652_vm5, %v6822_v15, 0.0  ;;  %v2720_v14 = vadd.f32 %v1388_v47, %v850_v45  ;;  %v978_v11 = vsel %vm704_vm8, %v6805_v61, 0.0  ;;  %vm1242_vm9 = vcmp.eq.s32.totalorder %v434_v21, %v6808_v62 }
 0x289   :  { %3897 = vmatmul.f32.gmra.mxu3 %v7022_v2  ;;  %3903 = vmatpush.msrb.mxu0 %v3247_v40  ;;  %vm205_vm12 = vcmp.gt.s32.totalorder %v6964_v13, 0  ;;  %v1516_v31 = vsel %vm1242_vm9, %v6811_v63, 0.0  ;;  %vm1780_vm13 = vcmp.eq.s32.totalorder %v434_v21, %v6814_v0  ;;  %vm2318_vm14 = vcmp.eq.s32.totalorder %v434_v21, %v6831_v37  ;;  %v305_v40 = vld [vmem:[#allocation11 + $0x2f0] sm:$0xff] }
 0x28a   :  { %3771 = vmatmul.f32.gmra.mxu0 %v6953_v6  ;;  %v2464_v6 = vsel %vm2190_vm7, %v6836_v24, 0.0  ;;  %3944 = vmatpush.msrb.mxu1 %v3375_v49  ;;  %v2054_v57 = vsel %vm1780_vm13, %v6822_v15, 0.0  ;;  %v2592_v3 = vsel %vm2318_vm14, %v6836_v24, 0.0  ;;  %v2848_v33 = vadd.f32 %v1516_v31, %v978_v11  ;;  %v7121_v49 = vld [vmem:[#allocation12] sm:$0xff] }
 0x28b   :  { %v2976_v50 = vadd.f32 %v2464_v6, %v1926_v25  ;;  %v7076_v10 = vmul.f32 %v7020_v7, %v188_v8  ;;  %v3104_v4 = vadd.f32 %v2592_v3, %v2054_v57  ;;  %vm583_vm6 = vcmp.eq.s32.totalorder %v313_v26, %v6881_v20 }
 0x28c   :  { %3812 = vmatmul.f32.gmra.mxu1 %v6979_v41  ;;  %v4783_v55 = vsel %vm198_vm10, 1.0, %v5024_v18  ;;  %v206_v52 = vsel %vm205_vm12, %v6964_v13, 0  ;;  %v857_v56 = vsel %vm583_vm6, %v6884_v30, 0.0  ;;  %vm1121_vm11 = vcmp.eq.s32.totalorder %v313_v26, %v6887_v58 }
 0x28d   :  { %v3232_v41 = vadd.f32 %v2976_v50, %v2720_v14  ;;  %8535 = vst [vmem:[#allocation21_spill] sm:$0xff] %v7076_v10  ;;  %v7087_v35 = vsel %vm203_vm15, %v7029_v51, 15  ;;  %v3360_v8 = vadd.f32 %v3104_v4, %v2848_v33  ;;  %v1395_v7 = vsel %vm1121_vm11, %v6890_v36, 0.0 }
 0x28e   :  { %8536 = vst [vmem:[#allocation22_spill] sm:$0xff] %v7087_v35  ;;  %vm1659_vm0 = vcmp.eq.s32.totalorder %v313_v26, %v6895_v48  ;;  %vm2197_vm1 = vcmp.eq.s32.totalorder %v313_v26, %v6906_v46  ;;  %v2727_v13 = vadd.f32 %v1395_v7, %v857_v56  ;;  %vm711_vm2 = vcmp.eq.s32.totalorder %v441_v53, %v6881_v20  ;;  %v433_v26 = vld [vmem:[#allocation11 + $0x6f0] sm:$0xff] }
 0x28f   :  { %3987 = vmatpush.msrb.mxu2 %v3232_v41  ;;  %v1933_v18 = vsel %vm1659_vm0, %v6903_v43, 0.0  ;;  %vm207_vm3 = vcmp.lt.s32.totalorder %v206_v52, 15  ;;  %4028 = vmatpush.msrb.mxu3 %v3360_v8  ;;  %v985_v42 = vsel %vm711_vm2, %v6884_v30, 0.0  ;;  %vm1249_vm15 = vcmp.eq.s32.totalorder %v441_v53, %v6887_v58 }
 0x290   :  { %v1523_v51 = vsel %vm1249_vm15, %v6890_v36, 0.0  ;;  %vm1787_vm4 = vcmp.eq.s32.totalorder %v441_v53, %v6895_v48  ;;  %vm2325_vm5 = vcmp.eq.s32.totalorder %v441_v53, %v6906_v46  ;;  %vm568_vm7 = vcmp.eq.s32.totalorder %v298_v38, %v6802_v59  ;;  %v290_v53 = vld [vmem:[#allocation11 + $0x278] sm:$0xff] }
 0x291   :  { %v2061_v5 = vsel %vm1787_vm4, %v6903_v43, 0.0  ;;  %v2599_v12 = vsel %vm2325_vm5, %v6915_v16, 0.0  ;;  %v2855_v23 = vadd.f32 %v1523_v51, %v985_v42  ;;  %v842_v32 = vsel %vm568_vm7, %v6805_v61, 0.0 }
 0x292   :  { %3774 = vmatmul.f32.gmra.mxu0 %v6992_v27  ;;  %v2471_v27 = vsel %vm2197_vm1, %v6915_v16, 0.0  ;;  %v3111_v54 = vadd.f32 %v2599_v12, %v2061_v5  ;;  %vm1106_vm8 = vcmp.eq.s32.totalorder %v298_v38, %v6808_v62  ;;  %vm1644_vm9 = vcmp.eq.s32.totalorder %v298_v38, %v6814_v0 }
 0x293   :  { %v2983_v34 = vadd.f32 %v2471_v27, %v1933_v18  ;;  %vm2182_vm10 = vcmp.eq.s32.totalorder %v298_v38, %v6831_v37  ;;  %vm696_vm12 = vcmp.eq.s32.totalorder %v426_v60, %v6802_v59  ;;  %v1918_v1 = vsel %vm1644_vm9, %v6822_v15, 0.0 }
 0x294   :  { %3815 = vmatmul.f32.gmra.mxu1 %v7022_v2  ;;  %v1380_v2 = vsel %vm1106_vm8, %v6811_v63, 0.0  ;;  %v3367_v9 = vadd.f32 %v3111_v54, %v2855_v23  ;;  %v2456_v21 = vsel %vm2182_vm10, %v6836_v24, 0.0  ;;  %v970_v39 = vsel %vm696_vm12, %v6805_v61, 0.0 }
 0x295   :  { %v3239_v19 = vadd.f32 %v2983_v34, %v2727_v13  ;;  %v2712_v22 = vadd.f32 %v1380_v2, %v842_v32  ;;  %v2968_v28 = vadd.f32 %v2456_v21, %v1918_v1  ;;  %vm1234_vm13 = vcmp.eq.s32.totalorder %v426_v60, %v6808_v62  ;;  %v418_v13 = vld [vmem:[#allocation11 + $0x678] sm:$0xff]  ;;  %v297_v2 = vld [vmem:[#allocation11 + $0x2b0] sm:$0xff] }
 0x296   :  { %vm1772_vm14 = vcmp.eq.s32.totalorder %v426_v60, %v6814_v0  ;;  %v7116_v44 = vperm.slane %v7087_v35, 0  ;;  %3945 = vmatpush.msrb.mxu1 %v3367_v9  ;;  %v1508_v17 = vsel %vm1234_vm13, %v6811_v63, 0.0  ;;  %vm2310_vm6 = vcmp.eq.s32.totalorder %v426_v60, %v6831_v37 }
 0x297   :  { %3904 = vmatpush.msrb.mxu0 %v3239_v19  ;;  %v2046_v45 = vsel %vm1772_vm14, %v6822_v15, 0.0  ;;  %v3224_v47 = vadd.f32 %v2968_v28, %v2712_v22  ;;  %v2584_v25 = vsel %vm2310_vm6, %v6836_v24, 0.0  ;;  %v2840_v6 = vadd.f32 %v1508_v17, %v970_v39  ;;  %v425_v17 = vld [vmem:[#allocation11 + $0x6b0] sm:$0xff] }
 0x298   :  { %v7125_v14 = vmul.f32 %v4783_v55, %v6959_v29  ;;  %v7128_v50 = vperm.slane %v7076_v10, 0  ;;  %v3096_v11 = vadd.f32 %v2584_v25, %v2046_v45  ;;  %vm575_vm11 = vcmp.eq.s32.totalorder %v305_v40, %v6881_v20  ;;  %v3426_v45 = vpop.f32.mrf.mxu0 }
 0x299   :  { %v7132_v31 = vsel %vm207_vm3, %v206_v52, 15  ;;  %3988 = vmatpush.msrb.mxu2 %v3224_v47  ;;  %v849_v41 = vsel %vm575_vm11, %v6884_v30, 0.0  ;;  %vm1113_vm0 = vcmp.eq.s32.totalorder %v305_v40, %v6887_v58  ;;  %vm1651_vm1 = vcmp.eq.s32.totalorder %v305_v40, %v6895_v48  ;;  %v3467_v47 = vpop.f32.mrf.mxu1 }
 0x29a   :  { %8537 = vst [vmem:[#allocation23_spill] sm:$0xff] %v7125_v14  ;;  %vm4137_vm2 = vcmp.eq.s32.totalorder %v7121_v49, %v7116_v44  ;;  %v7140_v29 = vperm.slane %v7132_v31, 0  ;;  %v3352_v57 = vadd.f32 %v3096_v11, %v2840_v6  ;;  %v1387_v3 = vsel %vm1113_vm0, %v6890_v36, 0.0 }
 0x29b   :  { %8538 = vst [vmem:[#allocation24_spill] sm:$0xff] %v7132_v31  ;;  %v1925_v33 = vsel %vm1651_vm1, %v6903_v43, 0.0  ;;  %vm2189_vm3 = vcmp.eq.s32.totalorder %v305_v40, %v6906_v46  ;;  %v2719_v4 = vadd.f32 %v1387_v3, %v849_v41  ;;  %vm703_vm15 = vcmp.eq.s32.totalorder %v433_v26, %v6881_v20 }
 0x29c   :  { %vm1241_vm4 = vcmp.eq.s32.totalorder %v433_v26, %v6887_v58  ;;  %v7148_v55 = vperm.slane %v7125_v14, 0  ;;  %4029 = vmatpush.msrb.mxu3 %v3352_v57  ;;  %v2463_v52 = vsel %vm2189_vm3, %v6915_v16, 0.0  ;;  %v977_v56 = vsel %vm703_vm15, %v6884_v30, 0.0  ;;  %v282_v57 = vld [vmem:[#allocation11 + $0x238] sm:$0xff] }
 0x29d   :  { %v1515_v8 = vsel %vm1241_vm4, %v6890_v36, 0.0  ;;  %v2975_v7 = vadd.f32 %v2463_v52, %v1925_v33  ;;  %vm1779_vm5 = vcmp.eq.s32.totalorder %v433_v26, %v6895_v48  ;;  %vm2317_vm7 = vcmp.eq.s32.totalorder %v433_v26, %v6906_v46 }
 0x29e   :  { %v2847_v18 = vadd.f32 %v1515_v8, %v977_v56  ;;  %v2053_v38 = vsel %vm1779_vm5, %v6903_v43, 0.0  ;;  %v2591_v27 = vsel %vm2317_vm7, %v6915_v16, 0.0  ;;  %vm560_vm8 = vcmp.eq.s32.totalorder %v290_v53, %v6802_v59 }
 0x29f   :  { %vm1098_vm9 = vcmp.eq.s32.totalorder %v290_v53, %v6808_v62  ;;  %v3231_v42 = vadd.f32 %v2975_v7, %v2719_v4  ;;  %v3103_v34 = vadd.f32 %v2591_v27, %v2053_v38  ;;  %v834_v51 = vsel %vm560_vm8, %v6805_v61, 0.0  ;;  %v410_v7 = vld [vmem:[#allocation11 + $0x638] sm:$0xff] }
 0x2a0   :  { %v1372_v60 = vsel %vm1098_vm9, %v6811_v63, 0.0  ;;  %vm1636_vm10 = vcmp.eq.s32.totalorder %v290_v53, %v6814_v0  ;;  %vm2174_vm12 = vcmp.eq.s32.totalorder %v290_v53, %v6831_v37  ;;  %vm688_vm13 = vcmp.eq.s32.totalorder %v418_v13, %v6802_v59 }
 0x2a1   :  { %v2704_v5 = vadd.f32 %v1372_v60, %v834_v51  ;;  %3905 = vmatpush.msrb.mxu0 %v3231_v42  ;;  %v3359_v12 = vadd.f32 %v3103_v34, %v2847_v18  ;;  %v1910_v23 = vsel %vm1636_vm10, %v6822_v15, 0.0  ;;  %v2448_v19 = vsel %vm2174_vm12, %v6836_v24, 0.0 }
 0x2a2   :  { %v962_v54 = vsel %vm688_vm13, %v6805_v61, 0.0  ;;  %v2960_v32 = vadd.f32 %v2448_v19, %v1910_v23  ;;  %vm1226_vm14 = vcmp.eq.s32.totalorder %v418_v13, %v6808_v62  ;;  %vm1764_vm6 = vcmp.eq.s32.totalorder %v418_v13, %v6814_v0 }
 0x2a3   :  { %vm2302_vm11 = vcmp.eq.s32.totalorder %v418_v13, %v6831_v37  ;;  %vm4290_vm0 = vcmp.eq.s32.totalorder %v7121_v49, %v7140_v29  ;;  %3946 = vmatpush.msrb.mxu1 %v3359_v12  ;;  %v1500_v9 = vsel %vm1226_vm14, %v6811_v63, 0.0  ;;  %v2038_v1 = vsel %vm1764_vm6, %v6822_v15, 0.0 }
 0x2a4   :  { %v2576_v21 = vsel %vm2302_vm11, %v6836_v24, 0.0  ;;  %v3216_v22 = vadd.f32 %v2960_v32, %v2704_v5  ;;  %v2832_v28 = vadd.f32 %v1500_v9, %v962_v54  ;;  %v4218_v40 = vsel %vm4137_vm2, %v7128_v50, 0.0  ;;  %v289_v54 = vld [vmem:[#allocation11 + $0x270] sm:$0xff] }
 0x2a5   :  { %v3088_v39 = vadd.f32 %v2576_v21, %v2038_v1  ;;  %vm567_vm1 = vcmp.eq.s32.totalorder %v297_v2, %v6881_v20  ;;  %vm1105_vm3 = vcmp.eq.s32.totalorder %v297_v2, %v6887_v58  ;;  %v4371_v25 = vsel %vm4290_vm0, %v7148_v55, 0.0 }
 0x2a6   :  { %3989 = vmatpush.msrb.mxu2 %v3216_v22  ;;  %v841_v11 = vsel %vm567_vm1, %v6884_v30, 0.0  ;;  %v1379_v26 = vsel %vm1105_vm3, %v6890_v36, 0.0  ;;  %v3468_v41 = vadd.f32 %v3467_v47, %v3426_v45  ;;  %vm1643_vm15 = vcmp.eq.s32.totalorder %v297_v2, %v6895_v48 }
 0x2a7   :  { %v3344_v6 = vadd.f32 %v3088_v39, %v2832_v28  ;;  %vm2181_vm2 = vcmp.eq.s32.totalorder %v297_v2, %v6906_v46  ;;  %v2711_v49 = vadd.f32 %v1379_v26, %v841_v11  ;;  %v1917_v3 = vsel %vm1643_vm15, %v6903_v43, 0.0  ;;  %v417_v28 = vld [vmem:[#allocation11 + $0x670] sm:$0xff]  ;;  %v274_v11 = vld [vmem:[#allocation11 + $0x1f8] sm:$0xff] }
 0x2a8   :  { %v2455_v33 = vsel %vm2181_vm2, %v6915_v16, 0.0  ;;  %vm695_vm4 = vcmp.eq.s32.totalorder %v425_v17, %v6881_v20  ;;  %vm1233_vm5 = vcmp.eq.s32.totalorder %v425_v17, %v6887_v58  ;;  %v4435_v4 = vadd.f32 %v4371_v25, %v4218_v40  ;;  %v7214_v40 = vld [vmem:[#allocation12 + $0x40] sm:$0xff] }
 0x2a9   :  { %4030 = vmatpush.msrb.mxu3 %v3344_v6  ;;  %v2967_v53 = vadd.f32 %v2455_v33, %v1917_v3  ;;  %v969_v52 = vsel %vm695_vm4, %v6884_v30, 0.0  ;;  %v1507_v56 = vsel %vm1233_vm5, %v6890_v36, 0.0  ;;  %vm1771_vm7 = vcmp.eq.s32.totalorder %v425_v17, %v6895_v48  ;;  %v402_v3 = vld [vmem:[#allocation11 + $0x5f8] sm:$0xff] }
 0x2aa   :  { %vm2309_vm8 = vcmp.eq.s32.totalorder %v425_v17, %v6906_v46  ;;  %v2839_v8 = vadd.f32 %v1507_v56, %v969_v52  ;;  %vm552_vm9 = vcmp.eq.s32.totalorder %v282_v57, %v6802_v59  ;;  %v2045_v13 = vsel %vm1771_vm7, %v6903_v43, 0.0 }
 0x2ab   :  { %v3223_v18 = vadd.f32 %v2967_v53, %v2711_v49  ;;  %v2583_v38 = vsel %vm2309_vm8, %v6915_v16, 0.0  ;;  %v826_v27 = vsel %vm552_vm9, %v6805_v61, 0.0  ;;  %vm1090_vm10 = vcmp.eq.s32.totalorder %v282_v57, %v6808_v62 }
 0x2ac   :  { %v3095_v42 = vadd.f32 %v2583_v38, %v2045_v13  ;;  %vm1628_vm12 = vcmp.eq.s32.totalorder %v282_v57, %v6814_v0  ;;  %vm2166_vm13 = vcmp.eq.s32.totalorder %v282_v57, %v6831_v37  ;;  %v1364_v34 = vsel %vm1090_vm10, %v6811_v63, 0.0 }
 0x2ad   :  { %3906 = vmatpush.msrb.mxu0 %v3223_v18  ;;  %v1902_v51 = vsel %vm1628_vm12, %v6822_v15, 0.0  ;;  %v2440_v60 = vsel %vm2166_vm13, %v6836_v24, 0.0  ;;  %vm680_vm14 = vcmp.eq.s32.totalorder %v410_v7, %v6802_v59  ;;  %v2696_v12 = vadd.f32 %v1364_v34, %v826_v27 }
 0x2ae   :  { %v3351_v5 = vadd.f32 %v3095_v42, %v2839_v8  ;;  %v2952_v23 = vadd.f32 %v2440_v60, %v1902_v51  ;;  %v954_v19 = vsel %vm680_vm14, %v6805_v61, 0.0  ;;  %vm1218_vm6 = vcmp.eq.s32.totalorder %v410_v7, %v6808_v62  ;;  %v281_v60 = vld [vmem:[#allocation11 + $0x230] sm:$0xff] }
 0x2af   :  { %vm1756_vm11 = vcmp.eq.s32.totalorder %v410_v7, %v6814_v0  ;;  %vm2294_vm0 = vcmp.eq.s32.totalorder %v410_v7, %v6831_v37  ;;  %v1492_v2 = vsel %vm1218_vm6, %v6811_v63, 0.0  ;;  %v7212_v39 = vmul.f32 %v4435_v4, %v3468_v41 }
 0x2b0   :  { %3947 = vmatpush.msrb.mxu1 %v3351_v5  ;;  %v3208_v32 = vadd.f32 %v2952_v23, %v2696_v12  ;;  %v2030_v9 = vsel %vm1756_vm11, %v6822_v15, 0.0  ;;  %v2568_v1 = vsel %vm2294_vm0, %v6836_v24, 0.0  ;;  %v2824_v21 = vadd.f32 %v1492_v2, %v954_v19  ;;  %v7253_v12 = vpop.f32.mrf.mxu2  ;;  %v7255_v23 = vpop.f32.mrf.mxu3 }
 0x2b1   :  { %v3080_v22 = vadd.f32 %v2568_v1, %v2030_v9  ;;  %vm559_vm1 = vcmp.eq.s32.totalorder %v289_v54, %v6881_v20  ;;  %vm1097_vm3 = vcmp.eq.s32.totalorder %v289_v54, %v6887_v58  ;;  %v7219_v17 = vperm.slane %v7087_v35, 1  ;;  %8539 = vst [vmem:[#allocation25_spill] sm:$0xff] %v7253_v12 }
 0x2b2   :  { %3990 = vmatpush.msrb.mxu2 %v3208_v32  ;;  %v833_v47 = vsel %vm559_vm1, %v6884_v30, 0.0  ;;  %v1371_v25 = vsel %vm1097_vm3, %v6890_v36, 0.0  ;;  %vm1635_vm15 = vcmp.eq.s32.totalorder %v289_v54, %v6895_v48  ;;  %vm2173_vm2 = vcmp.eq.s32.totalorder %v289_v54, %v6906_v46  ;;  %8540 = vst [vmem:[#allocation26_spill] sm:$0xff] %v7255_v23 }
 0x2b3   :  { %v3336_v45 = vadd.f32 %v3080_v22, %v2824_v21  ;;  %v2703_v6 = vadd.f32 %v1371_v25, %v833_v47  ;;  %vm687_vm4 = vcmp.eq.s32.totalorder %v417_v28, %v6881_v20  ;;  %vm4145_vm5 = vcmp.eq.s32.totalorder %v7214_v40, %v7116_v44  ;;  %v409_v22 = vld [vmem:[#allocation11 + $0x630] sm:$0xff] }
 0x2b4   :  { %v1909_v26 = vsel %vm1635_vm15, %v6903_v43, 0.0  ;;  %v2447_v41 = vsel %vm2173_vm2, %v6915_v16, 0.0  ;;  %v961_v49 = vsel %vm687_vm4, %v6884_v30, 0.0  ;;  %vm1225_vm7 = vcmp.eq.s32.totalorder %v417_v28, %v6887_v58 }
 0x2b5   :  { %4031 = vmatpush.msrb.mxu3 %v3336_v45  ;;  %v2959_v57 = vadd.f32 %v2447_v41, %v1909_v26  ;;  %vm1763_vm8 = vcmp.eq.s32.totalorder %v417_v28, %v6895_v48  ;;  %vm2301_vm9 = vcmp.eq.s32.totalorder %v417_v28, %v6906_v46  ;;  %v1499_v33 = vsel %vm1225_vm7, %v6890_v36, 0.0  ;;  %v3429_v28 = vpop.f32.mrf.mxu0  ;;  %v3470_v45 = vpop.f32.mrf.mxu1 }
 0x2b6   :  { %v2037_v4 = vsel %vm1763_vm8, %v6903_v43, 0.0  ;;  %v2575_v53 = vsel %vm2301_vm9, %v6915_v16, 0.0  ;;  %vm544_vm10 = vcmp.eq.s32.totalorder %v274_v11, %v6802_v59  ;;  %v2831_v56 = vadd.f32 %v1499_v33, %v961_v49 }
 0x2b7   :  { %v3215_v52 = vadd.f32 %v2959_v57, %v2703_v6  ;;  %v3087_v8 = vadd.f32 %v2575_v53, %v2037_v4  ;;  %v818_v7 = vsel %vm544_vm10, %v6805_v61, 0.0  ;;  %vm1082_vm12 = vcmp.eq.s32.totalorder %v274_v11, %v6808_v62 }
 0x2b8   :  { %vm1620_vm13 = vcmp.eq.s32.totalorder %v274_v11, %v6814_v0  ;;  %vm2158_vm14 = vcmp.eq.s32.totalorder %v274_v11, %v6831_v37  ;;  %vm672_vm6 = vcmp.eq.s32.totalorder %v402_v3, %v6802_v59  ;;  %v1356_v13 = vsel %vm1082_vm12, %v6811_v63, 0.0 }
 0x2b9   :  { %3907 = vmatpush.msrb.mxu0 %v3215_v52  ;;  %v3343_v18 = vadd.f32 %v3087_v8, %v2831_v56  ;;  %v1894_v38 = vsel %vm1620_vm13, %v6822_v15, 0.0  ;;  %v2432_v27 = vsel %vm2158_vm14, %v6836_v24, 0.0  ;;  %v2688_v42 = vadd.f32 %v1356_v13, %v818_v7  ;;  %v394_v56 = vld [vmem:[#allocation11 + $0x5b8] sm:$0xff] }
 0x2ba   :  { %v2944_v34 = vadd.f32 %v2432_v27, %v1894_v38  ;;  %v946_v51 = vsel %vm672_vm6, %v6805_v61, 0.0  ;;  %vm1210_vm11 = vcmp.eq.s32.totalorder %v402_v3, %v6808_v62  ;;  %vm4298_vm0 = vcmp.eq.s32.totalorder %v7214_v40, %v7140_v29  ;;  %v266_v40 = vld [vmem:[#allocation11 + $0x1b8] sm:$0xff] }
 0x2bb   :  { %3948 = vmatpush.msrb.mxu1 %v3343_v18  ;;  %v1484_v5 = vsel %vm1210_vm11, %v6811_v63, 0.0  ;;  %vm1748_vm1 = vcmp.eq.s32.totalorder %v402_v3, %v6814_v0  ;;  %vm2286_vm3 = vcmp.eq.s32.totalorder %v402_v3, %v6831_v37  ;;  %v7260_v9 = vperm.slane %v7076_v10, 1 }
 0x2bc   :  { %v3200_v19 = vadd.f32 %v2944_v34, %v2688_v42  ;;  %v2022_v54 = vsel %vm1748_vm1, %v6822_v15, 0.0  ;;  %v2560_v32 = vsel %vm2286_vm3, %v6836_v24, 0.0  ;;  %v2816_v2 = vadd.f32 %v1484_v5, %v946_v51  ;;  %v4081_v42 = vld [vmem:[#allocation12 + $0x80] sm:$0xff]  ;;  %v7296_v51 = vpop.f32.mrf.mxu2 }
 0x2bd   :  { %v7263_v1 = vperm.slane %v7132_v31, 1  ;;  %v3072_v21 = vadd.f32 %v2560_v32, %v2022_v54  ;;  %vm551_vm15 = vcmp.eq.s32.totalorder %v281_v60, %v6881_v20  ;;  %v4226_v47 = vsel %vm4145_vm5, %v7128_v50, 0.0  ;;  %8541 = vst [vmem:[#allocation27_spill] sm:$0xff] %v7296_v51 }
 0x2be   :  { %v4379_v25 = vsel %vm4298_vm0, %v7148_v55, 0.0  ;;  %3991 = vmatpush.msrb.mxu2 %v3200_v19  ;;  %v825_v6 = vsel %vm551_vm15, %v6884_v30, 0.0  ;;  %vm1089_vm2 = vcmp.eq.s32.totalorder %v281_v60, %v6887_v58  ;;  %v3471_v11 = vadd.f32 %v3470_v45, %v3429_v28  ;;  %v7305_v28 = vpop.f32.mrf.mxu0  ;;  %v7307_v45 = vpop.f32.mrf.mxu1 }
 0x2bf   :  { %v3328_v26 = vadd.f32 %v3072_v21, %v2816_v2  ;;  %v1363_v41 = vsel %vm1089_vm2, %v6890_v36, 0.0  ;;  %vm1627_vm4 = vcmp.eq.s32.totalorder %v281_v60, %v6895_v48  ;;  %vm2165_vm5 = vcmp.eq.s32.totalorder %v281_v60, %v6906_v46  ;;  %v7298_v60 = vpop.f32.mrf.mxu3 }
 0x2c0   :  { %v1901_v49 = vsel %vm1627_vm4, %v6903_v43, 0.0  ;;  %v2695_v57 = vadd.f32 %v1363_v41, %v825_v6  ;;  %vm679_vm7 = vcmp.eq.s32.totalorder %v409_v22, %v6881_v20  ;;  %v4443_v3 = vadd.f32 %v4379_v25, %v4226_v47  ;;  %8542 = vst [vmem:[#allocation28_spill] sm:$0xff] %v7298_v60 }
 0x2c1   :  { %4032 = vmatpush.msrb.mxu3 %v3328_v26  ;;  %v2439_v33 = vsel %vm2165_vm5, %v6915_v16, 0.0  ;;  %v953_v4 = vsel %vm679_vm7, %v6884_v30, 0.0  ;;  %vm1217_vm8 = vcmp.eq.s32.totalorder %v409_v22, %v6887_v58  ;;  %vm1755_vm9 = vcmp.eq.s32.totalorder %v409_v22, %v6895_v48 }
 0x2c2   :  { %v2951_v53 = vadd.f32 %v2439_v33, %v1901_v49  ;;  %v1491_v52 = vsel %vm1217_vm8, %v6890_v36, 0.0  ;;  %vm2293_vm10 = vcmp.eq.s32.totalorder %v409_v22, %v6906_v46  ;;  %v2029_v8 = vsel %vm1755_vm9, %v6903_v43, 0.0  ;;  %v273_v22 = vld [vmem:[#allocation11 + $0x1f0] sm:$0xff] }
 0x2c3   :  { %v2567_v7 = vsel %vm2293_vm10, %v6915_v16, 0.0  ;;  %v2823_v18 = vadd.f32 %v1491_v52, %v953_v4  ;;  %vm536_vm12 = vcmp.eq.s32.totalorder %v266_v40, %v6802_v59  ;;  %vm1074_vm13 = vcmp.eq.s32.totalorder %v266_v40, %v6808_v62  ;;  %v401_v33 = vld [vmem:[#allocation11 + $0x5f0] sm:$0xff] }
 0x2c4   :  { %v3207_v13 = vadd.f32 %v2951_v53, %v2695_v57  ;;  %v3079_v38 = vadd.f32 %v2567_v7, %v2029_v8  ;;  %v810_v27 = vsel %vm536_vm12, %v6805_v61, 0.0  ;;  %v1348_v34 = vsel %vm1074_vm13, %v6811_v63, 0.0  ;;  %v7322_v53 = vld [vmem:[#allocation12 + $0xc0] sm:$0xff] }
 0x2c5   :  { %vm1612_vm14 = vcmp.eq.s32.totalorder %v266_v40, %v6814_v0  ;;  %vm2150_vm6 = vcmp.eq.s32.totalorder %v266_v40, %v6831_v37  ;;  %vm664_vm11 = vcmp.eq.s32.totalorder %v394_v56, %v6802_v59  ;;  %v2680_v32 = vadd.f32 %v1348_v34, %v810_v27 }
 0x2c6   :  { %3908 = vmatpush.msrb.mxu0 %v3207_v13  ;;  %v3335_v5 = vadd.f32 %v3079_v38, %v2823_v18  ;;  %v1886_v19 = vsel %vm1612_vm14, %v6822_v15, 0.0  ;;  %v2424_v54 = vsel %vm2150_vm6, %v6836_v24, 0.0  ;;  %v938_v21 = vsel %vm664_vm11, %v6805_v61, 0.0  ;;  %v258_v18 = vld [vmem:[#allocation11 + $0x178] sm:$0xff] }
 0x2c7   :  { %v2936_v2 = vadd.f32 %v2424_v54, %v1886_v19  ;;  %vm1202_vm0 = vcmp.eq.s32.totalorder %v394_v56, %v6808_v62  ;;  %vm1740_vm1 = vcmp.eq.s32.totalorder %v394_v56, %v6814_v0  ;;  %vm4153_vm3 = vcmp.eq.s32.totalorder %v4081_v42, %v7116_v44  ;;  %v7340_v19 = vpop.f32.mrf.mxu2  ;;  %v7342_v54 = vpop.f32.mrf.mxu3 }
 0x2c8   :  { %3949 = vmatpush.msrb.mxu1 %v3335_v5  ;;  %v1476_v47 = vsel %vm1202_vm0, %v6811_v63, 0.0  ;;  %v2014_v25 = vsel %vm1740_vm1, %v6822_v15, 0.0  ;;  %vm2278_vm15 = vcmp.eq.s32.totalorder %v394_v56, %v6831_v37  ;;  %vm4306_vm2 = vcmp.eq.s32.totalorder %v4081_v42, %v7140_v29  ;;  %v386_v5 = vld [vmem:[#allocation11 + $0x578] sm:$0xff]  ;;  %8543 = vst [vmem:[#allocation29_spill] sm:$0xff] %v7342_v54 }
 0x2c9   :  { %v3192_v6 = vadd.f32 %v2936_v2, %v2680_v32  ;;  %v2552_v26 = vsel %vm2278_vm15, %v6836_v24, 0.0  ;;  %v2808_v41 = vadd.f32 %v1476_v47, %v938_v21  ;;  %v7316_v49 = vperm.slane %v7125_v14, 1 }
 0x2ca   :  { %v7318_v57 = vmul.f32 %v4443_v3, %v3471_v11  ;;  %v3064_v40 = vadd.f32 %v2552_v26, %v2014_v25  ;;  %vm543_vm4 = vcmp.eq.s32.totalorder %v273_v22, %v6881_v20  ;;  %v4234_v4 = vsel %vm4153_vm3, %v7128_v50, 0.0  ;;  %v3476_v26 = vpop.f32.mrf.mxu1 }
 0x2cb   :  { %3992 = vmatpush.msrb.mxu2 %v3192_v6  ;;  %v817_v52 = vsel %vm543_vm4, %v6884_v30, 0.0  ;;  %vm1081_vm5 = vcmp.eq.s32.totalorder %v273_v22, %v6887_v58  ;;  %vm1619_vm7 = vcmp.eq.s32.totalorder %v273_v22, %v6895_v48  ;;  %v4387_v56 = vsel %vm4306_vm2, %v7148_v55, 0.0  ;;  %v3435_v6 = vpop.f32.mrf.mxu0 }
 0x2cc   :  { %v3320_v8 = vadd.f32 %v3064_v40, %v2808_v41  ;;  %v1355_v11 = vsel %vm1081_vm5, %v6890_v36, 0.0  ;;  %v1893_v3 = vsel %vm1619_vm7, %v6903_v43, 0.0  ;;  %vm2157_vm8 = vcmp.eq.s32.totalorder %v273_v22, %v6906_v46 }
 0x2cd   :  { %v2687_v7 = vadd.f32 %v1355_v11, %v817_v52  ;;  %vm671_vm9 = vcmp.eq.s32.totalorder %v401_v33, %v6881_v20  ;;  %vm1209_vm10 = vcmp.eq.s32.totalorder %v401_v33, %v6887_v58  ;;  %vm4161_vm12 = vcmp.eq.s32.totalorder %v7322_v53, %v7116_v44 }
 0x2ce   :  { %4033 = vmatpush.msrb.mxu3 %v3320_v8  ;;  %v2431_v13 = vsel %vm2157_vm8, %v6915_v16, 0.0  ;;  %v945_v38 = vsel %vm671_vm9, %v6884_v30, 0.0  ;;  %v1483_v27 = vsel %vm1209_vm10, %v6890_v36, 0.0  ;;  %vm1747_vm13 = vcmp.eq.s32.totalorder %v401_v33, %v6895_v48 }
 0x2cf   :  { %v2943_v42 = vadd.f32 %v2431_v13, %v1893_v3  ;;  %vm2285_vm14 = vcmp.eq.s32.totalorder %v401_v33, %v6906_v46  ;;  %v2815_v34 = vadd.f32 %v1483_v27, %v945_v38  ;;  %v2021_v32 = vsel %vm1747_vm13, %v6903_v43, 0.0  ;;  %v265_v3 = vld [vmem:[#allocation11 + $0x1b0] sm:$0xff] }
 0x2d0   :  { %v2559_v2 = vsel %vm2285_vm14, %v6915_v16, 0.0  ;;  %vm528_vm6 = vcmp.eq.s32.totalorder %v258_v18, %v6802_v59  ;;  %vm1066_vm11 = vcmp.eq.s32.totalorder %v258_v18, %v6808_v62  ;;  %vm1604_vm0 = vcmp.eq.s32.totalorder %v258_v18, %v6814_v0 }
 0x2d1   :  { %v3199_v21 = vadd.f32 %v2943_v42, %v2687_v7  ;;  %v3071_v22 = vadd.f32 %v2559_v2, %v2021_v32  ;;  %v802_v47 = vsel %vm528_vm6, %v6805_v61, 0.0  ;;  %v1340_v25 = vsel %vm1066_vm11, %v6811_v63, 0.0  ;;  %v393_v2 = vld [vmem:[#allocation11 + $0x5b0] sm:$0xff] }
 0x2d2   :  { %vm2142_vm1 = vcmp.eq.s32.totalorder %v258_v18, %v6831_v37  ;;  %v2672_v41 = vadd.f32 %v1340_v25, %v802_v47  ;;  %vm656_vm3 = vcmp.eq.s32.totalorder %v386_v5, %v6802_v59  ;;  %v1878_v33 = vsel %vm1604_vm0, %v6822_v15, 0.0  ;;  %v7381_v25 = vpop.f32.mrf.mxu3 }
 0x2d3   :  { %3909 = vmatpush.msrb.mxu0 %v3199_v21  ;;  %v3327_v40 = vadd.f32 %v3071_v22, %v2815_v34  ;;  %v2416_v52 = vsel %vm2142_vm1, %v6836_v24, 0.0  ;;  %v930_v8 = vsel %vm656_vm3, %v6805_v61, 0.0  ;;  %vm1194_vm15 = vcmp.eq.s32.totalorder %v386_v5, %v6808_v62 }
 0x2d4   :  { %v2928_v11 = vadd.f32 %v2416_v52, %v1878_v33  ;;  %vm1732_vm2 = vcmp.eq.s32.totalorder %v386_v5, %v6814_v0  ;;  %vm2270_vm4 = vcmp.eq.s32.totalorder %v386_v5, %v6831_v37  ;;  %vm4314_vm5 = vcmp.eq.s32.totalorder %v7322_v53, %v7140_v29  ;;  %v250_v53 = vld [vmem:[#allocation11 + $0x138] sm:$0xff] }
 0x2d5   :  { %3950 = vmatpush.msrb.mxu1 %v3327_v40  ;;  %v1468_v7 = vsel %vm1194_vm15, %v6811_v63, 0.0  ;;  %v2006_v18 = vsel %vm1732_vm2, %v6822_v15, 0.0  ;;  %v2544_v13 = vsel %vm2270_vm4, %v6836_v24, 0.0  ;;  %v7366_v38 = vadd.f32 %v7307_v45, %v7305_v28 }
 0x2d6   :  { %v3184_v27 = vadd.f32 %v2928_v11, %v2672_v41  ;;  %v2800_v42 = vadd.f32 %v1468_v7, %v930_v8  ;;  %v3056_v34 = vadd.f32 %v2544_v13, %v2006_v18  ;;  %v4451_v32 = vadd.f32 %v4387_v56, %v4234_v4  ;;  %v7379_v56 = vpop.f32.mrf.mxu2  ;;  %v3438_v8 = vpop.f32.mrf.mxu0  ;;  %v378_v7 = vld [vmem:[#allocation11 + $0x538] sm:$0xff] }
 0x2d7   :  { %v4242_v5 = vsel %vm4161_vm12, %v7128_v50, 0.0  ;;  %vm535_vm7 = vcmp.eq.s32.totalorder %v265_v3, %v6881_v20  ;;  %vm1073_vm8 = vcmp.eq.s32.totalorder %v265_v3, %v6887_v58  ;;  %v4395_v21 = vsel %vm4314_vm5, %v7148_v55, 0.0  ;;  %v3479_v11 = vpop.f32.mrf.mxu1 }
 0x2d8   :  { %3993 = vmatpush.msrb.mxu2 %v3184_v27  ;;  %v3312_v22 = vadd.f32 %v3056_v34, %v2800_v42  ;;  %v809_v28 = vsel %vm535_vm7, %v6884_v30, 0.0  ;;  %v1347_v45 = vsel %vm1073_vm8, %v6890_v36, 0.0  ;;  %v3477_v47 = vadd.f32 %v3476_v26, %v3435_v6  ;;  %v4097_v34 = vld [vmem:[#allocation12 + $0x100] sm:$0xff] }
 0x2d9   :  { %vm1611_vm9 = vcmp.eq.s32.totalorder %v265_v3, %v6895_v48  ;;  %vm2149_vm10 = vcmp.eq.s32.totalorder %v265_v3, %v6906_v46  ;;  %v2679_v4 = vadd.f32 %v1347_v45, %v809_v28  ;;  %vm663_vm12 = vcmp.eq.s32.totalorder %v393_v2, %v6881_v20 }
 0x2da   :  { %4034 = vmatpush.msrb.mxu3 %v3312_v22  ;;  %v1885_v41 = vsel %vm1611_vm9, %v6903_v43, 0.0  ;;  %v2423_v40 = vsel %vm2149_vm10, %v6915_v16, 0.0  ;;  %vm1201_vm13 = vcmp.eq.s32.totalorder %v393_v2, %v6887_v58  ;;  %v4459_v6 = vadd.f32 %v4395_v21, %v4242_v5 }
 0x2db   :  { %v2935_v26 = vadd.f32 %v2423_v40, %v1885_v41  ;;  %v937_v33 = vsel %vm663_vm12, %v6884_v30, 0.0  ;;  %v1475_v52 = vsel %vm1201_vm13, %v6890_v36, 0.0  ;;  %vm1739_vm14 = vcmp.eq.s32.totalorder %v393_v2, %v6895_v48 }
 0x2dc   :  { %vm2277_vm6 = vcmp.eq.s32.totalorder %v393_v2, %v6906_v46  ;;  %v2807_v3 = vadd.f32 %v1475_v52, %v937_v33  ;;  %vm520_vm11 = vcmp.eq.s32.totalorder %v250_v53, %v6802_v59  ;;  %v2013_v13 = vsel %vm1739_vm14, %v6903_v43, 0.0 }
 0x2dd   :  { %v3191_v18 = vadd.f32 %v2935_v26, %v2679_v4  ;;  %v2551_v27 = vsel %vm2277_vm6, %v6915_v16, 0.0  ;;  %v794_v42 = vsel %vm520_vm11, %v6805_v61, 0.0  ;;  %vm1058_vm0 = vcmp.eq.s32.totalorder %v250_v53, %v6808_v62 }
 0x2de   :  { %v3063_v5 = vadd.f32 %v2551_v27, %v2013_v13  ;;  %vm1596_vm1 = vcmp.eq.s32.totalorder %v250_v53, %v6814_v0  ;;  %vm2134_vm3 = vcmp.eq.s32.totalorder %v250_v53, %v6831_v37  ;;  %v1332_v2 = vsel %vm1058_vm0, %v6811_v63, 0.0  ;;  %v257_v53 = vld [vmem:[#allocation11 + $0x170] sm:$0xff] }
 0x2df   :  { %3910 = vmatpush.msrb.mxu0 %v3191_v18  ;;  %v1870_v21 = vsel %vm1596_vm1, %v6822_v15, 0.0  ;;  %v2408_v22 = vsel %vm2134_vm3, %v6836_v24, 0.0  ;;  %vm648_vm15 = vcmp.eq.s32.totalorder %v378_v7, %v6802_v59  ;;  %v2664_v45 = vadd.f32 %v1332_v2, %v794_v42  ;;  %v385_v42 = vld [vmem:[#allocation11 + $0x570] sm:$0xff]  ;;  %v7420_v2 = vpop.f32.mrf.mxu3 }
 0x2e0   :  { %v3319_v28 = vadd.f32 %v3063_v5, %v2807_v3  ;;  %v2920_v4 = vadd.f32 %v2408_v22, %v1870_v21  ;;  %v922_v41 = vsel %vm648_vm15, %v6805_v61, 0.0  ;;  %vm4169_vm2 = vcmp.eq.s32.totalorder %v4097_v34, %v7116_v44  ;;  %v7435_v21 = vpop.f32.mrf.mxu1 }
 0x2e1   :  { %vm1186_vm4 = vcmp.eq.s32.totalorder %v378_v7, %v6808_v62  ;;  %vm1724_vm5 = vcmp.eq.s32.totalorder %v378_v7, %v6814_v0  ;;  %vm2262_vm7 = vcmp.eq.s32.totalorder %v378_v7, %v6831_v37  ;;  %v7411_v3 = vmul.f32 %v4451_v32, %v7366_v38  ;;  %v7418_v7 = vpop.f32.mrf.mxu2  ;;  %v7429_v32 = vld [vmem:[#allocation12 + $0x140] sm:$0xff] }
 0x2e2   :  { %3951 = vmatpush.msrb.mxu1 %v3319_v28  ;;  %v3176_v40 = vadd.f32 %v2920_v4, %v2664_v45  ;;  %v1460_v26 = vsel %vm1186_vm4, %v6811_v63, 0.0  ;;  %v1998_v33 = vsel %vm1724_vm5, %v6822_v15, 0.0  ;;  %v2536_v52 = vsel %vm2262_vm7, %v6836_v24, 0.0  ;;  %v242_v28 = vld [vmem:[#allocation11 + $0xf8] sm:$0xff] }
 0x2e3   :  { %v7413_v18 = vmul.f32 %v4459_v6, %v3477_v47  ;;  %v2792_v13 = vadd.f32 %v1460_v26, %v922_v41  ;;  %v3048_v27 = vadd.f32 %v2536_v52, %v1998_v33  ;;  %v7415_v5 = vadd.f32 %v3479_v11, %v3438_v8  ;;  %v7433_v11 = vpop.f32.mrf.mxu0 }
 0x2e4   :  { %vm4322_vm8 = vcmp.eq.s32.totalorder %v4097_v34, %v7140_v29  ;;  %3994 = vmatpush.msrb.mxu2 %v3176_v40  ;;  %vm527_vm9 = vcmp.eq.s32.totalorder %v257_v53, %v6881_v20  ;;  %vm1065_vm10 = vcmp.eq.s32.totalorder %v257_v53, %v6887_v58  ;;  %v7427_v38 = vsel %vm4169_vm2, %v7128_v50, 0.0  ;;  %v370_v34 = vld [vmem:[#allocation11 + $0x4f8] sm:$0xff] }
 0x2e5   :  { %v3304_v47 = vadd.f32 %v3048_v27, %v2792_v13  ;;  %v801_v6 = vsel %vm527_vm9, %v6884_v30, 0.0  ;;  %v1339_v8 = vsel %vm1065_vm10, %v6890_v36, 0.0  ;;  %vm1603_vm12 = vcmp.eq.s32.totalorder %v257_v53, %v6895_v48 }
 0x2e6   :  { %vm2141_vm13 = vcmp.eq.s32.totalorder %v257_v53, %v6906_v46  ;;  %v2671_v22 = vadd.f32 %v1339_v8, %v801_v6  ;;  %vm655_vm14 = vcmp.eq.s32.totalorder %v385_v42, %v6881_v20  ;;  %v4403_v45 = vsel %vm4322_vm8, %v7148_v55, 0.0 }
 0x2e7   :  { %4035 = vmatpush.msrb.mxu3 %v3304_v47  ;;  %v1877_v4 = vsel %vm1603_vm12, %v6903_v43, 0.0  ;;  %v2415_v41 = vsel %vm2141_vm13, %v6915_v16, 0.0  ;;  %v929_v40 = vsel %vm655_vm14, %v6884_v30, 0.0  ;;  %vm4177_vm6 = vcmp.eq.s32.totalorder %v7429_v32, %v7116_v44 }
 0x2e8   :  { %vm4330_vm11 = vcmp.eq.s32.totalorder %v7429_v32, %v7140_v29  ;;  %v2927_v53 = vadd.f32 %v2415_v41, %v1877_v4  ;;  %vm1193_vm0 = vcmp.eq.s32.totalorder %v385_v42, %v6887_v58  ;;  %vm1731_vm1 = vcmp.eq.s32.totalorder %v385_v42, %v6895_v48 }
 0x2e9   :  { %vm2269_vm3 = vcmp.eq.s32.totalorder %v385_v42, %v6906_v46  ;;  %v1467_v26 = vsel %vm1193_vm0, %v6890_v36, 0.0  ;;  %v2005_v33 = vsel %vm1731_vm1, %v6903_v43, 0.0  ;;  %vm512_vm15 = vcmp.eq.s32.totalorder %v242_v28, %v6802_v59  ;;  %v249_v42 = vld [vmem:[#allocation11 + $0x130] sm:$0xff] }
 0x2ea   :  { %v2543_v52 = vsel %vm2269_vm3, %v6915_v16, 0.0  ;;  %v3183_v13 = vadd.f32 %v2927_v53, %v2671_v22  ;;  %v2799_v27 = vadd.f32 %v1467_v26, %v929_v40  ;;  %v786_v6 = vsel %vm512_vm15, %v6805_v61, 0.0 }
 0x2eb   :  { %v3055_v47 = vadd.f32 %v2543_v52, %v2005_v33  ;;  %vm1050_vm2 = vcmp.eq.s32.totalorder %v242_v28, %v6808_v62  ;;  %vm1588_vm4 = vcmp.eq.s32.totalorder %v242_v28, %v6814_v0  ;;  %vm2126_vm5 = vcmp.eq.s32.totalorder %v242_v28, %v6831_v37  ;;  %v7467_v33 = vpop.f32.mrf.mxu2  ;;  %v7469_v28 = vpop.f32.mrf.mxu3 }
 0x2ec   :  { %vm640_vm7 = vcmp.eq.s32.totalorder %v370_v34, %v6802_v59  ;;  %3911 = vmatpush.msrb.mxu0 %v3183_v13  ;;  %v1324_v4 = vsel %vm1050_vm2, %v6811_v63, 0.0  ;;  %v1862_v41 = vsel %vm1588_vm4, %v6822_v15, 0.0  ;;  %v2400_v22 = vsel %vm2126_vm5, %v6836_v24, 0.0 }
 0x2ed   :  { %v3311_v8 = vadd.f32 %v3055_v47, %v2799_v27  ;;  %v2656_v40 = vadd.f32 %v1324_v4, %v786_v6  ;;  %v2912_v53 = vadd.f32 %v2400_v22, %v1862_v41  ;;  %v914_v26 = vsel %vm640_vm7, %v6805_v61, 0.0  ;;  %v7477_v4 = vpop.f32.mrf.mxu0  ;;  %v7479_v41 = vpop.f32.mrf.mxu1 }
 0x2ee   :  { %vm1178_vm8 = vcmp.eq.s32.totalorder %v370_v34, %v6808_v62  ;;  %vm1716_vm9 = vcmp.eq.s32.totalorder %v370_v34, %v6814_v0  ;;  %vm2254_vm10 = vcmp.eq.s32.totalorder %v370_v34, %v6831_v37  ;;  %vm519_vm12 = vcmp.eq.s32.totalorder %v249_v42, %v6881_v20  ;;  %v241_v34 = vld [vmem:[#allocation11 + $0xf0] sm:$0xff] }
 0x2ef   :  { %3952 = vmatpush.msrb.mxu1 %v3311_v8  ;;  %v1452_v52 = vsel %vm1178_vm8, %v6811_v63, 0.0  ;;  %v3168_v13 = vadd.f32 %v2912_v53, %v2656_v40  ;;  %v1990_v27 = vsel %vm1716_vm9, %v6822_v15, 0.0  ;;  %v2528_v47 = vsel %vm2254_vm10, %v6836_v24, 0.0  ;;  %v7487_v40 = vld [vmem:[#allocation12 + $0x180] sm:$0xff] }
 0x2f0   :  { %v2784_v6 = vadd.f32 %v1452_v52, %v914_v26  ;;  %v3040_v22 = vadd.f32 %v2528_v47, %v1990_v27  ;;  %v793_v8 = vsel %vm519_vm12, %v6884_v30, 0.0  ;;  %vm1057_vm13 = vcmp.eq.s32.totalorder %v249_v42, %v6887_v58 }
 0x2f1   :  { %vm1595_vm14 = vcmp.eq.s32.totalorder %v249_v42, %v6895_v48  ;;  %v7485_v14 = vadd.f32 %v4403_v45, %v7427_v38  ;;  %3995 = vmatpush.msrb.mxu2 %v3168_v13  ;;  %v1331_v53 = vsel %vm1057_vm13, %v6890_v36, 0.0  ;;  %vm2133_vm0 = vcmp.eq.s32.totalorder %v249_v42, %v6906_v46 }
 0x2f2   :  { %v1869_v26 = vsel %vm1595_vm14, %v6903_v43, 0.0  ;;  %v7494_v52 = vadd.f32 %v7435_v21, %v7433_v11  ;;  %v3296_v27 = vadd.f32 %v3040_v22, %v2784_v6  ;;  %v2407_v47 = vsel %vm2133_vm0, %v6915_v16, 0.0  ;;  %v377_v11 = vld [vmem:[#allocation11 + $0x530] sm:$0xff] }
 0x2f3   :  { %v2663_v31 = vadd.f32 %v1331_v53, %v793_v8  ;;  %v7501_v38 = vsel %vm4177_vm6, %v7128_v50, 0.0  ;;  %v7507_v45 = vsel %vm4330_vm11, %v7148_v55, 0.0  ;;  %v2919_v42 = vadd.f32 %v2407_v47, %v1869_v26  ;;  %v234_v8 = vld [vmem:[#allocation11 + $0xb8] sm:$0xff]  ;;  %v7528_v47 = vpop.f32.mrf.mxu2 }
 0x2f4   :  { %vm511_vm1 = vcmp.eq.s32.totalorder %v241_v34, %v6881_v20  ;;  %vm4185_vm3 = vcmp.eq.s32.totalorder %v7487_v40, %v7116_v44  ;;  %4036 = vmatpush.msrb.mxu3 %v3296_v27  ;;  %vm1049_vm15 = vcmp.eq.s32.totalorder %v241_v34, %v6887_v58  ;;  %vm1587_vm6 = vcmp.eq.s32.totalorder %v241_v34, %v6895_v48 }
 0x2f5   :  { %v785_v21 = vsel %vm511_vm1, %v6884_v30, 0.0  ;;  %vm4338_vm2 = vcmp.eq.s32.totalorder %v7487_v40, %v7140_v29  ;;  %v3175_v32 = vadd.f32 %v2919_v42, %v2663_v31  ;;  %v1323_v13 = vsel %vm1049_vm15, %v6890_v36, 0.0  ;;  %v7530_v42 = vpop.f32.mrf.mxu3  ;;  %v3488_v60 = vpop.f32.mrf.mxu1  ;;  %v225_v40 = vld [vmem:[#allocation11 + $0x70] sm:$0xff] }
 0x2f6   :  { %v1861_v6 = vsel %vm1587_vm6, %v6903_v43, 0.0  ;;  %vm2125_vm11 = vcmp.eq.s32.totalorder %v241_v34, %v6906_v46  ;;  %v2655_v22 = vadd.f32 %v1323_v13, %v785_v21  ;;  %vm647_vm4 = vcmp.eq.s32.totalorder %v377_v11, %v6881_v20  ;;  %v362_v13 = vld [vmem:[#allocation11 + $0x4b8] sm:$0xff] }
 0x2f7   :  { %vm1185_vm5 = vcmp.eq.s32.totalorder %v377_v11, %v6887_v58  ;;  %v7523_v53 = vsel %vm4185_vm3, %v7128_v50, 0.0  ;;  %3912 = vmatpush.msrb.mxu0 %v3175_v32  ;;  %v2399_v26 = vsel %vm2125_vm11, %v6915_v16, 0.0  ;;  %v921_v31 = vsel %vm647_vm4, %v6884_v30, 0.0 }
 0x2f8   :  { %v1459_v27 = vsel %vm1185_vm5, %v6890_v36, 0.0  ;;  %v2911_v34 = vadd.f32 %v2399_v26, %v1861_v6  ;;  %vm1723_vm7 = vcmp.eq.s32.totalorder %v377_v11, %v6895_v48  ;;  %vm2261_vm8 = vcmp.eq.s32.totalorder %v377_v11, %v6906_v46  ;;  %v3447_v26 = vpop.f32.mrf.mxu0 }
 0x2f9   :  { %v2791_v21 = vadd.f32 %v1459_v27, %v921_v31  ;;  %v1997_v10 = vsel %vm1723_vm7, %v6903_v43, 0.0  ;;  %v2535_v32 = vsel %vm2261_vm8, %v6915_v16, 0.0  ;;  %vm504_vm9 = vcmp.eq.s32.totalorder %v234_v8, %v6802_v59 }
 0x2fa   :  { %vm1042_vm10 = vcmp.eq.s32.totalorder %v234_v8, %v6808_v62  ;;  %v3167_v23 = vadd.f32 %v2911_v34, %v2655_v22  ;;  %v3047_v12 = vadd.f32 %v2535_v32, %v1997_v10  ;;  %v778_v35 = vsel %vm504_vm9, %v6805_v61, 0.0  ;;  %v4121_v34 = vld [vmem:[#allocation12 + $0x1c0] sm:$0xff] }
 0x2fb   :  { %v1316_v6 = vsel %vm1042_vm10, %v6811_v63, 0.0  ;;  %vm1580_vm12 = vcmp.eq.s32.totalorder %v234_v8, %v6814_v0  ;;  %vm2118_vm13 = vcmp.eq.s32.totalorder %v234_v8, %v6831_v37  ;;  %vm632_vm14 = vcmp.eq.s32.totalorder %v362_v13, %v6802_v59  ;;  %v233_v8 = vld [vmem:[#allocation11 + $0xb0] sm:$0xff] }
 0x2fc   :  { %v2648_v11 = vadd.f32 %v1316_v6, %v778_v35  ;;  %3913 = vmatpush.msrb.mxu0 %v3167_v23  ;;  %v3303_v31 = vadd.f32 %v3047_v12, %v2791_v21  ;;  %v1854_v27 = vsel %vm1580_vm12, %v6822_v15, 0.0  ;;  %v2392_v22 = vsel %vm2118_vm13, %v6836_v24, 0.0 }
 0x2fd   :  { %v906_v10 = vsel %vm632_vm14, %v6805_v61, 0.0  ;;  %v2904_v32 = vadd.f32 %v2392_v22, %v1854_v27  ;;  %vm1170_vm0 = vcmp.eq.s32.totalorder %v362_v13, %v6808_v62  ;;  %vm1708_vm1 = vcmp.eq.s32.totalorder %v362_v13, %v6814_v0 }
 0x2fe   :  { %vm2246_vm3 = vcmp.eq.s32.totalorder %v362_v13, %v6831_v37  ;;  %v7553_v35 = vsel %vm4338_vm2, %v7148_v55, 0.0  ;;  %3953 = vmatpush.msrb.mxu1 %v3303_v31  ;;  %v1444_v12 = vsel %vm1170_vm0, %v6811_v63, 0.0  ;;  %v1982_v23 = vsel %vm1708_vm1, %v6822_v15, 0.0 }
 0x2ff   :  { %v2520_v21 = vsel %vm2246_vm3, %v6836_v24, 0.0  ;;  %v3160_v6 = vadd.f32 %v2904_v32, %v2648_v11  ;;  %v2776_v27 = vadd.f32 %v1444_v12, %v906_v10  ;;  %vm4193_vm15 = vcmp.eq.s32.totalorder %v4121_v34, %v7116_v44 }
 0x300   :  { %v3032_v22 = vadd.f32 %v2520_v21, %v1982_v23  ;;  %v4274_v13 = vsel %vm4193_vm15, %v7128_v50, 0.0  ;;  %vm4346_vm6 = vcmp.eq.s32.totalorder %v4121_v34, %v7140_v29  ;;  %vm503_vm11 = vcmp.eq.s32.totalorder %v233_v8, %v6881_v20  ;;  %v369_v50 = vld [vmem:[#allocation11 + $0x4f0] sm:$0xff]  ;;  %v7570_v29 = vpop.f32.mrf.mxu2  ;;  %v7572_v34 = vpop.f32.mrf.mxu3 }
 0x301   :  { %vm1041_vm2 = vcmp.eq.s32.totalorder %v233_v8, %v6887_v58  ;;  %3996 = vmatpush.msrb.mxu2 %v3160_v6  ;;  %v4427_v51 = vsel %vm4346_vm6, %v7148_v55, 0.0  ;;  %v777_v54 = vsel %vm503_vm11, %v6884_v30, 0.0  ;;  %v7566_v10 = vadd.f32 %v3488_v60, %v3447_v26  ;;  %v7582_v12 = vpop.f32.mrf.mxu0  ;;  %v7584_v23 = vpop.f32.mrf.mxu1  ;;  %v226_v6 = vld [vmem:[#allocation11 + $0x78] sm:$0xff] }
 0x302   :  { %v3288_v31 = vadd.f32 %v3032_v22, %v2776_v27  ;;  %v1315_v11 = vsel %vm1041_vm2, %v6890_v36, 0.0  ;;  %vm1579_vm4 = vcmp.eq.s32.totalorder %v233_v8, %v6895_v48  ;;  %vm2117_vm5 = vcmp.eq.s32.totalorder %v233_v8, %v6906_v46 }
 0x303   :  { %v2647_v44 = vadd.f32 %v1315_v11, %v777_v54  ;;  %v1853_v32 = vsel %vm1579_vm4, %v6903_v43, 0.0  ;;  %v2391_v55 = vsel %vm2117_vm5, %v6915_v16, 0.0  ;;  %vm495_vm7 = vcmp.eq.s32.totalorder %v225_v40, %v6881_v20  ;;  %v354_v11 = vld [vmem:[#allocation11 + $0x478] sm:$0xff] }
 0x304   :  { %4037 = vmatpush.msrb.mxu3 %v3288_v31  ;;  %vm1033_vm8 = vcmp.eq.s32.totalorder %v225_v40, %v6887_v58  ;;  %v7578_v60 = vadd.f32 %v4427_v51, %v4274_v13  ;;  %v2903_v26 = vadd.f32 %v2391_v55, %v1853_v32  ;;  %v769_v8 = vsel %vm495_vm7, %v6884_v30, 0.0 }
 0x305   :  { %v1307_v54 = vsel %vm1033_vm8, %v6890_v36, 0.0  ;;  %vm1571_vm9 = vcmp.eq.s32.totalorder %v225_v40, %v6895_v48  ;;  %vm2109_vm10 = vcmp.eq.s32.totalorder %v225_v40, %v6906_v46  ;;  %vm639_vm12 = vcmp.eq.s32.totalorder %v369_v50, %v6881_v20 }
 0x306   :  { %v2639_v21 = vadd.f32 %v1307_v54, %v769_v8  ;;  %v3159_v27 = vadd.f32 %v2903_v26, %v2647_v44  ;;  %v1845_v51 = vsel %vm1571_vm9, %v6903_v43, 0.0  ;;  %v2383_v22 = vsel %vm2109_vm10, %v6915_v16, 0.0 }
 0x307   :  { %v913_v13 = vsel %vm639_vm12, %v6884_v30, 0.0  ;;  %v2895_v31 = vadd.f32 %v2383_v22, %v1845_v51  ;;  %vm1177_vm13 = vcmp.eq.s32.totalorder %v369_v50, %v6887_v58  ;;  %vm1715_vm14 = vcmp.eq.s32.totalorder %v369_v50, %v6895_v48 }
 0x308   :  { %vm2253_vm0 = vcmp.eq.s32.totalorder %v369_v50, %v6906_v46  ;;  %3914 = vmatpush.msrb.mxu0 %v3159_v27  ;;  %v1451_v40 = vsel %vm1177_vm13, %v6890_v36, 0.0  ;;  %v1989_v32 = vsel %vm1715_vm14, %v6903_v43, 0.0  ;;  %vm496_vm1 = vcmp.eq.s32.totalorder %v226_v6, %v6802_v59  ;;  %v217_v50 = vld [vmem:[#allocation11 + $0x30] sm:$0xff] }
 0x309   :  { %v2527_v44 = vsel %vm2253_vm0, %v6915_v16, 0.0  ;;  %v3151_v55 = vadd.f32 %v2895_v31, %v2639_v21  ;;  %v2783_v26 = vadd.f32 %v1451_v40, %v913_v13  ;;  %v770_v54 = vsel %vm496_vm1, %v6805_v61, 0.0 }
 0x30a   :  { %v3039_v8 = vadd.f32 %v2527_v44, %v1989_v32  ;;  %vm1034_vm3 = vcmp.eq.s32.totalorder %v226_v6, %v6808_v62  ;;  %vm1572_vm15 = vcmp.eq.s32.totalorder %v226_v6, %v6814_v0  ;;  %vm2110_vm6 = vcmp.eq.s32.totalorder %v226_v6, %v6831_v37  ;;  %v7609_v32 = vpop.f32.mrf.mxu2  ;;  %v7611_v6 = vpop.f32.mrf.mxu3 }
 0x30b   :  { %vm624_vm11 = vcmp.eq.s32.totalorder %v354_v11, %v6802_v59  ;;  %3915 = vmatpush.msrb.mxu0 %v3151_v55  ;;  %v1308_v51 = vsel %vm1034_vm3, %v6811_v63, 0.0  ;;  %v1846_v22 = vsel %vm1572_vm15, %v6822_v15, 0.0  ;;  %v2384_v21 = vsel %vm2110_vm6, %v6836_v24, 0.0  ;;  %8544 = vst [vmem:[#allocation30_spill] sm:$0xff] %v7609_v32 }
 0x30c   :  { %v3295_v27 = vadd.f32 %v3039_v8, %v2783_v26  ;;  %v2640_v13 = vadd.f32 %v1308_v51, %v770_v54  ;;  %v2896_v31 = vadd.f32 %v2384_v21, %v1846_v22  ;;  %v898_v40 = vsel %vm624_vm11, %v6805_v61, 0.0  ;;  %8545 = vst [vmem:[#allocation31_spill] sm:$0xff] %v7611_v6  ;;  %v7619_v51 = vpop.f32.mrf.mxu0  ;;  %v7621_v22 = vpop.f32.mrf.mxu1 }
 0x30d   :  { %vm1162_vm2 = vcmp.eq.s32.totalorder %v354_v11, %v6808_v62  ;;  %vm1700_vm4 = vcmp.eq.s32.totalorder %v354_v11, %v6814_v0  ;;  %vm2238_vm5 = vcmp.eq.s32.totalorder %v354_v11, %v6831_v37  ;;  %vm487_vm7 = vcmp.eq.s32.totalorder %v217_v50, %v6881_v20  ;;  %v361_v11 = vld [vmem:[#allocation11 + $0x4b0] sm:$0xff] }
 0x30e   :  { %3954 = vmatpush.msrb.mxu1 %v3295_v27  ;;  %v1436_v44 = vsel %vm1162_vm2, %v6811_v63, 0.0  ;;  %v3152_v55 = vadd.f32 %v2896_v31, %v2640_v13  ;;  %v1974_v26 = vsel %vm1700_vm4, %v6822_v15, 0.0  ;;  %v2512_v8 = vsel %vm2238_vm5, %v6836_v24, 0.0 }
 0x30f   :  { %v2768_v54 = vadd.f32 %v1436_v44, %v898_v40  ;;  %v3024_v21 = vadd.f32 %v2512_v8, %v1974_v26  ;;  %v761_v27 = vsel %vm487_vm7, %v6884_v30, 0.0  ;;  %vm1025_vm8 = vcmp.eq.s32.totalorder %v217_v50, %v6887_v58 }
 0x310   :  { %vm1563_vm9 = vcmp.eq.s32.totalorder %v217_v50, %v6895_v48  ;;  %v4475_v13 = vadd.f32 %v7507_v45, %v7501_v38  ;;  %3997 = vmatpush.msrb.mxu2 %v3152_v55  ;;  %v1299_v31 = vsel %vm1025_vm8, %v6890_v36, 0.0  ;;  %vm2101_vm10 = vcmp.eq.s32.totalorder %v217_v50, %v6906_v46  ;;  %v218_v55 = vld [vmem:[#allocation11 + $0x38] sm:$0xff] }
 0x311   :  { %v1837_v40 = vsel %vm1563_vm9, %v6903_v43, 0.0  ;;  %v7633_v44 = vmul.f32 %v7485_v14, %v7415_v5  ;;  %v3280_v26 = vadd.f32 %v3024_v21, %v2768_v54  ;;  %v2375_v8 = vsel %vm2101_vm10, %v6915_v16, 0.0 }
 0x312   :  { %v2631_v6 = vadd.f32 %v1299_v31, %v761_v27  ;;  %v3486_v32 = vadd.f32 %v7479_v41, %v7477_v4  ;;  %v4483_v38 = vadd.f32 %v7553_v35, %v7523_v53  ;;  %v2887_v45 = vadd.f32 %v2375_v8, %v1837_v40  ;;  %v7649_v35 = vpop.f32.mrf.mxu2  ;;  %v7651_v54 = vpop.f32.mrf.mxu3  ;;  %v7663_v40 = vld [vmem:[#allocation12 + $0x188] sm:$0xff] }
 0x313   :  { %vm631_vm12 = vcmp.eq.s32.totalorder %v361_v11, %v6881_v20  ;;  %v4555_v50 = vmul.f32 %v7578_v60, %v7566_v10  ;;  %4038 = vmatpush.msrb.mxu3 %v3280_v26  ;;  %vm1169_vm13 = vcmp.eq.s32.totalorder %v361_v11, %v6887_v58  ;;  %vm1707_vm14 = vcmp.eq.s32.totalorder %v361_v11, %v6895_v48  ;;  %v346_v60 = vld [vmem:[#allocation11 + $0x438] sm:$0xff]  ;;  %v4122_v26 = vld [vmem:[#allocation12 + $0x1c8] sm:$0xff] }
 0x314   :  { %v905_v14 = vsel %vm631_vm12, %v6884_v30, 0.0  ;;  %v4539_v5 = vmul.f32 %v4475_v13, %v7494_v52  ;;  %v3143_v4 = vadd.f32 %v2887_v45, %v2631_v6  ;;  %v1443_v41 = vsel %vm1169_vm13, %v6890_v36, 0.0  ;;  %v7659_v13 = vpop.f32.mrf.mxu0  ;;  %v7661_v31 = vpop.f32.mrf.mxu1  ;;  %v4842_v45 = vld [vmem:[#allocation9] sm:$0xff] }
 0x315   :  { %v1981_v53 = vsel %vm1707_vm14, %v6903_v43, 0.0  ;;  %vm2245_vm0 = vcmp.eq.s32.totalorder %v361_v11, %v6906_v46  ;;  %v2775_v10 = vadd.f32 %v1443_v41, %v905_v14  ;;  %vm488_vm1 = vcmp.eq.s32.totalorder %v218_v55, %v6802_v59  ;;  %v7671_v14 = vld [vmem:[#allocation12 + $0x148] sm:$0xff] }
 0x316   :  { %vm1026_vm3 = vcmp.eq.s32.totalorder %v218_v55, %v6808_v62  ;;  %v4547_v21 = vmul.f32 %v4483_v38, %v3486_v32  ;;  %3916 = vmatpush.msrb.mxu0 %v3143_v4  ;;  %v2519_v52 = vsel %vm2245_vm0, %v6915_v16, 0.0  ;;  %v762_v6 = vsel %vm488_vm1, %v6805_v61, 0.0 }
 0x317   :  { %v1300_v27 = vsel %vm1026_vm3, %v6811_v63, 0.0  ;;  %v3031_v11 = vadd.f32 %v2519_v52, %v1981_v53  ;;  %vm1564_vm15 = vcmp.eq.s32.totalorder %v218_v55, %v6814_v0  ;;  %vm2102_vm6 = vcmp.eq.s32.totalorder %v218_v55, %v6831_v37  ;;  %3917 = vmatmul.f32.vlgmr.msrb.gmra.mxu0 %v4842_v45 }
 0x318   :  { %4576 = vmatpush.msra.mxu0 %v4555_v50  ;;  %v2632_v32 = vadd.f32 %v1300_v27, %v762_v6  ;;  %v1838_v8 = vsel %vm1564_vm15, %v6822_v15, 0.0  ;;  %v2376_v38 = vsel %vm2102_vm6, %v6836_v24, 0.0  ;;  %vm616_vm11 = vcmp.eq.s32.totalorder %v346_v60, %v6802_v59 }
 0x319   :  { %vm1154_vm2 = vcmp.eq.s32.totalorder %v346_v60, %v6808_v62  ;;  %v3287_v50 = vadd.f32 %v3031_v11, %v2775_v10  ;;  %v2888_v4 = vadd.f32 %v2376_v38, %v1838_v8  ;;  %v890_v41 = vsel %vm616_vm11, %v6805_v61, 0.0  ;;  %v353_v62 = vld [vmem:[#allocation11 + $0x470] sm:$0xff] }
 0x31a   :  { %v1428_v55 = vsel %vm1154_vm2, %v6811_v63, 0.0  ;;  %4577 = vmatpush.msra.mxu0 %v4547_v21  ;;  %vm4186_vm4 = vcmp.eq.s32.totalorder %v7663_v40, %v7219_v17  ;;  %vm1692_vm5 = vcmp.eq.s32.totalorder %v346_v60, %v6814_v0  ;;  %vm2230_vm7 = vcmp.eq.s32.totalorder %v346_v60, %v6831_v37  ;;  %v7687_v0 = vpop.f32.mrf.mxu2  ;;  %v7689_v37 = vpop.f32.mrf.mxu3 }
 0x31b   :  { %v2760_v59 = vadd.f32 %v1428_v55, %v890_v41  ;;  %vm4194_vm8 = vcmp.eq.s32.totalorder %v4122_v26, %v7219_v17  ;;  %3955 = vmatpush.msrb.mxu1 %v3287_v50  ;;  %v3144_v53 = vadd.f32 %v2888_v4, %v2632_v32  ;;  %v1966_v10 = vsel %vm1692_vm5, %v6822_v15, 0.0  ;;  %v4843_v41 = vld [vmem:[#allocation9 + $0x8] sm:$0xff] }
 0x31c   :  { %v2504_v61 = vsel %vm2230_vm7, %v6836_v24, 0.0  ;;  %4578 = vmatpush.msra.mxu0 %v4539_v5  ;;  %vm4178_vm9 = vcmp.eq.s32.totalorder %v7671_v14, %v7219_v17  ;;  %vm4331_vm10 = vcmp.eq.s32.totalorder %v7671_v14, %v7263_v1  ;;  %vm4347_vm12 = vcmp.eq.s32.totalorder %v4122_v26, %v7263_v1  ;;  %v345_v24 = vld [vmem:[#allocation11 + $0x430] sm:$0xff]  ;;  %v7705_v52 = vpop.f32.mrf.mxu0  ;;  %v7707_v6 = vpop.f32.mrf.mxu1  ;;  %v4098_v26 = vld [vmem:[#allocation12 + $0x108] sm:$0xff] }
 0x31d   :  { %v3016_v63 = vadd.f32 %v2504_v61, %v1966_v10  ;;  %v4267_v15 = vsel %vm4186_vm4, %v7260_v9, 0.0  ;;  %3998 = vmatpush.msrb.mxu2 %v3144_v53  ;;  %vm623_vm13 = vcmp.eq.s32.totalorder %v353_v62, %v6881_v20  ;;  %vm1161_vm14 = vcmp.eq.s32.totalorder %v353_v62, %v6887_v58 }
 0x31e   :  { %vm1699_vm0 = vcmp.eq.s32.totalorder %v353_v62, %v6895_v48  ;;  %vm4339_vm1 = vcmp.eq.s32.totalorder %v7663_v40, %v7263_v1  ;;  %v4275_v5 = vsel %vm4194_vm8, %v7260_v9, 0.0  ;;  %v897_v21 = vsel %vm623_vm13, %v6884_v30, 0.0  ;;  %3999 = vmatmul.f32.vlgmr.msrb.gmra.mxu2 %v4842_v45  ;;  %4579 = vmatpush.msra.mxu0 %v7633_v44  ;;  %v4090_v45 = vld [vmem:[#allocation12 + $0xc8] sm:$0xff] }
 0x31f   :  { %v3272_v60 = vadd.f32 %v3016_v63, %v2760_v59  ;;  %v4428_v27 = vsel %vm4347_vm12, %v7316_v49, 0.0  ;;  %v1435_v11 = vsel %vm1161_vm14, %v6890_v36, 0.0  ;;  %v1973_v32 = vsel %vm1699_vm0, %v6903_v43, 0.0  ;;  %v4074_v59 = vld [vmem:[#allocation12 + $0x48] sm:$0xff] }
 0x320   :  { %vm2237_vm3 = vcmp.eq.s32.totalorder %v353_v62, %v6906_v46  ;;  %v3571_v8 = vadd.f32 %v7572_v34, %v7570_v29  ;;  %v2767_v38 = vadd.f32 %v1435_v11, %v897_v21  ;;  %vm615_vm15 = vcmp.eq.s32.totalorder %v345_v24, %v6881_v20  ;;  %4580 = vmatpush.msra.mxu0 %v7413_v18  ;;  %v4844_v29 = vld [vmem:[#allocation9 + $0x10] sm:$0xff] }
 0x321   :  { %4039 = vmatpush.msrb.mxu3 %v3272_v60  ;;  %v2511_v44 = vsel %vm2237_vm3, %v6915_v16, 0.0  ;;  %v889_v4 = vsel %vm615_vm15, %v6884_v30, 0.0  ;;  %vm1153_vm6 = vcmp.eq.s32.totalorder %v345_v24, %v6887_v58  ;;  %vm1691_vm11 = vcmp.eq.s32.totalorder %v345_v24, %v6895_v48  ;;  %3920 = vmatmul.f32.gmra.mxu0 %v4844_v29  ;;  %v4845_v60 = vld [vmem:[#allocation9 + $0x18] sm:$0xff] }
 0x322   :  { %v3023_v50 = vadd.f32 %v2511_v44, %v1973_v32  ;;  %4040 = vmatmul.f32.vlgmr.msrb.gmra.mxu3 %v4843_v41  ;;  %v4492_v34 = vadd.f32 %v4428_v27, %v4275_v5  ;;  %v1427_v55 = vsel %vm1153_vm6, %v6890_v36, 0.0  ;;  %v1965_v20 = vsel %vm1691_vm11, %v6903_v43, 0.0  ;;  %4581 = vmatpush.msra.mxu0 %v7411_v3  ;;  %v7736_v43 = vpop.f32.mrf.mxu2  ;;  %v4082_v3 = vld [vmem:[#allocation12 + $0x88] sm:$0xff]  ;;  %v4846_v27 = vld [vmem:[#allocation9 + $0x20] sm:$0xff] }
 0x323   :  { %vm2229_vm2 = vcmp.eq.s32.totalorder %v345_v24, %v6906_v46  ;;  %v4420_v30 = vsel %vm4339_vm1, %v7316_v49, 0.0  ;;  %v2759_v18 = vadd.f32 %v1427_v55, %v889_v4  ;;  %vm4162_vm4 = vcmp.eq.s32.totalorder %v4090_v45, %v7219_v17  ;;  %v7738_v46 = vpop.f32.mrf.mxu3 }
 0x324   :  { %v3279_v58 = vadd.f32 %v3023_v50, %v2767_v38  ;;  %v2503_v48 = vsel %vm2229_vm2, %v6915_v16, 0.0  ;;  %vm4170_vm5 = vcmp.eq.s32.totalorder %v4098_v26, %v7219_v17  ;;  %vm4323_vm7 = vcmp.eq.s32.totalorder %v4098_v26, %v7263_v1  ;;  %4582 = vmatpush.msra.mxu0 %v7318_v57  ;;  %v7752_v61 = vpop.f32.mrf.mxu0  ;;  %v7754_v63 = vpop.f32.mrf.mxu1  ;;  %v8546_v50 = vld [vmem:[#allocation29_spill] sm:$0xff] }
 0x325   :  { %v3015_v36 = vadd.f32 %v2503_v48, %v1965_v20  ;;  %vm4315_vm8 = vcmp.eq.s32.totalorder %v4090_v45, %v7263_v1  ;;  %v4259_v16 = vsel %vm4178_vm9, %v7260_v9, 0.0  ;;  %v4412_v40 = vsel %vm4331_vm10, %v7316_v49, 0.0  ;;  %v8547_v20 = vld [vmem:[#allocation27_spill] sm:$0xff] }
 0x326   :  { %v3568_v57 = vadd.f32 %v7530_v42, %v7528_v47  ;;  %3956 = vmatpush.msrb.mxu1 %v3279_v58  ;;  %v4484_v62 = vadd.f32 %v4420_v30, %v4267_v15  ;;  %v4556_v53 = vmul.f32 %v4492_v34, %v3571_v8  ;;  %4002 = vmatmul.f32.gmra.mxu2 %v4844_v29  ;;  %v4251_v14 = vsel %vm4170_vm5, %v7260_v9, 0.0  ;;  %v4066_v42 = vld [vmem:[#allocation12 + $0x8] sm:$0xff]  ;;  %v8548_v30 = vld [vmem:[#allocation28_spill] sm:$0xff] }
 0x327   :  { %v3271_v10 = vadd.f32 %v3015_v36, %v2759_v18  ;;  %4583 = vmatpush.msra.mxu0 %v7212_v39  ;;  %v4404_v47 = vsel %vm4323_vm7, %v7316_v49, 0.0  ;;  %vm4154_vm9 = vcmp.eq.s32.totalorder %v4082_v3, %v7219_v17  ;;  %vm4307_vm10 = vcmp.eq.s32.totalorder %v4082_v3, %v7263_v1  ;;  %v8549_v18 = vld [vmem:[#allocation22_spill] sm:$0xff] }
 0x328   :  { %v3565_v39 = vadd.f32 %v7469_v28, %v7467_v33  ;;  %v4476_v15 = vadd.f32 %v4412_v40, %v4259_v16  ;;  %vm4146_vm12 = vcmp.eq.s32.totalorder %v4074_v59, %v7219_v17  ;;  %vm4299_vm13 = vcmp.eq.s32.totalorder %v4074_v59, %v7263_v1  ;;  %v4847_v3 = vld [vmem:[#allocation9 + $0x28] sm:$0xff]  ;;  %v8550_v16 = vld [vmem:[#allocation25_spill] sm:$0xff]  ;;  %v7815_v59 = vld [vmem:[#allocation12 + $0x10] sm:$0xff] }
 0x329   :  { %3957 = vmatpush.msrb.mxu1 %v3271_v10  ;;  %v4243_v24 = vsel %vm4162_vm4, %v7260_v9, 0.0  ;;  %v4396_v5 = vsel %vm4315_vm8, %v7316_v49, 0.0  ;;  %v3562_v33 = vadd.f32 %v7420_v2, %v7418_v7  ;;  %v4468_v28 = vadd.f32 %v4404_v47, %v4251_v14  ;;  %3923 = vmatmul.f32.gmra.mxu0 %v4846_v27  ;;  %v8551_v40 = vld [vmem:[#allocation26_spill] sm:$0xff] }
 0x32a   :  { %3958 = vmatmul.f32.vlgmr.msrb.gmra.mxu1 %v4843_v41  ;;  %4043 = vmatmul.f32.gmra.mxu3 %v4845_v60  ;;  %v4548_v21 = vmul.f32 %v4484_v62, %v3568_v57  ;;  %vm4138_vm14 = vcmp.eq.s32.totalorder %v4066_v42, %v7219_v17  ;;  %v4235_v11 = vsel %vm4154_vm9, %v7260_v9, 0.0  ;;  %v4388_v32 = vsel %vm4307_vm10, %v7316_v49, 0.0  ;;  %v7786_v44 = vpop.f32.mrf.mxu2 }
 0x32b   :  { %4596 = vmatpush.msra.mxu1 %v4556_v53  ;;  %vm4291_vm0 = vcmp.eq.s32.totalorder %v4066_v42, %v7263_v1  ;;  %v3559_v7 = vadd.f32 %v7381_v25, %v7379_v56  ;;  %v4460_v2 = vadd.f32 %v4396_v5, %v4243_v24  ;;  %v4540_v8 = vmul.f32 %v4476_v15, %v3565_v39  ;;  %v7788_v38 = vpop.f32.mrf.mxu3  ;;  %v4848_v1 = vld [vmem:[#allocation9 + $0x30] sm:$0xff]  ;;  %v8552_v53 = vld [vmem:[#allocation21_spill] sm:$0xff]  ;;  %v8553_v42 = vld [vmem:[#allocation24_spill] sm:$0xff] }
 0x32c   :  { %v4227_v45 = vsel %vm4146_vm12, %v7260_v9, 0.0  ;;  %v4380_v26 = vsel %vm4299_vm13, %v7316_v49, 0.0  ;;  %v3556_v4 = vadd.f32 %v8546_v50, %v7340_v19  ;;  %v4452_v41 = vadd.f32 %v4388_v32, %v4235_v11  ;;  %v7798_v25 = vpop.f32.mrf.mxu0  ;;  %v7800_v29 = vpop.f32.mrf.mxu1  ;;  %v4123_v50 = vld [vmem:[#allocation12 + $0x1d0] sm:$0xff] }
 0x32d   :  { %4597 = vmatpush.msra.mxu1 %v4548_v21  ;;  %v4532_v56 = vmul.f32 %v4468_v28, %v3562_v33  ;;  %v4219_v34 = vsel %vm4138_vm14, %v7260_v9, 0.0  ;;  %v4372_v55 = vsel %vm4291_vm0, %v7316_v49, 0.0  ;;  %v3553_v58 = vadd.f32 %v8548_v30, %v8547_v20  ;;  %v4075_v49 = vld [vmem:[#allocation12 + $0x50] sm:$0xff] }
 0x32e   :  { %4005 = vmatmul.f32.gmra.mxu2 %v4846_v27  ;;  %v4444_v19 = vadd.f32 %v4380_v26, %v4227_v45  ;;  %v4524_v48 = vmul.f32 %v4460_v2, %v3559_v7  ;;  %v7811_v36 = vperm.slane %v8549_v18, 2  ;;  %v3550_v17 = vadd.f32 %v8551_v40, %v8550_v16  ;;  %v8554_v28 = vld [vmem:[#allocation23_spill] sm:$0xff]  ;;  %v4849_v26 = vld [vmem:[#allocation9 + $0x38] sm:$0xff] }
 0x32f   :  { %4598 = vmatpush.msra.mxu1 %v4540_v8  ;;  %v4436_v9 = vadd.f32 %v4372_v55, %v4219_v34  ;;  %v4516_v57 = vmul.f32 %v4452_v41, %v3556_v4  ;;  %v7818_v10 = vperm.slane %v8552_v53, 2  ;;  %v7827_v39 = vperm.slane %v8553_v42, 2  ;;  %v4107_v27 = vld [vmem:[#allocation12 + $0x150] sm:$0xff] }
 0x330   :  { %v4508_v62 = vmul.f32 %v4444_v19, %v3553_v58  ;;  %vm4139_vm1 = vcmp.eq.s32.totalorder %v7815_v59, %v7811_v36  ;;  %vm4147_vm3 = vcmp.eq.s32.totalorder %v4075_v49, %v7811_v36  ;;  %v7832_v33 = vadd.f32 %v7584_v23, %v7582_v12  ;;  %v4083_v12 = vld [vmem:[#allocation12 + $0x90] sm:$0xff] }
 0x331   :  { %4599 = vmatpush.msra.mxu1 %v4532_v56  ;;  %3926 = vmatmul.f32.gmra.mxu0 %v4848_v1  ;;  %v4500_v15 = vmul.f32 %v4436_v9, %v3550_v17  ;;  %v7835_v21 = vperm.slane %v8554_v28, 2  ;;  %vm4300_vm15 = vcmp.eq.s32.totalorder %v4075_v49, %v7827_v39  ;;  %v7839_v11 = vsel %vm4139_vm1, %v7818_v10, 0.0  ;;  %v4091_v23 = vld [vmem:[#allocation12 + $0xd0] sm:$0xff]  ;;  %v4850_v56 = vld [vmem:[#allocation9 + $0x40] sm:$0xff]  ;;  %v4116_v17 = vld [vmem:[#allocation12 + $0x198] sm:$0xff] }
 0x332   :  { %3961 = vmatmul.f32.gmra.mxu1 %v4845_v60  ;;  %4046 = vmatmul.f32.gmra.mxu3 %v4847_v3  ;;  %v7820_v14 = vpop.f32.mrf.mxu2  ;;  %v4115_v60 = vld [vmem:[#allocation12 + $0x190] sm:$0xff]  ;;  %v7842_v32 = vperm.slane %v8549_v18, 3  ;;  %v7845_v7 = vperm.slane %v8552_v53, 3  ;;  %v7848_v2 = vperm.slane %v8553_v42, 3  ;;  %v7851_v8 = vperm.slane %v8554_v28, 3 }
 0x333   :  { %4600 = vmatpush.msra.mxu1 %v4524_v48  ;;  %v7822_v47 = vpop.f32.mrf.mxu3  ;;  %v7856_v45 = vsel %vm4147_vm3, %v7818_v10, 0.0  ;;  %vm4187_vm6 = vcmp.eq.s32.totalorder %v4115_v60, %v7811_v36  ;;  %vm4340_vm11 = vcmp.eq.s32.totalorder %v4115_v60, %v7827_v39  ;;  %v7863_v4 = vsel %vm4300_vm15, %v7835_v21, 0.0  ;;  %v4099_v41 = vld [vmem:[#allocation12 + $0x110] sm:$0xff] }
 0x334   :  { %v3608_v24 = vpop.f32.mrf.mxu0  ;;  %v3649_v5 = vpop.f32.mrf.mxu1  ;;  %vm4179_vm2 = vcmp.eq.s32.totalorder %v4107_v27, %v7811_v36  ;;  %vm4332_vm4 = vcmp.eq.s32.totalorder %v4107_v27, %v7827_v39  ;;  %vm4195_vm5 = vcmp.eq.s32.totalorder %v4123_v50, %v7811_v36  ;;  %vm4155_vm7 = vcmp.eq.s32.totalorder %v4083_v12, %v7811_v36 }
 0x335   :  { %4601 = vmatpush.msra.mxu1 %v4516_v57  ;;  %vm4308_vm8 = vcmp.eq.s32.totalorder %v4083_v12, %v7827_v39  ;;  %vm4163_vm9 = vcmp.eq.s32.totalorder %v4091_v23, %v7811_v36  ;;  %v4276_v34 = vsel %vm4195_vm5, %v7818_v10, 0.0  ;;  %vm4316_vm10 = vcmp.eq.s32.totalorder %v4091_v23, %v7827_v39  ;;  %v4124_v23 = vld [vmem:[#allocation12 + $0x1d8] sm:$0xff] }
 0x336   :  { %4008 = vmatmul.f32.gmra.mxu2 %v4848_v1  ;;  %v4268_v55 = vsel %vm4187_vm6, %v7818_v10, 0.0  ;;  %v4421_v20 = vsel %vm4340_vm11, %v7835_v21, 0.0  ;;  %vm4348_vm12 = vcmp.eq.s32.totalorder %v4123_v50, %v7827_v39  ;;  %vm4171_vm13 = vcmp.eq.s32.totalorder %v4099_v41, %v7811_v36 }
 0x337   :  { %4602 = vmatpush.msra.mxu1 %v4508_v62  ;;  %v4260_v19 = vsel %vm4179_vm2, %v7818_v10, 0.0  ;;  %v4413_v48 = vsel %vm4332_vm4, %v7835_v21, 0.0  ;;  %vm4292_vm14 = vcmp.eq.s32.totalorder %v7815_v59, %v7827_v39  ;;  %v4236_v16 = vsel %vm4155_vm7, %v7818_v10, 0.0  ;;  %v4108_v62 = vld [vmem:[#allocation12 + $0x158] sm:$0xff] }
 0x338   :  { %v4389_v40 = vsel %vm4308_vm8, %v7835_v21, 0.0  ;;  %vm4324_vm0 = vcmp.eq.s32.totalorder %v4099_v41, %v7827_v39  ;;  %v4244_v49 = vsel %vm4163_vm9, %v7818_v10, 0.0  ;;  %v4485_v60 = vadd.f32 %v4421_v20, %v4268_v55  ;;  %v4854_v39 = vld [vmem:[#allocation9 + $0x60] sm:$0xff] }
 0x339   :  { %4603 = vmatpush.msra.mxu1 %v4500_v15  ;;  %3929 = vmatmul.f32.gmra.mxu0 %v4850_v56  ;;  %v3650_v15 = vadd.f32 %v3649_v5, %v3608_v24  ;;  %v4397_v12 = vsel %vm4316_vm10, %v7835_v21, 0.0  ;;  %v4252_v50 = vsel %vm4171_vm13, %v7818_v10, 0.0  ;;  %v4851_v24 = vld [vmem:[#allocation9 + $0x48] sm:$0xff]  ;;  %vm4188_vm1 = vcmp.eq.s32.totalorder %v4116_v17, %v7842_v32  ;;  %v4852_v10 = vld [vmem:[#allocation9 + $0x50] sm:$0xff] }
 0x33a   :  { %3964 = vmatmul.f32.gmra.mxu1 %v4847_v3  ;;  %4049 = vmatmul.f32.gmra.mxu3 %v4849_v26  ;;  %v7875_v30 = vpop.f32.mrf.mxu2  ;;  %v4429_v3 = vsel %vm4348_vm12, %v7835_v21, 0.0  ;;  %vm4341_vm3 = vcmp.eq.s32.totalorder %v4116_v17, %v7848_v2  ;;  %v3644_v36 = vadd.f32 %v7754_v63, %v7752_v61  ;;  %vm4180_vm15 = vcmp.eq.s32.totalorder %v4108_v62, %v7842_v32 }
 0x33b   :  { %v7877_v58 = vpop.f32.mrf.mxu3  ;;  %v4493_v1 = vadd.f32 %v4429_v3, %v4276_v34  ;;  %v4477_v34 = vadd.f32 %v4413_v48, %v4260_v19  ;;  %v4405_v3 = vsel %vm4324_vm0, %v7835_v21, 0.0  ;;  %vm4196_vm6 = vcmp.eq.s32.totalorder %v4124_v23, %v7842_v32 }
 0x33c   :  { %v3611_v9 = vpop.f32.mrf.mxu0  ;;  %v3652_v57 = vpop.f32.mrf.mxu1  ;;  %vm4349_vm11 = vcmp.eq.s32.totalorder %v4124_v23, %v7848_v2  ;;  %vm4333_vm2 = vcmp.eq.s32.totalorder %v4108_v62, %v7848_v2  ;;  %v4469_v55 = vadd.f32 %v4405_v3, %v4252_v50  ;;  %v4269_v61 = vsel %vm4188_vm1, %v7845_v7, 0.0 }
 0x33d   :  { %v3653_v27 = vadd.f32 %v3652_v57, %v3611_v9  ;;  %v4430_v41 = vsel %vm4349_vm11, %v7851_v8, 0.0  ;;  %v4422_v63 = vsel %vm4341_vm3, %v7851_v8, 0.0  ;;  %v3641_v9 = vadd.f32 %v7707_v6, %v7705_v52 }
 0x33e   :  { %4011 = vmatmul.f32.gmra.mxu2 %v4850_v56  ;;  %v3647_v56 = vadd.f32 %v7800_v29, %v7798_v25  ;;  %v4100_v25 = vld [vmem:[#allocation12 + $0x118] sm:$0xff]  ;;  %v4549_v29 = vmul.f32 %v4485_v60, %v3650_v15  ;;  %v4461_v57 = vadd.f32 %v4397_v12, %v4244_v49  ;;  %v4261_v17 = vsel %vm4180_vm15, %v7845_v7, 0.0 }
 0x33f   :  { %v4557_v5 = vmul.f32 %v4493_v1, %v3653_v27  ;;  %v4092_v1 = vld [vmem:[#allocation12 + $0xd8] sm:$0xff]  ;;  %vm4172_vm4 = vcmp.eq.s32.totalorder %v4100_v25, %v7842_v32  ;;  %vm4325_vm5 = vcmp.eq.s32.totalorder %v4100_v25, %v7848_v2  ;;  %v4414_v27 = vsel %vm4333_vm2, %v7851_v8, 0.0 }
 0x340   :  { %v4541_v15 = vmul.f32 %v4477_v34, %v3647_v56  ;;  %v3732_v6 = vadd.f32 %v7877_v58, %v7875_v30  ;;  %v4486_v49 = vadd.f32 %v4422_v63, %v4269_v61  ;;  %v3638_v34 = vadd.f32 %v7661_v31, %v7659_v13  ;;  %v4853_v30 = vld [vmem:[#allocation9 + $0x58] sm:$0xff] }
 0x341   :  { %3932 = vmatmul.f32.gmra.mxu0 %v4852_v10  ;;  %4616 = vmatpush.msra.mxu2 %v4557_v5  ;;  %v4453_v3 = vadd.f32 %v4389_v40, %v4236_v16  ;;  %v4084_v5 = vld [vmem:[#allocation12 + $0x98] sm:$0xff]  ;;  %vm4164_vm7 = vcmp.eq.s32.totalorder %v4092_v1, %v7842_v32  ;;  %v4533_v23 = vmul.f32 %v4469_v55, %v3644_v36  ;;  %v4373_v62 = vsel %vm4292_vm14, %v7835_v21, 0.0 }
 0x342   :  { %3967 = vmatmul.f32.gmra.mxu1 %v4849_v26  ;;  %4052 = vmatmul.f32.gmra.mxu3 %v4851_v24  ;;  %v4277_v26 = vsel %vm4196_vm6, %v7845_v7, 0.0  ;;  %v3693_v20 = vpop.f32.mrf.mxu2  ;;  %vm4317_vm8 = vcmp.eq.s32.totalorder %v4092_v1, %v7848_v2  ;;  %v3729_v58 = vadd.f32 %v7822_v47, %v7820_v14  ;;  %v4478_v13 = vadd.f32 %v4414_v27, %v4261_v17 }
 0x343   :  { %v3734_v19 = vpop.f32.mrf.mxu3  ;;  %v4494_v48 = vadd.f32 %v4430_v41, %v4277_v26  ;;  %4617 = vmatpush.msra.mxu2 %v4549_v29  ;;  %v3635_v31 = vadd.f32 %v7621_v22, %v7619_v51  ;;  %v4525_v16 = vmul.f32 %v4461_v57, %v3641_v9  ;;  %v4253_v40 = vsel %vm4172_vm4, %v7845_v7, 0.0 }
 0x344   :  { %v3735_v60 = vadd.f32 %v3734_v19, %v3693_v20  ;;  %v3754_v50 = vpop.f32.mrf.mxu0  ;;  %v3795_v52 = vpop.f32.mrf.mxu1  ;;  %v4406_v59 = vsel %vm4325_vm5, %v7851_v8, 0.0  ;;  %v4445_v21 = vadd.f32 %v7863_v4, %v7856_v45  ;;  %vm4156_vm9 = vcmp.eq.s32.totalorder %v4084_v5, %v7842_v32  ;;  %v4068_v4 = vld [vmem:[#allocation12 + $0x18] sm:$0xff] }
 0x345   :  { %v7931_v56 = vadd.f32 %v3795_v52, %v3754_v50  ;;  %4618 = vmatpush.msra.mxu2 %v4541_v15  ;;  %vm4309_vm10 = vcmp.eq.s32.totalorder %v4084_v5, %v7848_v2  ;;  %v4550_v51 = vmul.f32 %v4486_v49, %v3732_v6  ;;  %v4517_v22 = vmul.f32 %v4453_v3, %v3638_v34  ;;  %v4856_v15 = vld [vmem:[#allocation9 + $0x70] sm:$0xff] }
 0x346   :  { %4014 = vmatmul.f32.gmra.mxu2 %v4852_v10  ;;  %v4558_v12 = vmul.f32 %v4494_v48, %v3735_v60  ;;  %v4076_v10 = vld [vmem:[#allocation12 + $0x58] sm:$0xff]  ;;  %v4245_v14 = vsel %vm4164_vm7, %v7845_v7, 0.0  ;;  %v4398_v47 = vsel %vm4317_vm8, %v7851_v8, 0.0  ;;  %v3726_v36 = vadd.f32 %v7788_v38, %v7786_v44  ;;  %v8556_v52 = vld [vmem:[#allocation31_spill] sm:$0xff] }
 0x347   :  { %4619 = vmatpush.msra.mxu2 %v4533_v23  ;;  %vm4148_vm12 = vcmp.eq.s32.totalorder %v4076_v10, %v7842_v32  ;;  %v4470_v25 = vadd.f32 %v4406_v59, %v4253_v40  ;;  %v4542_v29 = vmul.f32 %v4478_v13, %v3729_v58  ;;  %v4437_v41 = vadd.f32 %v4373_v62, %v7839_v11 }
 0x348   :  { %4636 = vmatpush.msra.mxu3 %v4558_v12  ;;  %vm4301_vm13 = vcmp.eq.s32.totalorder %v4076_v10, %v7848_v2  ;;  %v4237_v55 = vsel %vm4156_vm9, %v7845_v7, 0.0  ;;  %v4390_v61 = vsel %vm4309_vm10, %v7851_v8, 0.0  ;;  %v3723_v38 = vadd.f32 %v7738_v46, %v7736_v43  ;;  %v4855_v43 = vld [vmem:[#allocation9 + $0x68] sm:$0xff] }
 0x349   :  { %3935 = vmatmul.f32.gmra.mxu0 %v4854_v39  ;;  %4620 = vmatpush.msra.mxu2 %v4525_v16  ;;  %v4462_v20 = vadd.f32 %v4398_v47, %v4245_v14  ;;  %vm4140_vm14 = vcmp.eq.s32.totalorder %v4068_v4, %v7842_v32  ;;  %vm4293_vm0 = vcmp.eq.s32.totalorder %v4068_v4, %v7848_v2  ;;  %v4229_v19 = vsel %vm4148_vm12, %v7845_v7, 0.0  ;;  %v4077_v14 = vld [vmem:[#allocation12 + $0x60] sm:$0xff] }
 0x34a   :  { %3970 = vmatmul.f32.gmra.mxu1 %v4851_v24  ;;  %4055 = vmatmul.f32.gmra.mxu3 %v4853_v30  ;;  %v3836_v24 = vpop.f32.mrf.mxu2  ;;  %v4509_v11 = vmul.f32 %v4445_v21, %v3635_v31  ;;  %v4382_v48 = vsel %vm4301_vm13, %v7851_v8, 0.0  ;;  %v3720_v9 = vadd.f32 %v7689_v37, %v7687_v0  ;;  %v4454_v57 = vadd.f32 %v4390_v61, %v4237_v55  ;;  %v4069_v21 = vld [vmem:[#allocation12 + $0x20] sm:$0xff] }
 0x34b   :  { %v3877_v45 = vpop.f32.mrf.mxu3  ;;  %4637 = vmatpush.msra.mxu3 %v4550_v51  ;;  %4621 = vmatpush.msra.mxu2 %v4517_v22  ;;  %v4534_v1 = vmul.f32 %v4470_v25, %v3726_v36  ;;  %v4501_v46 = vmul.f32 %v4437_v41, %v7832_v33  ;;  %v4221_v2 = vsel %vm4140_vm14, %v7845_v7, 0.0  ;;  %v4374_v32 = vsel %vm4293_vm0, %v7851_v8, 0.0  ;;  %v8555_v33 = vld [vmem:[#allocation30_spill] sm:$0xff]  ;;  %v4085_v47 = vld [vmem:[#allocation12 + $0xa0] sm:$0xff] }
 0x34c   :  { %v7964_v26 = vadd.f32 %v3877_v45, %v3836_v24  ;;  %v7974_v63 = vpop.f32.mrf.mxu0  ;;  %v7976_v44 = vpop.f32.mrf.mxu1  ;;  %v4526_v60 = vmul.f32 %v4462_v20, %v3723_v38  ;;  %v3717_v17 = vadd.f32 %v7651_v54, %v7649_v35  ;;  %v4446_v0 = vadd.f32 %v4382_v48, %v4229_v19  ;;  %v4857_v35 = vld [vmem:[#allocation9 + $0x78] sm:$0xff]  ;;  %v4093_v24 = vld [vmem:[#allocation12 + $0xe0] sm:$0xff] }
 0x34d   :  { %4638 = vmatpush.msra.mxu3 %v4542_v29  ;;  %4622 = vmatpush.msra.mxu2 %v4509_v11  ;;  %v4518_v50 = vmul.f32 %v4454_v57, %v3720_v9  ;;  %v3714_v6 = vadd.f32 %v8556_v52, %v8555_v33  ;;  %v4438_v49 = vadd.f32 %v4374_v32, %v4221_v2  ;;  %v8024_v16 = vperm.slane %v8549_v18, 4  ;;  %v4125_v25 = vld [vmem:[#allocation12 + $0x1e0] sm:$0xff]  ;;  %v8083_v32 = vld [vmem:[#allocation12 + $0xe8] sm:$0xff] }
 0x34e   :  { %4017 = vmatmul.f32.gmra.mxu2 %v4854_v39  ;;  %v4510_v12 = vmul.f32 %v4446_v0, %v3717_v17  ;;  %v8027_v40 = vperm.slane %v8553_v42, 4  ;;  %v8034_v51 = vperm.slane %v8552_v53, 4  ;;  %v8037_v22 = vperm.slane %v8554_v28, 4  ;;  %v4117_v61 = vld [vmem:[#allocation12 + $0x1a0] sm:$0xff]  ;;  %v8088_v17 = vld [vmem:[#allocation12 + $0xa8] sm:$0xff] }
 0x34f   :  { %4639 = vmatpush.msra.mxu3 %v4534_v1  ;;  %4623 = vmatpush.msra.mxu2 %v4501_v46  ;;  %v4502_v54 = vmul.f32 %v4438_v49, %v3714_v6  ;;  %vm4141_vm1 = vcmp.eq.s32.totalorder %v4069_v21, %v8024_v16  ;;  %v8042_v45 = vperm.slane %v8549_v18, 5  ;;  %vm4149_vm15 = vcmp.eq.s32.totalorder %v4077_v14, %v8024_v16  ;;  %v4109_v20 = vld [vmem:[#allocation12 + $0x160] sm:$0xff]  ;;  %v4126_v33 = vld [vmem:[#allocation12 + $0x1e8] sm:$0xff] }
 0x350   :  { %vm4294_vm3 = vcmp.eq.s32.totalorder %v4069_v21, %v8027_v40  ;;  %vm4302_vm6 = vcmp.eq.s32.totalorder %v4077_v14, %v8027_v40  ;;  %v8051_v29 = vsel %vm4141_vm1, %v8034_v51, 0.0  ;;  %v8057_v55 = vperm.slane %v8552_v53, 5  ;;  %v4102_v52 = vld [vmem:[#allocation12 + $0x128] sm:$0xff] }
 0x351   :  { %3938 = vmatmul.f32.gmra.mxu0 %v4856_v15  ;;  %4640 = vmatpush.msra.mxu3 %v4526_v60  ;;  %v8054_v41 = vsel %vm4294_vm3, %v8037_v22, 0.0  ;;  %vm4157_vm11 = vcmp.eq.s32.totalorder %v4085_v47, %v8024_v16  ;;  %v8061_v38 = vperm.slane %v8553_v42, 5  ;;  %vm4310_vm2 = vcmp.eq.s32.totalorder %v4085_v47, %v8027_v40  ;;  %v4118_v47 = vld [vmem:[#allocation12 + $0x1a8] sm:$0xff] }
 0x352   :  { %3973 = vmatmul.f32.gmra.mxu1 %v4853_v30  ;;  %4058 = vmatmul.f32.gmra.mxu3 %v4855_v43  ;;  %v7993_v37 = vpop.f32.mrf.mxu2  ;;  %vm4165_vm4 = vcmp.eq.s32.totalorder %v4093_v24, %v8024_v16  ;;  %vm4318_vm5 = vcmp.eq.s32.totalorder %v4093_v24, %v8027_v40  ;;  %v4230_v48 = vsel %vm4149_vm15, %v8034_v51, 0.0  ;;  %v4383_v9 = vsel %vm4302_vm6, %v8037_v22, 0.0 }
 0x353   :  { %v7995_v27 = vpop.f32.mrf.mxu3  ;;  %4641 = vmatpush.msra.mxu3 %v4518_v50  ;;  %vm4197_vm7 = vcmp.eq.s32.totalorder %v4125_v25, %v8024_v16  ;;  %vm4350_vm8 = vcmp.eq.s32.totalorder %v4125_v25, %v8027_v40  ;;  %v8075_v57 = vperm.slane %v8554_v28, 5  ;;  %v4238_v1 = vsel %vm4157_vm11, %v8034_v51, 0.0 }
 0x354   :  { %v7999_v7 = vpop.f32.mrf.mxu0  ;;  %v8001_v8 = vpop.f32.mrf.mxu1  ;;  %vm4189_vm9 = vcmp.eq.s32.totalorder %v4117_v61, %v8024_v16  ;;  %vm4342_vm10 = vcmp.eq.s32.totalorder %v4117_v61, %v8027_v40  ;;  %v4391_v46 = vsel %vm4310_vm2, %v8037_v22, 0.0  ;;  %v4399_v2 = vsel %vm4318_vm5, %v8037_v22, 0.0  ;;  %v8115_v61 = vld [vmem:[#allocation12 + $0x68] sm:$0xff] }
 0x355   :  { %4642 = vmatpush.msra.mxu3 %v4510_v12  ;;  %vm4181_vm12 = vcmp.eq.s32.totalorder %v4109_v20, %v8024_v16  ;;  %v8086_v60 = vadd.f32 %v4383_v9, %v4230_v48  ;;  %vm4334_vm13 = vcmp.eq.s32.totalorder %v4109_v20, %v8027_v40  ;;  %v4278_v0 = vsel %vm4197_vm7, %v8034_v51, 0.0 }
 0x356   :  { %4020 = vmatmul.f32.gmra.mxu2 %v4856_v15  ;;  %v4246_v15 = vsel %vm4165_vm4, %v8034_v51, 0.0  ;;  %v4431_v50 = vsel %vm4350_vm8, %v8037_v22, 0.0  ;;  %v4270_v6 = vsel %vm4189_vm9, %v8034_v51, 0.0  ;;  %v4423_v49 = vsel %vm4342_vm10, %v8037_v22, 0.0 }
 0x357   :  { %4643 = vmatpush.msra.mxu3 %v4502_v54  ;;  %v8101_v12 = vadd.f32 %v4391_v46, %v4238_v1  ;;  %vm4166_vm1 = vcmp.eq.s32.totalorder %v8083_v32, %v8042_v45  ;;  %v4262_v54 = vsel %vm4181_vm12, %v8034_v51, 0.0  ;;  %vm4158_vm3 = vcmp.eq.s32.totalorder %v8088_v17, %v8042_v45  ;;  %v4110_v1 = vld [vmem:[#allocation12 + $0x168] sm:$0xff] }
 0x358   :  { %v4415_v24 = vsel %vm4334_vm13, %v8037_v22, 0.0  ;;  %v4495_v25 = vadd.f32 %v4431_v50, %v4278_v0  ;;  %vm4198_vm15 = vcmp.eq.s32.totalorder %v4126_v33, %v8042_v45  ;;  %vm4351_vm6 = vcmp.eq.s32.totalorder %v4126_v33, %v8061_v38 }
 0x359   :  { %vm4174_vm11 = vcmp.eq.s32.totalorder %v4102_v52, %v8042_v45  ;;  %v4487_v20 = vadd.f32 %v4423_v49, %v4270_v6  ;;  %vm4190_vm2 = vcmp.eq.s32.totalorder %v4118_v47, %v8042_v45  ;;  %vm4343_vm4 = vcmp.eq.s32.totalorder %v4118_v47, %v8061_v38 }
 0x35a   :  { %3976 = vmatmul.f32.gmra.mxu1 %v4855_v43  ;;  %4061 = vmatmul.f32.gmra.mxu3 %v4857_v35  ;;  %v8003_v34 = vpop.f32.mrf.mxu2  ;;  %v4101_v43 = vld [vmem:[#allocation12 + $0x120] sm:$0xff]  ;;  %vm4327_vm5 = vcmp.eq.s32.totalorder %v4102_v52, %v8061_v38  ;;  %vm4150_vm7 = vcmp.eq.s32.totalorder %v8115_v61, %v8042_v45  ;;  %vm4182_vm8 = vcmp.eq.s32.totalorder %v4110_v1, %v8042_v45  ;;  %v4424_v50 = vsel %vm4343_vm4, %v8075_v57, 0.0  ;;  %v4070_v52 = vld [vmem:[#allocation12 + $0x28] sm:$0xff] }
 0x35b   :  { %v8005_v3 = vpop.f32.mrf.mxu3  ;;  %vm4173_vm14 = vcmp.eq.s32.totalorder %v4101_v43, %v8024_v16  ;;  %vm4326_vm0 = vcmp.eq.s32.totalorder %v4101_v43, %v8027_v40  ;;  %v4479_v16 = vadd.f32 %v4415_v24, %v4262_v54  ;;  %v4279_v40 = vsel %vm4198_vm15, %v8057_v55, 0.0 }
 0x35c   :  { %v8007_v5 = vpop.f32.mrf.mxu0  ;;  %v8009_v23 = vpop.f32.mrf.mxu1  ;;  %v4254_v48 = vsel %vm4173_vm14, %v8034_v51, 0.0  ;;  %v4407_v9 = vsel %vm4326_vm0, %v8037_v22, 0.0  ;;  %v4432_v51 = vsel %vm4351_vm6, %v8075_v57, 0.0  ;;  %vm4335_vm9 = vcmp.eq.s32.totalorder %v4110_v1, %v8061_v38 }
 0x35d   :  { %vm4319_vm10 = vcmp.eq.s32.totalorder %v8083_v32, %v8061_v38  ;;  %v4271_v43 = vsel %vm4190_vm2, %v8057_v55, 0.0  ;;  %v4496_v6 = vadd.f32 %v4432_v51, %v4279_v40  ;;  %v3805_v49 = vadd.f32 %v8009_v23, %v8007_v5 }
 0x35e   :  { %v4408_v54 = vsel %vm4327_vm5, %v8075_v57, 0.0  ;;  %v4263_v47 = vsel %vm4182_vm8, %v8057_v55, 0.0  ;;  %v4416_v24 = vsel %vm4335_vm9, %v8075_v57, 0.0  ;;  %vm4311_vm12 = vcmp.eq.s32.totalorder %v8088_v17, %v8061_v38 }
 0x35f   :  { %v4247_v5 = vsel %vm4166_vm1, %v8057_v55, 0.0  ;;  %v4400_v23 = vsel %vm4319_vm10, %v8075_v57, 0.0  ;;  %vm4303_vm13 = vcmp.eq.s32.totalorder %v8115_v61, %v8061_v38  ;;  %v4239_v32 = vsel %vm4158_vm3, %v8057_v55, 0.0 }
 0x360   :  { %vm4142_vm14 = vcmp.eq.s32.totalorder %v4070_v52, %v8042_v45  ;;  %vm4295_vm0 = vcmp.eq.s32.totalorder %v4070_v52, %v8061_v38  ;;  %v3881_v51 = vadd.f32 %v7995_v27, %v7993_v37  ;;  %vm4564_vm3 = vcmask 523264  }
 0x361   :  { %v4223_v40 = vsel %vm4142_vm14, %v8057_v55, 0.0  ;;  %v4376_v61 = vsel %vm4295_vm0, %v8075_v57, 0.0 }
 0x362   :  { %3979 = vmatmul.f32.gmra.mxu1 %v4857_v35  ;;  %v8011_v62 = vpop.f32.mrf.mxu2  ;;  %v8103_v35 = vadd.f32 %v4399_v2, %v4246_v15 }
 0x363   :  { %v8013_v10 = vpop.f32.mrf.mxu3 }
 0x364   :  { %v8015_v30 = vpop.f32.mrf.mxu0  ;;  %v8017_v58 = vpop.f32.mrf.mxu1 }
 0x365   :  { %v3808_v33 = vadd.f32 %v8017_v58, %v8015_v30 }
 0x36a   :  { %v8019_v13 = vpop.f32.mrf.mxu2 }
 0x36b   :  { %v8021_v31 = vpop.f32.mrf.mxu3 }
 0x36c   :  { %v8029_v59 = vpop.f32.mrf.mxu0  ;;  %v8031_v39 = vpop.f32.mrf.mxu1 }
 0x36d   :  { %v3811_v22 = vadd.f32 %v8031_v39, %v8029_v59  ;;  %v4255_v59 = vsel %vm4174_vm11, %v8057_v55, 0.0 }
 0x36f   :  { %v4543_v58 = vmul.f32 %v4479_v16, %v3811_v22  ;;  %v3887_v16 = vadd.f32 %v8013_v10, %v8011_v62 }
 0x372   :  { %v8046_v4 = vpop.f32.mrf.mxu2 }
 0x373   :  { %v8048_v36 = vpop.f32.mrf.mxu3 }
 0x374   :  { %v3772_v11 = vpop.f32.mrf.mxu0  ;;  %v3813_v19 = vpop.f32.mrf.mxu1 }
 0x375   :  { %v3814_v2 = vadd.f32 %v3813_v19, %v3772_v11  ;;  %v4471_v19 = vadd.f32 %v4407_v9, %v4254_v48  ;;  %v4488_v9 = vadd.f32 %v4424_v50, %v4271_v43 }
 0x377   :  { %v4551_v39 = vmul.f32 %v4487_v20, %v3814_v2  ;;  %v3802_v20 = vadd.f32 %v8001_v8, %v7999_v7  ;;  %v3799_v8 = vadd.f32 %v7976_v44, %v7974_v63  ;;  %v4392_v2 = vsel %vm4311_vm12, %v8075_v57, 0.0 }
 0x378   :  { %v4439_v63 = vadd.f32 %v8054_v41, %v8051_v29  ;;  %v4464_v44 = vadd.f32 %v4400_v23, %v4247_v5  ;;  %v4456_v29 = vadd.f32 %v4392_v2, %v4239_v32  ;;  %v4072_v5 = vld [vmem:[#allocation12 + $0x38] sm:$0xff]  ;;  %v8253_v23 = vperm.slane %v8553_v42, 7 }
 0x379   :  { %v4519_v17 = vmul.f32 %v8101_v12, %v3802_v20  ;;  %v4511_v41 = vmul.f32 %v8086_v60, %v3799_v8  ;;  %v3884_v12 = vadd.f32 %v8005_v3, %v8003_v34  ;;  %v4440_v34 = vadd.f32 %v4376_v61, %v4223_v40  ;;  %v4120_v40 = vld [vmem:[#allocation12 + $0x1b8] sm:$0xff]  ;;  %v4127_v61 = vld [vmem:[#allocation12 + $0x1f0] sm:$0xff] }
 0x37a   :  { %v3854_v21 = vpop.f32.mrf.mxu2  ;;  %v4503_v10 = vmul.f32 %v4439_v63, %v7931_v56  ;;  %v4528_v22 = vmul.f32 %v4464_v44, %v3887_v16  ;;  %v8250_v20 = vperm.slane %v8549_v18, 7  ;;  %v8261_v8 = vperm.slane %v8552_v53, 7  ;;  %v8299_v63 = vld [vmem:[#allocation12 + $0xf0] sm:$0xff]  ;;  %v4128_v16 = vld [vmem:[#allocation12 + $0x1f8] sm:$0xff] }
 0x37b   :  { %v3895_v14 = vpop.f32.mrf.mxu3  ;;  %v4520_v3 = vmul.f32 %v4456_v29, %v3884_v12  ;;  %v4504_v45 = vmul.f32 %v4440_v34, %v7964_v26  ;;  %v8264_v32 = vperm.slane %v8554_v28, 7  ;;  %vm4297_vm15 = vcmp.eq.s32.totalorder %v4072_v5, %v8253_v23  ;;  %v8302_v44 = vld [vmem:[#allocation12 + $0x130] sm:$0xff] }
 0x37c   :  { %v3775_v46 = vpop.f32.mrf.mxu0  ;;  %v3816_v15 = vpop.f32.mrf.mxu1  ;;  %v3896_v48 = vadd.f32 %v3895_v14, %v3854_v21  ;;  %v4535_v21 = vmul.f32 %v4471_v19, %v3808_v33  ;;  %v3893_v14 = vadd.f32 %v8048_v36, %v8046_v4  ;;  %v3890_v4 = vadd.f32 %v8021_v31, %v8019_v13  ;;  %v8326_v29 = vld [vmem:[#allocation12 + $0xb0] sm:$0xff] }
 0x37d   :  { %v3817_v0 = vadd.f32 %v3816_v15, %v3775_v46  ;;  %v4480_v46 = vadd.f32 %v4416_v24, %v4263_v47  ;;  %v4472_v15 = vadd.f32 %v4408_v54, %v4255_v59  ;;  %v4231_v13 = vsel %vm4150_vm7, %v8057_v55, 0.0  ;;  %v4111_v34 = vld [vmem:[#allocation12 + $0x170] sm:$0xff] }
 0x37e   :  { %v4552_v36 = vmul.f32 %v4488_v9, %v3896_v48  ;;  %v4384_v31 = vsel %vm4303_vm13, %v8075_v57, 0.0  ;;  %vm4144_vm1 = vcmp.eq.s32.totalorder %v4072_v5, %v8250_v20  ;;  %v8279_v2 = vperm.slane %v8549_v18, 6 }
 0x37f   :  { %v4559_v11 = vmul.f32 %v4495_v25, %v3817_v0  ;;  %v4527_v0 = vmul.f32 %v8103_v35, %v3805_v49  ;;  %v4544_v35 = vmul.f32 %v4480_v46, %v3893_v14  ;;  %v4536_v62 = vmul.f32 %v4472_v15, %v3890_v4  ;;  %v4088_v14 = vld [vmem:[#allocation12 + $0xb8] sm:$0xff] }
 0x380   :  { %v4448_v60 = vadd.f32 %v4384_v31, %v4231_v13  ;;  %v4096_v46 = vld [vmem:[#allocation12 + $0xf8] sm:$0xff]  ;;  %vm4160_vm2 = vcmp.eq.s32.totalorder %v4088_v14, %v8250_v20  ;;  %vm4313_vm4 = vcmp.eq.s32.totalorder %v4088_v14, %v8253_v23  ;;  %v8291_v4 = vperm.slane %v8552_v53, 6 }
 0x381   :  { %4656 = vmatpush.msrb.mxu0 %v4559_v11  ;;  %v8269_v15 = vld [vmem:[%s8521_s6] sm:$0xf]  ;;  %vm4168_vm5 = vcmp.eq.s32.totalorder %v4096_v46, %v8250_v20  ;;  %v8294_v18 = vperm.slane %v8553_v42, 6  ;;  %vm4321_vm7 = vcmp.eq.s32.totalorder %v4096_v46, %v8253_v23  ;;  %v8309_v53 = vsel %vm4144_vm1, %v8261_v8, 0.0  ;;  %s5025_s6 = smov [#allocation14]  }
 0x382   :  { %v3857_v25 = vpop.f32.mrf.mxu2  ;;  %v4512_v56 = vmul.f32 %v4448_v60, %v3881_v51  ;;  %8561 = vst [vmem:[#allocation25_spill] sm:$0xff] %v8269_v15  ;;  %4787 = vmatmul.msk.f32.vlgmr.msra.gmra.mxu3 %vm4564_vm3, %v8269_v15  ;;  %4786 = vmatmul.msk.f32.vlgmr.msra.gmra.mxu2 %vm4564_vm3, %v8269_v15  ;;  %v8314_v42 = vsel %vm4297_vm15, %v8264_v32, 0.0  ;;  %v4104_v13 = vld [vmem:[#allocation12 + $0x138] sm:$0xff]  ;;  %v8336_v12 = vsel %vm4313_vm4, %v8264_v32, 0.0  ;;  %v8350_v51 = vsel %vm4321_vm7, %v8264_v32, 0.0  ;;  %v4119_v60 = vld [vmem:[#allocation12 + $0x1b0] sm:$0xff] }
 0x383   :  { %v3898_v30 = vpop.f32.mrf.mxu3  ;;  %4657 = vmatpush.msrb.mxu0 %v4551_v39  ;;  %4785 = vmatmul.msk.f32.vlgmr.msra.gmra.mxu1 %vm4564_vm3, %v8269_v15  ;;  %8562 = vst [vmem:[#allocation26_spill] sm:$0xff] %v8314_v42  ;;  %v4112_v31 = vld [vmem:[#allocation12 + $0x178] sm:$0xff]  ;;  %vm4200_vm12 = vcmp.eq.s32.totalorder %v4128_v16, %v8250_v20  ;;  %vm4353_vm13 = vcmp.eq.s32.totalorder %v4128_v16, %v8253_v23  ;;  %s4758_s12 = sshll.u32 %s5025_s6, 4  ;;  %s4759_s12 = int_to_ptr.vmem [resolvable:$true] %s4758_s12 }
 0x384   :  { %v3899_v1 = vadd.f32 %v3898_v30, %v3857_v25  ;;  %4784 = vmatmul.msk.f32.vlgmr.msra.gmra.mxu0 %vm4564_vm3, %v8269_v15  ;;  %vm4176_vm0 = vcmp.eq.s32.totalorder %v4104_v13, %v8250_v20  ;;  %vm4184_vm1 = vcmp.eq.s32.totalorder %v4112_v31, %v8250_v20  ;;  %vm4337_vm15 = vcmp.eq.s32.totalorder %v4112_v31, %v8253_v23 }
 0x385   :  { %4658 = vmatpush.msrb.mxu0 %v4543_v58  ;;  %vm4199_vm4 = vcmp.eq.s32.totalorder %v4127_v61, %v8279_v2  ;;  %vm4191_vm9 = vcmp.eq.s32.totalorder %v4119_v60, %v8279_v2  ;;  %vm4344_vm8 = vcmp.eq.s32.totalorder %v4119_v60, %v8294_v18  ;;  %vm4329_vm14 = vcmp.eq.s32.totalorder %v4104_v13, %v8253_v23 }
 0x386   :  { %v4560_v7 = vmul.f32 %v4496_v6, %v3899_v1  ;;  %vm4183_vm10 = vcmp.eq.s32.totalorder %v4111_v34, %v8279_v2  ;;  %vm4336_vm7 = vcmp.eq.s32.totalorder %v4111_v34, %v8294_v18  ;;  %v4280_v5 = vsel %vm4199_vm4, %v8291_v4, 0.0 }
 0x387   :  { %4659 = vmatpush.msrb.mxu0 %v4535_v21  ;;  %v4080_v21 = vld [vmem:[#allocation12 + $0x78] sm:$0xff]  ;;  %v4418_v46 = vsel %vm4337_vm15, %v8264_v32, 0.0  ;;  %v4272_v16 = vsel %vm4191_vm9, %v8291_v4, 0.0  ;;  %v4264_v31 = vsel %vm4183_vm10, %v8291_v4, 0.0  ;;  %vm8563_vm10 = vcmp.eq.s32.totalorder %v8302_v44, %v8279_v2 }
 0x388   :  { %4676 = vmatpush.msrb.mxu1 %v4560_v7  ;;  %vm4152_vm6 = vcmp.eq.s32.totalorder %v4080_v21, %v8250_v20  ;;  %vm4305_vm11 = vcmp.eq.s32.totalorder %v4080_v21, %v8253_v23  ;;  %v4256_v13 = vsel %vm8563_vm10, %v8291_v4, 0.0  ;;  %vm8568_vm15 = vcmp.eq.s32.totalorder %v8326_v29, %v8294_v18 }
 0x389   :  { %4660 = vmatpush.msrb.mxu0 %v4527_v0 }
 0x38a   :  { %4677 = vmatpush.msrb.mxu1 %v4552_v36  ;;  %v8297_v36 = vperm.slane %v8554_v28, 6  ;;  %v8319_v28 = vsel %vm4152_vm6, %v8261_v8, 0.0 }
 0x38b   :  { %4661 = vmatpush.msrb.mxu0 %v4519_v17 }
 0x38c   :  { %4678 = vmatpush.msrb.mxu1 %v4544_v35  ;;  %v8324_v35 = vsel %vm4305_vm11, %v8264_v32, 0.0  ;;  %vm4192_vm11 = vcmp.eq.s32.totalorder %v4120_v40, %v8250_v20 }
 0x38d   :  { %4662 = vmatpush.msrb.mxu0 %v4511_v41  ;;  %v8331_v41 = vsel %vm4160_vm2, %v8261_v8, 0.0  ;;  %vm4345_vm2 = vcmp.eq.s32.totalorder %v4120_v40, %v8253_v23  ;;  %v4425_v40 = vsel %vm4344_vm8, %v8297_v36, 0.0 }
 0x38e   :  { %4679 = vmatpush.msrb.mxu1 %v4536_v62  ;;  %v8341_v62 = vsel %vm4168_vm5, %v8261_v8, 0.0  ;;  %vm4352_vm5 = vcmp.eq.s32.totalorder %v4127_v61, %v8294_v18  ;;  %v4410_v61 = vsel %vm4329_vm14, %v8264_v32, 0.0  ;;  %vm8565_vm14 = vcmp.eq.s32.totalorder %v8299_v63, %v8279_v2 }
 0x38f   :  { %4663 = vmatpush.msrb.mxu0 %v4503_v10  ;;  %v4433_v21 = vsel %vm4352_vm5, %v8297_v36, 0.0 }
 0x390   :  { %4680 = vmatpush.msrb.mxu1 %v4528_v22  ;;  %v8356_v22 = vld [vmem:[#allocation12 + $0x70] sm:$0xff]  ;;  %4788 = vmatmul.msk.f32.vlgmr.msrb.gmra.mxu0 %vm4564_vm3, %v8269_v15 }
 0x391   :  { %vm4151_vm6 = vcmp.eq.s32.totalorder %v8356_v22, %v8279_v2 }
 0x392   :  { %4681 = vmatpush.msrb.mxu1 %v4520_v3 }
 0x394   :  { %4682 = vmatpush.msrb.mxu1 %v4512_v56  ;;  %v3918_v55 = vpop.f32.mrf.mxu0  ;;  %v4281_v56 = vsel %vm4200_vm12, %v8261_v8, 0.0  ;;  %vm4304_vm12 = vcmp.eq.s32.totalorder %v8356_v22, %v8294_v18 }
 0x396   :  { %4683 = vmatpush.msrb.mxu1 %v4504_v45  ;;  %v4434_v45 = vsel %vm4353_vm13, %v8264_v32, 0.0  ;;  %vm8564_vm13 = vcmp.eq.s32.totalorder %v8302_v44, %v8294_v18 }
 0x397   :  { %4789 = vmatmul.msk.f32.vlgmr.msrb.gmra.mxu1 %vm4564_vm3, %v8269_v15  ;;  %v4498_v15 = vadd.f32 %v4434_v45, %v4281_v56  ;;  %v4409_v34 = vsel %vm8564_vm13, %v8297_v36, 0.0  ;;  %v4489_v45 = vadd.f32 %v4425_v40, %v4272_v16 }
 0x39e   :  { %v8209_v38 = vpop.f32.mrf.mxu0 }
 0x39f   :  { %8557 = vst [vmem:[#allocation29_spill] sm:$0xff] %v8209_v38 }
 0x3a1   :  { %v4000_v57 = vpop.f32.mrf.mxu2 }
 0x3a5   :  { %v4041_v11 = vpop.f32.mrf.mxu3 }
 0x3a6   :  { %v8211_v37 = vadd.f32 %v4041_v11, %v4000_v57  ;;  %v8217_v50 = vpop.f32.mrf.mxu0  ;;  %v8391_v57 = vld [vmem:[#allocation12 + $0x30] sm:$0xff]  ;;  %v4273_v11 = vsel %vm4192_vm11, %v8261_v8, 0.0 }
 0x3a7   :  { %v3959_v27 = vpop.f32.mrf.mxu1  ;;  %vm4143_vm8 = vcmp.eq.s32.totalorder %v8391_v57, %v8279_v2  ;;  %vm4296_vm9 = vcmp.eq.s32.totalorder %v8391_v57, %v8294_v18  ;;  %v8574_v57 = vld [vmem:[#allocation25_spill] sm:$0xff] }
 0x3a8   :  { %8558 = vst [vmem:[#allocation27_spill] sm:$0xff] %v8211_v37  ;;  %v8213_v19 = vadd.f32 %v3959_v27, %v3918_v55  ;;  %v4265_v55 = vsel %vm4184_vm1, %v8261_v8, 0.0  ;;  %v4426_v27 = vsel %vm4345_vm2, %v8264_v32, 0.0  ;;  %v4417_v37 = vsel %vm4336_vm7, %v8297_v36, 0.0 }
 0x3a9   :  { %v8215_v43 = vpop.f32.mrf.mxu2  ;;  %v4490_v23 = vadd.f32 %v4426_v27, %v4273_v11  ;;  %v4482_v56 = vadd.f32 %v4418_v46, %v4265_v55  ;;  %v4248_v27 = vsel %vm8565_vm14, %v8291_v4, 0.0  ;;  %vm8567_vm1 = vcmp.eq.s32.totalorder %v8326_v29, %v8279_v2 }
 0x3aa   :  { %8559 = vst [vmem:[#allocation28_spill] sm:$0xff] %v8213_v19  ;;  %v4257_v19 = vsel %vm4176_vm0, %v8261_v8, 0.0  ;;  %v4497_v8 = vadd.f32 %v4433_v21, %v4280_v5  ;;  %vm8566_vm0 = vcmp.eq.s32.totalorder %v8299_v63, %v8294_v18  ;;  %v4481_v5 = vadd.f32 %v4417_v37, %v4264_v31 }
 0x3ab   :  { %v4401_v44 = vsel %vm8566_vm0, %v8297_v36, 0.0  ;;  %v4474_v55 = vadd.f32 %v4410_v61, %v4257_v19  ;;  %v4466_v37 = vadd.f32 %v8350_v51, %v8341_v62  ;;  %v4473_v19 = vadd.f32 %v4409_v34, %v4256_v13 }
 0x3ac   :  { %v4458_v63 = vadd.f32 %v8336_v12, %v8331_v41 }
 0x3ad   :  { %v8219_v33 = vpop.f32.mrf.mxu3 }
 0x3ae   :  { %v8227_v6 = vpop.f32.mrf.mxu0  ;;  %v4045_v62 = vadd.f32 %v8219_v33, %v8215_v43  ;;  %v4377_v43 = vsel %vm4296_vm9, %v8297_v36, 0.0  ;;  %v8569_v33 = vld [vmem:[#allocation26_spill] sm:$0xff] }
 0x3af   :  { %v8221_v59 = vpop.f32.mrf.mxu1 }
 0x3b0   :  { %8560 = vst [vmem:[#allocation22_spill] sm:$0xff] %v8221_v59 }
 0x3b1   :  { %v8223_v26 = vpop.f32.mrf.mxu2 }
 0x3b5   :  { %v8225_v39 = vpop.f32.mrf.mxu3 }
 0x3b6   :  { %v8237_v25 = vpop.f32.mrf.mxu0 }
 0x3b7   :  { %v8229_v49 = vpop.f32.mrf.mxu1 }
 0x3b8   :  { %v3966_v41 = vadd.f32 %v8229_v49, %v8217_v50  ;;  %v8571_v50 = vld [vmem:[#allocation22_spill] sm:$0xff] }
 0x3b9   :  { %v8231_v54 = vpop.f32.mrf.mxu2 }
 0x3bd   :  { %v8233_v47 = vpop.f32.mrf.mxu3 }
 0x3be   :  { %v8245_v9 = vpop.f32.mrf.mxu0 }
 0x3bf   :  { %v8235_v24 = vpop.f32.mrf.mxu1 }
 0x3c1   :  { %v8239_v30 = vpop.f32.mrf.mxu2 }
 0x3c5   :  { %v8241_v58 = vpop.f32.mrf.mxu3 }
 0x3c6   :  { %v8304_v17 = vpop.f32.mrf.mxu0  ;;  %v4054_v21 = vadd.f32 %v8241_v58, %v8239_v30  ;;  %v4393_v30 = vsel %vm8568_vm15, %v8297_v36, 0.0 }
 0x3c7   :  { %v8243_v48 = vpop.f32.mrf.mxu1 }
 0x3c8   :  { %v3972_v58 = vadd.f32 %v8243_v48, %v8237_v25  ;;  %v4385_v25 = vsel %vm4304_vm12, %v8297_v36, 0.0  ;;  %v3969_v48 = vadd.f32 %v8235_v24, %v8227_v6  ;;  %v4224_v6 = vsel %vm4143_vm8, %v8291_v4, 0.0  ;;  %v8573_v36 = vld [vmem:[#allocation28_spill] sm:$0xff] }
 0x3c9   :  { %v8247_v1 = vpop.f32.mrf.mxu2  ;;  %v4442_v24 = vadd.f32 %v8569_v33, %v8309_v53 }
 0x3ca   :  { %v4537_v51 = vmul.f32 %v4473_v19, %v3972_v58 }
 0x3cd   :  { %v8255_v52 = vpop.f32.mrf.mxu3 }
 0x3ce   :  { %v3939_v59 = vpop.f32.mrf.mxu0  ;;  %v4057_v42 = vadd.f32 %v8255_v52, %v8247_v1  ;;  %v4240_v52 = vsel %vm8567_vm1, %v8291_v4, 0.0 }
 0x3cf   :  { %v8257_v7 = vpop.f32.mrf.mxu1 }
 0x3d0   :  { %v3975_v1 = vadd.f32 %v8257_v7, %v8245_v9  ;;  %v4546_v9 = vmul.f32 %v4482_v56, %v4057_v42  ;;  %v4538_v42 = vmul.f32 %v4474_v55, %v4054_v21 }
 0x3d1   :  { %v8284_v0 = vpop.f32.mrf.mxu2 }
 0x3d2   :  { %v4545_v29 = vmul.f32 %v4481_v5, %v3975_v1 }
 0x3d5   :  { %v4059_v10 = vpop.f32.mrf.mxu3 }
 0x3d6   :  { %v4060_v20 = vadd.f32 %v4059_v10, %v8284_v0 }
 0x3d7   :  { %v3977_v3 = vpop.f32.mrf.mxu1 }
 0x3d8   :  { %v3978_v0 = vadd.f32 %v3977_v3, %v8304_v17  ;;  %v4465_v17 = vadd.f32 %v4401_v44, %v4248_v27 }
 0x3d9   :  { %v4021_v14 = vpop.f32.mrf.mxu2 }
 0x3da   :  { %v4553_v7 = vmul.f32 %v4489_v45, %v3978_v0  ;;  %v4529_v3 = vmul.f32 %v4465_v17, %v3969_v48 }
 0x3dd   :  { %v4062_v60 = vpop.f32.mrf.mxu3 }
 0x3de   :  { %v4063_v32 = vadd.f32 %v4062_v60, %v4021_v14  ;;  %v4441_v14 = vadd.f32 %v4377_v43, %v4224_v6 }
 0x3df   :  { %v3980_v38 = vpop.f32.mrf.mxu1 }
 0x3e0   :  { %v3981_v10 = vadd.f32 %v3980_v38, %v3939_v59  ;;  %v4562_v11 = vmul.f32 %v4498_v15, %v4063_v32  ;;  %v4554_v38 = vmul.f32 %v4490_v23, %v4060_v20  ;;  %v4051_v15 = vadd.f32 %v8233_v47, %v8231_v54 }
 0x3e1   :  { %v4232_v54 = vsel %vm4151_vm6, %v8291_v4, 0.0  ;;  %v4048_v47 = vadd.f32 %v8225_v39, %v8223_v26  ;;  %v4450_v26 = vadd.f32 %v8324_v35, %v8319_v28  ;;  %v4457_v39 = vadd.f32 %v4393_v30, %v4240_v52  ;;  %v8570_v35 = vld [vmem:[#allocation29_spill] sm:$0xff]  ;;  %v8572_v4 = vld [vmem:[#allocation27_spill] sm:$0xff] }
 0x3e2   :  { %v4561_v59 = vmul.f32 %v4497_v8, %v3981_v10  ;;  %4716 = vmatpush.msrb.mxu3 %v4562_v11  ;;  %v4530_v12 = vmul.f32 %v4466_v37, %v4051_v15  ;;  %v4449_v28 = vadd.f32 %v4385_v25, %v4232_v54  ;;  %v3963_v49 = vadd.f32 %v8571_v50, %v8570_v35 }
 0x3e3   :  { %v4522_v22 = vmul.f32 %v4458_v63, %v4048_v47  ;;  %v4514_v46 = vmul.f32 %v4450_v26, %v4045_v62  ;;  %v4521_v2 = vmul.f32 %v4457_v39, %v3966_v41  ;;  %v4506_v16 = vmul.f32 %v4442_v24, %v8572_v4 }
 0x3e4   :  { %4696 = vmatpush.msrb.mxu2 %v4561_v59  ;;  %4717 = vmatpush.msrb.mxu3 %v4554_v38  ;;  %v4513_v18 = vmul.f32 %v4449_v28, %v3963_v49  ;;  %v4505_v53 = vmul.f32 %v4441_v14, %v8573_v36  ;;  %vm4740_vm6 = vcmask 1043456  }
 0x3e6   :  { %4697 = vmatpush.msrb.mxu2 %v4553_v7  ;;  %4718 = vmatpush.msrb.mxu3 %v4546_v9 }
 0x3e8   :  { %4698 = vmatpush.msrb.mxu2 %v4545_v29  ;;  %4719 = vmatpush.msrb.mxu3 %v4538_v42 }
 0x3ea   :  { %4699 = vmatpush.msrb.mxu2 %v4537_v51  ;;  %4720 = vmatpush.msrb.mxu3 %v4530_v12 }
 0x3ec   :  { %4700 = vmatpush.msrb.mxu2 %v4529_v3  ;;  %4721 = vmatpush.msrb.mxu3 %v4522_v22 }
 0x3ee   :  { %4701 = vmatpush.msrb.mxu2 %v4521_v2  ;;  %4722 = vmatpush.msrb.mxu3 %v4514_v46 }
 0x3f0   :  { %4702 = vmatpush.msrb.mxu2 %v4513_v18  ;;  %4723 = vmatpush.msrb.mxu3 %v4506_v16 }
 0x3f1   :  { %4791 = vmatmul.msk.f32.vlgmr.msrb.gmra.mxu3 %vm4564_vm3, %v8574_v57 }
 0x3f2   :  { %4703 = vmatpush.msrb.mxu2 %v4505_v53 }
 0x3f3   :  { %4790 = vmatmul.msk.f32.vlgmr.msrb.gmra.mxu2 %vm4564_vm3, %v8574_v57 }
 0x400   :  { %v4605_v40 = vpop.f32.mrf.mxu1 }
 0x401   :  { %v4585_v61 = vpop.f32.mrf.mxu0  ;;  %v4736_v31 = vrot.slane %v4605_v40, 4 }
 0x403   :  { %v4741_v60 = vsel %vm4740_vm6, %v4585_v61, %v4736_v31 }
 0x404   :  { %4749 = vst [vmem:[#allocation14] sm:$0xff] %v4741_v60 }
 0x405   :  { %v4645_v20 = vpop.f32.mrf.mxu3  ;;  %v4625_v23 = vpop.f32.mrf.mxu2 }
 0x406   :  { %v4737_v8 = vrot.slane %v4645_v20, 4 }
 0x408   :  { %v4742_v32 = vsel %vm4740_vm6, %v4625_v23, %v4737_v8 }
 0x409   :  { %4750 = vst [vmem:[#allocation14 + $0x8] sm:$0xff] %v4742_v32 }
 0x40d   :  { %v4665_v34 = vpop.f32.mrf.mxu0 }
 0x414   :  { %v4685_v13 = vpop.f32.mrf.mxu1 }
 0x415   :  { %v4738_v56 = vrot.slane %v4685_v13, 4 }
 0x417   :  { %v4743_v45 = vsel %vm4740_vm6, %v4665_v34, %v4738_v56 }
 0x418   :  { %4751 = vst [vmem:[#allocation14 + $0x10] sm:$0xff] %v4743_v45 }
 0x474   :  { %v4725_v0 = vpop.f32.mrf.mxu3 }
 0x475   :  { %v4739_v10 = vrot.slane %v4725_v0, 4 }
 0x476   :  { %v4705_v11 = vpop.f32.mrf.mxu2 }
 0x477   :  { %v4744_v27 = vsel %vm4740_vm6, %v4705_v11, %v4739_v10 }
 0x478   :  { %4752 = vst [vmem:[#allocation14 + $0x18] sm:$0xff] %v4744_v27 }
 0x479   :  { %4763 = dma.vmem_to_hbm [thread:$0]  %s4759_s12, 512, %s4761_s3, [#allocation4]  }
 0x47a   :  { %5012 = dma.done.wait [#allocation4], 512  }
 0x47b   :  { %5013 = vsyncadd [#allocation4], 4294966784 }
 0x47c   :  { %4768 = vsyncpa [#allocation3], 1 }
 0x47d   :  { %4769 = vsyncpa [#allocation10], 1 }
 0x47e   :  { %4770 = vsyncpa [#allocation13], 1 }
 0x47f   :  { %4771 = vsyncpa [#allocation4], 1 }
 0x480   :  { %4772 = vsyncpa [#allocation5], 1 }
 0x481   :  { %4773 = vsyncpa [#allocation7], 1 }

</bundles_post_ra>
